<compile_context>
chip_gen: v7x
topology: tpu7x:2x2x1
jax: 0.10.0
libtpu: 0.0.40
codegen_flags: <defaults>
</compile_context>

<pallas_src>
import math
import functools

import jax
import jax.numpy as jnp
from jax import lax
from jax.experimental import pallas as pl
from jax.experimental.pallas import tpu as pltpu

NEG_BIG = -1e30  # finite stand-in for -inf in the causal mask


# ----------------------------- in-kernel helpers ---------------------------

def _layernorm(x, g, b, eps=1e-5):
    mu = jnp.mean(x, axis=-1, keepdims=True)
    xc = x - mu
    var = jnp.mean(xc * xc, axis=-1, keepdims=True)
    return xc * lax.rsqrt(var + eps) * g + b


def _erf(x):
    # Abramowitz & Stegun 7.1.26 rational approximation (|err| < 1.5e-7);
    # reciprocal goes to the EUP slot (approx).
    ax = jnp.abs(x)
    t = pl.reciprocal(1.0 + 0.3275911 * ax, approx=True)
    poly = ((((1.061405429 * t - 1.453152027) * t + 1.421413741) * t
             - 0.284496736) * t + 0.254829592) * t
    r = 1.0 - poly * jnp.exp(-ax * ax)
    return jnp.where(x >= 0.0, r, -r)


def _gelu(x):
    # matches F.gelu default (erf-based) up to the approximations noted above
    return 0.5 * x * (1.0 + _erf(x * 0.7071067811865476))


def _apply_act(y, act):
    if act == "relu":
        return jnp.maximum(y, 0.0)
    if act == "tanh":
        return jnp.tanh(y)
    return y


# ------------------------ generic tiled matmul kernel -----------------------

def _mm_kernel(x_ref, w_ref, b_ref, o_ref, *, act):
    y = jnp.dot(x_ref[...], w_ref[...], preferred_element_type=jnp.float32)
    o_ref[...] = _apply_act(y + b_ref[...], act).astype(o_ref.dtype)


def _choose_bm(M, bm_max=1024):
    """Largest multiple-of-8 divisor of M that is <= bm_max and leaves at
    least 2 grid blocks when M allows it (so the 'parallel' grid axis can be
    sharded across v7x's two TensorCores)."""
    if M % 8 == 0:
        if M <= 8:
            return M, M
        cap = max(8, (min(bm_max, M // 2) // 8) * 8)
        bm = cap
        while bm >= 8:
            if M % bm == 0:
                return bm, M
            bm -= 8
        return 8, M
    # fall back: pad M up to a multiple of 8 (never hit for this model's shapes)
    Mp = ((M + 7) // 8) * 8
    if Mp <= bm_max:
        return Mp, Mp
    bm = (bm_max // 8) * 8
    while Mp % bm:
        bm -= 8
    return bm, Mp


def pallas_linear(x, w, b, act="none", out_dtype=jnp.float32, bm_max=1024):
    """y = act(x @ w + b).  bf16 operands on the MXU, f32 accumulate,
    out_dtype store (bf16 for conv-chain intermediates -> halves HBM traffic).
    TODO(synk): add K/N tiling with a VMEM accumulator before scaling widths."""
    M, K = x.shape
    N = w.shape[1]
    bm, Mp = _choose_bm(M, bm_max)
    xb = x.astype(jnp.bfloat16)
    if Mp != M:
        xb = jnp.pad(xb, ((0, Mp - M), (0, 0)))
    out = pl.pallas_call(
        functools.partial(_mm_kernel, act=act),
        out_shape=jax.ShapeDtypeStruct((Mp, N), out_dtype),
        grid=(Mp // bm,),
        in_specs=[
            pl.BlockSpec((bm, K), lambda i: (i, 0)),
            pl.BlockSpec((K, N), lambda i: (0, 0)),
            pl.BlockSpec((1, N), lambda i: (0, 0)),
        ],
        out_specs=pl.BlockSpec((bm, N), lambda i: (i, 0)),
        compiler_params=pltpu.CompilerParams(dimension_semantics=("parallel",)),
    )(xb, w.astype(jnp.bfloat16), b.reshape(1, N).astype(jnp.float32))
    return out if Mp == M else out[:M]


# -------------------- fused transformer block (one kernel) ------------------

def _block_kernel(*refs, nh, t_valid, last):
    if last:
        (x_ref, ln1g, ln1b, wqkv, bqkv, wp, bp, ln2g, ln2b,
         w1, b1, w2, b2, lnfg, lnfb, hw, logits_ref, att_ref) = refs
    else:
        (x_ref, ln1g, ln1b, wqkv, bqkv, wp, bp, ln2g, ln2b,
         w1, b1, w2, b2, xo_ref) = refs

    bf = jnp.bfloat16
    x = x_ref[0]                              # (Tp, C) f32, this batch element
    Tp, C = x.shape
    Dh = C // nh

    # ---- LN1 + fused QKV projection (1/sqrt(Dh) pre-folded into Q columns) ----
    h = _layernorm(x, ln1g[...], ln1b[...])
    qkv = jnp.dot(h.astype(bf), wqkv[...],
                  preferred_element_type=jnp.float32) + bqkv[...]   # (Tp, 3C)

    # ---- batched multi-head causal attention (single einsum per stage) ----
    # Head split uses static lane slices + leading-dim stack (Mosaic-safe);
    # score/context matmuls and softmax are nh-batched, not per-head loops.
    def heads(lo):
        return jnp.stack(
            [qkv[:, lo + hh * Dh: lo + (hh + 1) * Dh] for hh in range(nh)],
            axis=0).astype(bf)                # (nh, Tp, Dh)
    q, k, v = heads(0), heads(C), heads(2 * C)

    rows = lax.broadcasted_iota(jnp.int32, (Tp, Tp), 0)
    cols = lax.broadcasted_iota(jnp.int32, (Tp, Tp), 1)
    valid = (cols <= rows) & (cols < t_valid)   # causal + explicit key padding mask

    s = jnp.einsum("hqd,hkd->hqk", q, k, preferred_element_type=jnp.float32)
    s = jnp.where(valid[None], s, NEG_BIG)
    m = jnp.max(s, axis=-1, keepdims=True)
    p = jnp.exp(s - m)
    att = p * pl.reciprocal(jnp.sum(p, axis=-1, keepdims=True), approx=True)
    if last:
        att_ref[0] = att                      # directly in (B, nh, T, T) layout

    y = jnp.einsum("hqk,hkd->hqd", att.astype(bf), v,
                   preferred_element_type=jnp.float32)              # (nh, Tp, Dh)
    y = jnp.concatenate([y[hh] for hh in range(nh)], axis=-1)       # (Tp, C)

    # ---- attention output projection + residual ----
    x = x + jnp.dot(y.astype(bf), wp[...],
                    preferred_element_type=jnp.float32) + bp[...]

    # ---- LN2 + MLP (fc1 -> erf-GELU -> fc2) + residual ----
    h = _layernorm(x, ln2g[...], ln2b[...])
    h1 = _gelu(jnp.dot(h.astype(bf), w1[...],
                       preferred_element_type=jnp.float32) + b1[...])
    x = x + jnp.dot(h1.astype(bf), w2[...],
                    preferred_element_type=jnp.float32) + b2[...]

    if last:
        # fused final LayerNorm + lm head (no x writeback for the last block)
        hf = _layernorm(x, lnfg[...], lnfb[...])
        logits_ref[0] = jnp.dot(hf.astype(bf), hw[...],
                                preferred_element_type=jnp.float32)
    else:
        xo_ref[0] = x


def pallas_block(x, lp, nh, t_valid, last, lnf=None):
    """One fused transformer block over a grid=(B,) 'parallel' axis.
    Non-last blocks return x_out (B,Tp,C); the last block returns
    (logits (B,Tp,V), att (B,nh,Tp,Tp)) with ln_f + head fused in."""
    B, Tp, C = x.shape

    def wspec(shape):
        return pl.BlockSpec(shape, lambda b, _s=shape: (0,) * len(_s))

    in_specs = [
        pl.BlockSpec((1, Tp, C), lambda b: (b, 0, 0)),
        wspec((1, C)), wspec((1, C)),                 # ln1
        wspec((C, 3 * C)), wspec((1, 3 * C)),         # fused qkv
        wspec((C, C)), wspec((1, C)),                 # out proj
        wspec((1, C)), wspec((1, C)),                 # ln2
        wspec((C, 4 * C)), wspec((1, 4 * C)),         # fc1
        wspec((4 * C, C)), wspec((1, C)),             # fc2
    ]
    args = [x, lp["ln1_g"], lp["ln1_b"], lp["wqkv"], lp["bqkv"],
            lp["wp"], lp["bp"], lp["ln2_g"], lp["ln2_b"],
            lp["w1"], lp["b1"], lp["w2"], lp["b2"]]

    if last:
        lnf_g, lnf_b, head_w = lnf
        V = head_w.shape[1]
        in_specs += [wspec((1, C)), wspec((1, C)), wspec((C, V))]
        args += [lnf_g, lnf_b, head_w]
        out_shape = (jax.ShapeDtypeStruct((B, Tp, V), jnp.float32),
                     jax.ShapeDtypeStruct((B, nh, Tp, Tp), jnp.float32))
        out_specs = (pl.BlockSpec((1, Tp, V), lambda b: (b, 0, 0)),
                     pl.BlockSpec((1, nh, Tp, Tp), lambda b: (b, 0, 0, 0)))
    else:
        out_shape = jax.ShapeDtypeStruct((B, Tp, C), jnp.float32)
        out_specs = pl.BlockSpec((1, Tp, C), lambda b: (b, 0, 0))

    return pl.pallas_call(
        functools.partial(_block_kernel, nh=nh, t_valid=t_valid, last=last),
        grid=(B,),
        in_specs=in_specs,
        out_specs=out_specs,
        out_shape=out_shape,
        compiler_params=pltpu.CompilerParams(dimension_semantics=("parallel",)),
    )(*args)


# ------------------------- conv state encoder (NHWC) ------------------------

def conv2d_relu_nhwc(x_nhwc, wmat, b, kh, kw, stride, cout):
    """Valid conv + ReLU via NHWC im2col + Pallas bf16 matmul (bf16 output).
    TODO(synk): build patches inside the kernel with strided ref loads so the
    im2col tensor never round-trips HBM."""
    N, H, W, Cin = x_nhwc.shape
    Ho = (H - kh) // stride + 1
    Wo = (W - kw) // stride + 1
    cols = []
    for i in range(kh):
        for j in range(kw):
            cols.append(x_nhwc[:, i:i + stride * Ho:stride,
                               j:j + stride * Wo:stride, :])
    p = jnp.concatenate(cols, axis=-1).reshape(N * Ho * Wo, kh * kw * Cin)
    y = pallas_linear(p, wmat, b, act="relu", out_dtype=jnp.bfloat16)
    return y.reshape(N, Ho, Wo, cout)


def state_encoder(imgs_nchw, p):
    x = imgs_nchw.transpose(0, 2, 3, 1).astype(jnp.bfloat16)        # NHWC once
    x = conv2d_relu_nhwc(x, p["c1_wm"], p["c1_b"], 8, 8, 4, 32)     # (N,20,20,32)
    x = conv2d_relu_nhwc(x, p["c2_wm"], p["c2_b"], 4, 4, 2, 64)     # (N,9,9,64)
    x = conv2d_relu_nhwc(x, p["c3_wm"], p["c3_b"], 3, 3, 1, 64)     # (N,7,7,64)
    x = x.reshape(x.shape[0], -1)                                   # (N,3136) (h,w,c)-major
    # se_wm rows were permuted to (h,w,c) order at prep time -> no transpose here
    return pallas_linear(x, p["se_wm"], p["se_b"], act="tanh")      # (N, C) f32


# ------------------------------- full forward --------------------------------

def gpt_forward(params, states, actions, rtgs, timesteps, cfg):
    """model_type='reward_conditioned', actions is not None, targets is None."""
    B, T = states.shape[0], states.shape[1]
    C, nh = cfg["n_embd"], cfg["n_head"]
    Ttok = 3 * T - 1                                   # targets is None
    Tp = max(8, ((Ttok + 7) // 8) * 8)                 # pad token axis ONCE

    imgs = states.reshape(-1, 4, 84, 84).astype(jnp.float32)
    state_emb = state_encoder(imgs, params).reshape(B, T, C)

    rtg_emb = pallas_linear(rtgs.astype(jnp.float32).reshape(B * T, 1),
                            params["ret_wm"], params["ret_b"],
                            act="tanh").reshape(B, T, C)
    act_idx = actions.astype(jnp.int32).squeeze(-1)                 # (B,T)
    act_emb = jnp.tanh(params["act_emb"][act_idx])                  # embedding gather (glue)

    # token interleave: [rtg, state, action, ..., rtg, state]; padded rows stay 0
    tok = jnp.zeros((B, Tp, C), jnp.float32)
    tok = tok.at[:, 0:Ttok:3, :].set(rtg_emb)
    tok = tok.at[:, 1:Ttok:3, :].set(state_emb)
    tok = tok.at[:, 2:Ttok:3, :].set(act_emb[:, -T + 1:, :])

    # positional embeddings: global_pos_emb gather at timestep + learned pos_emb
    g = params["global_pos_emb"][0]                                 # (max_ts+1, C)
    pe = g[timesteps[:, 0, 0].astype(jnp.int32)][:, None, :] + params["pos_emb"][:, :Ttok, :]
    x = tok.at[:, :Ttok, :].add(pe)                                 # embd dropout = identity

    n_blocks = len(params["blocks"])
    att_last = None
    logits_full = None
    for li, lp in enumerate(params["blocks"]):
        if li == n_blocks - 1:
            logits_full, att_last = pallas_block(
                x, lp, nh, Ttok, last=True,
                lnf=(params["lnf_g"], params["lnf_b"], params["head_w"]))
        else:
            x = pallas_block(x, lp, nh, Ttok, last=False)

    logits = logits_full[:, 1:Ttok:3, :]       # reward_conditioned & actions is not None
    att_last = att_last[:, :, :Ttok, :Ttok]
    return logits, None, att_last              # loss is None (targets is None)


# -------------------------------- parameters ---------------------------------

def init_params(key, cfg):
    """PyTorch-layout parameters (weights as the nn.Module would hold them)."""
    C, V, L = cfg["n_embd"], cfg["vocab_size"], cfg["n_layer"]
    keys = iter(jax.random.split(key, 256))

    def nrm(shape, std=0.02):
        return (std * jax.random.normal(next(keys), shape)).astype(jnp.float32)

    params = dict(
        tok_emb=nrm((V, C)),                       # present in module, unused in this forward
        # NOTE: PyTorch __init__ zeros these; small random used here to exercise the path.
        pos_emb=nrm((1, cfg["block_size"], C)),
        global_pos_emb=nrm((1, cfg["max_timestep"] + 1, C)),
        lnf_g=jnp.ones((C,), jnp.float32), lnf_b=jnp.zeros((C,), jnp.float32),
        head_w=nrm((C, V)),                        # head has no bias
        # state encoder (Conv2d weights: deterministic normal; PyTorch uses kaiming-uniform)
        c1_w=nrm((32, 4, 8, 8)), c1_b=jnp.zeros((32,), jnp.float32),
        c2_w=nrm((64, 32, 4, 4)), c2_b=jnp.zeros((64,), jnp.float32),
        c3_w=nrm((64, 64, 3, 3)), c3_b=jnp.zeros((64,), jnp.float32),
        se_w=nrm((3136, C)), se_b=jnp.zeros((C,), jnp.float32),
        ret_w=nrm((1, C)), ret_b=jnp.zeros((C,), jnp.float32),
        act_emb=nrm((V, C)),
    )
    blocks = []
    for _ in range(L):
        blocks.append(dict(
            ln1_g=jnp.ones((C,), jnp.float32), ln1_b=jnp.zeros((C,), jnp.float32),
            ln2_g=jnp.ones((C,), jnp.float32), ln2_b=jnp.zeros((C,), jnp.float32),
            wqkv=nrm((C, 3 * C)), bqkv=jnp.zeros((3 * C,), jnp.float32),   # [Wq | Wk | Wv]
            wp=nrm((C, C)), bp=jnp.zeros((C,), jnp.float32),
            w1=nrm((C, 4 * C)), b1=jnp.zeros((4 * C,), jnp.float32),
            w2=nrm((4 * C, C)), b2=jnp.zeros((C,), jnp.float32),
        ))
    params["blocks"] = blocks
    return params


def prepare_params(params, cfg):
    """One-time prep: bf16 weight casts, attention scale folded into Q columns,
    conv weights re-laid-out for NHWC im2col, se-linear rows permuted to the
    (h,w,c) flatten order, biases/LN params reshaped for lane broadcast."""
    C, nh = cfg["n_embd"], cfg["n_head"]
    bf = jnp.bfloat16
    qscale = 1.0 / math.sqrt(C // nh)

    def conv_wmat(w):            # torch (Cout,Cin,kh,kw) -> (kh*kw*Cin, Cout) bf16
        co, ci, kh, kw = w.shape
        return w.transpose(2, 3, 1, 0).reshape(kh * kw * ci, co).astype(bf)

    p = dict(
        c1_wm=conv_wmat(params["c1_w"]), c1_b=params["c1_b"],
        c2_wm=conv_wmat(params["c2_w"]), c2_b=params["c2_b"],
        c3_wm=conv_wmat(params["c3_w"]), c3_b=params["c3_b"],
        # torch Flatten is (c,h,w)-major; the NHWC encoder flattens (h,w,c)-major,
        # so permute the linear's input rows once here (no activation transpose).
        se_wm=params["se_w"].reshape(64, 7, 7, C).transpose(1, 2, 0, 3)
                            .reshape(64 * 7 * 7, C).astype(bf),
        se_b=params["se_b"],
        ret_wm=params["ret_w"].astype(bf), ret_b=params["ret_b"],
        act_emb=params["act_emb"],
        pos_emb=params["pos_emb"], global_pos_emb=params["global_pos_emb"],
        lnf_g=params["lnf_g"].reshape(1, C), lnf_b=params["lnf_b"].reshape(1, C),
        head_w=params["head_w"].astype(bf),
    )
    blocks = []
    for lp in params["blocks"]:
        wqkv = lp["wqkv"].at[:, :C].multiply(qscale)     # fold 1/sqrt(Dh) into Q
        bqkv = lp["bqkv"].at[:C].multiply(qscale)
        blocks.append(dict(
            ln1_g=lp["ln1_g"].reshape(1, C), ln1_b=lp["ln1_b"].reshape(1, C),
            ln2_g=lp["ln2_g"].reshape(1, C), ln2_b=lp["ln2_b"].reshape(1, C),
            wqkv=wqkv.astype(bf), bqkv=bqkv.reshape(1, 3 * C),
            wp=lp["wp"].astype(bf), bp=lp["bp"].reshape(1, C),
            w1=lp["w1"].astype(bf), b1=lp["b1"].reshape(1, 4 * C),
            w2=lp["w2"].astype(bf), b2=lp["b2"].reshape(1, C),
        ))
    p["blocks"] = blocks
    return p


# ----------------------------------- main ------------------------------------

if __name__ == "__main__":
    cfg = dict(vocab_size=16, n_embd=32, n_head=4, n_layer=2,
               block_size=16, max_timestep=20, model_type="reward_conditioned")
    B, T = 2, 4   # 2 trajectories, 4 timesteps each -> 11 interleaved tokens

    key = jax.random.PRNGKey(0)
    kp, ks, ka, kr, kt = jax.random.split(key, 5)
    params = prepare_params(init_params(kp, cfg), cfg)   # one-time bf16/layout prep

    states = jax.random.normal(ks, (B, T, 4 * 84 * 84), jnp.float32)
    actions = jax.random.randint(ka, (B, T, 1), 0, cfg["vocab_size"])
    rtgs = jax.random.uniform(kr, (B, T, 1), jnp.float32, 0.0, 10.0)
    timesteps = jax.random.randint(kt, (B, 1, 1), 0, cfg["max_timestep"] + 1)

    fwd = jax.jit(functools.partial(gpt_forward, cfg=cfg))
    logits, loss, att = fwd(params, states, actions, rtgs, timesteps)
    (logits, att) = jax.block_until_ready((logits, att))

    assert logits.shape == (B, T, cfg["vocab_size"]), logits.shape
    assert att.shape == (B, cfg["n_head"], 3 * T - 1, 3 * T - 1), att.shape
    assert loss is None
    assert bool(jnp.all(jnp.isfinite(logits))) and bool(jnp.all(jnp.isfinite(att)))
    print("KERNEL_OK")
</pallas_src>

<mosaic_0001>
module attributes {stable_mosaic.version = 11 : i64} {
  func.func @_mm_kernel(%arg0: i32, %arg1: memref<800x256xbf16, #tpu.memory_space<vmem>>, %arg2: memref<256x32xbf16, #tpu.memory_space<vmem>>, %arg3: memref<1x32xf32, #tpu.memory_space<vmem>>, %arg4: memref<800x32xbf16, #tpu.memory_space<vmem>>) attributes {dimension_semantics = [#tpu.dimension_semantics<parallel>], iteration_bounds = array<i64: 4>, scalar_prefetch = 0 : i64, scratch_operands = 0 : i64, tpu.core_type = #tpu.core_type<tc>, window_params = [{transform_indices = @transform_0, window_bounds = array<i64: 800, 256>}, {pipeline_mode = #tpu.pipeline_mode<synchronous>, transform_indices = @transform_1, window_bounds = array<i64: 256, 32>}, {pipeline_mode = #tpu.pipeline_mode<synchronous>, transform_indices = @transform_2, window_bounds = array<i64: 1, 32>}, {transform_indices = @transform_3, window_bounds = array<i64: 800, 32>}]} {
    %c0 = arith.constant 0 : index
    %c0_0 = arith.constant 0 : index
    %0 = vector.load %arg1[%c0, %c0_0] : memref<800x256xbf16, #tpu.memory_space<vmem>>, vector<800x256xbf16>
    %c0_1 = arith.constant 0 : index
    %c0_2 = arith.constant 0 : index
    %1 = vector.load %arg2[%c0_1, %c0_2] : memref<256x32xbf16, #tpu.memory_space<vmem>>, vector<256x32xbf16>
    %cst = arith.constant dense<0.000000e+00> : vector<800x32xf32>
    %2 = tpu.matmul %0, %1, %cst {dimension_numbers = #tpu.dot_dimension_numbers<[1], [0], [0], [1], [0, 0, 1, 1], [], []>} : vector<800x256xbf16>, vector<256x32xbf16>, vector<800x32xf32> -> vector<800x32xf32>
    %c0_3 = arith.constant 0 : index
    %c0_4 = arith.constant 0 : index
    %3 = vector.load %arg3[%c0_3, %c0_4] : memref<1x32xf32, #tpu.memory_space<vmem>>, vector<1x32xf32>
    %4 = vector.broadcast %3 : vector<1x32xf32> to vector<800x32xf32>
    %5 = arith.addf %2, %4 : vector<800x32xf32>
    %cst_5 = arith.constant 0.000000e+00 : f32
    %6 = vector.broadcast %cst_5 : f32 to vector<800x32xf32>
    %7 = arith.maximumf %5, %6 : vector<800x32xf32>
    %8 = arith.truncf %7 : vector<800x32xf32> to vector<800x32xbf16>
    %c0_6 = arith.constant 0 : index
    %c0_7 = arith.constant 0 : index
    %9 = vector.load %arg4[%c0_6, %c0_7] : memref<800x32xbf16, #tpu.memory_space<vmem>>, vector<800x32xbf16>
    tpu.vector_store %arg4[%c0_6, %c0_7], %8 {strides = array<i32>} : memref<800x32xbf16, #tpu.memory_space<vmem>>, vector<800x32xbf16>,
    return
  }
  func.func @transform_0(%arg0: i32) -> (i32, i32) {
    %c0_i32 = arith.constant 0 : i32
    %c0_i32_0 = arith.constant 0 : i32
    return %arg0, %c0_i32 : i32, i32
  }
  func.func @transform_1(%arg0: i32) -> (i32, i32) {
    %c0_i32 = arith.constant 0 : i32
    %c0_i32_0 = arith.constant 0 : i32
    %c0_i32_1 = arith.constant 0 : i32
    return %c0_i32, %c0_i32_0 : i32, i32
  }
  func.func @transform_2(%arg0: i32) -> (i32, i32) {
    %c0_i32 = arith.constant 0 : i32
    %c0_i32_0 = arith.constant 0 : i32
    %c0_i32_1 = arith.constant 0 : i32
    return %c0_i32, %c0_i32_0 : i32, i32
  }
  func.func @transform_3(%arg0: i32) -> (i32, i32) {
    %c0_i32 = arith.constant 0 : i32
    %c0_i32_0 = arith.constant 0 : i32
    return %arg0, %c0_i32 : i32, i32
  }
}

module attributes {stable_mosaic.version = 11 : i64} {
  func.func @_mm_kernel(%arg0: i32, %arg1: memref<216x512xbf16, #tpu.memory_space<vmem>>, %arg2: memref<512x64xbf16, #tpu.memory_space<vmem>>, %arg3: memref<1x64xf32, #tpu.memory_space<vmem>>, %arg4: memref<216x64xbf16, #tpu.memory_space<vmem>>) attributes {dimension_semantics = [#tpu.dimension_semantics<parallel>], iteration_bounds = array<i64: 3>, scalar_prefetch = 0 : i64, scratch_operands = 0 : i64, tpu.core_type = #tpu.core_type<tc>, window_params = [{transform_indices = @transform_0, window_bounds = array<i64: 216, 512>}, {pipeline_mode = #tpu.pipeline_mode<synchronous>, transform_indices = @transform_1, window_bounds = array<i64: 512, 64>}, {pipeline_mode = #tpu.pipeline_mode<synchronous>, transform_indices = @transform_2, window_bounds = array<i64: 1, 64>}, {transform_indices = @transform_3, window_bounds = array<i64: 216, 64>}]} {
    %c0 = arith.constant 0 : index
    %c0_0 = arith.constant 0 : index
    %0 = vector.load %arg1[%c0, %c0_0] : memref<216x512xbf16, #tpu.memory_space<vmem>>, vector<216x512xbf16>
    %c0_1 = arith.constant 0 : index
    %c0_2 = arith.constant 0 : index
    %1 = vector.load %arg2[%c0_1, %c0_2] : memref<512x64xbf16, #tpu.memory_space<vmem>>, vector<512x64xbf16>
    %cst = arith.constant dense<0.000000e+00> : vector<216x64xf32>
    %2 = tpu.matmul %0, %1, %cst {dimension_numbers = #tpu.dot_dimension_numbers<[1], [0], [0], [1], [0, 0, 1, 1], [], []>} : vector<216x512xbf16>, vector<512x64xbf16>, vector<216x64xf32> -> vector<216x64xf32>
    %c0_3 = arith.constant 0 : index
    %c0_4 = arith.constant 0 : index
    %3 = vector.load %arg3[%c0_3, %c0_4] : memref<1x64xf32, #tpu.memory_space<vmem>>, vector<1x64xf32>
    %4 = vector.broadcast %3 : vector<1x64xf32> to vector<216x64xf32>
    %5 = arith.addf %2, %4 : vector<216x64xf32>
    %cst_5 = arith.constant 0.000000e+00 : f32
    %6 = vector.broadcast %cst_5 : f32 to vector<216x64xf32>
    %7 = arith.maximumf %5, %6 : vector<216x64xf32>
    %8 = arith.truncf %7 : vector<216x64xf32> to vector<216x64xbf16>
    %c0_6 = arith.constant 0 : index
    %c0_7 = arith.constant 0 : index
    %9 = vector.load %arg4[%c0_6, %c0_7] : memref<216x64xbf16, #tpu.memory_space<vmem>>, vector<216x64xbf16>
    tpu.vector_store %arg4[%c0_6, %c0_7], %8 {strides = array<i32>} : memref<216x64xbf16, #tpu.memory_space<vmem>>, vector<216x64xbf16>,
    return
  }
  func.func @transform_0(%arg0: i32) -> (i32, i32) {
    %c0_i32 = arith.constant 0 : i32
    %c0_i32_0 = arith.constant 0 : i32
    return %arg0, %c0_i32 : i32, i32
  }
  func.func @transform_1(%arg0: i32) -> (i32, i32) {
    %c0_i32 = arith.constant 0 : i32
    %c0_i32_0 = arith.constant 0 : i32
    %c0_i32_1 = arith.constant 0 : i32
    return %c0_i32, %c0_i32_0 : i32, i32
  }
  func.func @transform_2(%arg0: i32) -> (i32, i32) {
    %c0_i32 = arith.constant 0 : i32
    %c0_i32_0 = arith.constant 0 : i32
    %c0_i32_1 = arith.constant 0 : i32
    return %c0_i32, %c0_i32_0 : i32, i32
  }
  func.func @transform_3(%arg0: i32) -> (i32, i32) {
    %c0_i32 = arith.constant 0 : i32
    %c0_i32_0 = arith.constant 0 : i32
    return %arg0, %c0_i32 : i32, i32
  }
}

module attributes {stable_mosaic.version = 11 : i64} {
  func.func @_mm_kernel(%arg0: i32, %arg1: memref<56x576xbf16, #tpu.memory_space<vmem>>, %arg2: memref<576x64xbf16, #tpu.memory_space<vmem>>, %arg3: memref<1x64xf32, #tpu.memory_space<vmem>>, %arg4: memref<56x64xbf16, #tpu.memory_space<vmem>>) attributes {dimension_semantics = [#tpu.dimension_semantics<parallel>], iteration_bounds = array<i64: 7>, scalar_prefetch = 0 : i64, scratch_operands = 0 : i64, tpu.core_type = #tpu.core_type<tc>, window_params = [{transform_indices = @transform_0, window_bounds = array<i64: 56, 576>}, {pipeline_mode = #tpu.pipeline_mode<synchronous>, transform_indices = @transform_1, window_bounds = array<i64: 576, 64>}, {pipeline_mode = #tpu.pipeline_mode<synchronous>, transform_indices = @transform_2, window_bounds = array<i64: 1, 64>}, {transform_indices = @transform_3, window_bounds = array<i64: 56, 64>}]} {
    %c0 = arith.constant 0 : index
    %c0_0 = arith.constant 0 : index
    %0 = vector.load %arg1[%c0, %c0_0] : memref<56x576xbf16, #tpu.memory_space<vmem>>, vector<56x576xbf16>
    %c0_1 = arith.constant 0 : index
    %c0_2 = arith.constant 0 : index
    %1 = vector.load %arg2[%c0_1, %c0_2] : memref<576x64xbf16, #tpu.memory_space<vmem>>, vector<576x64xbf16>
    %cst = arith.constant dense<0.000000e+00> : vector<56x64xf32>
    %2 = tpu.matmul %0, %1, %cst {dimension_numbers = #tpu.dot_dimension_numbers<[1], [0], [0], [1], [0, 0, 1, 1], [], []>} : vector<56x576xbf16>, vector<576x64xbf16>, vector<56x64xf32> -> vector<56x64xf32>
    %c0_3 = arith.constant 0 : index
    %c0_4 = arith.constant 0 : index
    %3 = vector.load %arg3[%c0_3, %c0_4] : memref<1x64xf32, #tpu.memory_space<vmem>>, vector<1x64xf32>
    %4 = vector.broadcast %3 : vector<1x64xf32> to vector<56x64xf32>
    %5 = arith.addf %2, %4 : vector<56x64xf32>
    %cst_5 = arith.constant 0.000000e+00 : f32
    %6 = vector.broadcast %cst_5 : f32 to vector<56x64xf32>
    %7 = arith.maximumf %5, %6 : vector<56x64xf32>
    %8 = arith.truncf %7 : vector<56x64xf32> to vector<56x64xbf16>
    %c0_6 = arith.constant 0 : index
    %c0_7 = arith.constant 0 : index
    %9 = vector.load %arg4[%c0_6, %c0_7] : memref<56x64xbf16, #tpu.memory_space<vmem>>, vector<56x64xbf16>
    tpu.vector_store %arg4[%c0_6, %c0_7], %8 {strides = array<i32>} : memref<56x64xbf16, #tpu.memory_space<vmem>>, vector<56x64xbf16>,
    return
  }
  func.func @transform_0(%arg0: i32) -> (i32, i32) {
    %c0_i32 = arith.constant 0 : i32
    %c0_i32_0 = arith.constant 0 : i32
    return %arg0, %c0_i32 : i32, i32
  }
  func.func @transform_1(%arg0: i32) -> (i32, i32) {
    %c0_i32 = arith.constant 0 : i32
    %c0_i32_0 = arith.constant 0 : i32
    %c0_i32_1 = arith.constant 0 : i32
    return %c0_i32, %c0_i32_0 : i32, i32
  }
  func.func @transform_2(%arg0: i32) -> (i32, i32) {
    %c0_i32 = arith.constant 0 : i32
    %c0_i32_0 = arith.constant 0 : i32
    %c0_i32_1 = arith.constant 0 : i32
    return %c0_i32, %c0_i32_0 : i32, i32
  }
  func.func @transform_3(%arg0: i32) -> (i32, i32) {
    %c0_i32 = arith.constant 0 : i32
    %c0_i32_0 = arith.constant 0 : i32
    return %arg0, %c0_i32 : i32, i32
  }
}

module attributes {stable_mosaic.version = 11 : i64} {
  func.func @_mm_kernel(%arg0: i32, %arg1: memref<8x3136xbf16, #tpu.memory_space<vmem>>, %arg2: memref<3136x32xbf16, #tpu.memory_space<vmem>>, %arg3: memref<1x32xf32, #tpu.memory_space<vmem>>, %arg4: memref<8x32xf32, #tpu.memory_space<vmem>>) attributes {dimension_semantics = [#tpu.dimension_semantics<parallel>], iteration_bounds = array<i64: 1>, scalar_prefetch = 0 : i64, scratch_operands = 0 : i64, tpu.core_type = #tpu.core_type<tc>, window_params = [{transform_indices = @transform_0, window_bounds = array<i64: 8, 3136>}, {pipeline_mode = #tpu.pipeline_mode<synchronous>, transform_indices = @transform_1, window_bounds = array<i64: 3136, 32>}, {pipeline_mode = #tpu.pipeline_mode<synchronous>, transform_indices = @transform_2, window_bounds = array<i64: 1, 32>}, {transform_indices = @transform_3, window_bounds = array<i64: 8, 32>}]} {
    %c0 = arith.constant 0 : index
    %c0_0 = arith.constant 0 : index
    %0 = vector.load %arg1[%c0, %c0_0] : memref<8x3136xbf16, #tpu.memory_space<vmem>>, vector<8x3136xbf16>
    %c0_1 = arith.constant 0 : index
    %c0_2 = arith.constant 0 : index
    %1 = vector.load %arg2[%c0_1, %c0_2] : memref<3136x32xbf16, #tpu.memory_space<vmem>>, vector<3136x32xbf16>
    %cst = arith.constant dense<0.000000e+00> : vector<8x32xf32>
    %2 = tpu.matmul %0, %1, %cst {dimension_numbers = #tpu.dot_dimension_numbers<[1], [0], [0], [1], [0, 0, 1, 1], [], []>} : vector<8x3136xbf16>, vector<3136x32xbf16>, vector<8x32xf32> -> vector<8x32xf32>
    %c0_3 = arith.constant 0 : index
    %c0_4 = arith.constant 0 : index
    %3 = vector.load %arg3[%c0_3, %c0_4] : memref<1x32xf32, #tpu.memory_space<vmem>>, vector<1x32xf32>
    %4 = vector.broadcast %3 : vector<1x32xf32> to vector<8x32xf32>
    %5 = arith.addf %2, %4 : vector<8x32xf32>
    %6 = math.tanh %5 : vector<8x32xf32>
    %c0_5 = arith.constant 0 : index
    %c0_6 = arith.constant 0 : index
    %7 = vector.load %arg4[%c0_5, %c0_6] : memref<8x32xf32, #tpu.memory_space<vmem>>, vector<8x32xf32>
    tpu.vector_store %arg4[%c0_5, %c0_6], %6 {strides = array<i32>} : memref<8x32xf32, #tpu.memory_space<vmem>>, vector<8x32xf32>,
    return
  }
  func.func @transform_0(%arg0: i32) -> (i32, i32) {
    %c0_i32 = arith.constant 0 : i32
    %c0_i32_0 = arith.constant 0 : i32
    return %arg0, %c0_i32 : i32, i32
  }
  func.func @transform_1(%arg0: i32) -> (i32, i32) {
    %c0_i32 = arith.constant 0 : i32
    %c0_i32_0 = arith.constant 0 : i32
    %c0_i32_1 = arith.constant 0 : i32
    return %c0_i32, %c0_i32_0 : i32, i32
  }
  func.func @transform_2(%arg0: i32) -> (i32, i32) {
    %c0_i32 = arith.constant 0 : i32
    %c0_i32_0 = arith.constant 0 : i32
    %c0_i32_1 = arith.constant 0 : i32
    return %c0_i32, %c0_i32_0 : i32, i32
  }
  func.func @transform_3(%arg0: i32) -> (i32, i32) {
    %c0_i32 = arith.constant 0 : i32
    %c0_i32_0 = arith.constant 0 : i32
    return %arg0, %c0_i32 : i32, i32
  }
}

module attributes {stable_mosaic.version = 11 : i64} {
  func.func @_mm_kernel(%arg0: i32, %arg1: memref<8x1xbf16, #tpu.memory_space<vmem>>, %arg2: memref<1x32xbf16, #tpu.memory_space<vmem>>, %arg3: memref<1x32xf32, #tpu.memory_space<vmem>>, %arg4: memref<8x32xf32, #tpu.memory_space<vmem>>) attributes {dimension_semantics = [#tpu.dimension_semantics<parallel>], iteration_bounds = array<i64: 1>, scalar_prefetch = 0 : i64, scratch_operands = 0 : i64, tpu.core_type = #tpu.core_type<tc>, window_params = [{transform_indices = @transform_0, window_bounds = array<i64: 8, 1>}, {pipeline_mode = #tpu.pipeline_mode<synchronous>, transform_indices = @transform_1, window_bounds = array<i64: 1, 32>}, {pipeline_mode = #tpu.pipeline_mode<synchronous>, transform_indices = @transform_2, window_bounds = array<i64: 1, 32>}, {transform_indices = @transform_3, window_bounds = array<i64: 8, 32>}]} {
    %c0 = arith.constant 0 : index
    %c0_0 = arith.constant 0 : index
    %0 = vector.load %arg1[%c0, %c0_0] : memref<8x1xbf16, #tpu.memory_space<vmem>>, vector<8x1xbf16>
    %c0_1 = arith.constant 0 : index
    %c0_2 = arith.constant 0 : index
    %1 = vector.load %arg2[%c0_1, %c0_2] : memref<1x32xbf16, #tpu.memory_space<vmem>>, vector<1x32xbf16>
    %cst = arith.constant dense<0.000000e+00> : vector<8x32xf32>
    %2 = tpu.matmul %0, %1, %cst {dimension_numbers = #tpu.dot_dimension_numbers<[1], [0], [0], [1], [0, 0, 1, 1], [], []>} : vector<8x1xbf16>, vector<1x32xbf16>, vector<8x32xf32> -> vector<8x32xf32>
    %c0_3 = arith.constant 0 : index
    %c0_4 = arith.constant 0 : index
    %3 = vector.load %arg3[%c0_3, %c0_4] : memref<1x32xf32, #tpu.memory_space<vmem>>, vector<1x32xf32>
    %4 = vector.broadcast %3 : vector<1x32xf32> to vector<8x32xf32>
    %5 = arith.addf %2, %4 : vector<8x32xf32>
    %6 = math.tanh %5 : vector<8x32xf32>
    %c0_5 = arith.constant 0 : index
    %c0_6 = arith.constant 0 : index
    %7 = vector.load %arg4[%c0_5, %c0_6] : memref<8x32xf32, #tpu.memory_space<vmem>>, vector<8x32xf32>
    tpu.vector_store %arg4[%c0_5, %c0_6], %6 {strides = array<i32>} : memref<8x32xf32, #tpu.memory_space<vmem>>, vector<8x32xf32>,
    return
  }
  func.func @transform_0(%arg0: i32) -> (i32, i32) {
    %c0_i32 = arith.constant 0 : i32
    %c0_i32_0 = arith.constant 0 : i32
    return %arg0, %c0_i32 : i32, i32
  }
  func.func @transform_1(%arg0: i32) -> (i32, i32) {
    %c0_i32 = arith.constant 0 : i32
    %c0_i32_0 = arith.constant 0 : i32
    %c0_i32_1 = arith.constant 0 : i32
    return %c0_i32, %c0_i32_0 : i32, i32
  }
  func.func @transform_2(%arg0: i32) -> (i32, i32) {
    %c0_i32 = arith.constant 0 : i32
    %c0_i32_0 = arith.constant 0 : i32
    %c0_i32_1 = arith.constant 0 : i32
    return %c0_i32, %c0_i32_0 : i32, i32
  }
  func.func @transform_3(%arg0: i32) -> (i32, i32) {
    %c0_i32 = arith.constant 0 : i32
    %c0_i32_0 = arith.constant 0 : i32
    return %arg0, %c0_i32 : i32, i32
  }
}

module attributes {stable_mosaic.version = 11 : i64} {
  func.func @_block_kernel(%arg0: i32, %arg1: memref<1x16x32xf32, #tpu.memory_space<vmem>>, %arg2: memref<1x32xf32, #tpu.memory_space<vmem>>, %arg3: memref<1x32xf32, #tpu.memory_space<vmem>>, %arg4: memref<32x96xbf16, #tpu.memory_space<vmem>>, %arg5: memref<1x96xf32, #tpu.memory_space<vmem>>, %arg6: memref<32x32xbf16, #tpu.memory_space<vmem>>, %arg7: memref<1x32xf32, #tpu.memory_space<vmem>>, %arg8: memref<1x32xf32, #tpu.memory_space<vmem>>, %arg9: memref<1x32xf32, #tpu.memory_space<vmem>>, %arg10: memref<32x128xbf16, #tpu.memory_space<vmem>>, %arg11: memref<1x128xf32, #tpu.memory_space<vmem>>, %arg12: memref<128x32xbf16, #tpu.memory_space<vmem>>, %arg13: memref<1x32xf32, #tpu.memory_space<vmem>>, %arg14: memref<1x16x32xf32, #tpu.memory_space<vmem>>) attributes {dimension_semantics = [#tpu.dimension_semantics<parallel>], iteration_bounds = array<i64: 2>, scalar_prefetch = 0 : i64, scratch_operands = 0 : i64, tpu.core_type = #tpu.core_type<tc>, window_params = [{transform_indices = @transform_0, window_bounds = array<i64: 1, 16, 32>}, {pipeline_mode = #tpu.pipeline_mode<synchronous>, transform_indices = @transform_1, window_bounds = array<i64: 1, 32>}, {pipeline_mode = #tpu.pipeline_mode<synchronous>, transform_indices = @transform_2, window_bounds = array<i64: 1, 32>}, {pipeline_mode = #tpu.pipeline_mode<synchronous>, transform_indices = @transform_3, window_bounds = array<i64: 32, 96>}, {pipeline_mode = #tpu.pipeline_mode<synchronous>, transform_indices = @transform_4, window_bounds = array<i64: 1, 96>}, {pipeline_mode = #tpu.pipeline_mode<synchronous>, transform_indices = @transform_5, window_bounds = array<i64: 32, 32>}, {pipeline_mode = #tpu.pipeline_mode<synchronous>, transform_indices = @transform_6, window_bounds = array<i64: 1, 32>}, {pipeline_mode = #tpu.pipeline_mode<synchronous>, transform_indices = @transform_7, window_bounds = array<i64: 1, 32>}, {pipeline_mode = #tpu.pipeline_mode<synchronous>, transform_indices = @transform_8, window_bounds = array<i64: 1, 32>}, {pipeline_mode = #tpu.pipeline_mode<synchronous>, transform_indices = @transform_9, window_bounds = array<i64: 32, 128>}, {pipeline_mode = #tpu.pipeline_mode<synchronous>, transform_indices = @transform_10, window_bounds = array<i64: 1, 128>}, {pipeline_mode = #tpu.pipeline_mode<synchronous>, transform_indices = @transform_11, window_bounds = array<i64: 128, 32>}, {pipeline_mode = #tpu.pipeline_mode<synchronous>, transform_indices = @transform_12, window_bounds = array<i64: 1, 32>}, {transform_indices = @transform_13, window_bounds = array<i64: 1, 16, 32>}]} {
    %c0 = arith.constant 0 : index
    %c0_0 = arith.constant 0 : index
    %c0_1 = arith.constant 0 : index
    %0 = vector.load %arg1[%c0, %c0_0, %c0_1] : memref<1x16x32xf32, #tpu.memory_space<vmem>>, vector<1x16x32xf32>
    %1 = vector.shape_cast %0 : vector<1x16x32xf32> to vector<16x32xf32>
    %c0_2 = arith.constant 0 : index
    %c0_3 = arith.constant 0 : index
    %2 = vector.load %arg2[%c0_2, %c0_3] : memref<1x32xf32, #tpu.memory_space<vmem>>, vector<1x32xf32>
    %c0_4 = arith.constant 0 : index
    %c0_5 = arith.constant 0 : index
    %3 = vector.load %arg3[%c0_4, %c0_5] : memref<1x32xf32, #tpu.memory_space<vmem>>, vector<1x32xf32>
    %cst = arith.constant dense<0.000000e+00> : vector<16xf32>
    %4 = vector.multi_reduction <add>, %1, %cst [1] : vector<16x32xf32> to vector<16xf32>
    %5 = vector.shape_cast %4 : vector<16xf32> to vector<16x1xf32>
    %cst_6 = arith.constant 3.200000e+01 : f32
    %6 = vector.broadcast %cst_6 : f32 to vector<16x1xf32>
    %7 = arith.divf %5, %6 : vector<16x1xf32>
    %8 = vector.broadcast %7 : vector<16x1xf32> to vector<16x32xf32>
    %9 = arith.subf %1, %8 : vector<16x32xf32>
    %10 = arith.mulf %9, %9 : vector<16x32xf32>
    %cst_7 = arith.constant dense<0.000000e+00> : vector<16xf32>
    %11 = vector.multi_reduction <add>, %10, %cst_7 [1] : vector<16x32xf32> to vector<16xf32>
    %12 = vector.shape_cast %11 : vector<16xf32> to vector<16x1xf32>
    %cst_8 = arith.constant 3.200000e+01 : f32
    %13 = vector.broadcast %cst_8 : f32 to vector<16x1xf32>
    %14 = arith.divf %12, %13 : vector<16x1xf32>
    %cst_9 = arith.constant 9.99999974E-6 : f32
    %15 = vector.broadcast %cst_9 : f32 to vector<16x1xf32>
    %16 = arith.addf %14, %15 : vector<16x1xf32>
    %17 = math.rsqrt %16 : vector<16x1xf32>
    %18 = vector.broadcast %17 : vector<16x1xf32> to vector<16x32xf32>
    %19 = arith.mulf %9, %18 : vector<16x32xf32>
    %20 = vector.broadcast %2 : vector<1x32xf32> to vector<16x32xf32>
    %21 = arith.mulf %19, %20 : vector<16x32xf32>
    %22 = vector.broadcast %3 : vector<1x32xf32> to vector<16x32xf32>
    %23 = arith.addf %21, %22 : vector<16x32xf32>
    %24 = arith.truncf %23 : vector<16x32xf32> to vector<16x32xbf16>
    %c0_10 = arith.constant 0 : index
    %c0_11 = arith.constant 0 : index
    %25 = vector.load %arg4[%c0_10, %c0_11] : memref<32x96xbf16, #tpu.memory_space<vmem>>, vector<32x96xbf16>
    %cst_12 = arith.constant dense<0.000000e+00> : vector<16x96xf32>
    %26 = tpu.matmul %24, %25, %cst_12 {dimension_numbers = #tpu.dot_dimension_numbers<[1], [0], [0], [1], [0, 0, 1, 1], [], []>} : vector<16x32xbf16>, vector<32x96xbf16>, vector<16x96xf32> -> vector<16x96xf32>
    %c0_13 = arith.constant 0 : index
    %c0_14 = arith.constant 0 : index
    %27 = vector.load %arg5[%c0_13, %c0_14] : memref<1x96xf32, #tpu.memory_space<vmem>>, vector<1x96xf32>
    %28 = vector.broadcast %27 : vector<1x96xf32> to vector<16x96xf32>
    %29 = arith.addf %26, %28 : vector<16x96xf32>
    %30 = vector.extract_strided_slice %29 {offsets = [0, 0], sizes = [16, 8], strides = [1, 1]} : vector<16x96xf32> to vector<16x8xf32>
    %31 = vector.extract_strided_slice %29 {offsets = [0, 8], sizes = [16, 8], strides = [1, 1]} : vector<16x96xf32> to vector<16x8xf32>
    %32 = vector.extract_strided_slice %29 {offsets = [0, 16], sizes = [16, 8], strides = [1, 1]} : vector<16x96xf32> to vector<16x8xf32>
    %33 = vector.extract_strided_slice %29 {offsets = [0, 24], sizes = [16, 8], strides = [1, 1]} : vector<16x96xf32> to vector<16x8xf32>
    %34 = vector.shape_cast %30 : vector<16x8xf32> to vector<1x16x8xf32>
    %35 = vector.shape_cast %31 : vector<16x8xf32> to vector<1x16x8xf32>
    %36 = vector.shape_cast %32 : vector<16x8xf32> to vector<1x16x8xf32>
    %37 = vector.shape_cast %33 : vector<16x8xf32> to vector<1x16x8xf32>
    %38 = tpu.concatenate %34, %35, %36, %37 in 0 : vector<1x16x8xf32>, vector<1x16x8xf32>, vector<1x16x8xf32>, vector<1x16x8xf32> -> vector<4x16x8xf32>
    %39 = arith.truncf %38 : vector<4x16x8xf32> to vector<4x16x8xbf16>
    %40 = vector.extract_strided_slice %29 {offsets = [0, 32], sizes = [16, 8], strides = [1, 1]} : vector<16x96xf32> to vector<16x8xf32>
    %41 = vector.extract_strided_slice %29 {offsets = [0, 40], sizes = [16, 8], strides = [1, 1]} : vector<16x96xf32> to vector<16x8xf32>
    %42 = vector.extract_strided_slice %29 {offsets = [0, 48], sizes = [16, 8], strides = [1, 1]} : vector<16x96xf32> to vector<16x8xf32>
    %43 = vector.extract_strided_slice %29 {offsets = [0, 56], sizes = [16, 8], strides = [1, 1]} : vector<16x96xf32> to vector<16x8xf32>
    %44 = vector.shape_cast %40 : vector<16x8xf32> to vector<1x16x8xf32>
    %45 = vector.shape_cast %41 : vector<16x8xf32> to vector<1x16x8xf32>
    %46 = vector.shape_cast %42 : vector<16x8xf32> to vector<1x16x8xf32>
    %47 = vector.shape_cast %43 : vector<16x8xf32> to vector<1x16x8xf32>
    %48 = tpu.concatenate %44, %45, %46, %47 in 0 : vector<1x16x8xf32>, vector<1x16x8xf32>, vector<1x16x8xf32>, vector<1x16x8xf32> -> vector<4x16x8xf32>
    %49 = arith.truncf %48 : vector<4x16x8xf32> to vector<4x16x8xbf16>
    %50 = vector.extract_strided_slice %29 {offsets = [0, 64], sizes = [16, 8], strides = [1, 1]} : vector<16x96xf32> to vector<16x8xf32>
    %51 = vector.extract_strided_slice %29 {offsets = [0, 72], sizes = [16, 8], strides = [1, 1]} : vector<16x96xf32> to vector<16x8xf32>
    %52 = vector.extract_strided_slice %29 {offsets = [0, 80], sizes = [16, 8], strides = [1, 1]} : vector<16x96xf32> to vector<16x8xf32>
    %53 = vector.extract_strided_slice %29 {offsets = [0, 88], sizes = [16, 8], strides = [1, 1]} : vector<16x96xf32> to vector<16x8xf32>
    %54 = vector.shape_cast %50 : vector<16x8xf32> to vector<1x16x8xf32>
    %55 = vector.shape_cast %51 : vector<16x8xf32> to vector<1x16x8xf32>
    %56 = vector.shape_cast %52 : vector<16x8xf32> to vector<1x16x8xf32>
    %57 = vector.shape_cast %53 : vector<16x8xf32> to vector<1x16x8xf32>
    %58 = tpu.concatenate %54, %55, %56, %57 in 0 : vector<1x16x8xf32>, vector<1x16x8xf32>, vector<1x16x8xf32>, vector<1x16x8xf32> -> vector<4x16x8xf32>
    %59 = arith.truncf %58 : vector<4x16x8xf32> to vector<4x16x8xbf16>
    %60 = tpu.iota {dimensions = array<i32: 0>} : vector<16x16xi32>
    %61 = tpu.iota {dimensions = array<i32: 1>} : vector<16x16xi32>
    %62 = arith.cmpi sle, %61, %60 : vector<16x16xi32>
    %c11_i32 = arith.constant 11 : i32
    %63 = vector.broadcast %c11_i32 : i32 to vector<16x16xi32>
    %64 = arith.cmpi slt, %61, %63 : vector<16x16xi32>
    %65 = arith.andi %62, %64 : vector<16x16xi1>
    "tpu.trace_start"() <{level = 10 : i32, message = "hqd,hkd->hqk"}> : () -> ()
    %cst_15 = arith.constant dense<0.000000e+00> : vector<4x16x16xf32>
    %66 = tpu.matmul %39, %49, %cst_15 {dimension_numbers = #tpu.dot_dimension_numbers<[2], [2], [1], [1], [0, 0, 0, 1, 1, 1], [0], [0]>} : vector<4x16x8xbf16>, vector<4x16x8xbf16>, vector<4x16x16xf32> -> vector<4x16x16xf32>
    "tpu.trace_stop"() : () -> ()
    %67 = vector.shape_cast %65 : vector<16x16xi1> to vector<1x16x16xi1>
    %cst_16 = arith.constant -1.000000e+30 : f32
    %68 = vector.shape_cast %67 : vector<1x16x16xi1> to vector<1x16x16xi1>
    %69 = vector.broadcast %68 : vector<1x16x16xi1> to vector<4x16x16xi1>
    %70 = vector.broadcast %cst_16 : f32 to vector<4x16x16xf32>
    %71 = arith.select %69, %66, %70 : vector<4x16x16xi1>, vector<4x16x16xf32>
    %cst_17 = arith.constant dense<0xFF800000> : vector<4x16xf32>
    %72 = vector.multi_reduction <maximumf>, %71, %cst_17 [2] : vector<4x16x16xf32> to vector<4x16xf32>
    %73 = vector.shape_cast %72 : vector<4x16xf32> to vector<4x16x1xf32>
    %74 = vector.broadcast %73 : vector<4x16x1xf32> to vector<4x16x16xf32>
    %75 = arith.subf %71, %74 : vector<4x16x16xf32>
    %76 = math.exp %75 : vector<4x16x16xf32>
    %cst_18 = arith.constant dense<0.000000e+00> : vector<4x16xf32>
    %77 = vector.multi_reduction <add>, %76, %cst_18 [2] : vector<4x16x16xf32> to vector<4x16xf32>
    %78 = vector.shape_cast %77 : vector<4x16xf32> to vector<4x16x1xf32>
    %79 = tpu.reciprocal %78 {approx = true} : vector<4x16x1xf32> -> vector<4x16x1xf32>
    %80 = vector.broadcast %79 : vector<4x16x1xf32> to vector<4x16x16xf32>
    %81 = arith.mulf %76, %80 : vector<4x16x16xf32>
    %82 = arith.truncf %81 : vector<4x16x16xf32> to vector<4x16x16xbf16>
    "tpu.trace_start"() <{level = 10 : i32, message = "hqk,hkd->hqd"}> : () -> ()
    %cst_19 = arith.constant dense<0.000000e+00> : vector<4x16x8xf32>
    %83 = tpu.matmul %82, %59, %cst_19 {dimension_numbers = #tpu.dot_dimension_numbers<[2], [1], [1], [2], [0, 0, 0, 1, 1, 2], [0], [0]>} : vector<4x16x16xbf16>, vector<4x16x8xbf16>, vector<4x16x8xf32> -> vector<4x16x8xf32>
    "tpu.trace_stop"() : () -> ()
    %84 = vector.extract_strided_slice %83 {offsets = [0, 0, 0], sizes = [1, 16, 8], strides = [1, 1, 1]} : vector<4x16x8xf32> to vector<1x16x8xf32>
    %85 = vector.shape_cast %84 : vector<1x16x8xf32> to vector<16x8xf32>
    %86 = vector.extract_strided_slice %83 {offsets = [1, 0, 0], sizes = [1, 16, 8], strides = [1, 1, 1]} : vector<4x16x8xf32> to vector<1x16x8xf32>
    %87 = vector.shape_cast %86 : vector<1x16x8xf32> to vector<16x8xf32>
    %88 = vector.extract_strided_slice %83 {offsets = [2, 0, 0], sizes = [1, 16, 8], strides = [1, 1, 1]} : vector<4x16x8xf32> to vector<1x16x8xf32>
    %89 = vector.shape_cast %88 : vector<1x16x8xf32> to vector<16x8xf32>
    %90 = vector.extract_strided_slice %83 {offsets = [3, 0, 0], sizes = [1, 16, 8], strides = [1, 1, 1]} : vector<4x16x8xf32> to vector<1x16x8xf32>
    %91 = vector.shape_cast %90 : vector<1x16x8xf32> to vector<16x8xf32>
    %92 = tpu.concatenate %85, %87, %89, %91 in 1 : vector<16x8xf32>, vector<16x8xf32>, vector<16x8xf32>, vector<16x8xf32> -> vector<16x32xf32>
    %93 = arith.truncf %92 : vector<16x32xf32> to vector<16x32xbf16>
    %c0_20 = arith.constant 0 : index
    %c0_21 = arith.constant 0 : index
    %94 = vector.load %arg6[%c0_20, %c0_21] : memref<32x32xbf16, #tpu.memory_space<vmem>>, vector<32x32xbf16>
    %cst_22 = arith.constant dense<0.000000e+00> : vector<16x32xf32>
    %95 = tpu.matmul %93, %94, %cst_22 {dimension_numbers = #tpu.dot_dimension_numbers<[1], [0], [0], [1], [0, 0, 1, 1], [], []>} : vector<16x32xbf16>, vector<32x32xbf16>, vector<16x32xf32> -> vector<16x32xf32>
    %96 = arith.addf %1, %95 : vector<16x32xf32>
    %c0_23 = arith.constant 0 : index
    %c0_24 = arith.constant 0 : index
    %97 = vector.load %arg7[%c0_23, %c0_24] : memref<1x32xf32, #tpu.memory_space<vmem>>, vector<1x32xf32>
    %98 = vector.broadcast %97 : vector<1x32xf32> to vector<16x32xf32>
    %99 = arith.addf %96, %98 : vector<16x32xf32>
    %c0_25 = arith.constant 0 : index
    %c0_26 = arith.constant 0 : index
    %100 = vector.load %arg8[%c0_25, %c0_26] : memref<1x32xf32, #tpu.memory_space<vmem>>, vector<1x32xf32>
    %c0_27 = arith.constant 0 : index
    %c0_28 = arith.constant 0 : index
    %101 = vector.load %arg9[%c0_27, %c0_28] : memref<1x32xf32, #tpu.memory_space<vmem>>, vector<1x32xf32>
    %cst_29 = arith.constant dense<0.000000e+00> : vector<16xf32>
    %102 = vector.multi_reduction <add>, %99, %cst_29 [1] : vector<16x32xf32> to vector<16xf32>
    %103 = vector.shape_cast %102 : vector<16xf32> to vector<16x1xf32>
    %cst_30 = arith.constant 3.200000e+01 : f32
    %104 = vector.broadcast %cst_30 : f32 to vector<16x1xf32>
    %105 = arith.divf %103, %104 : vector<16x1xf32>
    %106 = vector.broadcast %105 : vector<16x1xf32> to vector<16x32xf32>
    %107 = arith.subf %99, %106 : vector<16x32xf32>
    %108 = arith.mulf %107, %107 : vector<16x32xf32>
    %cst_31 = arith.constant dense<0.000000e+00> : vector<16xf32>
    %109 = vector.multi_reduction <add>, %108, %cst_31 [1] : vector<16x32xf32> to vector<16xf32>
    %110 = vector.shape_cast %109 : vector<16xf32> to vector<16x1xf32>
    %cst_32 = arith.constant 3.200000e+01 : f32
    %111 = vector.broadcast %cst_32 : f32 to vector<16x1xf32>
    %112 = arith.divf %110, %111 : vector<16x1xf32>
    %cst_33 = arith.constant 9.99999974E-6 : f32
    %113 = vector.broadcast %cst_33 : f32 to vector<16x1xf32>
    %114 = arith.addf %112, %113 : vector<16x1xf32>
    %115 = math.rsqrt %114 : vector<16x1xf32>
    %116 = vector.broadcast %115 : vector<16x1xf32> to vector<16x32xf32>
    %117 = arith.mulf %107, %116 : vector<16x32xf32>
    %118 = vector.broadcast %100 : vector<1x32xf32> to vector<16x32xf32>
    %119 = arith.mulf %117, %118 : vector<16x32xf32>
    %120 = vector.broadcast %101 : vector<1x32xf32> to vector<16x32xf32>
    %121 = arith.addf %119, %120 : vector<16x32xf32>
    %122 = arith.truncf %121 : vector<16x32xf32> to vector<16x32xbf16>
    %c0_34 = arith.constant 0 : index
    %c0_35 = arith.constant 0 : index
    %123 = vector.load %arg10[%c0_34, %c0_35] : memref<32x128xbf16, #tpu.memory_space<vmem>>, vector<32x128xbf16>
    %cst_36 = arith.constant dense<0.000000e+00> : vector<16x128xf32>
    %124 = tpu.matmul %122, %123, %cst_36 {dimension_numbers = #tpu.dot_dimension_numbers<[1], [0], [0], [1], [0, 0, 1, 1], [], []>} : vector<16x32xbf16>, vector<32x128xbf16>, vector<16x128xf32> -> vector<16x128xf32>
    %c0_37 = arith.constant 0 : index
    %c0_38 = arith.constant 0 : index
    %125 = vector.load %arg11[%c0_37, %c0_38] : memref<1x128xf32, #tpu.memory_space<vmem>>, vector<1x128xf32>
    %126 = vector.broadcast %125 : vector<1x128xf32> to vector<16x128xf32>
    %127 = arith.addf %124, %126 : vector<16x128xf32>
    %cst_39 = arith.constant 5.000000e-01 : f32
    %128 = vector.broadcast %cst_39 : f32 to vector<16x128xf32>
    %129 = arith.mulf %128, %127 : vector<16x128xf32>
    %cst_40 = arith.constant 0.707106769 : f32
    %130 = vector.broadcast %cst_40 : f32 to vector<16x128xf32>
    %131 = arith.mulf %127, %130 : vector<16x128xf32>
    %132 = math.absf %131 : vector<16x128xf32>
    %cst_41 = arith.constant 0.327591091 : f32
    %133 = vector.broadcast %cst_41 : f32 to vector<16x128xf32>
    %134 = arith.mulf %133, %132 : vector<16x128xf32>
    %cst_42 = arith.constant 1.000000e+00 : f32
    %135 = vector.broadcast %cst_42 : f32 to vector<16x128xf32>
    %136 = arith.addf %135, %134 : vector<16x128xf32>
    %137 = tpu.reciprocal %136 {approx = true} : vector<16x128xf32> -> vector<16x128xf32>
    %cst_43 = arith.constant 1.06140542 : f32
    %138 = vector.broadcast %cst_43 : f32 to vector<16x128xf32>
    %139 = arith.mulf %138, %137 : vector<16x128xf32>
    %cst_44 = arith.constant 1.45315206 : f32
    %140 = vector.broadcast %cst_44 : f32 to vector<16x128xf32>
    %141 = arith.subf %139, %140 : vector<16x128xf32>
    %142 = arith.mulf %141, %137 : vector<16x128xf32>
    %cst_45 = arith.constant 1.42141378 : f32
    %143 = vector.broadcast %cst_45 : f32 to vector<16x128xf32>
    %144 = arith.addf %142, %143 : vector<16x128xf32>
    %145 = arith.mulf %144, %137 : vector<16x128xf32>
    %cst_46 = arith.constant 0.284496725 : f32
    %146 = vector.broadcast %cst_46 : f32 to vector<16x128xf32>
    %147 = arith.subf %145, %146 : vector<16x128xf32>
    %148 = arith.mulf %147, %137 : vector<16x128xf32>
    %cst_47 = arith.constant 0.254829586 : f32
    %149 = vector.broadcast %cst_47 : f32 to vector<16x128xf32>
    %150 = arith.addf %148, %149 : vector<16x128xf32>
    %151 = arith.mulf %150, %137 : vector<16x128xf32>
    %cst_48 = arith.constant 0.000000e+00 : f32
    %152 = vector.broadcast %cst_48 : f32 to vector<16x128xf32>
    %153 = arith.subf %152, %132 : vector<16x128xf32>
    %154 = arith.mulf %153, %132 : vector<16x128xf32>
    %155 = math.exp %154 : vector<16x128xf32>
    %156 = arith.mulf %151, %155 : vector<16x128xf32>
    %cst_49 = arith.constant 1.000000e+00 : f32
    %157 = vector.broadcast %cst_49 : f32 to vector<16x128xf32>
    %158 = arith.subf %157, %156 : vector<16x128xf32>
    %cst_50 = arith.constant 0.000000e+00 : f32
    %159 = vector.broadcast %cst_50 : f32 to vector<16x128xf32>
    %160 = arith.cmpf oge, %131, %159 : vector<16x128xf32>
    %cst_51 = arith.constant 0.000000e+00 : f32
    %161 = vector.broadcast %cst_51 : f32 to vector<16x128xf32>
    %162 = arith.subf %161, %158 : vector<16x128xf32>
    %163 = arith.select %160, %158, %162 : vector<16x128xi1>, vector<16x128xf32>
    %cst_52 = arith.constant 1.000000e+00 : f32
    %164 = vector.broadcast %cst_52 : f32 to vector<16x128xf32>
    %165 = arith.addf %164, %163 : vector<16x128xf32>
    %166 = arith.mulf %129, %165 : vector<16x128xf32>
    %167 = arith.truncf %166 : vector<16x128xf32> to vector<16x128xbf16>
    %c0_53 = arith.constant 0 : index
    %c0_54 = arith.constant 0 : index
    %168 = vector.load %arg12[%c0_53, %c0_54] : memref<128x32xbf16, #tpu.memory_space<vmem>>, vector<128x32xbf16>
    %cst_55 = arith.constant dense<0.000000e+00> : vector<16x32xf32>
    %169 = tpu.matmul %167, %168, %cst_55 {dimension_numbers = #tpu.dot_dimension_numbers<[1], [0], [0], [1], [0, 0, 1, 1], [], []>} : vector<16x128xbf16>, vector<128x32xbf16>, vector<16x32xf32> -> vector<16x32xf32>
    %170 = arith.addf %99, %169 : vector<16x32xf32>
    %c0_56 = arith.constant 0 : index
    %c0_57 = arith.constant 0 : index
    %171 = vector.load %arg13[%c0_56, %c0_57] : memref<1x32xf32, #tpu.memory_space<vmem>>, vector<1x32xf32>
    %172 = vector.broadcast %171 : vector<1x32xf32> to vector<16x32xf32>
    %173 = arith.addf %170, %172 : vector<16x32xf32>
    %c0_58 = arith.constant 0 : index
    %c0_59 = arith.constant 0 : index
    %c0_60 = arith.constant 0 : index
    %174 = vector.load %arg14[%c0_58, %c0_59, %c0_60] : memref<1x16x32xf32, #tpu.memory_space<vmem>>, vector<1x16x32xf32>
    %175 = vector.shape_cast %174 : vector<1x16x32xf32> to vector<16x32xf32>
    %176 = vector.shape_cast %173 : vector<16x32xf32> to vector<1x16x32xf32>
    tpu.vector_store %arg14[%c0_58, %c0_59, %c0_60], %176 {strides = array<i32>} : memref<1x16x32xf32, #tpu.memory_space<vmem>>, vector<1x16x32xf32>,
    return
  }
  func.func @transform_0(%arg0: i32) -> (i32, i32, i32) {
    %c0_i32 = arith.constant 0 : i32
    %c0_i32_0 = arith.constant 0 : i32
    %c0_i32_1 = arith.constant 0 : i32
    return %arg0, %c0_i32, %c0_i32_0 : i32, i32, i32
  }
  func.func @transform_1(%arg0: i32) -> (i32, i32) {
    %c0_i32 = arith.constant 0 : i32
    %c0_i32_0 = arith.constant 0 : i32
    %c0_i32_1 = arith.constant 0 : i32
    return %c0_i32, %c0_i32_0 : i32, i32
  }
  func.func @transform_2(%arg0: i32) -> (i32, i32) {
    %c0_i32 = arith.constant 0 : i32
    %c0_i32_0 = arith.constant 0 : i32
    %c0_i32_1 = arith.constant 0 : i32
    return %c0_i32, %c0_i32_0 : i32, i32
  }
  func.func @transform_3(%arg0: i32) -> (i32, i32) {
    %c0_i32 = arith.constant 0 : i32
    %c0_i32_0 = arith.constant 0 : i32
    %c0_i32_1 = arith.constant 0 : i32
    return %c0_i32, %c0_i32_0 : i32, i32
  }
  func.func @transform_4(%arg0: i32) -> (i32, i32) {
    %c0_i32 = arith.constant 0 : i32
    %c0_i32_0 = arith.constant 0 : i32
    %c0_i32_1 = arith.constant 0 : i32
    return %c0_i32, %c0_i32_0 : i32, i32
  }
  func.func @transform_5(%arg0: i32) -> (i32, i32) {
    %c0_i32 = arith.constant 0 : i32
    %c0_i32_0 = arith.constant 0 : i32
    %c0_i32_1 = arith.constant 0 : i32
    return %c0_i32, %c0_i32_0 : i32, i32
  }
  func.func @transform_6(%arg0: i32) -> (i32, i32) {
    %c0_i32 = arith.constant 0 : i32
    %c0_i32_0 = arith.constant 0 : i32
    %c0_i32_1 = arith.constant 0 : i32
    return %c0_i32, %c0_i32_0 : i32, i32
  }
  func.func @transform_7(%arg0: i32) -> (i32, i32) {
    %c0_i32 = arith.constant 0 : i32
    %c0_i32_0 = arith.constant 0 : i32
    %c0_i32_1 = arith.constant 0 : i32
    return %c0_i32, %c0_i32_0 : i32, i32
  }
  func.func @transform_8(%arg0: i32) -> (i32, i32) {
    %c0_i32 = arith.constant 0 : i32
    %c0_i32_0 = arith.constant 0 : i32
    %c0_i32_1 = arith.constant 0 : i32
    return %c0_i32, %c0_i32_0 : i32, i32
  }
  func.func @transform_9(%arg0: i32) -> (i32, i32) {
    %c0_i32 = arith.constant 0 : i32
    %c0_i32_0 = arith.constant 0 : i32
    %c0_i32_1 = arith.constant 0 : i32
    return %c0_i32, %c0_i32_0 : i32, i32
  }
  func.func @transform_10(%arg0: i32) -> (i32, i32) {
    %c0_i32 = arith.constant 0 : i32
    %c0_i32_0 = arith.constant 0 : i32
    %c0_i32_1 = arith.constant 0 : i32
    return %c0_i32, %c0_i32_0 : i32, i32
  }
  func.func @transform_11(%arg0: i32) -> (i32, i32) {
    %c0_i32 = arith.constant 0 : i32
    %c0_i32_0 = arith.constant 0 : i32
    %c0_i32_1 = arith.constant 0 : i32
    return %c0_i32, %c0_i32_0 : i32, i32
  }
  func.func @transform_12(%arg0: i32) -> (i32, i32) {
    %c0_i32 = arith.constant 0 : i32
    %c0_i32_0 = arith.constant 0 : i32
    %c0_i32_1 = arith.constant 0 : i32
    return %c0_i32, %c0_i32_0 : i32, i32
  }
  func.func @transform_13(%arg0: i32) -> (i32, i32, i32) {
    %c0_i32 = arith.constant 0 : i32
    %c0_i32_0 = arith.constant 0 : i32
    %c0_i32_1 = arith.constant 0 : i32
    return %arg0, %c0_i32, %c0_i32_0 : i32, i32, i32
  }
}

module attributes {stable_mosaic.version = 11 : i64} {
  func.func @_block_kernel(%arg0: i32, %arg1: memref<1x16x32xf32, #tpu.memory_space<vmem>>, %arg2: memref<1x32xf32, #tpu.memory_space<vmem>>, %arg3: memref<1x32xf32, #tpu.memory_space<vmem>>, %arg4: memref<32x96xbf16, #tpu.memory_space<vmem>>, %arg5: memref<1x96xf32, #tpu.memory_space<vmem>>, %arg6: memref<32x32xbf16, #tpu.memory_space<vmem>>, %arg7: memref<1x32xf32, #tpu.memory_space<vmem>>, %arg8: memref<1x32xf32, #tpu.memory_space<vmem>>, %arg9: memref<1x32xf32, #tpu.memory_space<vmem>>, %arg10: memref<32x128xbf16, #tpu.memory_space<vmem>>, %arg11: memref<1x128xf32, #tpu.memory_space<vmem>>, %arg12: memref<128x32xbf16, #tpu.memory_space<vmem>>, %arg13: memref<1x32xf32, #tpu.memory_space<vmem>>, %arg14: memref<1x32xf32, #tpu.memory_space<vmem>>, %arg15: memref<1x32xf32, #tpu.memory_space<vmem>>, %arg16: memref<32x16xbf16, #tpu.memory_space<vmem>>, %arg17: memref<1x16x16xf32, #tpu.memory_space<vmem>>, %arg18: memref<1x4x16x16xf32, #tpu.memory_space<vmem>>) attributes {dimension_semantics = [#tpu.dimension_semantics<parallel>], iteration_bounds = array<i64: 2>, scalar_prefetch = 0 : i64, scratch_operands = 0 : i64, tpu.core_type = #tpu.core_type<tc>, window_params = [{transform_indices = @transform_0, window_bounds = array<i64: 1, 16, 32>}, {pipeline_mode = #tpu.pipeline_mode<synchronous>, transform_indices = @transform_1, window_bounds = array<i64: 1, 32>}, {pipeline_mode = #tpu.pipeline_mode<synchronous>, transform_indices = @transform_2, window_bounds = array<i64: 1, 32>}, {pipeline_mode = #tpu.pipeline_mode<synchronous>, transform_indices = @transform_3, window_bounds = array<i64: 32, 96>}, {pipeline_mode = #tpu.pipeline_mode<synchronous>, transform_indices = @transform_4, window_bounds = array<i64: 1, 96>}, {pipeline_mode = #tpu.pipeline_mode<synchronous>, transform_indices = @transform_5, window_bounds = array<i64: 32, 32>}, {pipeline_mode = #tpu.pipeline_mode<synchronous>, transform_indices = @transform_6, window_bounds = array<i64: 1, 32>}, {pipeline_mode = #tpu.pipeline_mode<synchronous>, transform_indices = @transform_7, window_bounds = array<i64: 1, 32>}, {pipeline_mode = #tpu.pipeline_mode<synchronous>, transform_indices = @transform_8, window_bounds = array<i64: 1, 32>}, {pipeline_mode = #tpu.pipeline_mode<synchronous>, transform_indices = @transform_9, window_bounds = array<i64: 32, 128>}, {pipeline_mode = #tpu.pipeline_mode<synchronous>, transform_indices = @transform_10, window_bounds = array<i64: 1, 128>}, {pipeline_mode = #tpu.pipeline_mode<synchronous>, transform_indices = @transform_11, window_bounds = array<i64: 128, 32>}, {pipeline_mode = #tpu.pipeline_mode<synchronous>, transform_indices = @transform_12, window_bounds = array<i64: 1, 32>}, {pipeline_mode = #tpu.pipeline_mode<synchronous>, transform_indices = @transform_13, window_bounds = array<i64: 1, 32>}, {pipeline_mode = #tpu.pipeline_mode<synchronous>, transform_indices = @transform_14, window_bounds = array<i64: 1, 32>}, {pipeline_mode = #tpu.pipeline_mode<synchronous>, transform_indices = @transform_15, window_bounds = array<i64: 32, 16>}, {transform_indices = @transform_16, window_bounds = array<i64: 1, 16, 16>}, {transform_indices = @transform_17, window_bounds = array<i64: 1, 4, 16, 16>}]} {
    %c0 = arith.constant 0 : index
    %c0_0 = arith.constant 0 : index
    %c0_1 = arith.constant 0 : index
    %0 = vector.load %arg1[%c0, %c0_0, %c0_1] : memref<1x16x32xf32, #tpu.memory_space<vmem>>, vector<1x16x32xf32>
    %1 = vector.shape_cast %0 : vector<1x16x32xf32> to vector<16x32xf32>
    %c0_2 = arith.constant 0 : index
    %c0_3 = arith.constant 0 : index
    %2 = vector.load %arg2[%c0_2, %c0_3] : memref<1x32xf32, #tpu.memory_space<vmem>>, vector<1x32xf32>
    %c0_4 = arith.constant 0 : index
    %c0_5 = arith.constant 0 : index
    %3 = vector.load %arg3[%c0_4, %c0_5] : memref<1x32xf32, #tpu.memory_space<vmem>>, vector<1x32xf32>
    %cst = arith.constant dense<0.000000e+00> : vector<16xf32>
    %4 = vector.multi_reduction <add>, %1, %cst [1] : vector<16x32xf32> to vector<16xf32>
    %5 = vector.shape_cast %4 : vector<16xf32> to vector<16x1xf32>
    %cst_6 = arith.constant 3.200000e+01 : f32
    %6 = vector.broadcast %cst_6 : f32 to vector<16x1xf32>
    %7 = arith.divf %5, %6 : vector<16x1xf32>
    %8 = vector.broadcast %7 : vector<16x1xf32> to vector<16x32xf32>
    %9 = arith.subf %1, %8 : vector<16x32xf32>
    %10 = arith.mulf %9, %9 : vector<16x32xf32>
    %cst_7 = arith.constant dense<0.000000e+00> : vector<16xf32>
    %11 = vector.multi_reduction <add>, %10, %cst_7 [1] : vector<16x32xf32> to vector<16xf32>
    %12 = vector.shape_cast %11 : vector<16xf32> to vector<16x1xf32>
    %cst_8 = arith.constant 3.200000e+01 : f32
    %13 = vector.broadcast %cst_8 : f32 to vector<16x1xf32>
    %14 = arith.divf %12, %13 : vector<16x1xf32>
    %cst_9 = arith.constant 9.99999974E-6 : f32
    %15 = vector.broadcast %cst_9 : f32 to vector<16x1xf32>
    %16 = arith.addf %14, %15 : vector<16x1xf32>
    %17 = math.rsqrt %16 : vector<16x1xf32>
    %18 = vector.broadcast %17 : vector<16x1xf32> to vector<16x32xf32>
    %19 = arith.mulf %9, %18 : vector<16x32xf32>
    %20 = vector.broadcast %2 : vector<1x32xf32> to vector<16x32xf32>
    %21 = arith.mulf %19, %20 : vector<16x32xf32>
    %22 = vector.broadcast %3 : vector<1x32xf32> to vector<16x32xf32>
    %23 = arith.addf %21, %22 : vector<16x32xf32>
    %24 = arith.truncf %23 : vector<16x32xf32> to vector<16x32xbf16>
    %c0_10 = arith.constant 0 : index
    %c0_11 = arith.constant 0 : index
    %25 = vector.load %arg4[%c0_10, %c0_11] : memref<32x96xbf16, #tpu.memory_space<vmem>>, vector<32x96xbf16>
    %cst_12 = arith.constant dense<0.000000e+00> : vector<16x96xf32>
    %26 = tpu.matmul %24, %25, %cst_12 {dimension_numbers = #tpu.dot_dimension_numbers<[1], [0], [0], [1], [0, 0, 1, 1], [], []>} : vector<16x32xbf16>, vector<32x96xbf16>, vector<16x96xf32> -> vector<16x96xf32>
    %c0_13 = arith.constant 0 : index
    %c0_14 = arith.constant 0 : index
    %27 = vector.load %arg5[%c0_13, %c0_14] : memref<1x96xf32, #tpu.memory_space<vmem>>, vector<1x96xf32>
    %28 = vector.broadcast %27 : vector<1x96xf32> to vector<16x96xf32>
    %29 = arith.addf %26, %28 : vector<16x96xf32>
    %30 = vector.extract_strided_slice %29 {offsets = [0, 0], sizes = [16, 8], strides = [1, 1]} : vector<16x96xf32> to vector<16x8xf32>
    %31 = vector.extract_strided_slice %29 {offsets = [0, 8], sizes = [16, 8], strides = [1, 1]} : vector<16x96xf32> to vector<16x8xf32>
    %32 = vector.extract_strided_slice %29 {offsets = [0, 16], sizes = [16, 8], strides = [1, 1]} : vector<16x96xf32> to vector<16x8xf32>
    %33 = vector.extract_strided_slice %29 {offsets = [0, 24], sizes = [16, 8], strides = [1, 1]} : vector<16x96xf32> to vector<16x8xf32>
    %34 = vector.shape_cast %30 : vector<16x8xf32> to vector<1x16x8xf32>
    %35 = vector.shape_cast %31 : vector<16x8xf32> to vector<1x16x8xf32>
    %36 = vector.shape_cast %32 : vector<16x8xf32> to vector<1x16x8xf32>
    %37 = vector.shape_cast %33 : vector<16x8xf32> to vector<1x16x8xf32>
    %38 = tpu.concatenate %34, %35, %36, %37 in 0 : vector<1x16x8xf32>, vector<1x16x8xf32>, vector<1x16x8xf32>, vector<1x16x8xf32> -> vector<4x16x8xf32>
    %39 = arith.truncf %38 : vector<4x16x8xf32> to vector<4x16x8xbf16>
    %40 = vector.extract_strided_slice %29 {offsets = [0, 32], sizes = [16, 8], strides = [1, 1]} : vector<16x96xf32> to vector<16x8xf32>
    %41 = vector.extract_strided_slice %29 {offsets = [0, 40], sizes = [16, 8], strides = [1, 1]} : vector<16x96xf32> to vector<16x8xf32>
    %42 = vector.extract_strided_slice %29 {offsets = [0, 48], sizes = [16, 8], strides = [1, 1]} : vector<16x96xf32> to vector<16x8xf32>
    %43 = vector.extract_strided_slice %29 {offsets = [0, 56], sizes = [16, 8], strides = [1, 1]} : vector<16x96xf32> to vector<16x8xf32>
    %44 = vector.shape_cast %40 : vector<16x8xf32> to vector<1x16x8xf32>
    %45 = vector.shape_cast %41 : vector<16x8xf32> to vector<1x16x8xf32>
    %46 = vector.shape_cast %42 : vector<16x8xf32> to vector<1x16x8xf32>
    %47 = vector.shape_cast %43 : vector<16x8xf32> to vector<1x16x8xf32>
    %48 = tpu.concatenate %44, %45, %46, %47 in 0 : vector<1x16x8xf32>, vector<1x16x8xf32>, vector<1x16x8xf32>, vector<1x16x8xf32> -> vector<4x16x8xf32>
    %49 = arith.truncf %48 : vector<4x16x8xf32> to vector<4x16x8xbf16>
    %50 = vector.extract_strided_slice %29 {offsets = [0, 64], sizes = [16, 8], strides = [1, 1]} : vector<16x96xf32> to vector<16x8xf32>
    %51 = vector.extract_strided_slice %29 {offsets = [0, 72], sizes = [16, 8], strides = [1, 1]} : vector<16x96xf32> to vector<16x8xf32>
    %52 = vector.extract_strided_slice %29 {offsets = [0, 80], sizes = [16, 8], strides = [1, 1]} : vector<16x96xf32> to vector<16x8xf32>
    %53 = vector.extract_strided_slice %29 {offsets = [0, 88], sizes = [16, 8], strides = [1, 1]} : vector<16x96xf32> to vector<16x8xf32>
    %54 = vector.shape_cast %50 : vector<16x8xf32> to vector<1x16x8xf32>
    %55 = vector.shape_cast %51 : vector<16x8xf32> to vector<1x16x8xf32>
    %56 = vector.shape_cast %52 : vector<16x8xf32> to vector<1x16x8xf32>
    %57 = vector.shape_cast %53 : vector<16x8xf32> to vector<1x16x8xf32>
    %58 = tpu.concatenate %54, %55, %56, %57 in 0 : vector<1x16x8xf32>, vector<1x16x8xf32>, vector<1x16x8xf32>, vector<1x16x8xf32> -> vector<4x16x8xf32>
    %59 = arith.truncf %58 : vector<4x16x8xf32> to vector<4x16x8xbf16>
    %60 = tpu.iota {dimensions = array<i32: 0>} : vector<16x16xi32>
    %61 = tpu.iota {dimensions = array<i32: 1>} : vector<16x16xi32>
    %62 = arith.cmpi sle, %61, %60 : vector<16x16xi32>
    %c11_i32 = arith.constant 11 : i32
    %63 = vector.broadcast %c11_i32 : i32 to vector<16x16xi32>
    %64 = arith.cmpi slt, %61, %63 : vector<16x16xi32>
    %65 = arith.andi %62, %64 : vector<16x16xi1>
    "tpu.trace_start"() <{level = 10 : i32, message = "hqd,hkd->hqk"}> : () -> ()
    %cst_15 = arith.constant dense<0.000000e+00> : vector<4x16x16xf32>
    %66 = tpu.matmul %39, %49, %cst_15 {dimension_numbers = #tpu.dot_dimension_numbers<[2], [2], [1], [1], [0, 0, 0, 1, 1, 1], [0], [0]>} : vector<4x16x8xbf16>, vector<4x16x8xbf16>, vector<4x16x16xf32> -> vector<4x16x16xf32>
    "tpu.trace_stop"() : () -> ()
    %67 = vector.shape_cast %65 : vector<16x16xi1> to vector<1x16x16xi1>
    %cst_16 = arith.constant -1.000000e+30 : f32
    %68 = vector.shape_cast %67 : vector<1x16x16xi1> to vector<1x16x16xi1>
    %69 = vector.broadcast %68 : vector<1x16x16xi1> to vector<4x16x16xi1>
    %70 = vector.broadcast %cst_16 : f32 to vector<4x16x16xf32>
    %71 = arith.select %69, %66, %70 : vector<4x16x16xi1>, vector<4x16x16xf32>
    %cst_17 = arith.constant dense<0xFF800000> : vector<4x16xf32>
    %72 = vector.multi_reduction <maximumf>, %71, %cst_17 [2] : vector<4x16x16xf32> to vector<4x16xf32>
    %73 = vector.shape_cast %72 : vector<4x16xf32> to vector<4x16x1xf32>
    %74 = vector.broadcast %73 : vector<4x16x1xf32> to vector<4x16x16xf32>
    %75 = arith.subf %71, %74 : vector<4x16x16xf32>
    %76 = math.exp %75 : vector<4x16x16xf32>
    %cst_18 = arith.constant dense<0.000000e+00> : vector<4x16xf32>
    %77 = vector.multi_reduction <add>, %76, %cst_18 [2] : vector<4x16x16xf32> to vector<4x16xf32>
    %78 = vector.shape_cast %77 : vector<4x16xf32> to vector<4x16x1xf32>
    %79 = tpu.reciprocal %78 {approx = true} : vector<4x16x1xf32> -> vector<4x16x1xf32>
    %80 = vector.broadcast %79 : vector<4x16x1xf32> to vector<4x16x16xf32>
    %81 = arith.mulf %76, %80 : vector<4x16x16xf32>
    %c0_19 = arith.constant 0 : index
    %c0_20 = arith.constant 0 : index
    %c0_21 = arith.constant 0 : index
    %c0_22 = arith.constant 0 : index
    %82 = vector.load %arg18[%c0_19, %c0_20, %c0_21, %c0_22] : memref<1x4x16x16xf32, #tpu.memory_space<vmem>>, vector<1x4x16x16xf32>
    %83 = vector.shape_cast %82 : vector<1x4x16x16xf32> to vector<4x16x16xf32>
    %84 = vector.shape_cast %81 : vector<4x16x16xf32> to vector<1x4x16x16xf32>
    tpu.vector_store %arg18[%c0_19, %c0_20, %c0_21, %c0_22], %84 {strides = array<i32>} : memref<1x4x16x16xf32, #tpu.memory_space<vmem>>, vector<1x4x16x16xf32>,
    %85 = arith.truncf %81 : vector<4x16x16xf32> to vector<4x16x16xbf16>
    "tpu.trace_start"() <{level = 10 : i32, message = "hqk,hkd->hqd"}> : () -> ()
    %cst_23 = arith.constant dense<0.000000e+00> : vector<4x16x8xf32>
    %86 = tpu.matmul %85, %59, %cst_23 {dimension_numbers = #tpu.dot_dimension_numbers<[2], [1], [1], [2], [0, 0, 0, 1, 1, 2], [0], [0]>} : vector<4x16x16xbf16>, vector<4x16x8xbf16>, vector<4x16x8xf32> -> vector<4x16x8xf32>
    "tpu.trace_stop"() : () -> ()
    %87 = vector.extract_strided_slice %86 {offsets = [0, 0, 0], sizes = [1, 16, 8], strides = [1, 1, 1]} : vector<4x16x8xf32> to vector<1x16x8xf32>
    %88 = vector.shape_cast %87 : vector<1x16x8xf32> to vector<16x8xf32>
    %89 = vector.extract_strided_slice %86 {offsets = [1, 0, 0], sizes = [1, 16, 8], strides = [1, 1, 1]} : vector<4x16x8xf32> to vector<1x16x8xf32>
    %90 = vector.shape_cast %89 : vector<1x16x8xf32> to vector<16x8xf32>
    %91 = vector.extract_strided_slice %86 {offsets = [2, 0, 0], sizes = [1, 16, 8], strides = [1, 1, 1]} : vector<4x16x8xf32> to vector<1x16x8xf32>
    %92 = vector.shape_cast %91 : vector<1x16x8xf32> to vector<16x8xf32>
    %93 = vector.extract_strided_slice %86 {offsets = [3, 0, 0], sizes = [1, 16, 8], strides = [1, 1, 1]} : vector<4x16x8xf32> to vector<1x16x8xf32>
    %94 = vector.shape_cast %93 : vector<1x16x8xf32> to vector<16x8xf32>
    %95 = tpu.concatenate %88, %90, %92, %94 in 1 : vector<16x8xf32>, vector<16x8xf32>, vector<16x8xf32>, vector<16x8xf32> -> vector<16x32xf32>
    %96 = arith.truncf %95 : vector<16x32xf32> to vector<16x32xbf16>
    %c0_24 = arith.constant 0 : index
    %c0_25 = arith.constant 0 : index
    %97 = vector.load %arg6[%c0_24, %c0_25] : memref<32x32xbf16, #tpu.memory_space<vmem>>, vector<32x32xbf16>
    %cst_26 = arith.constant dense<0.000000e+00> : vector<16x32xf32>
    %98 = tpu.matmul %96, %97, %cst_26 {dimension_numbers = #tpu.dot_dimension_numbers<[1], [0], [0], [1], [0, 0, 1, 1], [], []>} : vector<16x32xbf16>, vector<32x32xbf16>, vector<16x32xf32> -> vector<16x32xf32>
    %99 = arith.addf %1, %98 : vector<16x32xf32>
    %c0_27 = arith.constant 0 : index
    %c0_28 = arith.constant 0 : index
    %100 = vector.load %arg7[%c0_27, %c0_28] : memref<1x32xf32, #tpu.memory_space<vmem>>, vector<1x32xf32>
    %101 = vector.broadcast %100 : vector<1x32xf32> to vector<16x32xf32>
    %102 = arith.addf %99, %101 : vector<16x32xf32>
    %c0_29 = arith.constant 0 : index
    %c0_30 = arith.constant 0 : index
    %103 = vector.load %arg8[%c0_29, %c0_30] : memref<1x32xf32, #tpu.memory_space<vmem>>, vector<1x32xf32>
    %c0_31 = arith.constant 0 : index
    %c0_32 = arith.constant 0 : index
    %104 = vector.load %arg9[%c0_31, %c0_32] : memref<1x32xf32, #tpu.memory_space<vmem>>, vector<1x32xf32>
    %cst_33 = arith.constant dense<0.000000e+00> : vector<16xf32>
    %105 = vector.multi_reduction <add>, %102, %cst_33 [1] : vector<16x32xf32> to vector<16xf32>
    %106 = vector.shape_cast %105 : vector<16xf32> to vector<16x1xf32>
    %cst_34 = arith.constant 3.200000e+01 : f32
    %107 = vector.broadcast %cst_34 : f32 to vector<16x1xf32>
    %108 = arith.divf %106, %107 : vector<16x1xf32>
    %109 = vector.broadcast %108 : vector<16x1xf32> to vector<16x32xf32>
    %110 = arith.subf %102, %109 : vector<16x32xf32>
    %111 = arith.mulf %110, %110 : vector<16x32xf32>
    %cst_35 = arith.constant dense<0.000000e+00> : vector<16xf32>
    %112 = vector.multi_reduction <add>, %111, %cst_35 [1] : vector<16x32xf32> to vector<16xf32>
    %113 = vector.shape_cast %112 : vector<16xf32> to vector<16x1xf32>
    %cst_36 = arith.constant 3.200000e+01 : f32
    %114 = vector.broadcast %cst_36 : f32 to vector<16x1xf32>
    %115 = arith.divf %113, %114 : vector<16x1xf32>
    %cst_37 = arith.constant 9.99999974E-6 : f32
    %116 = vector.broadcast %cst_37 : f32 to vector<16x1xf32>
    %117 = arith.addf %115, %116 : vector<16x1xf32>
    %118 = math.rsqrt %117 : vector<16x1xf32>
    %119 = vector.broadcast %118 : vector<16x1xf32> to vector<16x32xf32>
    %120 = arith.mulf %110, %119 : vector<16x32xf32>
    %121 = vector.broadcast %103 : vector<1x32xf32> to vector<16x32xf32>
    %122 = arith.mulf %120, %121 : vector<16x32xf32>
    %123 = vector.broadcast %104 : vector<1x32xf32> to vector<16x32xf32>
    %124 = arith.addf %122, %123 : vector<16x32xf32>
    %125 = arith.truncf %124 : vector<16x32xf32> to vector<16x32xbf16>
    %c0_38 = arith.constant 0 : index
    %c0_39 = arith.constant 0 : index
    %126 = vector.load %arg10[%c0_38, %c0_39] : memref<32x128xbf16, #tpu.memory_space<vmem>>, vector<32x128xbf16>
    %cst_40 = arith.constant dense<0.000000e+00> : vector<16x128xf32>
    %127 = tpu.matmul %125, %126, %cst_40 {dimension_numbers = #tpu.dot_dimension_numbers<[1], [0], [0], [1], [0, 0, 1, 1], [], []>} : vector<16x32xbf16>, vector<32x128xbf16>, vector<16x128xf32> -> vector<16x128xf32>
    %c0_41 = arith.constant 0 : index
    %c0_42 = arith.constant 0 : index
    %128 = vector.load %arg11[%c0_41, %c0_42] : memref<1x128xf32, #tpu.memory_space<vmem>>, vector<1x128xf32>
    %129 = vector.broadcast %128 : vector<1x128xf32> to vector<16x128xf32>
    %130 = arith.addf %127, %129 : vector<16x128xf32>
    %cst_43 = arith.constant 5.000000e-01 : f32
    %131 = vector.broadcast %cst_43 : f32 to vector<16x128xf32>
    %132 = arith.mulf %131, %130 : vector<16x128xf32>
    %cst_44 = arith.constant 0.707106769 : f32
    %133 = vector.broadcast %cst_44 : f32 to vector<16x128xf32>
    %134 = arith.mulf %130, %133 : vector<16x128xf32>
    %135 = math.absf %134 : vector<16x128xf32>
    %cst_45 = arith.constant 0.327591091 : f32
    %136 = vector.broadcast %cst_45 : f32 to vector<16x128xf32>
    %137 = arith.mulf %136, %135 : vector<16x128xf32>
    %cst_46 = arith.constant 1.000000e+00 : f32
    %138 = vector.broadcast %cst_46 : f32 to vector<16x128xf32>
    %139 = arith.addf %138, %137 : vector<16x128xf32>
    %140 = tpu.reciprocal %139 {approx = true} : vector<16x128xf32> -> vector<16x128xf32>
    %cst_47 = arith.constant 1.06140542 : f32
    %141 = vector.broadcast %cst_47 : f32 to vector<16x128xf32>
    %142 = arith.mulf %141, %140 : vector<16x128xf32>
    %cst_48 = arith.constant 1.45315206 : f32
    %143 = vector.broadcast %cst_48 : f32 to vector<16x128xf32>
    %144 = arith.subf %142, %143 : vector<16x128xf32>
    %145 = arith.mulf %144, %140 : vector<16x128xf32>
    %cst_49 = arith.constant 1.42141378 : f32
    %146 = vector.broadcast %cst_49 : f32 to vector<16x128xf32>
    %147 = arith.addf %145, %146 : vector<16x128xf32>
    %148 = arith.mulf %147, %140 : vector<16x128xf32>
    %cst_50 = arith.constant 0.284496725 : f32
    %149 = vector.broadcast %cst_50 : f32 to vector<16x128xf32>
    %150 = arith.subf %148, %149 : vector<16x128xf32>
    %151 = arith.mulf %150, %140 : vector<16x128xf32>
    %cst_51 = arith.constant 0.254829586 : f32
    %152 = vector.broadcast %cst_51 : f32 to vector<16x128xf32>
    %153 = arith.addf %151, %152 : vector<16x128xf32>
    %154 = arith.mulf %153, %140 : vector<16x128xf32>
    %cst_52 = arith.constant 0.000000e+00 : f32
    %155 = vector.broadcast %cst_52 : f32 to vector<16x128xf32>
    %156 = arith.subf %155, %135 : vector<16x128xf32>
    %157 = arith.mulf %156, %135 : vector<16x128xf32>
    %158 = math.exp %157 : vector<16x128xf32>
    %159 = arith.mulf %154, %158 : vector<16x128xf32>
    %cst_53 = arith.constant 1.000000e+00 : f32
    %160 = vector.broadcast %cst_53 : f32 to vector<16x128xf32>
    %161 = arith.subf %160, %159 : vector<16x128xf32>
    %cst_54 = arith.constant 0.000000e+00 : f32
    %162 = vector.broadcast %cst_54 : f32 to vector<16x128xf32>
    %163 = arith.cmpf oge, %134, %162 : vector<16x128xf32>
    %cst_55 = arith.constant 0.000000e+00 : f32
    %164 = vector.broadcast %cst_55 : f32 to vector<16x128xf32>
    %165 = arith.subf %164, %161 : vector<16x128xf32>
    %166 = arith.select %163, %161, %165 : vector<16x128xi1>, vector<16x128xf32>
    %cst_56 = arith.constant 1.000000e+00 : f32
    %167 = vector.broadcast %cst_56 : f32 to vector<16x128xf32>
    %168 = arith.addf %167, %166 : vector<16x128xf32>
    %169 = arith.mulf %132, %168 : vector<16x128xf32>
    %170 = arith.truncf %169 : vector<16x128xf32> to vector<16x128xbf16>
    %c0_57 = arith.constant 0 : index
    %c0_58 = arith.constant 0 : index
    %171 = vector.load %arg12[%c0_57, %c0_58] : memref<128x32xbf16, #tpu.memory_space<vmem>>, vector<128x32xbf16>
    %cst_59 = arith.constant dense<0.000000e+00> : vector<16x32xf32>
    %172 = tpu.matmul %170, %171, %cst_59 {dimension_numbers = #tpu.dot_dimension_numbers<[1], [0], [0], [1], [0, 0, 1, 1], [], []>} : vector<16x128xbf16>, vector<128x32xbf16>, vector<16x32xf32> -> vector<16x32xf32>
    %173 = arith.addf %102, %172 : vector<16x32xf32>
    %c0_60 = arith.constant 0 : index
    %c0_61 = arith.constant 0 : index
    %174 = vector.load %arg13[%c0_60, %c0_61] : memref<1x32xf32, #tpu.memory_space<vmem>>, vector<1x32xf32>
    %175 = vector.broadcast %174 : vector<1x32xf32> to vector<16x32xf32>
    %176 = arith.addf %173, %175 : vector<16x32xf32>
    %c0_62 = arith.constant 0 : index
    %c0_63 = arith.constant 0 : index
    %177 = vector.load %arg14[%c0_62, %c0_63] : memref<1x32xf32, #tpu.memory_space<vmem>>, vector<1x32xf32>
    %c0_64 = arith.constant 0 : index
    %c0_65 = arith.constant 0 : index
    %178 = vector.load %arg15[%c0_64, %c0_65] : memref<1x32xf32, #tpu.memory_space<vmem>>, vector<1x32xf32>
    %cst_66 = arith.constant dense<0.000000e+00> : vector<16xf32>
    %179 = vector.multi_reduction <add>, %176, %cst_66 [1] : vector<16x32xf32> to vector<16xf32>
    %180 = vector.shape_cast %179 : vector<16xf32> to vector<16x1xf32>
    %cst_67 = arith.constant 3.200000e+01 : f32
    %181 = vector.broadcast %cst_67 : f32 to vector<16x1xf32>
    %182 = arith.divf %180, %181 : vector<16x1xf32>
    %183 = vector.broadcast %182 : vector<16x1xf32> to vector<16x32xf32>
    %184 = arith.subf %176, %183 : vector<16x32xf32>
    %185 = arith.mulf %184, %184 : vector<16x32xf32>
    %cst_68 = arith.constant dense<0.000000e+00> : vector<16xf32>
    %186 = vector.multi_reduction <add>, %185, %cst_68 [1] : vector<16x32xf32> to vector<16xf32>
    %187 = vector.shape_cast %186 : vector<16xf32> to vector<16x1xf32>
    %cst_69 = arith.constant 3.200000e+01 : f32
    %188 = vector.broadcast %cst_69 : f32 to vector<16x1xf32>
    %189 = arith.divf %187, %188 : vector<16x1xf32>
    %cst_70 = arith.constant 9.99999974E-6 : f32
    %190 = vector.broadcast %cst_70 : f32 to vector<16x1xf32>
    %191 = arith.addf %189, %190 : vector<16x1xf32>
    %192 = math.rsqrt %191 : vector<16x1xf32>
    %193 = vector.broadcast %192 : vector<16x1xf32> to vector<16x32xf32>
    %194 = arith.mulf %184, %193 : vector<16x32xf32>
    %195 = vector.broadcast %177 : vector<1x32xf32> to vector<16x32xf32>
    %196 = arith.mulf %194, %195 : vector<16x32xf32>
    %197 = vector.broadcast %178 : vector<1x32xf32> to vector<16x32xf32>
    %198 = arith.addf %196, %197 : vector<16x32xf32>
    %199 = arith.truncf %198 : vector<16x32xf32> to vector<16x32xbf16>
    %c0_71 = arith.constant 0 : index
    %c0_72 = arith.constant 0 : index
    %200 = vector.load %arg16[%c0_71, %c0_72] : memref<32x16xbf16, #tpu.memory_space<vmem>>, vector<32x16xbf16>
    %cst_73 = arith.constant dense<0.000000e+00> : vector<16x16xf32>
    %201 = tpu.matmul %199, %200, %cst_73 {dimension_numbers = #tpu.dot_dimension_numbers<[1], [0], [0], [1], [0, 0, 1, 1], [], []>} : vector<16x32xbf16>, vector<32x16xbf16>, vector<16x16xf32> -> vector<16x16xf32>
    %c0_74 = arith.constant 0 : index
    %c0_75 = arith.constant 0 : index
    %c0_76 = arith.constant 0 : index
    %202 = vector.load %arg17[%c0_74, %c0_75, %c0_76] : memref<1x16x16xf32, #tpu.memory_space<vmem>>, vector<1x16x16xf32>
    %203 = vector.shape_cast %202 : vector<1x16x16xf32> to vector<16x16xf32>
    %204 = vector.shape_cast %201 : vector<16x16xf32> to vector<1x16x16xf32>
    tpu.vector_store %arg17[%c0_74, %c0_75, %c0_76], %204 {strides = array<i32>} : memref<1x16x16xf32, #tpu.memory_space<vmem>>, vector<1x16x16xf32>,
    return
  }
  func.func @transform_0(%arg0: i32) -> (i32, i32, i32) {
    %c0_i32 = arith.constant 0 : i32
    %c0_i32_0 = arith.constant 0 : i32
    %c0_i32_1 = arith.constant 0 : i32
    return %arg0, %c0_i32, %c0_i32_0 : i32, i32, i32
  }
  func.func @transform_1(%arg0: i32) -> (i32, i32) {
    %c0_i32 = arith.constant 0 : i32
    %c0_i32_0 = arith.constant 0 : i32
    %c0_i32_1 = arith.constant 0 : i32
    return %c0_i32, %c0_i32_0 : i32, i32
  }
  func.func @transform_2(%arg0: i32) -> (i32, i32) {
    %c0_i32 = arith.constant 0 : i32
    %c0_i32_0 = arith.constant 0 : i32
    %c0_i32_1 = arith.constant 0 : i32
    return %c0_i32, %c0_i32_0 : i32, i32
  }
  func.func @transform_3(%arg0: i32) -> (i32, i32) {
    %c0_i32 = arith.constant 0 : i32
    %c0_i32_0 = arith.constant 0 : i32
    %c0_i32_1 = arith.constant 0 : i32
    return %c0_i32, %c0_i32_0 : i32, i32
  }
  func.func @transform_4(%arg0: i32) -> (i32, i32) {
    %c0_i32 = arith.constant 0 : i32
    %c0_i32_0 = arith.constant 0 : i32
    %c0_i32_1 = arith.constant 0 : i32
    return %c0_i32, %c0_i32_0 : i32, i32
  }
  func.func @transform_5(%arg0: i32) -> (i32, i32) {
    %c0_i32 = arith.constant 0 : i32
    %c0_i32_0 = arith.constant 0 : i32
    %c0_i32_1 = arith.constant 0 : i32
    return %c0_i32, %c0_i32_0 : i32, i32
  }
  func.func @transform_6(%arg0: i32) -> (i32, i32) {
    %c0_i32 = arith.constant 0 : i32
    %c0_i32_0 = arith.constant 0 : i32
    %c0_i32_1 = arith.constant 0 : i32
    return %c0_i32, %c0_i32_0 : i32, i32
  }
  func.func @transform_7(%arg0: i32) -> (i32, i32) {
    %c0_i32 = arith.constant 0 : i32
    %c0_i32_0 = arith.constant 0 : i32
    %c0_i32_1 = arith.constant 0 : i32
    return %c0_i32, %c0_i32_0 : i32, i32
  }
  func.func @transform_8(%arg0: i32) -> (i32, i32) {
    %c0_i32 = arith.constant 0 : i32
    %c0_i32_0 = arith.constant 0 : i32
    %c0_i32_1 = arith.constant 0 : i32
    return %c0_i32, %c0_i32_0 : i32, i32
  }
  func.func @transform_9(%arg0: i32) -> (i32, i32) {
    %c0_i32 = arith.constant 0 : i32
    %c0_i32_0 = arith.constant 0 : i32
    %c0_i32_1 = arith.constant 0 : i32
    return %c0_i32, %c0_i32_0 : i32, i32
  }
  func.func @transform_10(%arg0: i32) -> (i32, i32) {
    %c0_i32 = arith.constant 0 : i32
    %c0_i32_0 = arith.constant 0 : i32
    %c0_i32_1 = arith.constant 0 : i32
    return %c0_i32, %c0_i32_0 : i32, i32
  }
  func.func @transform_11(%arg0: i32) -> (i32, i32) {
    %c0_i32 = arith.constant 0 : i32
    %c0_i32_0 = arith.constant 0 : i32
    %c0_i32_1 = arith.constant 0 : i32
    return %c0_i32, %c0_i32_0 : i32, i32
  }
  func.func @transform_12(%arg0: i32) -> (i32, i32) {
    %c0_i32 = arith.constant 0 : i32
    %c0_i32_0 = arith.constant 0 : i32
    %c0_i32_1 = arith.constant 0 : i32
    return %c0_i32, %c0_i32_0 : i32, i32
  }
  func.func @transform_13(%arg0: i32) -> (i32, i32) {
    %c0_i32 = arith.constant 0 : i32
    %c0_i32_0 = arith.constant 0 : i32
    %c0_i32_1 = arith.constant 0 : i32
    return %c0_i32, %c0_i32_0 : i32, i32
  }
  func.func @transform_14(%arg0: i32) -> (i32, i32) {
    %c0_i32 = arith.constant 0 : i32
    %c0_i32_0 = arith.constant 0 : i32
    %c0_i32_1 = arith.constant 0 : i32
    return %c0_i32, %c0_i32_0 : i32, i32
  }
  func.func @transform_15(%arg0: i32) -> (i32, i32) {
    %c0_i32 = arith.constant 0 : i32
    %c0_i32_0 = arith.constant 0 : i32
    %c0_i32_1 = arith.constant 0 : i32
    return %c0_i32, %c0_i32_0 : i32, i32
  }
  func.func @transform_16(%arg0: i32) -> (i32, i32, i32) {
    %c0_i32 = arith.constant 0 : i32
    %c0_i32_0 = arith.constant 0 : i32
    %c0_i32_1 = arith.constant 0 : i32
    return %arg0, %c0_i32, %c0_i32_0 : i32, i32, i32
  }
  func.func @transform_17(%arg0: i32) -> (i32, i32, i32, i32) {
    %c0_i32 = arith.constant 0 : i32
    %c0_i32_0 = arith.constant 0 : i32
    %c0_i32_1 = arith.constant 0 : i32
    %c0_i32_2 = arith.constant 0 : i32
    return %arg0, %c0_i32, %c0_i32_0, %c0_i32_1 : i32, i32, i32, i32
  }
}

</mosaic_0001>

<bundles_post_ra>
// kernel: gpt_forward.7
= control target key start
LH: loop header
LB: loop body
LE: loop exit
PB: predicated region body
PF: predicated region fallthrough
CT: control target
= control target key end

     0   :  { %s2568_s12 = smov 0   ;;  %s3083_s0 = inlined_call_operand.vmem [shape: bf16[3200,256], index: 0, kind: input, shape index: {}]   ;;  %s3084_s1 = inlined_call_operand.vmem [shape: bf16[256,32], index: 1, kind: input, shape index: {}]   ;;  %s3085_s2 = inlined_call_operand.vmem [shape: f32[1,32], index: 2, kind: input, shape index: {}]   ;;  %s3086_s3 = inlined_call_operand.vmem [shape: bf16[3200,32], index: 3, kind: output, shape index: {}]  }
   0x1 LB: > { %s2003_s13 = sadd.s32 4294967295, %s2545_s12   ;;  %p2007_p0 = scmp.ge.s32.totalorder %s2545_s12, 1  ;;  %s2545_s12 = sphi %s2568_s12, %s13_s12  }
   0x2   : > { %p139_p1 = scmp.lt.s32.totalorder %s2545_s12, 5 }
   0x4   : > { %p140_p2 = pnand %p2007_p0, %p139_p1 }
   0x5   : > { %v2372_v0 = vld [vmem:[%s3084_s1] sm:$0xff] (!%p140_p2)   ;;  %v2547_v1 = vmov (!%p140_p2), 0   ;;  %s164_s16 = smul.u32 (!%p140_p2), 100, %s2003_s13  ;;  %v2373_v2 = vld [vmem:[%s3084_s1 + $0x8] sm:$0xff] (!%p140_p2)   ;;  %v2374_v3 = vld [vmem:[%s3084_s1 + $0x10] sm:$0xff] (!%p140_p2)   ;;  %vm1846_vm0 = vcmask (!%p140_p2), 257024  }
   0x6   : > { %143 = sbr.rel (%p140_p2) target bundleno = 483 (0x1e3), region = 32  ;;  %913 = vmatprep.subr.bf16.mxu0 (!%p140_p2), %v2547_v1  ;;  %2331 = vmatprep.subr.bf16.mxu1 (!%p140_p2), %v2547_v1  ;;  %v2375_v4 = vld [vmem:[%s3084_s1 + $0x18] sm:$0xff] (!%p140_p2)   ;;  %v2376_v5 = vld [vmem:[%s3084_s1 + $0x20] sm:$0xff] (!%p140_p2)   ;;  %v2377_v7 = vld [vmem:[%s3084_s1 + $0x28] sm:$0xff] (!%p140_p2)  }
   0x7   : > { %914 = vmatpush1.bf16.msra.mxu0 (!%p140_p2), %v2372_v0  ;;  %2347 = vmatpush1.bf16.msra.mxu1 (!%p140_p2), %v2372_v0  ;;  %p165_p3 = scmp.lt.s32.totalorder (!%p140_p2), %s164_s16, 399  ;;  %v2378_v9 = vld [vmem:[%s3084_s1 + $0x30] sm:$0xff] (!%p140_p2)   ;;  %v2379_v10 = vld [vmem:[%s3084_s1 + $0x38] sm:$0xff] (!%p140_p2)   ;;  %v2380_v11 = vld [vmem:[%s3084_s1 + $0x40] sm:$0xff] (!%p140_p2)  }
   0x8   : > { %915 = vmatprep.subr.bf16.mxu0 (!%p140_p2), %v2547_v1  ;;  %2332 = vmatprep.subr.bf16.mxu1 (!%p140_p2), %v2547_v1  ;;  %v2381_v12 = vld [vmem:[%s3084_s1 + $0x48] sm:$0xff] (!%p140_p2)   ;;  %v2382_v13 = vld [vmem:[%s3084_s1 + $0x50] sm:$0xff] (!%p140_p2)   ;;  %v2383_v14 = vld [vmem:[%s3084_s1 + $0x58] sm:$0xff] (!%p140_p2)  }
   0x9   : > { %v2384_v15 = vld [vmem:[%s3084_s1 + $0x60] sm:$0xff] (!%p140_p2)   ;;  %v2385_v16 = vld [vmem:[%s3084_s1 + $0x68] sm:$0xff] (!%p140_p2)   ;;  %v2386_v17 = vld [vmem:[%s3084_s1 + $0x70] sm:$0xff] (!%p140_p2)  }
   0xa   : > { %v2387_v18 = vld [vmem:[%s3084_s1 + $0x78] sm:$0xff] (!%p140_p2)  }
   0xb   : > { %916 = vmatpush1.bf16.msra.mxu0 (!%p140_p2), %v2373_v2  ;;  %2348 = vmatpush1.bf16.msra.mxu1 (!%p140_p2), %v2373_v2 }
   0xc   : > { %917 = vmatprep.subr.bf16.mxu0 (!%p140_p2), %v2547_v1  ;;  %2333 = vmatprep.subr.bf16.mxu1 (!%p140_p2), %v2547_v1 }
   0xd   : > { %s3088_s16 = smov (!%p165_p3, %s164_s16), 399 }
   0xe   : > { %s2230_s23 = sshll.u32 %s3088_s16, 3  ;;  %s2010_s29 = sshll.u32 %s3088_s16, 2 }
   0xf   : > { %918 = vmatpush1.bf16.msra.mxu0 %v2374_v3  ;;  %2349 = vmatpush1.bf16.msra.mxu1 %v2374_v3  ;;  %s2605_s28 = scalar_lea.vmem %s3083_s0, %s2230_s23  ;;  %s2777_s16 = scalar_lea.vmem %s3086_s3, %s2010_s29 }
  0x10   : > { %919 = vmatprep.subr.bf16.mxu0 %v2547_v1  ;;  %2334 = vmatprep.subr.bf16.mxu1 %v2547_v1  ;;  %v2390_v6 = vld [vmem:[%s2605_s28 + $0x4] ss:$8 sps:$4 sm:$0xff]   ;;  %v2393_v8 = vld [vmem:[%s2605_s28 + $0x194] ss:$8 sps:$4 sm:$0xff]   ;;  %v2388_v19 = vld [vmem:[%s2605_s28] ss:$8 sps:$4 sm:$0xff]  }
  0x11   : > { %945 = vmatprep.mubr.bf16.mxu0 %v2390_v6  ;;  %1145 = vmatprep.mubr.bf16.mxu1 %v2393_v8  ;;  %v2391_v20 = vld [vmem:[%s2605_s28 + $0x190] ss:$8 sps:$4 sm:$0xff]   ;;  %v2394_v21 = vld [vmem:[%s2605_s28 + $0x14] ss:$8 sps:$4 sm:$0xff]   ;;  %v2396_v22 = vld [vmem:[%s2605_s28 + $0x1a4] ss:$8 sps:$4 sm:$0xff]  }
  0x12   : > { %v2398_v23 = vld [vmem:[%s2605_s28 + $0x10] ss:$8 sps:$4 sm:$0xff]   ;;  %v2399_v24 = vld [vmem:[%s2605_s28 + $0x1a0] ss:$8 sps:$4 sm:$0xff]   ;;  %v2400_v25 = vld [vmem:[%s2605_s28 + $0x24] ss:$8 sps:$4 sm:$0xff]  }
  0x13   : > { %920 = vmatpush1.bf16.msra.mxu0 %v2375_v4  ;;  %2350 = vmatpush1.bf16.msra.mxu1 %v2375_v4  ;;  %v2402_v26 = vld [vmem:[%s2605_s28 + $0x1b4] ss:$8 sps:$4 sm:$0xff]   ;;  %v2404_v27 = vld [vmem:[%s2605_s28 + $0x20] ss:$8 sps:$4 sm:$0xff]   ;;  %v2405_v28 = vld [vmem:[%s2605_s28 + $0x1b0] ss:$8 sps:$4 sm:$0xff]  }
  0x14   : > { %921 = vmatprep.subr.bf16.mxu0 %v2547_v1  ;;  %2335 = vmatprep.subr.bf16.mxu1 %v2547_v1  ;;  %v2406_v29 = vld [vmem:[%s2605_s28 + $0x34] ss:$8 sps:$4 sm:$0xff]   ;;  %v2408_v30 = vld [vmem:[%s2605_s28 + $0x1c4] ss:$8 sps:$4 sm:$0xff]   ;;  %v2410_v31 = vld [vmem:[%s2605_s28 + $0x30] ss:$8 sps:$4 sm:$0xff]  }
  0x15   : > { %v2411_v32 = vld [vmem:[%s2605_s28 + $0x1c0] ss:$8 sps:$4 sm:$0xff]   ;;  %v2412_v33 = vld [vmem:[%s2605_s28 + $0x44] ss:$8 sps:$4 sm:$0xff]   ;;  %v2414_v34 = vld [vmem:[%s2605_s28 + $0x1d4] ss:$8 sps:$4 sm:$0xff]  }
  0x16   : > { %v2416_v35 = vld [vmem:[%s2605_s28 + $0x40] ss:$8 sps:$4 sm:$0xff]   ;;  %v2417_v36 = vld [vmem:[%s2605_s28 + $0x1d0] ss:$8 sps:$4 sm:$0xff]   ;;  %v2418_v37 = vld [vmem:[%s2605_s28 + $0x54] ss:$8 sps:$4 sm:$0xff]  }
  0x17   : > { %922 = vmatpush1.bf16.msra.mxu0 %v2376_v5  ;;  %2351 = vmatpush1.bf16.msra.mxu1 %v2376_v5  ;;  %v2420_v38 = vld [vmem:[%s2605_s28 + $0x1e4] ss:$8 sps:$4 sm:$0xff]   ;;  %v2422_v39 = vld [vmem:[%s2605_s28 + $0x50] ss:$8 sps:$4 sm:$0xff]   ;;  %v2423_v40 = vld [vmem:[%s2605_s28 + $0x1e0] ss:$8 sps:$4 sm:$0xff]  }
  0x18   : > { %923 = vmatprep.subr.bf16.mxu0 %v2547_v1  ;;  %2336 = vmatprep.subr.bf16.mxu1 %v2547_v1  ;;  %v2424_v41 = vld [vmem:[%s2605_s28 + $0x64] ss:$8 sps:$4 sm:$0xff]   ;;  %v2426_v42 = vld [vmem:[%s2605_s28 + $0x1f4] ss:$8 sps:$4 sm:$0xff]   ;;  %v2428_v43 = vld [vmem:[%s2605_s28 + $0x60] ss:$8 sps:$4 sm:$0xff]  }
  0x19   : > { %v2429_v44 = vld [vmem:[%s2605_s28 + $0x1f0] ss:$8 sps:$4 sm:$0xff]   ;;  %v2430_v45 = vld [vmem:[%s2605_s28 + $0x74] ss:$8 sps:$4 sm:$0xff]   ;;  %v2432_v46 = vld [vmem:[%s2605_s28 + $0x204] ss:$8 sps:$4 sm:$0xff]  }
  0x1a   : > { %v2434_v47 = vld [vmem:[%s2605_s28 + $0x70] ss:$8 sps:$4 sm:$0xff]   ;;  %v2435_v48 = vld [vmem:[%s2605_s28 + $0x200] ss:$8 sps:$4 sm:$0xff]   ;;  %v2436_v49 = vld [vmem:[%s2605_s28 + $0x84] ss:$8 sps:$4 sm:$0xff]  }
  0x1b   : > { %924 = vmatpush1.bf16.msra.mxu0 %v2377_v7  ;;  %2352 = vmatpush1.bf16.msra.mxu1 %v2377_v7  ;;  %v2438_v50 = vld [vmem:[%s2605_s28 + $0x214] ss:$8 sps:$4 sm:$0xff]   ;;  %v2440_v51 = vld [vmem:[%s2605_s28 + $0x80] ss:$8 sps:$4 sm:$0xff]   ;;  %v2441_v52 = vld [vmem:[%s2605_s28 + $0x210] ss:$8 sps:$4 sm:$0xff]  }
  0x1c   : > { %925 = vmatprep.subr.bf16.mxu0 %v2547_v1  ;;  %2337 = vmatprep.subr.bf16.mxu1 %v2547_v1  ;;  %v2442_v53 = vld [vmem:[%s2605_s28 + $0x94] ss:$8 sps:$4 sm:$0xff]   ;;  %v2444_v54 = vld [vmem:[%s2605_s28 + $0x224] ss:$8 sps:$4 sm:$0xff]   ;;  %v2446_v55 = vld [vmem:[%s2605_s28 + $0x90] ss:$8 sps:$4 sm:$0xff]  }
  0x1d   : > { %v2447_v56 = vld [vmem:[%s2605_s28 + $0x220] ss:$8 sps:$4 sm:$0xff]   ;;  %v2448_v57 = vld [vmem:[%s2605_s28 + $0xa4] ss:$8 sps:$4 sm:$0xff]   ;;  %v2450_v58 = vld [vmem:[%s2605_s28 + $0x234] ss:$8 sps:$4 sm:$0xff]  }
  0x1e   : > { %v2452_v59 = vld [vmem:[%s2605_s28 + $0xa0] ss:$8 sps:$4 sm:$0xff]   ;;  %v2453_v60 = vld [vmem:[%s2605_s28 + $0x230] ss:$8 sps:$4 sm:$0xff]   ;;  %v2454_v61 = vld [vmem:[%s2605_s28 + $0xb4] ss:$8 sps:$4 sm:$0xff]  }
  0x1f   : > { %926 = vmatpush1.bf16.msra.mxu0 %v2378_v9  ;;  %2353 = vmatpush1.bf16.msra.mxu1 %v2378_v9  ;;  %v2456_v62 = vld [vmem:[%s2605_s28 + $0x244] ss:$8 sps:$4 sm:$0xff]   ;;  %v2458_v63 = vld [vmem:[%s2605_s28 + $0xb0] ss:$8 sps:$4 sm:$0xff]   ;;  %v2459_v0 = vld [vmem:[%s2605_s28 + $0x240] ss:$8 sps:$4 sm:$0xff]  }
  0x20   : > { %927 = vmatprep.subr.bf16.mxu0 %v2547_v1  ;;  %2338 = vmatprep.subr.bf16.mxu1 %v2547_v1  ;;  %v2462_v2 = vld [vmem:[%s2605_s28 + $0x254] ss:$8 sps:$4 sm:$0xff]   ;;  %v2464_v3 = vld [vmem:[%s2605_s28 + $0xc0] ss:$8 sps:$4 sm:$0xff]   ;;  %v2465_v4 = vld [vmem:[%s2605_s28 + $0x250] ss:$8 sps:$4 sm:$0xff]  }
  0x21   : > { %v2466_v5 = vld [vmem:[%s2605_s28 + $0xd4] ss:$8 sps:$4 sm:$0xff]   ;;  %v2468_v6 = vld [vmem:[%s2605_s28 + $0x264] ss:$8 sps:$4 sm:$0xff]   ;;  %v2470_v7 = vld [vmem:[%s2605_s28 + $0xd0] ss:$8 sps:$4 sm:$0xff]  }
  0x22   : > { %v2471_v8 = vld [vmem:[%s2605_s28 + $0x260] ss:$8 sps:$4 sm:$0xff]   ;;  %v2472_v9 = vld [vmem:[%s2605_s28 + $0xe4] ss:$8 sps:$4 sm:$0xff]  }
  0x23   : > { %928 = vmatpush1.bf16.msra.mxu0 %v2379_v10  ;;  %2354 = vmatpush1.bf16.msra.mxu1 %v2379_v10  ;;  %v2474_v10 = vld [vmem:[%s2605_s28 + $0x274] ss:$8 sps:$4 sm:$0xff]  }
  0x24   : > { %929 = vmatprep.subr.bf16.mxu0 %v2547_v1  ;;  %2339 = vmatprep.subr.bf16.mxu1 %v2547_v1 }
  0x27   : > { %930 = vmatpush1.bf16.msra.mxu0 %v2380_v11  ;;  %2355 = vmatpush1.bf16.msra.mxu1 %v2380_v11  ;;  %v2476_v11 = vld [vmem:[%s2605_s28 + $0xe0] ss:$8 sps:$4 sm:$0xff]  }
  0x28   : > { %931 = vmatprep.subr.bf16.mxu0 %v2547_v1  ;;  %2340 = vmatprep.subr.bf16.mxu1 %v2547_v1 }
  0x2b   : > { %932 = vmatpush1.bf16.msra.mxu0 %v2381_v12  ;;  %2356 = vmatpush1.bf16.msra.mxu1 %v2381_v12  ;;  %v2477_v12 = vld [vmem:[%s2605_s28 + $0x270] ss:$8 sps:$4 sm:$0xff]  }
  0x2c   : > { %933 = vmatprep.subr.bf16.mxu0 %v2547_v1  ;;  %2341 = vmatprep.subr.bf16.mxu1 %v2547_v1 }
  0x2f   : > { %934 = vmatpush1.bf16.msra.mxu0 %v2382_v13  ;;  %2357 = vmatpush1.bf16.msra.mxu1 %v2382_v13  ;;  %v2478_v13 = vld [vmem:[%s2605_s28 + $0xf4] ss:$8 sps:$4 sm:$0xff]  }
  0x30   : > { %935 = vmatprep.subr.bf16.mxu0 %v2547_v1  ;;  %2342 = vmatprep.subr.bf16.mxu1 %v2547_v1 }
  0x33   : > { %936 = vmatpush1.bf16.msra.mxu0 %v2383_v14  ;;  %2358 = vmatpush1.bf16.msra.mxu1 %v2383_v14  ;;  %v2480_v14 = vld [vmem:[%s2605_s28 + $0x284] ss:$8 sps:$4 sm:$0xff]  }
  0x34   : > { %937 = vmatprep.subr.bf16.mxu0 %v2547_v1  ;;  %2343 = vmatprep.subr.bf16.mxu1 %v2547_v1 }
  0x37   : > { %938 = vmatpush1.bf16.msra.mxu0 %v2384_v15  ;;  %2359 = vmatpush1.bf16.msra.mxu1 %v2384_v15  ;;  %v2482_v15 = vld [vmem:[%s2605_s28 + $0xf0] ss:$8 sps:$4 sm:$0xff]  }
  0x38   : > { %939 = vmatprep.subr.bf16.mxu0 %v2547_v1  ;;  %2344 = vmatprep.subr.bf16.mxu1 %v2547_v1 }
  0x3b   : > { %940 = vmatpush1.bf16.msra.mxu0 %v2385_v16  ;;  %2360 = vmatpush1.bf16.msra.mxu1 %v2385_v16  ;;  %v2483_v16 = vld [vmem:[%s2605_s28 + $0x280] ss:$8 sps:$4 sm:$0xff]  }
  0x3c   : > { %941 = vmatprep.subr.bf16.mxu0 %v2547_v1  ;;  %2345 = vmatprep.subr.bf16.mxu1 %v2547_v1 }
  0x3f   : > { %942 = vmatpush1.bf16.msra.mxu0 %v2386_v17  ;;  %2361 = vmatpush1.bf16.msra.mxu1 %v2386_v17  ;;  %v2484_v17 = vld [vmem:[%s2605_s28 + $0x104] ss:$8 sps:$4 sm:$0xff]  }
  0x40   : > { %943 = vmatprep.subr.bf16.mxu0 %v2547_v1  ;;  %2346 = vmatprep.subr.bf16.mxu1 %v2547_v1  ;;  %v2460_v1 = vld [vmem:[%s2605_s28 + $0xc4] ss:$8 sps:$4 sm:$0xff]  }
  0x43   : > { %944 = vmatpush1.bf16.msra.mxu0 %v2387_v18  ;;  %2362 = vmatpush1.bf16.msra.mxu1 %v2387_v18  ;;  %v2486_v18 = vld [vmem:[%s2605_s28 + $0x294] ss:$8 sps:$4 sm:$0xff]  }
  0x46   : > { %946 = vmatmul.mubr.bf16.vlgmr.msra.gmra.mrb[0].mxu0 %v2388_v19  ;;  %1146 = vmatmul.mubr.bf16.vlgmr.msra.gmra.mrb[0].mxu1 %v2391_v20  ;;  %v2488_v19 = vld [vmem:[%s2605_s28 + $0x100] ss:$8 sps:$4 sm:$0xff]   ;;  %v2489_v20 = vld [vmem:[%s2605_s28 + $0x290] ss:$8 sps:$4 sm:$0xff]  }
  0x47   : > { %953 = vmatprep.mubr.bf16.mxu0 %v2394_v21  ;;  %1153 = vmatprep.mubr.bf16.mxu1 %v2396_v22  ;;  %v2490_v21 = vld [vmem:[%s2605_s28 + $0x114] ss:$8 sps:$4 sm:$0xff]   ;;  %v2492_v22 = vld [vmem:[%s2605_s28 + $0x2a4] ss:$8 sps:$4 sm:$0xff]  }
  0x4e   : > { %954 = vmatmul.mubr.bf16.gmra.mrb[4].mxu0 %v2398_v23  ;;  %1154 = vmatmul.mubr.bf16.gmra.mrb[4].mxu1 %v2399_v24  ;;  %v2494_v23 = vld [vmem:[%s2605_s28 + $0x110] ss:$8 sps:$4 sm:$0xff]   ;;  %v2495_v24 = vld [vmem:[%s2605_s28 + $0x2a0] ss:$8 sps:$4 sm:$0xff]  }
  0x4f   : > { %961 = vmatprep.mubr.bf16.mxu0 %v2400_v25  ;;  %1161 = vmatprep.mubr.bf16.mxu1 %v2402_v26  ;;  %v2496_v25 = vld [vmem:[%s2605_s28 + $0x124] ss:$8 sps:$4 sm:$0xff]   ;;  %v2498_v26 = vld [vmem:[%s2605_s28 + $0x2b4] ss:$8 sps:$4 sm:$0xff]  }
  0x56   : > { %962 = vmatmul.mubr.bf16.gmra.mrb[8].mxu0 %v2404_v27  ;;  %1162 = vmatmul.mubr.bf16.gmra.mrb[8].mxu1 %v2405_v28  ;;  %v2500_v27 = vld [vmem:[%s2605_s28 + $0x120] ss:$8 sps:$4 sm:$0xff]   ;;  %v2501_v28 = vld [vmem:[%s2605_s28 + $0x2b0] ss:$8 sps:$4 sm:$0xff]  }
  0x57   : > { %969 = vmatprep.mubr.bf16.mxu0 %v2406_v29  ;;  %1169 = vmatprep.mubr.bf16.mxu1 %v2408_v30  ;;  %v2502_v29 = vld [vmem:[%s2605_s28 + $0x134] ss:$8 sps:$4 sm:$0xff]   ;;  %v2504_v30 = vld [vmem:[%s2605_s28 + $0x2c4] ss:$8 sps:$4 sm:$0xff]  }
  0x5e   : > { %970 = vmatmul.mubr.bf16.gmra.mrb[12].mxu0 %v2410_v31  ;;  %1170 = vmatmul.mubr.bf16.gmra.mrb[12].mxu1 %v2411_v32  ;;  %v2506_v31 = vld [vmem:[%s2605_s28 + $0x130] ss:$8 sps:$4 sm:$0xff]   ;;  %v2507_v32 = vld [vmem:[%s2605_s28 + $0x2c0] ss:$8 sps:$4 sm:$0xff]  }
  0x5f   : > { %977 = vmatprep.mubr.bf16.mxu0 %v2412_v33  ;;  %1177 = vmatprep.mubr.bf16.mxu1 %v2414_v34  ;;  %v2508_v33 = vld [vmem:[%s2605_s28 + $0x144] ss:$8 sps:$4 sm:$0xff]   ;;  %v2510_v34 = vld [vmem:[%s2605_s28 + $0x2d4] ss:$8 sps:$4 sm:$0xff]  }
  0x66   : > { %978 = vmatmul.mubr.bf16.gmra.mrb[16].mxu0 %v2416_v35  ;;  %1178 = vmatmul.mubr.bf16.gmra.mrb[16].mxu1 %v2417_v36  ;;  %v2512_v35 = vld [vmem:[%s2605_s28 + $0x140] ss:$8 sps:$4 sm:$0xff]   ;;  %v2513_v36 = vld [vmem:[%s2605_s28 + $0x2d0] ss:$8 sps:$4 sm:$0xff]  }
  0x67   : > { %985 = vmatprep.mubr.bf16.mxu0 %v2418_v37  ;;  %1185 = vmatprep.mubr.bf16.mxu1 %v2420_v38  ;;  %v2514_v37 = vld [vmem:[%s2605_s28 + $0x154] ss:$8 sps:$4 sm:$0xff]   ;;  %v2516_v38 = vld [vmem:[%s2605_s28 + $0x2e4] ss:$8 sps:$4 sm:$0xff]  }
  0x6e   : > { %986 = vmatmul.mubr.bf16.gmra.mrb[20].mxu0 %v2422_v39  ;;  %1186 = vmatmul.mubr.bf16.gmra.mrb[20].mxu1 %v2423_v40  ;;  %v2518_v39 = vld [vmem:[%s2605_s28 + $0x150] ss:$8 sps:$4 sm:$0xff]   ;;  %v2519_v40 = vld [vmem:[%s2605_s28 + $0x2e0] ss:$8 sps:$4 sm:$0xff]  }
  0x6f   : > { %993 = vmatprep.mubr.bf16.mxu0 %v2424_v41  ;;  %1193 = vmatprep.mubr.bf16.mxu1 %v2426_v42  ;;  %v2520_v41 = vld [vmem:[%s2605_s28 + $0x164] ss:$8 sps:$4 sm:$0xff]   ;;  %v2522_v42 = vld [vmem:[%s2605_s28 + $0x2f4] ss:$8 sps:$4 sm:$0xff]  }
  0x76   : > { %994 = vmatmul.mubr.bf16.gmra.mrb[24].mxu0 %v2428_v43  ;;  %1194 = vmatmul.mubr.bf16.gmra.mrb[24].mxu1 %v2429_v44  ;;  %v2524_v43 = vld [vmem:[%s2605_s28 + $0x160] ss:$8 sps:$4 sm:$0xff]   ;;  %v2525_v44 = vld [vmem:[%s2605_s28 + $0x2f0] ss:$8 sps:$4 sm:$0xff]  }
  0x77   : > { %1001 = vmatprep.mubr.bf16.mxu0 %v2430_v45  ;;  %1201 = vmatprep.mubr.bf16.mxu1 %v2432_v46  ;;  %v2526_v45 = vld [vmem:[%s2605_s28 + $0x174] ss:$8 sps:$4 sm:$0xff]   ;;  %v2528_v46 = vld [vmem:[%s2605_s28 + $0x304] ss:$8 sps:$4 sm:$0xff]  }
  0x7e   : > { %1002 = vmatmul.mubr.bf16.gmra.mrb[28].mxu0 %v2434_v47  ;;  %1202 = vmatmul.mubr.bf16.gmra.mrb[28].mxu1 %v2435_v48  ;;  %v2530_v47 = vld [vmem:[%s2605_s28 + $0x170] ss:$8 sps:$4 sm:$0xff]   ;;  %v2531_v48 = vld [vmem:[%s2605_s28 + $0x300] ss:$8 sps:$4 sm:$0xff]  }
  0x7f   : > { %1009 = vmatprep.mubr.bf16.mxu0 %v2436_v49  ;;  %1209 = vmatprep.mubr.bf16.mxu1 %v2438_v50  ;;  %v2532_v49 = vld [vmem:[%s2605_s28 + $0x184] ss:$8 sps:$4 sm:$0xff]   ;;  %v2534_v50 = vld [vmem:[%s2605_s28 + $0x314] ss:$8 sps:$4 sm:$0xff]  }
  0x86   : > { %1010 = vmatmul.mubr.bf16.gmra.mrb[32].mxu0 %v2440_v51  ;;  %1210 = vmatmul.mubr.bf16.gmra.mrb[32].mxu1 %v2441_v52  ;;  %v2536_v51 = vld [vmem:[%s2605_s28 + $0x180] ss:$8 sps:$4 sm:$0xff]   ;;  %v2537_v52 = vld [vmem:[%s2605_s28 + $0x310] ss:$8 sps:$4 sm:$0xff]  }
  0x87   : > { %1017 = vmatprep.mubr.bf16.mxu0 %v2442_v53  ;;  %1217 = vmatprep.mubr.bf16.mxu1 %v2444_v54  ;;  %v2767_v53 = vld [vmem:[%s3085_s2] ss:$0 sm:$0xff] }
  0x8e   : > { %1018 = vmatmul.mubr.bf16.gmra.mrb[36].mxu0 %v2446_v55  ;;  %1218 = vmatmul.mubr.bf16.gmra.mrb[36].mxu1 %v2447_v56 }
  0x8f   : > { %1025 = vmatprep.mubr.bf16.mxu0 %v2448_v57  ;;  %1225 = vmatprep.mubr.bf16.mxu1 %v2450_v58 }
  0x96   : > { %1026 = vmatmul.mubr.bf16.gmra.mrb[40].mxu0 %v2452_v59  ;;  %1226 = vmatmul.mubr.bf16.gmra.mrb[40].mxu1 %v2453_v60 }
  0x97   : > { %1033 = vmatprep.mubr.bf16.mxu0 %v2454_v61  ;;  %1233 = vmatprep.mubr.bf16.mxu1 %v2456_v62 }
  0x9e   : > { %1034 = vmatmul.mubr.bf16.gmra.mrb[44].mxu0 %v2458_v63  ;;  %1234 = vmatmul.mubr.bf16.gmra.mrb[44].mxu1 %v2459_v0 }
  0x9f   : > { %1041 = vmatprep.mubr.bf16.mxu0 %v2460_v1  ;;  %1241 = vmatprep.mubr.bf16.mxu1 %v2462_v2 }
  0xa6   : > { %1042 = vmatmul.mubr.bf16.gmra.mrb[48].mxu0 %v2464_v3  ;;  %1242 = vmatmul.mubr.bf16.gmra.mrb[48].mxu1 %v2465_v4 }
  0xa7   : > { %1049 = vmatprep.mubr.bf16.mxu0 %v2466_v5  ;;  %1249 = vmatprep.mubr.bf16.mxu1 %v2468_v6 }
  0xae   : > { %1050 = vmatmul.mubr.bf16.gmra.mrb[52].mxu0 %v2470_v7  ;;  %1250 = vmatmul.mubr.bf16.gmra.mrb[52].mxu1 %v2471_v8 }
  0xaf   : > { %1057 = vmatprep.mubr.bf16.mxu0 %v2472_v9  ;;  %1257 = vmatprep.mubr.bf16.mxu1 %v2474_v10 }
  0xb6   : > { %1058 = vmatmul.mubr.bf16.gmra.mrb[56].mxu0 %v2476_v11  ;;  %1258 = vmatmul.mubr.bf16.gmra.mrb[56].mxu1 %v2477_v12 }
  0xb7   : > { %1065 = vmatprep.mubr.bf16.mxu0 %v2478_v13  ;;  %1265 = vmatprep.mubr.bf16.mxu1 %v2480_v14 }
  0xbe   : > { %1066 = vmatmul.mubr.bf16.gmra.mrb[60].mxu0 %v2482_v15  ;;  %1266 = vmatmul.mubr.bf16.gmra.mrb[60].mxu1 %v2483_v16 }
  0xbf   : > { %1073 = vmatprep.mubr.bf16.mxu0 %v2484_v17  ;;  %1273 = vmatprep.mubr.bf16.mxu1 %v2486_v18 }
  0xc6   : > { %1074 = vmatmul.mubr.bf16.gmra.mrb[64].mxu0 %v2488_v19  ;;  %1274 = vmatmul.mubr.bf16.gmra.mrb[64].mxu1 %v2489_v20 }
  0xc7   : > { %1081 = vmatprep.mubr.bf16.mxu0 %v2490_v21  ;;  %1281 = vmatprep.mubr.bf16.mxu1 %v2492_v22 }
  0xce   : > { %1082 = vmatmul.mubr.bf16.gmra.mrb[68].mxu0 %v2494_v23  ;;  %1282 = vmatmul.mubr.bf16.gmra.mrb[68].mxu1 %v2495_v24 }
  0xcf   : > { %1089 = vmatprep.mubr.bf16.mxu0 %v2496_v25  ;;  %1289 = vmatprep.mubr.bf16.mxu1 %v2498_v26 }
  0xd6   : > { %1090 = vmatmul.mubr.bf16.gmra.mrb[72].mxu0 %v2500_v27  ;;  %1290 = vmatmul.mubr.bf16.gmra.mrb[72].mxu1 %v2501_v28 }
  0xd7   : > { %1097 = vmatprep.mubr.bf16.mxu0 %v2502_v29  ;;  %1297 = vmatprep.mubr.bf16.mxu1 %v2504_v30 }
  0xde   : > { %1098 = vmatmul.mubr.bf16.gmra.mrb[76].mxu0 %v2506_v31  ;;  %1298 = vmatmul.mubr.bf16.gmra.mrb[76].mxu1 %v2507_v32 }
  0xdf   : > { %1105 = vmatprep.mubr.bf16.mxu0 %v2508_v33  ;;  %1305 = vmatprep.mubr.bf16.mxu1 %v2510_v34 }
  0xe6   : > { %1106 = vmatmul.mubr.bf16.gmra.mrb[80].mxu0 %v2512_v35  ;;  %1306 = vmatmul.mubr.bf16.gmra.mrb[80].mxu1 %v2513_v36 }
  0xe7   : > { %1113 = vmatprep.mubr.bf16.mxu0 %v2514_v37  ;;  %1313 = vmatprep.mubr.bf16.mxu1 %v2516_v38 }
  0xee   : > { %1114 = vmatmul.mubr.bf16.gmra.mrb[84].mxu0 %v2518_v39  ;;  %1314 = vmatmul.mubr.bf16.gmra.mrb[84].mxu1 %v2519_v40 }
  0xef   : > { %1121 = vmatprep.mubr.bf16.mxu0 %v2520_v41  ;;  %1321 = vmatprep.mubr.bf16.mxu1 %v2522_v42 }
  0xf6   : > { %1122 = vmatmul.mubr.bf16.gmra.mrb[88].mxu0 %v2524_v43  ;;  %1322 = vmatmul.mubr.bf16.gmra.mrb[88].mxu1 %v2525_v44 }
  0xf7   : > { %1129 = vmatprep.mubr.bf16.mxu0 %v2526_v45  ;;  %1329 = vmatprep.mubr.bf16.mxu1 %v2528_v46 }
  0xfe   : > { %1130 = vmatmul.mubr.bf16.gmra.mrb[92].mxu0 %v2530_v47  ;;  %1330 = vmatmul.mubr.bf16.gmra.mrb[92].mxu1 %v2531_v48 }
  0xff   : > { %1137 = vmatprep.mubr.bf16.mxu0 %v2532_v49  ;;  %1337 = vmatprep.mubr.bf16.mxu1 %v2534_v50 }
 0x106   : > { %1138 = vmatmul.mubr.bf16.gmra.mrb[96].mxu0 %v2536_v51  ;;  %1338 = vmatmul.mubr.bf16.gmra.mrb[96].mxu1 %v2537_v52 }
 0x119   : > { %v947_v54 = vpop.f32.mrb[0].mxu0  ;;  %v1147_v55 = vpop.f32.mrb[0].mxu1 }
 0x11a   : > { %v948_v56 = vadd.f32 %v2767_v53, %v947_v54  ;;  %v1148_v57 = vadd.f32 %v2767_v53, %v1147_v55  ;;  %v949_v58 = vpop.f32.mrb[1].mxu0  ;;  %v1149_v59 = vpop.f32.mrb[1].mxu1 }
 0x11b   : > { %v950_v60 = vpop.f32.mrb[2].mxu0  ;;  %v1150_v61 = vpop.f32.mrb[2].mxu1 }
 0x11c   : > { %v1346_v62 = vmax.f32 %v948_v56, 0.0  ;;  %v1396_v63 = vmax.f32 %v1148_v57, 0.0  ;;  %v951_v0 = vadd.f32 %v2767_v53, %v950_v60  ;;  %v1151_v1 = vadd.f32 %v2767_v53, %v1150_v61  ;;  %v952_v2 = vpop.f32.mrb[3].mxu0  ;;  %v1152_v3 = vpop.f32.mrb[3].mxu1 }
 0x11e   : > { %v2231_v4 = vpack.c.bf16 %v1346_v62, %v1346_v62  ;;  %v2281_v5 = vpack.c.bf16 %v1396_v63, %v1396_v63  ;;  %v1347_v6 = vmax.f32 %v951_v0, 0.0  ;;  %v1397_v7 = vmax.f32 %v1151_v1, 0.0 }
 0x120   : > { %1847 = vst.msk [vmem:[%s2777_s16] sm:$0xf] %vm1846_vm0, %v2231_v4  ;;  %1897 = vst.msk [vmem:[%s2777_s16 + $0xc8] sm:$0xf] %vm1846_vm0, %v2281_v5  ;;  %v2232_v8 = vpack.c.bf16 %v1347_v6, %v1347_v6  ;;  %v2282_v9 = vpack.c.bf16 %v1397_v7, %v1397_v7 }
 0x121   : > { %v955_v10 = vpop.f32.mrb[4].mxu0  ;;  %v1155_v11 = vpop.f32.mrb[4].mxu1 }
 0x122   : > { %1848 = vst.msk [vmem:[%s2777_s16 + $0x4] sm:$0xf] %vm1846_vm0, %v2232_v8  ;;  %1898 = vst.msk [vmem:[%s2777_s16 + $0xcc] sm:$0xf] %vm1846_vm0, %v2282_v9  ;;  %v956_v12 = vadd.f32 %v2767_v53, %v955_v10  ;;  %v1156_v13 = vadd.f32 %v2767_v53, %v1155_v11  ;;  %v957_v14 = vpop.f32.mrb[5].mxu0  ;;  %v1157_v15 = vpop.f32.mrb[5].mxu1 }
 0x123   : > { %v958_v16 = vpop.f32.mrb[6].mxu0  ;;  %v1158_v17 = vpop.f32.mrb[6].mxu1 }
 0x124   : > { %v1348_v18 = vmax.f32 %v956_v12, 0.0  ;;  %v1398_v19 = vmax.f32 %v1156_v13, 0.0  ;;  %v959_v20 = vadd.f32 %v2767_v53, %v958_v16  ;;  %v1159_v21 = vadd.f32 %v2767_v53, %v1158_v17  ;;  %v960_v22 = vpop.f32.mrb[7].mxu0  ;;  %v1160_v23 = vpop.f32.mrb[7].mxu1 }
 0x126   : > { %v2233_v24 = vpack.c.bf16 %v1348_v18, %v1348_v18  ;;  %v2283_v25 = vpack.c.bf16 %v1398_v19, %v1398_v19  ;;  %v1349_v26 = vmax.f32 %v959_v20, 0.0  ;;  %v1399_v27 = vmax.f32 %v1159_v21, 0.0 }
 0x128   : > { %1849 = vst.msk [vmem:[%s2777_s16 + $0x8] sm:$0xf] %vm1846_vm0, %v2233_v24  ;;  %1899 = vst.msk [vmem:[%s2777_s16 + $0xd0] sm:$0xf] %vm1846_vm0, %v2283_v25  ;;  %v2234_v28 = vpack.c.bf16 %v1349_v26, %v1349_v26  ;;  %v2284_v29 = vpack.c.bf16 %v1399_v27, %v1399_v27 }
 0x129   : > { %v963_v30 = vpop.f32.mrb[8].mxu0  ;;  %v1163_v31 = vpop.f32.mrb[8].mxu1 }
 0x12a   : > { %1850 = vst.msk [vmem:[%s2777_s16 + $0xc] sm:$0xf] %vm1846_vm0, %v2234_v28  ;;  %1900 = vst.msk [vmem:[%s2777_s16 + $0xd4] sm:$0xf] %vm1846_vm0, %v2284_v29  ;;  %v964_v32 = vadd.f32 %v2767_v53, %v963_v30  ;;  %v1164_v33 = vadd.f32 %v2767_v53, %v1163_v31  ;;  %v965_v34 = vpop.f32.mrb[9].mxu0  ;;  %v1165_v35 = vpop.f32.mrb[9].mxu1 }
 0x12b   : > { %v966_v36 = vpop.f32.mrb[10].mxu0  ;;  %v1166_v37 = vpop.f32.mrb[10].mxu1 }
 0x12c   : > { %v1350_v38 = vmax.f32 %v964_v32, 0.0  ;;  %v1400_v39 = vmax.f32 %v1164_v33, 0.0  ;;  %v967_v40 = vadd.f32 %v2767_v53, %v966_v36  ;;  %v1167_v41 = vadd.f32 %v2767_v53, %v1166_v37  ;;  %v968_v42 = vpop.f32.mrb[11].mxu0  ;;  %v1168_v43 = vpop.f32.mrb[11].mxu1 }
 0x12e   : > { %v2235_v44 = vpack.c.bf16 %v1350_v38, %v1350_v38  ;;  %v2285_v45 = vpack.c.bf16 %v1400_v39, %v1400_v39  ;;  %v1351_v46 = vmax.f32 %v967_v40, 0.0  ;;  %v1401_v47 = vmax.f32 %v1167_v41, 0.0 }
 0x130   : > { %1851 = vst.msk [vmem:[%s2777_s16 + $0x10] sm:$0xf] %vm1846_vm0, %v2235_v44  ;;  %1901 = vst.msk [vmem:[%s2777_s16 + $0xd8] sm:$0xf] %vm1846_vm0, %v2285_v45  ;;  %v2236_v48 = vpack.c.bf16 %v1351_v46, %v1351_v46  ;;  %v2286_v49 = vpack.c.bf16 %v1401_v47, %v1401_v47 }
 0x131   : > { %v971_v50 = vpop.f32.mrb[12].mxu0  ;;  %v1171_v51 = vpop.f32.mrb[12].mxu1 }
 0x132   : > { %1852 = vst.msk [vmem:[%s2777_s16 + $0x14] sm:$0xf] %vm1846_vm0, %v2236_v48  ;;  %1902 = vst.msk [vmem:[%s2777_s16 + $0xdc] sm:$0xf] %vm1846_vm0, %v2286_v49  ;;  %v972_v52 = vadd.f32 %v2767_v53, %v971_v50  ;;  %v1172_v54 = vadd.f32 %v2767_v53, %v1171_v51  ;;  %v973_v55 = vpop.f32.mrb[13].mxu0  ;;  %v1173_v56 = vpop.f32.mrb[13].mxu1 }
 0x133   : > { %v974_v57 = vpop.f32.mrb[14].mxu0  ;;  %v1174_v58 = vpop.f32.mrb[14].mxu1 }
 0x134   : > { %v1352_v59 = vmax.f32 %v972_v52, 0.0  ;;  %v1402_v60 = vmax.f32 %v1172_v54, 0.0  ;;  %v975_v61 = vadd.f32 %v2767_v53, %v974_v57  ;;  %v1175_v62 = vadd.f32 %v2767_v53, %v1174_v58  ;;  %v976_v63 = vpop.f32.mrb[15].mxu0  ;;  %v1176_v0 = vpop.f32.mrb[15].mxu1 }
 0x136   : > { %v2237_v1 = vpack.c.bf16 %v1352_v59, %v1352_v59  ;;  %v2287_v2 = vpack.c.bf16 %v1402_v60, %v1402_v60  ;;  %v1353_v3 = vmax.f32 %v975_v61, 0.0  ;;  %v1403_v4 = vmax.f32 %v1175_v62, 0.0 }
 0x138   : > { %1853 = vst.msk [vmem:[%s2777_s16 + $0x18] sm:$0xf] %vm1846_vm0, %v2237_v1  ;;  %1903 = vst.msk [vmem:[%s2777_s16 + $0xe0] sm:$0xf] %vm1846_vm0, %v2287_v2  ;;  %v2238_v5 = vpack.c.bf16 %v1353_v3, %v1353_v3  ;;  %v2288_v6 = vpack.c.bf16 %v1403_v4, %v1403_v4 }
 0x139   : > { %v979_v7 = vpop.f32.mrb[16].mxu0  ;;  %v1179_v8 = vpop.f32.mrb[16].mxu1 }
 0x13a   : > { %1854 = vst.msk [vmem:[%s2777_s16 + $0x1c] sm:$0xf] %vm1846_vm0, %v2238_v5  ;;  %1904 = vst.msk [vmem:[%s2777_s16 + $0xe4] sm:$0xf] %vm1846_vm0, %v2288_v6  ;;  %v980_v9 = vadd.f32 %v2767_v53, %v979_v7  ;;  %v1180_v10 = vadd.f32 %v2767_v53, %v1179_v8  ;;  %v981_v11 = vpop.f32.mrb[17].mxu0  ;;  %v1181_v12 = vpop.f32.mrb[17].mxu1 }
 0x13b   : > { %v982_v13 = vpop.f32.mrb[18].mxu0  ;;  %v1182_v14 = vpop.f32.mrb[18].mxu1 }
 0x13c   : > { %v1354_v15 = vmax.f32 %v980_v9, 0.0  ;;  %v1404_v16 = vmax.f32 %v1180_v10, 0.0  ;;  %v983_v17 = vadd.f32 %v2767_v53, %v982_v13  ;;  %v1183_v18 = vadd.f32 %v2767_v53, %v1182_v14  ;;  %v984_v19 = vpop.f32.mrb[19].mxu0  ;;  %v1184_v20 = vpop.f32.mrb[19].mxu1 }
 0x13e   : > { %v2239_v21 = vpack.c.bf16 %v1354_v15, %v1354_v15  ;;  %v2289_v22 = vpack.c.bf16 %v1404_v16, %v1404_v16  ;;  %v1355_v23 = vmax.f32 %v983_v17, 0.0  ;;  %v1405_v24 = vmax.f32 %v1183_v18, 0.0 }
 0x140   : > { %1855 = vst.msk [vmem:[%s2777_s16 + $0x20] sm:$0xf] %vm1846_vm0, %v2239_v21  ;;  %1905 = vst.msk [vmem:[%s2777_s16 + $0xe8] sm:$0xf] %vm1846_vm0, %v2289_v22  ;;  %v2240_v25 = vpack.c.bf16 %v1355_v23, %v1355_v23  ;;  %v2290_v26 = vpack.c.bf16 %v1405_v24, %v1405_v24 }
 0x141   : > { %v987_v27 = vpop.f32.mrb[20].mxu0  ;;  %v1187_v28 = vpop.f32.mrb[20].mxu1 }
 0x142   : > { %1856 = vst.msk [vmem:[%s2777_s16 + $0x24] sm:$0xf] %vm1846_vm0, %v2240_v25  ;;  %1906 = vst.msk [vmem:[%s2777_s16 + $0xec] sm:$0xf] %vm1846_vm0, %v2290_v26  ;;  %v988_v29 = vadd.f32 %v2767_v53, %v987_v27  ;;  %v1188_v30 = vadd.f32 %v2767_v53, %v1187_v28  ;;  %v989_v31 = vpop.f32.mrb[21].mxu0  ;;  %v1189_v32 = vpop.f32.mrb[21].mxu1 }
 0x143   : > { %v990_v33 = vpop.f32.mrb[22].mxu0  ;;  %v1190_v34 = vpop.f32.mrb[22].mxu1 }
 0x144   : > { %v1356_v35 = vmax.f32 %v988_v29, 0.0  ;;  %v1406_v36 = vmax.f32 %v1188_v30, 0.0  ;;  %v991_v37 = vadd.f32 %v2767_v53, %v990_v33  ;;  %v1191_v38 = vadd.f32 %v2767_v53, %v1190_v34  ;;  %v992_v39 = vpop.f32.mrb[23].mxu0  ;;  %v1192_v40 = vpop.f32.mrb[23].mxu1 }
 0x146   : > { %v2241_v41 = vpack.c.bf16 %v1356_v35, %v1356_v35  ;;  %v2291_v42 = vpack.c.bf16 %v1406_v36, %v1406_v36  ;;  %v1357_v43 = vmax.f32 %v991_v37, 0.0  ;;  %v1407_v44 = vmax.f32 %v1191_v38, 0.0 }
 0x148   : > { %1857 = vst.msk [vmem:[%s2777_s16 + $0x28] sm:$0xf] %vm1846_vm0, %v2241_v41  ;;  %1907 = vst.msk [vmem:[%s2777_s16 + $0xf0] sm:$0xf] %vm1846_vm0, %v2291_v42  ;;  %v2242_v45 = vpack.c.bf16 %v1357_v43, %v1357_v43  ;;  %v2292_v46 = vpack.c.bf16 %v1407_v44, %v1407_v44 }
 0x149   : > { %v995_v47 = vpop.f32.mrb[24].mxu0  ;;  %v1195_v48 = vpop.f32.mrb[24].mxu1 }
 0x14a   : > { %1858 = vst.msk [vmem:[%s2777_s16 + $0x2c] sm:$0xf] %vm1846_vm0, %v2242_v45  ;;  %1908 = vst.msk [vmem:[%s2777_s16 + $0xf4] sm:$0xf] %vm1846_vm0, %v2292_v46  ;;  %v996_v49 = vadd.f32 %v2767_v53, %v995_v47  ;;  %v1196_v50 = vadd.f32 %v2767_v53, %v1195_v48  ;;  %v997_v51 = vpop.f32.mrb[25].mxu0  ;;  %v1197_v52 = vpop.f32.mrb[25].mxu1 }
 0x14b   : > { %v998_v54 = vpop.f32.mrb[26].mxu0  ;;  %v1198_v55 = vpop.f32.mrb[26].mxu1 }
 0x14c   : > { %v1358_v56 = vmax.f32 %v996_v49, 0.0  ;;  %v1408_v57 = vmax.f32 %v1196_v50, 0.0  ;;  %v999_v58 = vadd.f32 %v2767_v53, %v998_v54  ;;  %v1199_v59 = vadd.f32 %v2767_v53, %v1198_v55  ;;  %v1000_v60 = vpop.f32.mrb[27].mxu0  ;;  %v1200_v61 = vpop.f32.mrb[27].mxu1 }
 0x14e   : > { %v2243_v62 = vpack.c.bf16 %v1358_v56, %v1358_v56  ;;  %v2293_v63 = vpack.c.bf16 %v1408_v57, %v1408_v57  ;;  %v1359_v0 = vmax.f32 %v999_v58, 0.0  ;;  %v1409_v1 = vmax.f32 %v1199_v59, 0.0 }
 0x150   : > { %1859 = vst.msk [vmem:[%s2777_s16 + $0x30] sm:$0xf] %vm1846_vm0, %v2243_v62  ;;  %1909 = vst.msk [vmem:[%s2777_s16 + $0xf8] sm:$0xf] %vm1846_vm0, %v2293_v63  ;;  %v2244_v2 = vpack.c.bf16 %v1359_v0, %v1359_v0  ;;  %v2294_v3 = vpack.c.bf16 %v1409_v1, %v1409_v1 }
 0x151   : > { %v1003_v4 = vpop.f32.mrb[28].mxu0  ;;  %v1203_v5 = vpop.f32.mrb[28].mxu1 }
 0x152   : > { %1860 = vst.msk [vmem:[%s2777_s16 + $0x34] sm:$0xf] %vm1846_vm0, %v2244_v2  ;;  %1910 = vst.msk [vmem:[%s2777_s16 + $0xfc] sm:$0xf] %vm1846_vm0, %v2294_v3  ;;  %v1004_v6 = vadd.f32 %v2767_v53, %v1003_v4  ;;  %v1204_v7 = vadd.f32 %v2767_v53, %v1203_v5  ;;  %v1005_v8 = vpop.f32.mrb[29].mxu0  ;;  %v1205_v9 = vpop.f32.mrb[29].mxu1 }
 0x153   : > { %v1006_v10 = vpop.f32.mrb[30].mxu0  ;;  %v1206_v11 = vpop.f32.mrb[30].mxu1 }
 0x154   : > { %v1360_v12 = vmax.f32 %v1004_v6, 0.0  ;;  %v1410_v13 = vmax.f32 %v1204_v7, 0.0  ;;  %v1007_v14 = vadd.f32 %v2767_v53, %v1006_v10  ;;  %v1207_v15 = vadd.f32 %v2767_v53, %v1206_v11  ;;  %v1008_v16 = vpop.f32.mrb[31].mxu0  ;;  %v1208_v17 = vpop.f32.mrb[31].mxu1 }
 0x156   : > { %v2245_v18 = vpack.c.bf16 %v1360_v12, %v1360_v12  ;;  %v2295_v19 = vpack.c.bf16 %v1410_v13, %v1410_v13  ;;  %v1361_v20 = vmax.f32 %v1007_v14, 0.0  ;;  %v1411_v21 = vmax.f32 %v1207_v15, 0.0 }
 0x158   : > { %1861 = vst.msk [vmem:[%s2777_s16 + $0x38] sm:$0xf] %vm1846_vm0, %v2245_v18  ;;  %1911 = vst.msk [vmem:[%s2777_s16 + $0x100] sm:$0xf] %vm1846_vm0, %v2295_v19  ;;  %v2246_v22 = vpack.c.bf16 %v1361_v20, %v1361_v20  ;;  %v2296_v23 = vpack.c.bf16 %v1411_v21, %v1411_v21 }
 0x159   : > { %v1011_v24 = vpop.f32.mrb[32].mxu0  ;;  %v1211_v25 = vpop.f32.mrb[32].mxu1 }
 0x15a   : > { %1862 = vst.msk [vmem:[%s2777_s16 + $0x3c] sm:$0xf] %vm1846_vm0, %v2246_v22  ;;  %1912 = vst.msk [vmem:[%s2777_s16 + $0x104] sm:$0xf] %vm1846_vm0, %v2296_v23  ;;  %v1012_v26 = vadd.f32 %v2767_v53, %v1011_v24  ;;  %v1212_v27 = vadd.f32 %v2767_v53, %v1211_v25  ;;  %v1013_v28 = vpop.f32.mrb[33].mxu0  ;;  %v1213_v29 = vpop.f32.mrb[33].mxu1 }
 0x15b   : > { %v1014_v30 = vpop.f32.mrb[34].mxu0  ;;  %v1214_v31 = vpop.f32.mrb[34].mxu1 }
 0x15c   : > { %v1362_v32 = vmax.f32 %v1012_v26, 0.0  ;;  %v1412_v33 = vmax.f32 %v1212_v27, 0.0  ;;  %v1015_v34 = vadd.f32 %v2767_v53, %v1014_v30  ;;  %v1215_v35 = vadd.f32 %v2767_v53, %v1214_v31  ;;  %v1016_v36 = vpop.f32.mrb[35].mxu0  ;;  %v1216_v37 = vpop.f32.mrb[35].mxu1 }
 0x15e   : > { %v2247_v38 = vpack.c.bf16 %v1362_v32, %v1362_v32  ;;  %v2297_v39 = vpack.c.bf16 %v1412_v33, %v1412_v33  ;;  %v1363_v40 = vmax.f32 %v1015_v34, 0.0  ;;  %v1413_v41 = vmax.f32 %v1215_v35, 0.0 }
 0x160   : > { %1863 = vst.msk [vmem:[%s2777_s16 + $0x40] sm:$0xf] %vm1846_vm0, %v2247_v38  ;;  %1913 = vst.msk [vmem:[%s2777_s16 + $0x108] sm:$0xf] %vm1846_vm0, %v2297_v39  ;;  %v2248_v42 = vpack.c.bf16 %v1363_v40, %v1363_v40  ;;  %v2298_v43 = vpack.c.bf16 %v1413_v41, %v1413_v41 }
 0x161   : > { %v1019_v44 = vpop.f32.mrb[36].mxu0  ;;  %v1219_v45 = vpop.f32.mrb[36].mxu1 }
 0x162   : > { %1864 = vst.msk [vmem:[%s2777_s16 + $0x44] sm:$0xf] %vm1846_vm0, %v2248_v42  ;;  %1914 = vst.msk [vmem:[%s2777_s16 + $0x10c] sm:$0xf] %vm1846_vm0, %v2298_v43  ;;  %v1020_v46 = vadd.f32 %v2767_v53, %v1019_v44  ;;  %v1220_v47 = vadd.f32 %v2767_v53, %v1219_v45  ;;  %v1021_v48 = vpop.f32.mrb[37].mxu0  ;;  %v1221_v49 = vpop.f32.mrb[37].mxu1 }
 0x163   : > { %v1022_v50 = vpop.f32.mrb[38].mxu0  ;;  %v1222_v51 = vpop.f32.mrb[38].mxu1 }
 0x164   : > { %v1364_v52 = vmax.f32 %v1020_v46, 0.0  ;;  %v1414_v54 = vmax.f32 %v1220_v47, 0.0  ;;  %v1023_v55 = vadd.f32 %v2767_v53, %v1022_v50  ;;  %v1223_v56 = vadd.f32 %v2767_v53, %v1222_v51  ;;  %v1024_v57 = vpop.f32.mrb[39].mxu0  ;;  %v1224_v58 = vpop.f32.mrb[39].mxu1 }
 0x166   : > { %v2249_v59 = vpack.c.bf16 %v1364_v52, %v1364_v52  ;;  %v2299_v60 = vpack.c.bf16 %v1414_v54, %v1414_v54  ;;  %v1365_v61 = vmax.f32 %v1023_v55, 0.0  ;;  %v1415_v62 = vmax.f32 %v1223_v56, 0.0 }
 0x168   : > { %1865 = vst.msk [vmem:[%s2777_s16 + $0x48] sm:$0xf] %vm1846_vm0, %v2249_v59  ;;  %1915 = vst.msk [vmem:[%s2777_s16 + $0x110] sm:$0xf] %vm1846_vm0, %v2299_v60  ;;  %v2250_v63 = vpack.c.bf16 %v1365_v61, %v1365_v61  ;;  %v2300_v0 = vpack.c.bf16 %v1415_v62, %v1415_v62 }
 0x169   : > { %v1027_v1 = vpop.f32.mrb[40].mxu0  ;;  %v1227_v2 = vpop.f32.mrb[40].mxu1 }
 0x16a   : > { %1866 = vst.msk [vmem:[%s2777_s16 + $0x4c] sm:$0xf] %vm1846_vm0, %v2250_v63  ;;  %1916 = vst.msk [vmem:[%s2777_s16 + $0x114] sm:$0xf] %vm1846_vm0, %v2300_v0  ;;  %v1028_v3 = vadd.f32 %v2767_v53, %v1027_v1  ;;  %v1228_v4 = vadd.f32 %v2767_v53, %v1227_v2  ;;  %v1029_v5 = vpop.f32.mrb[41].mxu0  ;;  %v1229_v6 = vpop.f32.mrb[41].mxu1 }
 0x16b   : > { %v1030_v7 = vpop.f32.mrb[42].mxu0  ;;  %v1230_v8 = vpop.f32.mrb[42].mxu1 }
 0x16c   : > { %v1366_v9 = vmax.f32 %v1028_v3, 0.0  ;;  %v1416_v10 = vmax.f32 %v1228_v4, 0.0  ;;  %v1031_v11 = vadd.f32 %v2767_v53, %v1030_v7  ;;  %v1231_v12 = vadd.f32 %v2767_v53, %v1230_v8  ;;  %v1032_v13 = vpop.f32.mrb[43].mxu0  ;;  %v1232_v14 = vpop.f32.mrb[43].mxu1 }
 0x16e   : > { %v2251_v15 = vpack.c.bf16 %v1366_v9, %v1366_v9  ;;  %v2301_v16 = vpack.c.bf16 %v1416_v10, %v1416_v10  ;;  %v1367_v17 = vmax.f32 %v1031_v11, 0.0  ;;  %v1417_v18 = vmax.f32 %v1231_v12, 0.0 }
 0x170   : > { %1867 = vst.msk [vmem:[%s2777_s16 + $0x50] sm:$0xf] %vm1846_vm0, %v2251_v15  ;;  %1917 = vst.msk [vmem:[%s2777_s16 + $0x118] sm:$0xf] %vm1846_vm0, %v2301_v16  ;;  %v2252_v19 = vpack.c.bf16 %v1367_v17, %v1367_v17  ;;  %v2302_v20 = vpack.c.bf16 %v1417_v18, %v1417_v18 }
 0x171   : > { %v1035_v21 = vpop.f32.mrb[44].mxu0  ;;  %v1235_v22 = vpop.f32.mrb[44].mxu1 }
 0x172   : > { %1868 = vst.msk [vmem:[%s2777_s16 + $0x54] sm:$0xf] %vm1846_vm0, %v2252_v19  ;;  %1918 = vst.msk [vmem:[%s2777_s16 + $0x11c] sm:$0xf] %vm1846_vm0, %v2302_v20  ;;  %v1036_v23 = vadd.f32 %v2767_v53, %v1035_v21  ;;  %v1236_v24 = vadd.f32 %v2767_v53, %v1235_v22  ;;  %v1037_v25 = vpop.f32.mrb[45].mxu0  ;;  %v1237_v26 = vpop.f32.mrb[45].mxu1 }
 0x173   : > { %v1038_v27 = vpop.f32.mrb[46].mxu0  ;;  %v1238_v28 = vpop.f32.mrb[46].mxu1 }
 0x174   : > { %v1368_v29 = vmax.f32 %v1036_v23, 0.0  ;;  %v1418_v30 = vmax.f32 %v1236_v24, 0.0  ;;  %v1039_v31 = vadd.f32 %v2767_v53, %v1038_v27  ;;  %v1239_v32 = vadd.f32 %v2767_v53, %v1238_v28  ;;  %v1040_v33 = vpop.f32.mrb[47].mxu0  ;;  %v1240_v34 = vpop.f32.mrb[47].mxu1 }
 0x176   : > { %v2253_v35 = vpack.c.bf16 %v1368_v29, %v1368_v29  ;;  %v2303_v36 = vpack.c.bf16 %v1418_v30, %v1418_v30  ;;  %v1369_v37 = vmax.f32 %v1039_v31, 0.0  ;;  %v1419_v38 = vmax.f32 %v1239_v32, 0.0 }
 0x178   : > { %1869 = vst.msk [vmem:[%s2777_s16 + $0x58] sm:$0xf] %vm1846_vm0, %v2253_v35  ;;  %1919 = vst.msk [vmem:[%s2777_s16 + $0x120] sm:$0xf] %vm1846_vm0, %v2303_v36  ;;  %v2254_v39 = vpack.c.bf16 %v1369_v37, %v1369_v37  ;;  %v2304_v40 = vpack.c.bf16 %v1419_v38, %v1419_v38 }
 0x179   : > { %v1043_v41 = vpop.f32.mrb[48].mxu0  ;;  %v1243_v42 = vpop.f32.mrb[48].mxu1 }
 0x17a   : > { %1870 = vst.msk [vmem:[%s2777_s16 + $0x5c] sm:$0xf] %vm1846_vm0, %v2254_v39  ;;  %1920 = vst.msk [vmem:[%s2777_s16 + $0x124] sm:$0xf] %vm1846_vm0, %v2304_v40  ;;  %v1044_v43 = vadd.f32 %v2767_v53, %v1043_v41  ;;  %v1244_v44 = vadd.f32 %v2767_v53, %v1243_v42  ;;  %v1045_v45 = vpop.f32.mrb[49].mxu0  ;;  %v1245_v46 = vpop.f32.mrb[49].mxu1 }
 0x17b   : > { %v1046_v47 = vpop.f32.mrb[50].mxu0  ;;  %v1246_v48 = vpop.f32.mrb[50].mxu1 }
 0x17c   : > { %v1370_v49 = vmax.f32 %v1044_v43, 0.0  ;;  %v1420_v50 = vmax.f32 %v1244_v44, 0.0  ;;  %v1047_v51 = vadd.f32 %v2767_v53, %v1046_v47  ;;  %v1247_v52 = vadd.f32 %v2767_v53, %v1246_v48  ;;  %v1048_v54 = vpop.f32.mrb[51].mxu0  ;;  %v1248_v55 = vpop.f32.mrb[51].mxu1 }
 0x17e   : > { %v2255_v56 = vpack.c.bf16 %v1370_v49, %v1370_v49  ;;  %v2305_v57 = vpack.c.bf16 %v1420_v50, %v1420_v50  ;;  %v1371_v58 = vmax.f32 %v1047_v51, 0.0  ;;  %v1421_v59 = vmax.f32 %v1247_v52, 0.0 }
 0x180   : > { %1871 = vst.msk [vmem:[%s2777_s16 + $0x60] sm:$0xf] %vm1846_vm0, %v2255_v56  ;;  %1921 = vst.msk [vmem:[%s2777_s16 + $0x128] sm:$0xf] %vm1846_vm0, %v2305_v57  ;;  %v2256_v60 = vpack.c.bf16 %v1371_v58, %v1371_v58  ;;  %v2306_v61 = vpack.c.bf16 %v1421_v59, %v1421_v59 }
 0x181   : > { %v1051_v62 = vpop.f32.mrb[52].mxu0  ;;  %v1251_v63 = vpop.f32.mrb[52].mxu1 }
 0x182   : > { %1872 = vst.msk [vmem:[%s2777_s16 + $0x64] sm:$0xf] %vm1846_vm0, %v2256_v60  ;;  %1922 = vst.msk [vmem:[%s2777_s16 + $0x12c] sm:$0xf] %vm1846_vm0, %v2306_v61  ;;  %v1052_v0 = vadd.f32 %v2767_v53, %v1051_v62  ;;  %v1252_v1 = vadd.f32 %v2767_v53, %v1251_v63  ;;  %v1053_v2 = vpop.f32.mrb[53].mxu0  ;;  %v1253_v3 = vpop.f32.mrb[53].mxu1 }
 0x183   : > { %v1054_v4 = vpop.f32.mrb[54].mxu0  ;;  %v1254_v5 = vpop.f32.mrb[54].mxu1 }
 0x184   : > { %v1372_v6 = vmax.f32 %v1052_v0, 0.0  ;;  %v1422_v7 = vmax.f32 %v1252_v1, 0.0  ;;  %v1055_v8 = vadd.f32 %v2767_v53, %v1054_v4  ;;  %v1255_v9 = vadd.f32 %v2767_v53, %v1254_v5  ;;  %v1056_v10 = vpop.f32.mrb[55].mxu0  ;;  %v1256_v11 = vpop.f32.mrb[55].mxu1 }
 0x186   : > { %v2257_v12 = vpack.c.bf16 %v1372_v6, %v1372_v6  ;;  %v2307_v13 = vpack.c.bf16 %v1422_v7, %v1422_v7  ;;  %v1373_v14 = vmax.f32 %v1055_v8, 0.0  ;;  %v1423_v15 = vmax.f32 %v1255_v9, 0.0 }
 0x188   : > { %1873 = vst.msk [vmem:[%s2777_s16 + $0x68] sm:$0xf] %vm1846_vm0, %v2257_v12  ;;  %1923 = vst.msk [vmem:[%s2777_s16 + $0x130] sm:$0xf] %vm1846_vm0, %v2307_v13  ;;  %v2258_v16 = vpack.c.bf16 %v1373_v14, %v1373_v14  ;;  %v2308_v17 = vpack.c.bf16 %v1423_v15, %v1423_v15 }
 0x189   : > { %v1059_v18 = vpop.f32.mrb[56].mxu0  ;;  %v1259_v19 = vpop.f32.mrb[56].mxu1 }
 0x18a   : > { %1874 = vst.msk [vmem:[%s2777_s16 + $0x6c] sm:$0xf] %vm1846_vm0, %v2258_v16  ;;  %1924 = vst.msk [vmem:[%s2777_s16 + $0x134] sm:$0xf] %vm1846_vm0, %v2308_v17  ;;  %v1060_v20 = vadd.f32 %v2767_v53, %v1059_v18  ;;  %v1260_v21 = vadd.f32 %v2767_v53, %v1259_v19  ;;  %v1061_v22 = vpop.f32.mrb[57].mxu0  ;;  %v1261_v23 = vpop.f32.mrb[57].mxu1 }
 0x18b   : > { %v1062_v24 = vpop.f32.mrb[58].mxu0  ;;  %v1262_v25 = vpop.f32.mrb[58].mxu1 }
 0x18c   : > { %v1374_v26 = vmax.f32 %v1060_v20, 0.0  ;;  %v1424_v27 = vmax.f32 %v1260_v21, 0.0  ;;  %v1063_v28 = vadd.f32 %v2767_v53, %v1062_v24  ;;  %v1263_v29 = vadd.f32 %v2767_v53, %v1262_v25  ;;  %v1064_v30 = vpop.f32.mrb[59].mxu0  ;;  %v1264_v31 = vpop.f32.mrb[59].mxu1 }
 0x18e   : > { %v2259_v32 = vpack.c.bf16 %v1374_v26, %v1374_v26  ;;  %v2309_v33 = vpack.c.bf16 %v1424_v27, %v1424_v27  ;;  %v1375_v34 = vmax.f32 %v1063_v28, 0.0  ;;  %v1425_v35 = vmax.f32 %v1263_v29, 0.0 }
 0x190   : > { %1875 = vst.msk [vmem:[%s2777_s16 + $0x70] sm:$0xf] %vm1846_vm0, %v2259_v32  ;;  %1925 = vst.msk [vmem:[%s2777_s16 + $0x138] sm:$0xf] %vm1846_vm0, %v2309_v33  ;;  %v2260_v36 = vpack.c.bf16 %v1375_v34, %v1375_v34  ;;  %v2310_v37 = vpack.c.bf16 %v1425_v35, %v1425_v35 }
 0x191   : > { %v1067_v38 = vpop.f32.mrb[60].mxu0  ;;  %v1267_v39 = vpop.f32.mrb[60].mxu1 }
 0x192   : > { %1876 = vst.msk [vmem:[%s2777_s16 + $0x74] sm:$0xf] %vm1846_vm0, %v2260_v36  ;;  %1926 = vst.msk [vmem:[%s2777_s16 + $0x13c] sm:$0xf] %vm1846_vm0, %v2310_v37  ;;  %v1068_v40 = vadd.f32 %v2767_v53, %v1067_v38  ;;  %v1268_v41 = vadd.f32 %v2767_v53, %v1267_v39  ;;  %v1069_v42 = vpop.f32.mrb[61].mxu0  ;;  %v1269_v43 = vpop.f32.mrb[61].mxu1 }
 0x193   : > { %v1070_v44 = vpop.f32.mrb[62].mxu0  ;;  %v1270_v45 = vpop.f32.mrb[62].mxu1 }
 0x194   : > { %v1376_v46 = vmax.f32 %v1068_v40, 0.0  ;;  %v1426_v47 = vmax.f32 %v1268_v41, 0.0  ;;  %v1071_v48 = vadd.f32 %v2767_v53, %v1070_v44  ;;  %v1271_v49 = vadd.f32 %v2767_v53, %v1270_v45  ;;  %v1072_v50 = vpop.f32.mrb[63].mxu0  ;;  %v1272_v51 = vpop.f32.mrb[63].mxu1 }
 0x196   : > { %v2261_v52 = vpack.c.bf16 %v1376_v46, %v1376_v46  ;;  %v2311_v54 = vpack.c.bf16 %v1426_v47, %v1426_v47  ;;  %v1377_v55 = vmax.f32 %v1071_v48, 0.0  ;;  %v1427_v56 = vmax.f32 %v1271_v49, 0.0 }
 0x198   : > { %1877 = vst.msk [vmem:[%s2777_s16 + $0x78] sm:$0xf] %vm1846_vm0, %v2261_v52  ;;  %1927 = vst.msk [vmem:[%s2777_s16 + $0x140] sm:$0xf] %vm1846_vm0, %v2311_v54  ;;  %v2262_v57 = vpack.c.bf16 %v1377_v55, %v1377_v55  ;;  %v2312_v58 = vpack.c.bf16 %v1427_v56, %v1427_v56 }
 0x199   : > { %v1075_v59 = vpop.f32.mrb[64].mxu0  ;;  %v1275_v60 = vpop.f32.mrb[64].mxu1 }
 0x19a   : > { %1878 = vst.msk [vmem:[%s2777_s16 + $0x7c] sm:$0xf] %vm1846_vm0, %v2262_v57  ;;  %1928 = vst.msk [vmem:[%s2777_s16 + $0x144] sm:$0xf] %vm1846_vm0, %v2312_v58  ;;  %v1076_v61 = vadd.f32 %v2767_v53, %v1075_v59  ;;  %v1276_v62 = vadd.f32 %v2767_v53, %v1275_v60  ;;  %v1077_v63 = vpop.f32.mrb[65].mxu0  ;;  %v1277_v0 = vpop.f32.mrb[65].mxu1 }
 0x19b   : > { %v1078_v1 = vpop.f32.mrb[66].mxu0  ;;  %v1278_v2 = vpop.f32.mrb[66].mxu1 }
 0x19c   : > { %v1378_v3 = vmax.f32 %v1076_v61, 0.0  ;;  %v1428_v4 = vmax.f32 %v1276_v62, 0.0  ;;  %v1079_v5 = vadd.f32 %v2767_v53, %v1078_v1  ;;  %v1279_v6 = vadd.f32 %v2767_v53, %v1278_v2  ;;  %v1080_v7 = vpop.f32.mrb[67].mxu0  ;;  %v1280_v8 = vpop.f32.mrb[67].mxu1 }
 0x19e   : > { %v2263_v9 = vpack.c.bf16 %v1378_v3, %v1378_v3  ;;  %v2313_v10 = vpack.c.bf16 %v1428_v4, %v1428_v4  ;;  %v1379_v11 = vmax.f32 %v1079_v5, 0.0  ;;  %v1429_v12 = vmax.f32 %v1279_v6, 0.0 }
 0x1a0   : > { %1879 = vst.msk [vmem:[%s2777_s16 + $0x80] sm:$0xf] %vm1846_vm0, %v2263_v9  ;;  %1929 = vst.msk [vmem:[%s2777_s16 + $0x148] sm:$0xf] %vm1846_vm0, %v2313_v10  ;;  %v2264_v13 = vpack.c.bf16 %v1379_v11, %v1379_v11  ;;  %v2314_v14 = vpack.c.bf16 %v1429_v12, %v1429_v12 }
 0x1a1   : > { %v1083_v15 = vpop.f32.mrb[68].mxu0  ;;  %v1283_v16 = vpop.f32.mrb[68].mxu1 }
 0x1a2   : > { %1880 = vst.msk [vmem:[%s2777_s16 + $0x84] sm:$0xf] %vm1846_vm0, %v2264_v13  ;;  %1930 = vst.msk [vmem:[%s2777_s16 + $0x14c] sm:$0xf] %vm1846_vm0, %v2314_v14  ;;  %v1084_v17 = vadd.f32 %v2767_v53, %v1083_v15  ;;  %v1284_v18 = vadd.f32 %v2767_v53, %v1283_v16  ;;  %v1085_v19 = vpop.f32.mrb[69].mxu0  ;;  %v1285_v20 = vpop.f32.mrb[69].mxu1 }
 0x1a3   : > { %v1086_v21 = vpop.f32.mrb[70].mxu0  ;;  %v1286_v22 = vpop.f32.mrb[70].mxu1 }
 0x1a4   : > { %v1380_v23 = vmax.f32 %v1084_v17, 0.0  ;;  %v1430_v24 = vmax.f32 %v1284_v18, 0.0  ;;  %v1087_v25 = vadd.f32 %v2767_v53, %v1086_v21  ;;  %v1287_v26 = vadd.f32 %v2767_v53, %v1286_v22  ;;  %v1088_v27 = vpop.f32.mrb[71].mxu0  ;;  %v1288_v28 = vpop.f32.mrb[71].mxu1 }
 0x1a6   : > { %v2265_v29 = vpack.c.bf16 %v1380_v23, %v1380_v23  ;;  %v2315_v30 = vpack.c.bf16 %v1430_v24, %v1430_v24  ;;  %v1381_v31 = vmax.f32 %v1087_v25, 0.0  ;;  %v1431_v32 = vmax.f32 %v1287_v26, 0.0 }
 0x1a8   : > { %1881 = vst.msk [vmem:[%s2777_s16 + $0x88] sm:$0xf] %vm1846_vm0, %v2265_v29  ;;  %1931 = vst.msk [vmem:[%s2777_s16 + $0x150] sm:$0xf] %vm1846_vm0, %v2315_v30  ;;  %v2266_v33 = vpack.c.bf16 %v1381_v31, %v1381_v31  ;;  %v2316_v34 = vpack.c.bf16 %v1431_v32, %v1431_v32 }
 0x1a9   : > { %v1091_v35 = vpop.f32.mrb[72].mxu0  ;;  %v1291_v36 = vpop.f32.mrb[72].mxu1 }
 0x1aa   : > { %1882 = vst.msk [vmem:[%s2777_s16 + $0x8c] sm:$0xf] %vm1846_vm0, %v2266_v33  ;;  %1932 = vst.msk [vmem:[%s2777_s16 + $0x154] sm:$0xf] %vm1846_vm0, %v2316_v34  ;;  %v1092_v37 = vadd.f32 %v2767_v53, %v1091_v35  ;;  %v1292_v38 = vadd.f32 %v2767_v53, %v1291_v36  ;;  %v1093_v39 = vpop.f32.mrb[73].mxu0  ;;  %v1293_v40 = vpop.f32.mrb[73].mxu1 }
 0x1ab   : > { %v1094_v41 = vpop.f32.mrb[74].mxu0  ;;  %v1294_v42 = vpop.f32.mrb[74].mxu1 }
 0x1ac   : > { %v1382_v43 = vmax.f32 %v1092_v37, 0.0  ;;  %v1432_v44 = vmax.f32 %v1292_v38, 0.0  ;;  %v1095_v45 = vadd.f32 %v2767_v53, %v1094_v41  ;;  %v1295_v46 = vadd.f32 %v2767_v53, %v1294_v42  ;;  %v1096_v47 = vpop.f32.mrb[75].mxu0  ;;  %v1296_v48 = vpop.f32.mrb[75].mxu1  ;;  %v3032_v42 = vld [vmem:[%s3085_s2] ss:$0 sm:$0xff] }
 0x1ae   : > { %v2267_v49 = vpack.c.bf16 %v1382_v43, %v1382_v43  ;;  %v2317_v50 = vpack.c.bf16 %v1432_v44, %v1432_v44  ;;  %v1383_v51 = vmax.f32 %v1095_v45, 0.0  ;;  %v1433_v52 = vmax.f32 %v1295_v46, 0.0 }
 0x1b0   : > { %1883 = vst.msk [vmem:[%s2777_s16 + $0x90] sm:$0xf] %vm1846_vm0, %v2267_v49  ;;  %1933 = vst.msk [vmem:[%s2777_s16 + $0x158] sm:$0xf] %vm1846_vm0, %v2317_v50  ;;  %v2268_v54 = vpack.c.bf16 %v1383_v51, %v1383_v51  ;;  %v2318_v55 = vpack.c.bf16 %v1433_v52, %v1433_v52 }
 0x1b1   : > { %v1099_v56 = vpop.f32.mrb[76].mxu0  ;;  %v1299_v57 = vpop.f32.mrb[76].mxu1 }
 0x1b2   : > { %1884 = vst.msk [vmem:[%s2777_s16 + $0x94] sm:$0xf] %vm1846_vm0, %v2268_v54  ;;  %1934 = vst.msk [vmem:[%s2777_s16 + $0x15c] sm:$0xf] %vm1846_vm0, %v2318_v55  ;;  %v1100_v58 = vadd.f32 %v2767_v53, %v1099_v56  ;;  %v1300_v59 = vadd.f32 %v2767_v53, %v1299_v57  ;;  %v1101_v60 = vpop.f32.mrb[77].mxu0  ;;  %v1301_v61 = vpop.f32.mrb[77].mxu1 }
 0x1b3   : > { %v1102_v62 = vpop.f32.mrb[78].mxu0  ;;  %v1302_v63 = vpop.f32.mrb[78].mxu1 }
 0x1b4   : > { %v1384_v0 = vmax.f32 %v1100_v58, 0.0  ;;  %v1434_v1 = vmax.f32 %v1300_v59, 0.0  ;;  %v1103_v2 = vadd.f32 %v2767_v53, %v1102_v62  ;;  %v1303_v3 = vadd.f32 %v2767_v53, %v1302_v63  ;;  %v1104_v4 = vpop.f32.mrb[79].mxu0  ;;  %v1304_v5 = vpop.f32.mrb[79].mxu1 }
 0x1b6   : > { %v2269_v6 = vpack.c.bf16 %v1384_v0, %v1384_v0  ;;  %v2319_v7 = vpack.c.bf16 %v1434_v1, %v1434_v1  ;;  %v1385_v8 = vmax.f32 %v1103_v2, 0.0  ;;  %v1435_v9 = vmax.f32 %v1303_v3, 0.0 }
 0x1b8   : > { %1885 = vst.msk [vmem:[%s2777_s16 + $0x98] sm:$0xf] %vm1846_vm0, %v2269_v6  ;;  %1935 = vst.msk [vmem:[%s2777_s16 + $0x160] sm:$0xf] %vm1846_vm0, %v2319_v7  ;;  %v2270_v10 = vpack.c.bf16 %v1385_v8, %v1385_v8  ;;  %v2320_v11 = vpack.c.bf16 %v1435_v9, %v1435_v9 }
 0x1b9   : > { %v1107_v12 = vpop.f32.mrb[80].mxu0  ;;  %v1307_v13 = vpop.f32.mrb[80].mxu1 }
 0x1ba   : > { %1886 = vst.msk [vmem:[%s2777_s16 + $0x9c] sm:$0xf] %vm1846_vm0, %v2270_v10  ;;  %1936 = vst.msk [vmem:[%s2777_s16 + $0x164] sm:$0xf] %vm1846_vm0, %v2320_v11  ;;  %v1108_v14 = vadd.f32 %v2767_v53, %v1107_v12  ;;  %v1308_v15 = vadd.f32 %v2767_v53, %v1307_v13  ;;  %v1109_v16 = vpop.f32.mrb[81].mxu0  ;;  %v1309_v17 = vpop.f32.mrb[81].mxu1 }
 0x1bb   : > { %v1110_v18 = vpop.f32.mrb[82].mxu0  ;;  %v1310_v19 = vpop.f32.mrb[82].mxu1 }
 0x1bc   : > { %v1386_v20 = vmax.f32 %v1108_v14, 0.0  ;;  %v1436_v21 = vmax.f32 %v1308_v15, 0.0  ;;  %v1111_v22 = vadd.f32 %v2767_v53, %v1110_v18  ;;  %v1311_v23 = vadd.f32 %v2767_v53, %v1310_v19  ;;  %v1112_v24 = vpop.f32.mrb[83].mxu0  ;;  %v1312_v25 = vpop.f32.mrb[83].mxu1 }
 0x1be   : > { %v2271_v26 = vpack.c.bf16 %v1386_v20, %v1386_v20  ;;  %v2321_v27 = vpack.c.bf16 %v1436_v21, %v1436_v21  ;;  %v1387_v28 = vmax.f32 %v1111_v22, 0.0  ;;  %v1437_v29 = vmax.f32 %v1311_v23, 0.0 }
 0x1c0   : > { %1887 = vst.msk [vmem:[%s2777_s16 + $0xa0] sm:$0xf] %vm1846_vm0, %v2271_v26  ;;  %1937 = vst.msk [vmem:[%s2777_s16 + $0x168] sm:$0xf] %vm1846_vm0, %v2321_v27  ;;  %v2272_v30 = vpack.c.bf16 %v1387_v28, %v1387_v28  ;;  %v2322_v31 = vpack.c.bf16 %v1437_v29, %v1437_v29 }
 0x1c1   : > { %v1115_v32 = vpop.f32.mrb[84].mxu0  ;;  %v1315_v33 = vpop.f32.mrb[84].mxu1 }
 0x1c2   : > { %1888 = vst.msk [vmem:[%s2777_s16 + $0xa4] sm:$0xf] %vm1846_vm0, %v2272_v30  ;;  %1938 = vst.msk [vmem:[%s2777_s16 + $0x16c] sm:$0xf] %vm1846_vm0, %v2322_v31  ;;  %v1116_v34 = vadd.f32 %v2767_v53, %v1115_v32  ;;  %v1316_v35 = vadd.f32 %v2767_v53, %v1315_v33  ;;  %v1117_v36 = vpop.f32.mrb[85].mxu0  ;;  %v1317_v37 = vpop.f32.mrb[85].mxu1 }
 0x1c3   : > { %v1118_v38 = vpop.f32.mrb[86].mxu0  ;;  %v1318_v39 = vpop.f32.mrb[86].mxu1 }
 0x1c4   : > { %v1388_v40 = vmax.f32 %v1116_v34, 0.0  ;;  %v1438_v41 = vmax.f32 %v1316_v35, 0.0  ;;  %v1119_v43 = vadd.f32 %v3032_v42, %v1118_v38  ;;  %v1319_v44 = vadd.f32 %v3032_v42, %v1318_v39  ;;  %v1120_v53 = vpop.f32.mrb[87].mxu0  ;;  %v1320_v45 = vpop.f32.mrb[87].mxu1 }
 0x1c6   : > { %v2273_v46 = vpack.c.bf16 %v1388_v40, %v1388_v40  ;;  %v2323_v47 = vpack.c.bf16 %v1438_v41, %v1438_v41  ;;  %v1389_v48 = vmax.f32 %v1119_v43, 0.0  ;;  %v1439_v49 = vmax.f32 %v1319_v44, 0.0 }
 0x1c8   : > { %1889 = vst.msk [vmem:[%s2777_s16 + $0xa8] sm:$0xf] %vm1846_vm0, %v2273_v46  ;;  %1939 = vst.msk [vmem:[%s2777_s16 + $0x170] sm:$0xf] %vm1846_vm0, %v2323_v47  ;;  %v2274_v50 = vpack.c.bf16 %v1389_v48, %v1389_v48  ;;  %v2324_v51 = vpack.c.bf16 %v1439_v49, %v1439_v49 }
 0x1c9   : > { %v1123_v52 = vpop.f32.mrb[88].mxu0  ;;  %v1323_v54 = vpop.f32.mrb[88].mxu1 }
 0x1ca   : > { %1890 = vst.msk [vmem:[%s2777_s16 + $0xac] sm:$0xf] %vm1846_vm0, %v2274_v50  ;;  %1940 = vst.msk [vmem:[%s2777_s16 + $0x174] sm:$0xf] %vm1846_vm0, %v2324_v51  ;;  %v1124_v55 = vadd.f32 %v3032_v42, %v1123_v52  ;;  %v1324_v56 = vadd.f32 %v3032_v42, %v1323_v54  ;;  %v1125_v57 = vpop.f32.mrb[89].mxu0  ;;  %v1325_v58 = vpop.f32.mrb[89].mxu1 }
 0x1cb   : > { %v1126_v59 = vpop.f32.mrb[90].mxu0  ;;  %v1326_v60 = vpop.f32.mrb[90].mxu1 }
 0x1cc   : > { %v1390_v61 = vmax.f32 %v1124_v55, 0.0  ;;  %v1440_v62 = vmax.f32 %v1324_v56, 0.0  ;;  %v1127_v63 = vadd.f32 %v3032_v42, %v1126_v59  ;;  %v1327_v0 = vadd.f32 %v3032_v42, %v1326_v60  ;;  %v1128_v1 = vpop.f32.mrb[91].mxu0  ;;  %v1328_v2 = vpop.f32.mrb[91].mxu1 }
 0x1ce   : > { %v2275_v3 = vpack.c.bf16 %v1390_v61, %v1390_v61  ;;  %v2325_v4 = vpack.c.bf16 %v1440_v62, %v1440_v62  ;;  %v1391_v5 = vmax.f32 %v1127_v63, 0.0  ;;  %v1441_v6 = vmax.f32 %v1327_v0, 0.0 }
 0x1d0   : > { %1891 = vst.msk [vmem:[%s2777_s16 + $0xb0] sm:$0xf] %vm1846_vm0, %v2275_v3  ;;  %1941 = vst.msk [vmem:[%s2777_s16 + $0x178] sm:$0xf] %vm1846_vm0, %v2325_v4  ;;  %v2276_v7 = vpack.c.bf16 %v1391_v5, %v1391_v5  ;;  %v2326_v8 = vpack.c.bf16 %v1441_v6, %v1441_v6 }
 0x1d1   : > { %v1131_v9 = vpop.f32.mrb[92].mxu0  ;;  %v1331_v10 = vpop.f32.mrb[92].mxu1 }
 0x1d2   : > { %1892 = vst.msk [vmem:[%s2777_s16 + $0xb4] sm:$0xf] %vm1846_vm0, %v2276_v7  ;;  %1942 = vst.msk [vmem:[%s2777_s16 + $0x17c] sm:$0xf] %vm1846_vm0, %v2326_v8  ;;  %v1132_v11 = vadd.f32 %v3032_v42, %v1131_v9  ;;  %v1332_v12 = vadd.f32 %v3032_v42, %v1331_v10  ;;  %v1133_v13 = vpop.f32.mrb[93].mxu0  ;;  %v1333_v14 = vpop.f32.mrb[93].mxu1 }
 0x1d3   : > { %v1134_v15 = vpop.f32.mrb[94].mxu0  ;;  %v1334_v16 = vpop.f32.mrb[94].mxu1 }
 0x1d4   : > { %v1392_v17 = vmax.f32 %v1132_v11, 0.0  ;;  %v1442_v18 = vmax.f32 %v1332_v12, 0.0  ;;  %v1135_v19 = vadd.f32 %v3032_v42, %v1134_v15  ;;  %v1335_v20 = vadd.f32 %v3032_v42, %v1334_v16  ;;  %v1136_v21 = vpop.f32.mrb[95].mxu0  ;;  %v1336_v22 = vpop.f32.mrb[95].mxu1 }
 0x1d6   : > { %v2277_v23 = vpack.c.bf16 %v1392_v17, %v1392_v17  ;;  %v2327_v24 = vpack.c.bf16 %v1442_v18, %v1442_v18  ;;  %v1393_v25 = vmax.f32 %v1135_v19, 0.0  ;;  %v1443_v26 = vmax.f32 %v1335_v20, 0.0 }
 0x1d8   : > { %1893 = vst.msk [vmem:[%s2777_s16 + $0xb8] sm:$0xf] %vm1846_vm0, %v2277_v23  ;;  %1943 = vst.msk [vmem:[%s2777_s16 + $0x180] sm:$0xf] %vm1846_vm0, %v2327_v24  ;;  %v2278_v27 = vpack.c.bf16 %v1393_v25, %v1393_v25  ;;  %v2328_v28 = vpack.c.bf16 %v1443_v26, %v1443_v26 }
 0x1d9   : > { %v1139_v29 = vpop.f32.mrb[96].mxu0  ;;  %v1339_v30 = vpop.f32.mrb[96].mxu1 }
 0x1da   : > { %1894 = vst.msk [vmem:[%s2777_s16 + $0xbc] sm:$0xf] %vm1846_vm0, %v2278_v27  ;;  %1944 = vst.msk [vmem:[%s2777_s16 + $0x184] sm:$0xf] %vm1846_vm0, %v2328_v28  ;;  %v1140_v31 = vadd.f32 %v3032_v42, %v1139_v29  ;;  %v1340_v32 = vadd.f32 %v3032_v42, %v1339_v30  ;;  %v1141_v33 = vpop.f32.mrb[97].mxu0  ;;  %v1341_v34 = vpop.f32.mrb[97].mxu1 }
 0x1db   : > { %v1142_v35 = vpop.f32.mrb[98].mxu0  ;;  %v1342_v36 = vpop.f32.mrb[98].mxu1 }
 0x1dc   : > { %v1394_v37 = vmax.f32 %v1140_v31, 0.0  ;;  %v1444_v38 = vmax.f32 %v1340_v32, 0.0  ;;  %v1143_v39 = vadd.f32 %v3032_v42, %v1142_v35  ;;  %v1343_v40 = vadd.f32 %v3032_v42, %v1342_v36  ;;  %v1144_v41 = vpop.f32.mrb[99].mxu0  ;;  %v1344_v43 = vpop.f32.mrb[99].mxu1 }
 0x1de   : > { %v2279_v44 = vpack.c.bf16 %v1394_v37, %v1394_v37  ;;  %v2329_v53 = vpack.c.bf16 %v1444_v38, %v1444_v38  ;;  %v1395_v45 = vmax.f32 %v1143_v39, 0.0  ;;  %v1445_v46 = vmax.f32 %v1343_v40, 0.0 }
 0x1e0   : > { %1895 = vst.msk [vmem:[%s2777_s16 + $0xc0] sm:$0xf] %vm1846_vm0, %v2279_v44  ;;  %1945 = vst.msk [vmem:[%s2777_s16 + $0x188] sm:$0xf] %vm1846_vm0, %v2329_v53  ;;  %v2280_v47 = vpack.c.bf16 %v1395_v45, %v1395_v45  ;;  %v2330_v48 = vpack.c.bf16 %v1445_v46, %v1445_v46 }
 0x1e2   : > { %1896 = vst.msk [vmem:[%s2777_s16 + $0xc4] sm:$0xf] %vm1846_vm0, %v2280_v47  ;;  %1946 = vst.msk [vmem:[%s2777_s16 + $0x18c] sm:$0xf] %vm1846_vm0, %v2330_v48 }
 0x1e3 PF: > { %s13_s12 = sadd.s32 1, %s2545_s12  }
 0x1e4   : > { %p10_p4 = scmp.ge.s32.totalorder %s13_s12, 6  }
 0x1e6   :  { %12 = sbr.rel (!%p10_p4) target bundleno = 1 (0x1), region = 62 }

// kernel: gpt_forward.8
= control target key start
LH: loop header
LB: loop body
LE: loop exit
PB: predicated region body
PF: predicated region fallthrough
CT: control target
= control target key end

     0   :  { %s1781_s12 = smov 0   ;;  %s2044_s0 = inlined_call_operand.vmem [shape: bf16[648,512], index: 0, kind: input, shape index: {}]   ;;  %s2045_s1 = inlined_call_operand.vmem [shape: bf16[512,64], index: 1, kind: input, shape index: {}]   ;;  %s2046_s2 = inlined_call_operand.vmem [shape: f32[1,64], index: 2, kind: input, shape index: {}]   ;;  %s2047_s3 = inlined_call_operand.vmem [shape: bf16[648,64], index: 3, kind: output, shape index: {}]  }
   0x1 LB: > { %s1277_s13 = sadd.s32 4294967295, %s1759_s12   ;;  %p1281_p0 = scmp.ge.s32.totalorder %s1759_s12, 1  ;;  %s1759_s12 = sphi %s1781_s12, %s13_s12  }
   0x2   : > { %p139_p1 = scmp.lt.s32.totalorder %s1759_s12, 4 }
   0x4   : > { %p140_p2 = pnand %p1281_p0, %p139_p1 }
   0x5   : > { %v1639_v0 = vld [vmem:[%s2045_s1 + $0x40] sm:$0xff] (!%p140_p2)   ;;  %v1643_v4 = vld [vmem:[%s2045_s1 + $0x48] sm:$0xff] (!%p140_p2)   ;;  %v1647_v8 = vld [vmem:[%s2045_s1 + $0x50] sm:$0xff] (!%p140_p2)   ;;  %s164_s19 = smul.u32 (!%p140_p2), 27, %s1277_s13  ;;  %vm1193_vm0 = vcmask (!%p140_p2), 519168  }
   0x6   : > { %143 = sbr.rel (%p140_p2) target bundleno = 367 (0x16f), region = 32  ;;  %v1640_v1 = vld [vmem:[%s2045_s1 + $0xc0] sm:$0xff] (!%p140_p2)   ;;  %1431 = vmatprep.subr.bf16.mxu0 (!%p140_p2), %v1639_v0  ;;  %v1644_v5 = vld [vmem:[%s2045_s1 + $0xc8] sm:$0xff] (!%p140_p2)   ;;  %v1648_v9 = vld [vmem:[%s2045_s1 + $0xd0] sm:$0xff] (!%p140_p2)  }
   0x7   : > { %v1641_v2 = vld [vmem:[%s2045_s1] sm:$0xff] (!%p140_p2)   ;;  %1531 = vmatprep.subr.bf16.mxu1 (!%p140_p2), %v1640_v1  ;;  %v1645_v6 = vld [vmem:[%s2045_s1 + $0x8] sm:$0xff] (!%p140_p2)   ;;  %v1649_v10 = vld [vmem:[%s2045_s1 + $0x10] sm:$0xff] (!%p140_p2)   ;;  %p165_p3 = scmp.lt.s32.totalorder (!%p140_p2), %s164_s19, 80 }
   0x8   : > { %v1642_v3 = vld [vmem:[%s2045_s1 + $0x80] sm:$0xff] (!%p140_p2)   ;;  %1432 = vmatpush3.bf16.msra.mxu0 (!%p140_p2), %v1641_v2  ;;  %v1646_v7 = vld [vmem:[%s2045_s1 + $0x88] sm:$0xff] (!%p140_p2)   ;;  %v1650_v11 = vld [vmem:[%s2045_s1 + $0x90] sm:$0xff] (!%p140_p2)  }
   0x9   : > { %1532 = vmatpush3.bf16.msra.mxu1 (!%p140_p2), %v1642_v3  ;;  %1433 = vmatprep.subr.bf16.mxu0 (!%p140_p2), %v1643_v4  ;;  %v1651_v12 = vld [vmem:[%s2045_s1 + $0x58] sm:$0xff] (!%p140_p2)   ;;  %v1655_v16 = vld [vmem:[%s2045_s1 + $0x60] sm:$0xff] (!%p140_p2)   ;;  %v1659_v20 = vld [vmem:[%s2045_s1 + $0x68] sm:$0xff] (!%p140_p2)  }
   0xa   : > { %1533 = vmatprep.subr.bf16.mxu1 (!%p140_p2), %v1644_v5  ;;  %v1652_v13 = vld [vmem:[%s2045_s1 + $0xd8] sm:$0xff] (!%p140_p2)   ;;  %v1656_v17 = vld [vmem:[%s2045_s1 + $0xe0] sm:$0xff] (!%p140_p2)   ;;  %v1660_v21 = vld [vmem:[%s2045_s1 + $0xe8] sm:$0xff] (!%p140_p2)  }
   0xb   : > { %v1653_v14 = vld [vmem:[%s2045_s1 + $0x18] sm:$0xff] (!%p140_p2)   ;;  %v1657_v18 = vld [vmem:[%s2045_s1 + $0x20] sm:$0xff] (!%p140_p2)   ;;  %v1661_v22 = vld [vmem:[%s2045_s1 + $0x28] sm:$0xff] (!%p140_p2)  }
   0xc   : > { %1434 = vmatpush3.bf16.msra.mxu0 (!%p140_p2), %v1645_v6  ;;  %v1654_v15 = vld [vmem:[%s2045_s1 + $0x98] sm:$0xff] (!%p140_p2)   ;;  %v1658_v19 = vld [vmem:[%s2045_s1 + $0xa0] sm:$0xff] (!%p140_p2)   ;;  %v1662_v23 = vld [vmem:[%s2045_s1 + $0xa8] sm:$0xff] (!%p140_p2)  }
   0xd   : > { %1534 = vmatpush3.bf16.msra.mxu1 %v1646_v7  ;;  %1435 = vmatprep.subr.bf16.mxu0 %v1647_v8  ;;  %s2049_s19 = smov (!%p165_p3, %s164_s19), 80  ;;  %v1663_v24 = vld [vmem:[%s2045_s1 + $0x70] sm:$0xff]   ;;  %v1667_v28 = vld [vmem:[%s2045_s1 + $0x78] sm:$0xff]  }
   0xe   : > { %1535 = vmatprep.subr.bf16.mxu1 %v1648_v9  ;;  %v1664_v25 = vld [vmem:[%s2045_s1 + $0xf0] sm:$0xff]   ;;  %s1403_s18 = sshll.u32 %s2049_s19, 4  ;;  %v1668_v29 = vld [vmem:[%s2045_s1 + $0xf8] sm:$0xff]   ;;  %s1284_s7 = sshll.u32 %s2049_s19, 2 }
   0xf   : > { %v1665_v26 = vld [vmem:[%s2045_s1 + $0x30] sm:$0xff]   ;;  %s1887_s13 = scalar_lea.vmem %s2044_s0, %s1403_s18  ;;  %v1669_v30 = vld [vmem:[%s2045_s1 + $0x38] sm:$0xff]   ;;  %s1960_s10 = scalar_lea.vmem %s2047_s3, %s1284_s7 }
  0x10   : > { %1436 = vmatpush3.bf16.msra.mxu0 %v1649_v10  ;;  %v1666_v27 = vld [vmem:[%s2045_s1 + $0xb0] sm:$0xff]   ;;  %v1670_v31 = vld [vmem:[%s2045_s1 + $0xb8] sm:$0xff]  }
  0x11   : > { %1536 = vmatpush3.bf16.msra.mxu1 %v1650_v11  ;;  %1437 = vmatprep.subr.bf16.mxu0 %v1651_v12  ;;  %v1671_v32 = vld [vmem:[%s1887_s13] ss:$16 sps:$4 sm:$0xff]   ;;  %v1673_v33 = vld [vmem:[%s1887_s13 + $0x4] ss:$16 sps:$4 sm:$0xff]   ;;  %v1674_v34 = vld [vmem:[%s1887_s13 + $0x8] ss:$16 sps:$4 sm:$0xff]  }
  0x12   : > { %1537 = vmatprep.subr.bf16.mxu1 %v1652_v13  ;;  %v1676_v35 = vld [vmem:[%s1887_s13 + $0xc] ss:$16 sps:$4 sm:$0xff]   ;;  %801 = vmatprep.mubr.bf16.mxu0 %v1673_v33  ;;  %v1677_v36 = vld [vmem:[%s1887_s13 + $0x24] ss:$16 sps:$4 sm:$0xff]   ;;  %v1681_v38 = vld [vmem:[%s1887_s13 + $0x20] ss:$16 sps:$4 sm:$0xff]  }
  0x13   : > { %945 = vmatprep.mubr.bf16.mxu1 %v1676_v35  ;;  %v1679_v37 = vld [vmem:[%s1887_s13 + $0x2c] ss:$16 sps:$4 sm:$0xff]   ;;  %v1682_v39 = vld [vmem:[%s1887_s13 + $0x28] ss:$16 sps:$4 sm:$0xff]   ;;  %v1683_v40 = vld [vmem:[%s1887_s13 + $0x44] ss:$16 sps:$4 sm:$0xff]  }
  0x14   : > { %1438 = vmatpush3.bf16.msra.mxu0 %v1653_v14  ;;  %v1685_v41 = vld [vmem:[%s1887_s13 + $0x4c] ss:$16 sps:$4 sm:$0xff]   ;;  %v1687_v42 = vld [vmem:[%s1887_s13 + $0x40] ss:$16 sps:$4 sm:$0xff]   ;;  %v1688_v43 = vld [vmem:[%s1887_s13 + $0x48] ss:$16 sps:$4 sm:$0xff]  }
  0x15   : > { %1538 = vmatpush3.bf16.msra.mxu1 %v1654_v15  ;;  %1439 = vmatprep.subr.bf16.mxu0 %v1655_v16  ;;  %v1689_v44 = vld [vmem:[%s1887_s13 + $0x64] ss:$16 sps:$4 sm:$0xff]   ;;  %v1691_v45 = vld [vmem:[%s1887_s13 + $0x6c] ss:$16 sps:$4 sm:$0xff]   ;;  %v1693_v46 = vld [vmem:[%s1887_s13 + $0x60] ss:$16 sps:$4 sm:$0xff]  }
  0x16   : > { %1539 = vmatprep.subr.bf16.mxu1 %v1656_v17  ;;  %v1694_v47 = vld [vmem:[%s1887_s13 + $0x68] ss:$16 sps:$4 sm:$0xff]   ;;  %v1695_v48 = vld [vmem:[%s1887_s13 + $0x84] ss:$16 sps:$4 sm:$0xff]   ;;  %v1697_v49 = vld [vmem:[%s1887_s13 + $0x8c] ss:$16 sps:$4 sm:$0xff]  }
  0x17   : > { %v1699_v50 = vld [vmem:[%s1887_s13 + $0x80] ss:$16 sps:$4 sm:$0xff]   ;;  %v1700_v51 = vld [vmem:[%s1887_s13 + $0x88] ss:$16 sps:$4 sm:$0xff]   ;;  %v1701_v52 = vld [vmem:[%s1887_s13 + $0xa4] ss:$16 sps:$4 sm:$0xff]  }
  0x18   : > { %1440 = vmatpush3.bf16.msra.mxu0 %v1657_v18  ;;  %v1703_v53 = vld [vmem:[%s1887_s13 + $0xac] ss:$16 sps:$4 sm:$0xff]   ;;  %v1705_v54 = vld [vmem:[%s1887_s13 + $0xa0] ss:$16 sps:$4 sm:$0xff]   ;;  %v1706_v55 = vld [vmem:[%s1887_s13 + $0xa8] ss:$16 sps:$4 sm:$0xff]  }
  0x19   : > { %1540 = vmatpush3.bf16.msra.mxu1 %v1658_v19  ;;  %1441 = vmatprep.subr.bf16.mxu0 %v1659_v20  ;;  %v1707_v56 = vld [vmem:[%s1887_s13 + $0xc4] ss:$16 sps:$4 sm:$0xff]   ;;  %v1709_v57 = vld [vmem:[%s1887_s13 + $0xcc] ss:$16 sps:$4 sm:$0xff]   ;;  %v1711_v58 = vld [vmem:[%s1887_s13 + $0xc0] ss:$16 sps:$4 sm:$0xff]  }
  0x1a   : > { %1541 = vmatprep.subr.bf16.mxu1 %v1660_v21  ;;  %v1712_v59 = vld [vmem:[%s1887_s13 + $0xc8] ss:$16 sps:$4 sm:$0xff]   ;;  %v1713_v60 = vld [vmem:[%s1887_s13 + $0xe4] ss:$16 sps:$4 sm:$0xff]   ;;  %v1715_v61 = vld [vmem:[%s1887_s13 + $0xec] ss:$16 sps:$4 sm:$0xff]  }
  0x1b   : > { %v1717_v62 = vld [vmem:[%s1887_s13 + $0xe0] ss:$16 sps:$4 sm:$0xff]   ;;  %v1718_v63 = vld [vmem:[%s1887_s13 + $0xe8] ss:$16 sps:$4 sm:$0xff]   ;;  %v1719_v0 = vld [vmem:[%s1887_s13 + $0x104] ss:$16 sps:$4 sm:$0xff]  }
  0x1c   : > { %1442 = vmatpush3.bf16.msra.mxu0 %v1661_v22  ;;  %v1721_v1 = vld [vmem:[%s1887_s13 + $0x10c] ss:$16 sps:$4 sm:$0xff]   ;;  %v1723_v2 = vld [vmem:[%s1887_s13 + $0x100] ss:$16 sps:$4 sm:$0xff]   ;;  %v1724_v3 = vld [vmem:[%s1887_s13 + $0x108] ss:$16 sps:$4 sm:$0xff]  }
  0x1d   : > { %1542 = vmatpush3.bf16.msra.mxu1 %v1662_v23  ;;  %1443 = vmatprep.subr.bf16.mxu0 %v1663_v24  ;;  %v1725_v4 = vld [vmem:[%s1887_s13 + $0x124] ss:$16 sps:$4 sm:$0xff]   ;;  %v1727_v5 = vld [vmem:[%s1887_s13 + $0x12c] ss:$16 sps:$4 sm:$0xff]   ;;  %v1729_v6 = vld [vmem:[%s1887_s13 + $0x120] ss:$16 sps:$4 sm:$0xff]  }
  0x1e   : > { %1543 = vmatprep.subr.bf16.mxu1 %v1664_v25  ;;  %v1730_v7 = vld [vmem:[%s1887_s13 + $0x128] ss:$16 sps:$4 sm:$0xff]   ;;  %v1731_v8 = vld [vmem:[%s1887_s13 + $0x144] ss:$16 sps:$4 sm:$0xff]   ;;  %v1733_v9 = vld [vmem:[%s1887_s13 + $0x14c] ss:$16 sps:$4 sm:$0xff]  }
  0x1f   : > { %v1735_v10 = vld [vmem:[%s1887_s13 + $0x140] ss:$16 sps:$4 sm:$0xff]   ;;  %v1736_v11 = vld [vmem:[%s1887_s13 + $0x148] ss:$16 sps:$4 sm:$0xff]   ;;  %v1737_v12 = vld [vmem:[%s1887_s13 + $0x164] ss:$16 sps:$4 sm:$0xff]  }
  0x20   : > { %1444 = vmatpush3.bf16.msra.mxu0 %v1665_v26  ;;  %v1739_v13 = vld [vmem:[%s1887_s13 + $0x16c] ss:$16 sps:$4 sm:$0xff]   ;;  %v1741_v14 = vld [vmem:[%s1887_s13 + $0x160] ss:$16 sps:$4 sm:$0xff]   ;;  %v1742_v15 = vld [vmem:[%s1887_s13 + $0x168] ss:$16 sps:$4 sm:$0xff]  }
  0x21   : > { %1544 = vmatpush3.bf16.msra.mxu1 %v1666_v27  ;;  %1445 = vmatprep.subr.bf16.mxu0 %v1667_v28  ;;  %v1743_v16 = vld [vmem:[%s1887_s13 + $0x184] ss:$16 sps:$4 sm:$0xff]   ;;  %v1745_v17 = vld [vmem:[%s1887_s13 + $0x18c] ss:$16 sps:$4 sm:$0xff]   ;;  %v1747_v20 = vld [vmem:[%s1887_s13 + $0x180] ss:$16 sps:$4 sm:$0xff]  }
  0x22   : > { %1545 = vmatprep.subr.bf16.mxu1 %v1668_v29  ;;  %v230_v18 = vld [vmem:[%s1887_s13 + $0x1a0] sm:$0xff]  ;;  %v231_v19 = vld [vmem:[%s1887_s13 + $0x1a8] sm:$0xff] }
  0x23   : > { %v1748_v21 = vld [vmem:[%s1887_s13 + $0x188] ss:$16 sps:$4 sm:$0xff]   ;;  %v1339_v22 = vcombine.high %v230_v18, %v230_v18  ;;  %v1341_v23 = vcombine.high %v231_v19, %v231_v19  ;;  %v1338_v24 = vcombine.low %v230_v18, %v230_v18  ;;  %v1340_v25 = vcombine.low %v231_v19, %v231_v19  ;;  %v1952_v28 = vld [vmem:[%s2046_s2] ss:$0 sm:$0xff] }
  0x24   : > { %1446 = vmatpush3.bf16.msra.mxu0 %v1669_v30 }
  0x25   : > { %1546 = vmatpush3.bf16.msra.mxu1 %v1670_v31 }
  0x27   : > { %802 = vmatmul.mubr.bf16.vlgmr.msra.gmra.mrb[0].mxu0 %v1671_v32 }
  0x28   : > { %946 = vmatmul.mubr.bf16.vlgmr.msra.gmra.mrb[0].mxu1 %v1674_v34  ;;  %809 = vmatprep.mubr.bf16.mxu0 %v1677_v36 }
  0x29   : > { %953 = vmatprep.mubr.bf16.mxu1 %v1679_v37 }
  0x2f   : > { %810 = vmatmul.mubr.bf16.gmra.mrb[4].mxu0 %v1681_v38 }
  0x30   : > { %954 = vmatmul.mubr.bf16.gmra.mrb[4].mxu1 %v1682_v39  ;;  %817 = vmatprep.mubr.bf16.mxu0 %v1683_v40 }
  0x31   : > { %961 = vmatprep.mubr.bf16.mxu1 %v1685_v41 }
  0x37   : > { %818 = vmatmul.mubr.bf16.gmra.mrb[8].mxu0 %v1687_v42 }
  0x38   : > { %962 = vmatmul.mubr.bf16.gmra.mrb[8].mxu1 %v1688_v43  ;;  %825 = vmatprep.mubr.bf16.mxu0 %v1689_v44 }
  0x39   : > { %969 = vmatprep.mubr.bf16.mxu1 %v1691_v45 }
  0x3f   : > { %826 = vmatmul.mubr.bf16.gmra.mrb[12].mxu0 %v1693_v46 }
  0x40   : > { %970 = vmatmul.mubr.bf16.gmra.mrb[12].mxu1 %v1694_v47  ;;  %833 = vmatprep.mubr.bf16.mxu0 %v1695_v48 }
  0x41   : > { %977 = vmatprep.mubr.bf16.mxu1 %v1697_v49 }
  0x47   : > { %834 = vmatmul.mubr.bf16.gmra.mrb[16].mxu0 %v1699_v50 }
  0x48   : > { %978 = vmatmul.mubr.bf16.gmra.mrb[16].mxu1 %v1700_v51  ;;  %841 = vmatprep.mubr.bf16.mxu0 %v1701_v52 }
  0x49   : > { %985 = vmatprep.mubr.bf16.mxu1 %v1703_v53 }
  0x4f   : > { %842 = vmatmul.mubr.bf16.gmra.mrb[20].mxu0 %v1705_v54 }
  0x50   : > { %986 = vmatmul.mubr.bf16.gmra.mrb[20].mxu1 %v1706_v55  ;;  %849 = vmatprep.mubr.bf16.mxu0 %v1707_v56 }
  0x51   : > { %993 = vmatprep.mubr.bf16.mxu1 %v1709_v57 }
  0x57   : > { %850 = vmatmul.mubr.bf16.gmra.mrb[24].mxu0 %v1711_v58 }
  0x58   : > { %994 = vmatmul.mubr.bf16.gmra.mrb[24].mxu1 %v1712_v59  ;;  %857 = vmatprep.mubr.bf16.mxu0 %v1713_v60 }
  0x59   : > { %1001 = vmatprep.mubr.bf16.mxu1 %v1715_v61 }
  0x5f   : > { %858 = vmatmul.mubr.bf16.gmra.mrb[28].mxu0 %v1717_v62 }
  0x60   : > { %1002 = vmatmul.mubr.bf16.gmra.mrb[28].mxu1 %v1718_v63  ;;  %865 = vmatprep.mubr.bf16.mxu0 %v1719_v0 }
  0x61   : > { %1009 = vmatprep.mubr.bf16.mxu1 %v1721_v1 }
  0x67   : > { %866 = vmatmul.mubr.bf16.gmra.mrb[32].mxu0 %v1723_v2 }
  0x68   : > { %1010 = vmatmul.mubr.bf16.gmra.mrb[32].mxu1 %v1724_v3  ;;  %873 = vmatprep.mubr.bf16.mxu0 %v1725_v4 }
  0x69   : > { %1017 = vmatprep.mubr.bf16.mxu1 %v1727_v5 }
  0x6f   : > { %874 = vmatmul.mubr.bf16.gmra.mrb[36].mxu0 %v1729_v6 }
  0x70   : > { %1018 = vmatmul.mubr.bf16.gmra.mrb[36].mxu1 %v1730_v7  ;;  %881 = vmatprep.mubr.bf16.mxu0 %v1731_v8 }
  0x71   : > { %1025 = vmatprep.mubr.bf16.mxu1 %v1733_v9 }
  0x77   : > { %882 = vmatmul.mubr.bf16.gmra.mrb[40].mxu0 %v1735_v10 }
  0x78   : > { %1026 = vmatmul.mubr.bf16.gmra.mrb[40].mxu1 %v1736_v11  ;;  %889 = vmatprep.mubr.bf16.mxu0 %v1737_v12 }
  0x79   : > { %1033 = vmatprep.mubr.bf16.mxu1 %v1739_v13 }
  0x7f   : > { %890 = vmatmul.mubr.bf16.gmra.mrb[44].mxu0 %v1741_v14 }
  0x80   : > { %1034 = vmatmul.mubr.bf16.gmra.mrb[44].mxu1 %v1742_v15  ;;  %897 = vmatprep.mubr.bf16.mxu0 %v1743_v16 }
  0x81   : > { %1041 = vmatprep.mubr.bf16.mxu1 %v1745_v17 }
  0x87   : > { %898 = vmatmul.mubr.bf16.gmra.mrb[48].mxu0 %v1747_v20 }
  0x88   : > { %1042 = vmatmul.mubr.bf16.gmra.mrb[48].mxu1 %v1748_v21  ;;  %905 = vmatprep.mubr.bf16.mxu0 %v1339_v22 }
  0x89   : > { %1049 = vmatprep.mubr.bf16.mxu1 %v1341_v23 }
  0x8f   : > { %906 = vmatmul.mubr.bf16.gmra.mrb[52].mxu0 %v1338_v24 }
  0x90   : > { %1050 = vmatmul.mubr.bf16.gmra.mrb[52].mxu1 %v1340_v25 }
  0xfa   : > { %v1447_v26 = vpop.f32.mrb[0].mxu0 }
  0xfb   : > { %v1547_v27 = vpop.f32.mrb[0].mxu1  ;;  %v1448_v29 = vpop.f32.mrb[1].mxu0 }
  0xfc   : > { %v1449_v30 = vadd.f32 %v1448_v29, %v1447_v26  ;;  %v1548_v31 = vpop.f32.mrb[1].mxu1  ;;  %v1450_v32 = vpop.f32.mrb[2].mxu0 }
  0xfd   : > { %v1549_v33 = vadd.f32 %v1548_v31, %v1547_v27  ;;  %v1550_v34 = vpop.f32.mrb[2].mxu1  ;;  %v1451_v35 = vpop.f32.mrb[3].mxu0 }
  0xfe   : > { %v804_v36 = vadd.f32 %v1449_v30, %v1952_v28  ;;  %v1452_v37 = vadd.f32 %v1451_v35, %v1450_v32  ;;  %v1551_v38 = vpop.f32.mrb[3].mxu1 }
  0xff   : > { %v1552_v39 = vadd.f32 %v1551_v38, %v1550_v34 }
 0x100   : > { %v948_v40 = vadd.f32 %v1549_v33, %v804_v36  ;;  %v807_v41 = vadd.f32 %v1452_v37, %v1952_v28 }
 0x102   : > { %v1057_v42 = vmax.f32 %v948_v40, 0.0  ;;  %v951_v43 = vadd.f32 %v1552_v39, %v807_v41  ;;  %v1453_v44 = vpop.f32.mrb[4].mxu0 }
 0x103   : > { %v1553_v45 = vpop.f32.mrb[4].mxu1  ;;  %v1454_v46 = vpop.f32.mrb[5].mxu0 }
 0x104   : > { %v1404_v47 = vpack.c.bf16 %v1057_v42, %v1057_v42  ;;  %v1058_v48 = vmax.f32 %v951_v43, 0.0  ;;  %v1455_v49 = vadd.f32 %v1454_v46, %v1453_v44  ;;  %v1554_v50 = vpop.f32.mrb[5].mxu1  ;;  %v1456_v51 = vpop.f32.mrb[6].mxu0 }
 0x105   : > { %v1555_v52 = vadd.f32 %v1554_v50, %v1553_v45  ;;  %v1556_v53 = vpop.f32.mrb[6].mxu1  ;;  %v1457_v54 = vpop.f32.mrb[7].mxu0 }
 0x106   : > { %1194 = vst.msk [vmem:[%s1960_s10] sm:$0xf] %vm1193_vm0, %v1404_v47  ;;  %v1405_v55 = vpack.c.bf16 %v1058_v48, %v1058_v48  ;;  %v812_v56 = vadd.f32 %v1455_v49, %v1952_v28  ;;  %v1458_v57 = vadd.f32 %v1457_v54, %v1456_v51  ;;  %v1557_v58 = vpop.f32.mrb[7].mxu1 }
 0x107   : > { %v1558_v59 = vadd.f32 %v1557_v58, %v1556_v53 }
 0x108   : > { %1195 = vst.msk [vmem:[%s1960_s10 + $0x4] sm:$0xf] %vm1193_vm0, %v1405_v55  ;;  %v956_v60 = vadd.f32 %v1555_v52, %v812_v56  ;;  %v815_v61 = vadd.f32 %v1458_v57, %v1952_v28 }
 0x10a   : > { %v1059_v62 = vmax.f32 %v956_v60, 0.0  ;;  %v959_v63 = vadd.f32 %v1558_v59, %v815_v61  ;;  %v1459_v0 = vpop.f32.mrb[8].mxu0 }
 0x10b   : > { %v1559_v1 = vpop.f32.mrb[8].mxu1  ;;  %v1460_v2 = vpop.f32.mrb[9].mxu0 }
 0x10c   : > { %v1406_v3 = vpack.c.bf16 %v1059_v62, %v1059_v62  ;;  %v1060_v4 = vmax.f32 %v959_v63, 0.0  ;;  %v1461_v5 = vadd.f32 %v1460_v2, %v1459_v0  ;;  %v1560_v6 = vpop.f32.mrb[9].mxu1  ;;  %v1462_v7 = vpop.f32.mrb[10].mxu0 }
 0x10d   : > { %v1561_v8 = vadd.f32 %v1560_v6, %v1559_v1  ;;  %v1562_v9 = vpop.f32.mrb[10].mxu1  ;;  %v1463_v10 = vpop.f32.mrb[11].mxu0 }
 0x10e   : > { %1196 = vst.msk [vmem:[%s1960_s10 + $0x8] sm:$0xf] %vm1193_vm0, %v1406_v3  ;;  %v1407_v11 = vpack.c.bf16 %v1060_v4, %v1060_v4  ;;  %v820_v12 = vadd.f32 %v1461_v5, %v1952_v28  ;;  %v1464_v13 = vadd.f32 %v1463_v10, %v1462_v7  ;;  %v1563_v14 = vpop.f32.mrb[11].mxu1 }
 0x10f   : > { %v1564_v15 = vadd.f32 %v1563_v14, %v1562_v9 }
 0x110   : > { %1197 = vst.msk [vmem:[%s1960_s10 + $0xc] sm:$0xf] %vm1193_vm0, %v1407_v11  ;;  %v964_v16 = vadd.f32 %v1561_v8, %v820_v12  ;;  %v823_v17 = vadd.f32 %v1464_v13, %v1952_v28 }
 0x112   : > { %v1061_v18 = vmax.f32 %v964_v16, 0.0  ;;  %v967_v19 = vadd.f32 %v1564_v15, %v823_v17  ;;  %v1465_v20 = vpop.f32.mrb[12].mxu0 }
 0x113   : > { %v1565_v21 = vpop.f32.mrb[12].mxu1  ;;  %v1466_v22 = vpop.f32.mrb[13].mxu0 }
 0x114   : > { %v1408_v23 = vpack.c.bf16 %v1061_v18, %v1061_v18  ;;  %v1062_v24 = vmax.f32 %v967_v19, 0.0  ;;  %v1467_v25 = vadd.f32 %v1466_v22, %v1465_v20  ;;  %v1566_v26 = vpop.f32.mrb[13].mxu1  ;;  %v1468_v27 = vpop.f32.mrb[14].mxu0 }
 0x115   : > { %v1567_v29 = vadd.f32 %v1566_v26, %v1565_v21  ;;  %v1568_v30 = vpop.f32.mrb[14].mxu1  ;;  %v1469_v31 = vpop.f32.mrb[15].mxu0 }
 0x116   : > { %1198 = vst.msk [vmem:[%s1960_s10 + $0x10] sm:$0xf] %vm1193_vm0, %v1408_v23  ;;  %v1409_v32 = vpack.c.bf16 %v1062_v24, %v1062_v24  ;;  %v828_v33 = vadd.f32 %v1467_v25, %v1952_v28  ;;  %v1470_v34 = vadd.f32 %v1469_v31, %v1468_v27  ;;  %v1569_v35 = vpop.f32.mrb[15].mxu1 }
 0x117   : > { %v1570_v36 = vadd.f32 %v1569_v35, %v1568_v30 }
 0x118   : > { %1199 = vst.msk [vmem:[%s1960_s10 + $0x14] sm:$0xf] %vm1193_vm0, %v1409_v32  ;;  %v972_v37 = vadd.f32 %v1567_v29, %v828_v33  ;;  %v831_v38 = vadd.f32 %v1470_v34, %v1952_v28 }
 0x11a   : > { %v1063_v39 = vmax.f32 %v972_v37, 0.0  ;;  %v975_v40 = vadd.f32 %v1570_v36, %v831_v38  ;;  %v1471_v41 = vpop.f32.mrb[16].mxu0 }
 0x11b   : > { %v1571_v42 = vpop.f32.mrb[16].mxu1  ;;  %v1472_v43 = vpop.f32.mrb[17].mxu0 }
 0x11c   : > { %v1410_v44 = vpack.c.bf16 %v1063_v39, %v1063_v39  ;;  %v1064_v45 = vmax.f32 %v975_v40, 0.0  ;;  %v1473_v46 = vadd.f32 %v1472_v43, %v1471_v41  ;;  %v1572_v47 = vpop.f32.mrb[17].mxu1  ;;  %v1474_v48 = vpop.f32.mrb[18].mxu0 }
 0x11d   : > { %v1573_v49 = vadd.f32 %v1572_v47, %v1571_v42  ;;  %v1574_v50 = vpop.f32.mrb[18].mxu1  ;;  %v1475_v51 = vpop.f32.mrb[19].mxu0 }
 0x11e   : > { %1200 = vst.msk [vmem:[%s1960_s10 + $0x18] sm:$0xf] %vm1193_vm0, %v1410_v44  ;;  %v1411_v52 = vpack.c.bf16 %v1064_v45, %v1064_v45  ;;  %v836_v53 = vadd.f32 %v1473_v46, %v1952_v28  ;;  %v1476_v54 = vadd.f32 %v1475_v51, %v1474_v48  ;;  %v1575_v55 = vpop.f32.mrb[19].mxu1 }
 0x11f   : > { %v1576_v56 = vadd.f32 %v1575_v55, %v1574_v50 }
 0x120   : > { %1201 = vst.msk [vmem:[%s1960_s10 + $0x1c] sm:$0xf] %vm1193_vm0, %v1411_v52  ;;  %v980_v57 = vadd.f32 %v1573_v49, %v836_v53  ;;  %v839_v58 = vadd.f32 %v1476_v54, %v1952_v28 }
 0x122   : > { %v1065_v59 = vmax.f32 %v980_v57, 0.0  ;;  %v983_v60 = vadd.f32 %v1576_v56, %v839_v58  ;;  %v1477_v61 = vpop.f32.mrb[20].mxu0 }
 0x123   : > { %v1577_v62 = vpop.f32.mrb[20].mxu1  ;;  %v1478_v63 = vpop.f32.mrb[21].mxu0 }
 0x124   : > { %v1412_v0 = vpack.c.bf16 %v1065_v59, %v1065_v59  ;;  %v1066_v1 = vmax.f32 %v983_v60, 0.0  ;;  %v1479_v2 = vadd.f32 %v1478_v63, %v1477_v61  ;;  %v1578_v3 = vpop.f32.mrb[21].mxu1  ;;  %v1480_v4 = vpop.f32.mrb[22].mxu0 }
 0x125   : > { %v1579_v5 = vadd.f32 %v1578_v3, %v1577_v62  ;;  %v1580_v6 = vpop.f32.mrb[22].mxu1  ;;  %v1481_v7 = vpop.f32.mrb[23].mxu0 }
 0x126   : > { %1202 = vst.msk [vmem:[%s1960_s10 + $0x20] sm:$0xf] %vm1193_vm0, %v1412_v0  ;;  %v1413_v8 = vpack.c.bf16 %v1066_v1, %v1066_v1  ;;  %v844_v9 = vadd.f32 %v1479_v2, %v1952_v28  ;;  %v1482_v10 = vadd.f32 %v1481_v7, %v1480_v4  ;;  %v1581_v11 = vpop.f32.mrb[23].mxu1 }
 0x127   : > { %v1582_v12 = vadd.f32 %v1581_v11, %v1580_v6 }
 0x128   : > { %1203 = vst.msk [vmem:[%s1960_s10 + $0x24] sm:$0xf] %vm1193_vm0, %v1413_v8  ;;  %v988_v13 = vadd.f32 %v1579_v5, %v844_v9  ;;  %v847_v14 = vadd.f32 %v1482_v10, %v1952_v28 }
 0x12a   : > { %v1067_v15 = vmax.f32 %v988_v13, 0.0  ;;  %v991_v16 = vadd.f32 %v1582_v12, %v847_v14  ;;  %v1483_v17 = vpop.f32.mrb[24].mxu0 }
 0x12b   : > { %v1583_v18 = vpop.f32.mrb[24].mxu1  ;;  %v1484_v19 = vpop.f32.mrb[25].mxu0 }
 0x12c   : > { %v1414_v20 = vpack.c.bf16 %v1067_v15, %v1067_v15  ;;  %v1068_v21 = vmax.f32 %v991_v16, 0.0  ;;  %v1485_v22 = vadd.f32 %v1484_v19, %v1483_v17  ;;  %v1584_v23 = vpop.f32.mrb[25].mxu1  ;;  %v1486_v24 = vpop.f32.mrb[26].mxu0 }
 0x12d   : > { %v1585_v25 = vadd.f32 %v1584_v23, %v1583_v18  ;;  %v1586_v26 = vpop.f32.mrb[26].mxu1  ;;  %v1487_v27 = vpop.f32.mrb[27].mxu0 }
 0x12e   : > { %1204 = vst.msk [vmem:[%s1960_s10 + $0x28] sm:$0xf] %vm1193_vm0, %v1414_v20  ;;  %v1415_v29 = vpack.c.bf16 %v1068_v21, %v1068_v21  ;;  %v852_v30 = vadd.f32 %v1485_v22, %v1952_v28  ;;  %v1488_v31 = vadd.f32 %v1487_v27, %v1486_v24  ;;  %v1587_v32 = vpop.f32.mrb[27].mxu1 }
 0x12f   : > { %v1588_v33 = vadd.f32 %v1587_v32, %v1586_v26 }
 0x130   : > { %1205 = vst.msk [vmem:[%s1960_s10 + $0x2c] sm:$0xf] %vm1193_vm0, %v1415_v29  ;;  %v996_v34 = vadd.f32 %v1585_v25, %v852_v30  ;;  %v855_v35 = vadd.f32 %v1488_v31, %v1952_v28 }
 0x132   : > { %v1069_v36 = vmax.f32 %v996_v34, 0.0  ;;  %v999_v37 = vadd.f32 %v1588_v33, %v855_v35  ;;  %v1489_v38 = vpop.f32.mrb[28].mxu0 }
 0x133   : > { %v1589_v39 = vpop.f32.mrb[28].mxu1  ;;  %v1490_v40 = vpop.f32.mrb[29].mxu0 }
 0x134   : > { %v1416_v41 = vpack.c.bf16 %v1069_v36, %v1069_v36  ;;  %v1070_v42 = vmax.f32 %v999_v37, 0.0  ;;  %v1491_v43 = vadd.f32 %v1490_v40, %v1489_v38  ;;  %v1590_v44 = vpop.f32.mrb[29].mxu1  ;;  %v1492_v45 = vpop.f32.mrb[30].mxu0 }
 0x135   : > { %v1591_v46 = vadd.f32 %v1590_v44, %v1589_v39  ;;  %v1592_v47 = vpop.f32.mrb[30].mxu1  ;;  %v1493_v48 = vpop.f32.mrb[31].mxu0 }
 0x136   : > { %1206 = vst.msk [vmem:[%s1960_s10 + $0x30] sm:$0xf] %vm1193_vm0, %v1416_v41  ;;  %v1417_v49 = vpack.c.bf16 %v1070_v42, %v1070_v42  ;;  %v860_v50 = vadd.f32 %v1491_v43, %v1952_v28  ;;  %v1494_v51 = vadd.f32 %v1493_v48, %v1492_v45  ;;  %v1593_v52 = vpop.f32.mrb[31].mxu1 }
 0x137   : > { %v1594_v53 = vadd.f32 %v1593_v52, %v1592_v47 }
 0x138   : > { %1207 = vst.msk [vmem:[%s1960_s10 + $0x34] sm:$0xf] %vm1193_vm0, %v1417_v49  ;;  %v1004_v54 = vadd.f32 %v1591_v46, %v860_v50  ;;  %v863_v55 = vadd.f32 %v1494_v51, %v1952_v28 }
 0x13a   : > { %v1071_v56 = vmax.f32 %v1004_v54, 0.0  ;;  %v1007_v57 = vadd.f32 %v1594_v53, %v863_v55  ;;  %v1495_v58 = vpop.f32.mrb[32].mxu0 }
 0x13b   : > { %v1595_v59 = vpop.f32.mrb[32].mxu1  ;;  %v1496_v60 = vpop.f32.mrb[33].mxu0 }
 0x13c   : > { %v1418_v61 = vpack.c.bf16 %v1071_v56, %v1071_v56  ;;  %v1072_v62 = vmax.f32 %v1007_v57, 0.0  ;;  %v1497_v63 = vadd.f32 %v1496_v60, %v1495_v58  ;;  %v1596_v0 = vpop.f32.mrb[33].mxu1  ;;  %v1498_v1 = vpop.f32.mrb[34].mxu0 }
 0x13d   : > { %v1597_v2 = vadd.f32 %v1596_v0, %v1595_v59  ;;  %v1598_v3 = vpop.f32.mrb[34].mxu1  ;;  %v1499_v4 = vpop.f32.mrb[35].mxu0 }
 0x13e   : > { %1208 = vst.msk [vmem:[%s1960_s10 + $0x38] sm:$0xf] %vm1193_vm0, %v1418_v61  ;;  %v1419_v5 = vpack.c.bf16 %v1072_v62, %v1072_v62  ;;  %v868_v6 = vadd.f32 %v1497_v63, %v1952_v28  ;;  %v1500_v7 = vadd.f32 %v1499_v4, %v1498_v1  ;;  %v1599_v8 = vpop.f32.mrb[35].mxu1 }
 0x13f   : > { %v1600_v9 = vadd.f32 %v1599_v8, %v1598_v3 }
 0x140   : > { %1209 = vst.msk [vmem:[%s1960_s10 + $0x3c] sm:$0xf] %vm1193_vm0, %v1419_v5  ;;  %v1012_v10 = vadd.f32 %v1597_v2, %v868_v6  ;;  %v871_v11 = vadd.f32 %v1500_v7, %v1952_v28 }
 0x142   : > { %v1073_v12 = vmax.f32 %v1012_v10, 0.0  ;;  %v1015_v13 = vadd.f32 %v1600_v9, %v871_v11  ;;  %v1501_v14 = vpop.f32.mrb[36].mxu0 }
 0x143   : > { %v1601_v15 = vpop.f32.mrb[36].mxu1  ;;  %v1502_v16 = vpop.f32.mrb[37].mxu0 }
 0x144   : > { %v1420_v17 = vpack.c.bf16 %v1073_v12, %v1073_v12  ;;  %v1074_v18 = vmax.f32 %v1015_v13, 0.0  ;;  %v1503_v19 = vadd.f32 %v1502_v16, %v1501_v14  ;;  %v1602_v20 = vpop.f32.mrb[37].mxu1  ;;  %v1504_v21 = vpop.f32.mrb[38].mxu0 }
 0x145   : > { %v1603_v22 = vadd.f32 %v1602_v20, %v1601_v15  ;;  %v1604_v23 = vpop.f32.mrb[38].mxu1  ;;  %v1505_v24 = vpop.f32.mrb[39].mxu0 }
 0x146   : > { %1210 = vst.msk [vmem:[%s1960_s10 + $0x40] sm:$0xf] %vm1193_vm0, %v1420_v17  ;;  %v1421_v25 = vpack.c.bf16 %v1074_v18, %v1074_v18  ;;  %v876_v26 = vadd.f32 %v1503_v19, %v1952_v28  ;;  %v1506_v27 = vadd.f32 %v1505_v24, %v1504_v21  ;;  %v1605_v29 = vpop.f32.mrb[39].mxu1 }
 0x147   : > { %v1606_v30 = vadd.f32 %v1605_v29, %v1604_v23 }
 0x148   : > { %1211 = vst.msk [vmem:[%s1960_s10 + $0x44] sm:$0xf] %vm1193_vm0, %v1421_v25  ;;  %v1020_v31 = vadd.f32 %v1603_v22, %v876_v26  ;;  %v879_v32 = vadd.f32 %v1506_v27, %v1952_v28 }
 0x14a   : > { %v1075_v33 = vmax.f32 %v1020_v31, 0.0  ;;  %v1023_v34 = vadd.f32 %v1606_v30, %v879_v32  ;;  %v1507_v35 = vpop.f32.mrb[40].mxu0 }
 0x14b   : > { %v1607_v36 = vpop.f32.mrb[40].mxu1  ;;  %v1508_v37 = vpop.f32.mrb[41].mxu0 }
 0x14c   : > { %v1422_v38 = vpack.c.bf16 %v1075_v33, %v1075_v33  ;;  %v1076_v39 = vmax.f32 %v1023_v34, 0.0  ;;  %v1509_v40 = vadd.f32 %v1508_v37, %v1507_v35  ;;  %v1608_v41 = vpop.f32.mrb[41].mxu1  ;;  %v1510_v42 = vpop.f32.mrb[42].mxu0 }
 0x14d   : > { %v1609_v43 = vadd.f32 %v1608_v41, %v1607_v36  ;;  %v1610_v44 = vpop.f32.mrb[42].mxu1  ;;  %v1511_v45 = vpop.f32.mrb[43].mxu0 }
 0x14e   : > { %1212 = vst.msk [vmem:[%s1960_s10 + $0x48] sm:$0xf] %vm1193_vm0, %v1422_v38  ;;  %v1423_v46 = vpack.c.bf16 %v1076_v39, %v1076_v39  ;;  %v884_v47 = vadd.f32 %v1509_v40, %v1952_v28  ;;  %v1512_v48 = vadd.f32 %v1511_v45, %v1510_v42  ;;  %v1611_v49 = vpop.f32.mrb[43].mxu1 }
 0x14f   : > { %v1612_v50 = vadd.f32 %v1611_v49, %v1610_v44 }
 0x150   : > { %1213 = vst.msk [vmem:[%s1960_s10 + $0x4c] sm:$0xf] %vm1193_vm0, %v1423_v46  ;;  %v1028_v51 = vadd.f32 %v1609_v43, %v884_v47  ;;  %v887_v52 = vadd.f32 %v1512_v48, %v1952_v28 }
 0x152   : > { %v1077_v53 = vmax.f32 %v1028_v51, 0.0  ;;  %v1031_v54 = vadd.f32 %v1612_v50, %v887_v52  ;;  %v1513_v55 = vpop.f32.mrb[44].mxu0 }
 0x153   : > { %v1613_v56 = vpop.f32.mrb[44].mxu1  ;;  %v1514_v57 = vpop.f32.mrb[45].mxu0 }
 0x154   : > { %v1424_v58 = vpack.c.bf16 %v1077_v53, %v1077_v53  ;;  %v1078_v59 = vmax.f32 %v1031_v54, 0.0  ;;  %v1515_v60 = vadd.f32 %v1514_v57, %v1513_v55  ;;  %v1614_v61 = vpop.f32.mrb[45].mxu1  ;;  %v1516_v62 = vpop.f32.mrb[46].mxu0 }
 0x155   : > { %v1615_v63 = vadd.f32 %v1614_v61, %v1613_v56  ;;  %v1616_v0 = vpop.f32.mrb[46].mxu1  ;;  %v1517_v1 = vpop.f32.mrb[47].mxu0 }
 0x156   : > { %1214 = vst.msk [vmem:[%s1960_s10 + $0x50] sm:$0xf] %vm1193_vm0, %v1424_v58  ;;  %v1425_v2 = vpack.c.bf16 %v1078_v59, %v1078_v59  ;;  %v892_v3 = vadd.f32 %v1515_v60, %v1952_v28  ;;  %v1518_v4 = vadd.f32 %v1517_v1, %v1516_v62  ;;  %v1617_v5 = vpop.f32.mrb[47].mxu1 }
 0x157   : > { %v1618_v6 = vadd.f32 %v1617_v5, %v1616_v0 }
 0x158   : > { %1215 = vst.msk [vmem:[%s1960_s10 + $0x54] sm:$0xf] %vm1193_vm0, %v1425_v2  ;;  %v1036_v7 = vadd.f32 %v1615_v63, %v892_v3  ;;  %v895_v8 = vadd.f32 %v1518_v4, %v1952_v28 }
 0x15a   : > { %v1079_v9 = vmax.f32 %v1036_v7, 0.0  ;;  %v1039_v10 = vadd.f32 %v1618_v6, %v895_v8  ;;  %v1519_v11 = vpop.f32.mrb[48].mxu0 }
 0x15b   : > { %v1619_v12 = vpop.f32.mrb[48].mxu1  ;;  %v1520_v13 = vpop.f32.mrb[49].mxu0 }
 0x15c   : > { %v1426_v14 = vpack.c.bf16 %v1079_v9, %v1079_v9  ;;  %v1080_v15 = vmax.f32 %v1039_v10, 0.0  ;;  %v1521_v16 = vadd.f32 %v1520_v13, %v1519_v11  ;;  %v1620_v17 = vpop.f32.mrb[49].mxu1  ;;  %v1522_v18 = vpop.f32.mrb[50].mxu0 }
 0x15d   : > { %v1621_v19 = vadd.f32 %v1620_v17, %v1619_v12  ;;  %v1622_v20 = vpop.f32.mrb[50].mxu1  ;;  %v1523_v21 = vpop.f32.mrb[51].mxu0 }
 0x15e   : > { %1216 = vst.msk [vmem:[%s1960_s10 + $0x58] sm:$0xf] %vm1193_vm0, %v1426_v14  ;;  %v1427_v22 = vpack.c.bf16 %v1080_v15, %v1080_v15  ;;  %v900_v23 = vadd.f32 %v1521_v16, %v1952_v28  ;;  %v1524_v24 = vadd.f32 %v1523_v21, %v1522_v18  ;;  %v1623_v25 = vpop.f32.mrb[51].mxu1 }
 0x15f   : > { %v1624_v26 = vadd.f32 %v1623_v25, %v1622_v20 }
 0x160   : > { %1217 = vst.msk [vmem:[%s1960_s10 + $0x5c] sm:$0xf] %vm1193_vm0, %v1427_v22  ;;  %v1044_v27 = vadd.f32 %v1621_v19, %v900_v23  ;;  %v903_v29 = vadd.f32 %v1524_v24, %v1952_v28 }
 0x162   : > { %v1081_v30 = vmax.f32 %v1044_v27, 0.0  ;;  %v1047_v31 = vadd.f32 %v1624_v26, %v903_v29  ;;  %v1525_v32 = vpop.f32.mrb[52].mxu0 }
 0x163   : > { %v1625_v33 = vpop.f32.mrb[52].mxu1  ;;  %v1526_v34 = vpop.f32.mrb[53].mxu0 }
 0x164   : > { %v1428_v35 = vpack.c.bf16 %v1081_v30, %v1081_v30  ;;  %v1082_v36 = vmax.f32 %v1047_v31, 0.0  ;;  %v1527_v37 = vadd.f32 %v1526_v34, %v1525_v32  ;;  %v1626_v38 = vpop.f32.mrb[53].mxu1  ;;  %v1528_v39 = vpop.f32.mrb[54].mxu0 }
 0x165   : > { %v1627_v40 = vadd.f32 %v1626_v38, %v1625_v33  ;;  %v1628_v41 = vpop.f32.mrb[54].mxu1  ;;  %v1529_v42 = vpop.f32.mrb[55].mxu0 }
 0x166   : > { %1218 = vst.msk [vmem:[%s1960_s10 + $0x60] sm:$0xf] %vm1193_vm0, %v1428_v35  ;;  %v1429_v43 = vpack.c.bf16 %v1082_v36, %v1082_v36  ;;  %v908_v44 = vadd.f32 %v1527_v37, %v1952_v28  ;;  %v1629_v45 = vpop.f32.mrb[55].mxu1 }
 0x168   : > { %1219 = vst.msk [vmem:[%s1960_s10 + $0x64] sm:$0xf] %vm1193_vm0, %v1429_v43  ;;  %v1052_v46 = vadd.f32 %v1627_v40, %v908_v44 }
 0x16a   : > { %v1083_v47 = vmax.f32 %v1052_v46, 0.0 }
 0x16c   : > { %v1430_v48 = vpack.c.bf16 %v1083_v47, %v1083_v47 }
 0x16e   : > { %1220 = vst.msk [vmem:[%s1960_s10 + $0x68] sm:$0xf] %vm1193_vm0, %v1430_v48 }
 0x16f PF: > { %s13_s12 = sadd.s32 1, %s1759_s12  }
 0x170   : > { %p10_p4 = scmp.ge.s32.totalorder %s13_s12, 5  }
 0x172   :  { %12 = sbr.rel (!%p10_p4) target bundleno = 1 (0x1), region = 62 }

// kernel: gpt_forward.9
= control target key start
LH: loop header
LB: loop body
LE: loop exit
PB: predicated region body
PF: predicated region fallthrough
CT: control target
= control target key end

     0   :  { %s1186_s12 = smov 0   ;;  %s1347_s0 = inlined_call_operand.vmem [shape: bf16[392,576], index: 0, kind: input, shape index: {}]   ;;  %s1348_s1 = inlined_call_operand.vmem [shape: bf16[576,64], index: 1, kind: input, shape index: {}]   ;;  %s1349_s2 = inlined_call_operand.vmem [shape: f32[1,64], index: 2, kind: input, shape index: {}]   ;;  %s1350_s3 = inlined_call_operand.vmem [shape: bf16[392,64], index: 3, kind: output, shape index: {}]  }
   0x1 LB: > { %s891_s13 = sadd.s32 4294967295, %s1164_s12   ;;  %p895_p0 = scmp.ge.s32.totalorder %s1164_s12, 1  ;;  %s1164_s12 = sphi %s1186_s12, %s13_s12  }
   0x2   : > { %p139_p1 = scmp.lt.s32.totalorder %s1164_s12, 8 }
   0x4   : > { %p140_p2 = pnand %p895_p0, %p139_p1 }
   0x5   : > { %v1096_v0 = vld [vmem:[%s1348_s1 + $0x40] sm:$0xff] (!%p140_p2)   ;;  %v1100_v4 = vld [vmem:[%s1348_s1 + $0x48] sm:$0xff] (!%p140_p2)   ;;  %v1104_v8 = vld [vmem:[%s1348_s1 + $0x50] sm:$0xff] (!%p140_p2)   ;;  %s164_s17 = smul.u32 (!%p140_p2), 7, %s891_s13  ;;  %vm586_vm0 = vcmask (!%p140_p2), 523264   ;;  %vm827_vm1 = vcmask (!%p140_p2), 519168  }
   0x6   : > { %143 = sbr.rel (%p140_p2) target bundleno = 294 (0x126), region = 32  ;;  %v1097_v1 = vld [vmem:[%s1348_s1 + $0xc0] sm:$0xff] (!%p140_p2)   ;;  %975 = vmatprep.subr.bf16.mxu0 (!%p140_p2), %v1096_v0  ;;  %v1101_v5 = vld [vmem:[%s1348_s1 + $0xc8] sm:$0xff] (!%p140_p2)   ;;  %v1105_v9 = vld [vmem:[%s1348_s1 + $0xd0] sm:$0xff] (!%p140_p2)  }
   0x7   : > { %v1098_v2 = vld [vmem:[%s1348_s1] sm:$0xff] (!%p140_p2)   ;;  %1015 = vmatprep.subr.bf16.mxu1 (!%p140_p2), %v1097_v1  ;;  %v1102_v6 = vld [vmem:[%s1348_s1 + $0x8] sm:$0xff] (!%p140_p2)   ;;  %v1106_v10 = vld [vmem:[%s1348_s1 + $0x10] sm:$0xff] (!%p140_p2)   ;;  %p165_p3 = scmp.lt.s32.totalorder (!%p140_p2), %s164_s17, 48 }
   0x8   : > { %v1099_v3 = vld [vmem:[%s1348_s1 + $0x80] sm:$0xff] (!%p140_p2)   ;;  %976 = vmatpush3.bf16.msra.mxu0 (!%p140_p2), %v1098_v2  ;;  %v1103_v7 = vld [vmem:[%s1348_s1 + $0x88] sm:$0xff] (!%p140_p2)   ;;  %v1107_v11 = vld [vmem:[%s1348_s1 + $0x90] sm:$0xff] (!%p140_p2)  }
   0x9   : > { %1016 = vmatpush3.bf16.msra.mxu1 (!%p140_p2), %v1099_v3  ;;  %977 = vmatprep.subr.bf16.mxu0 (!%p140_p2), %v1100_v4  ;;  %v1108_v12 = vld [vmem:[%s1348_s1 + $0x58] sm:$0xff] (!%p140_p2)   ;;  %v1112_v16 = vld [vmem:[%s1348_s1 + $0x60] sm:$0xff] (!%p140_p2)   ;;  %v1116_v20 = vld [vmem:[%s1348_s1 + $0x68] sm:$0xff] (!%p140_p2)  }
   0xa   : > { %1017 = vmatprep.subr.bf16.mxu1 (!%p140_p2), %v1101_v5  ;;  %v1109_v13 = vld [vmem:[%s1348_s1 + $0xd8] sm:$0xff] (!%p140_p2)   ;;  %v1113_v17 = vld [vmem:[%s1348_s1 + $0xe0] sm:$0xff] (!%p140_p2)   ;;  %v1117_v21 = vld [vmem:[%s1348_s1 + $0xe8] sm:$0xff] (!%p140_p2)  }
   0xb   : > { %v1110_v14 = vld [vmem:[%s1348_s1 + $0x18] sm:$0xff] (!%p140_p2)   ;;  %v1114_v18 = vld [vmem:[%s1348_s1 + $0x20] sm:$0xff] (!%p140_p2)   ;;  %v1118_v22 = vld [vmem:[%s1348_s1 + $0x28] sm:$0xff] (!%p140_p2)  }
   0xc   : > { %978 = vmatpush3.bf16.msra.mxu0 (!%p140_p2), %v1102_v6  ;;  %v1111_v15 = vld [vmem:[%s1348_s1 + $0x98] sm:$0xff] (!%p140_p2)   ;;  %v1115_v19 = vld [vmem:[%s1348_s1 + $0xa0] sm:$0xff] (!%p140_p2)   ;;  %v1119_v23 = vld [vmem:[%s1348_s1 + $0xa8] sm:$0xff] (!%p140_p2)  }
   0xd   : > { %1018 = vmatpush3.bf16.msra.mxu1 %v1103_v7  ;;  %979 = vmatprep.subr.bf16.mxu0 %v1104_v8  ;;  %s1352_s17 = smov (!%p165_p3, %s164_s17), 48  ;;  %v1120_v24 = vld [vmem:[%s1348_s1 + $0x70] sm:$0xff]   ;;  %v1124_v28 = vld [vmem:[%s1348_s1 + $0x78] sm:$0xff]   ;;  %v1134_v36 = vld [vmem:[%s1348_s1 + $0x100] sm:$0xff]  }
   0xe   : > { %1019 = vmatprep.subr.bf16.mxu1 %v1105_v9  ;;  %v1121_v25 = vld [vmem:[%s1348_s1 + $0xf0] sm:$0xff]   ;;  %s1087_s16 = smul.u32 20, %s1352_s17  ;;  %v1125_v29 = vld [vmem:[%s1348_s1 + $0xf8] sm:$0xff]   ;;  %v1141_v39 = vld [vmem:[%s1348_s1 + $0x108] sm:$0xff]   ;;  %s897_s18 = sshll.u32 %s1352_s17, 2 }
   0xf   : > { %v1122_v26 = vld [vmem:[%s1348_s1 + $0x30] sm:$0xff]   ;;  %v1126_v30 = vld [vmem:[%s1348_s1 + $0x38] sm:$0xff]   ;;  %v898_v60 = vld [vmem:[%s1349_s2] ss:$0 sm:$0xff]  ;;  %s175_s21 = scalar_lea.vmem %s1350_s3, %s897_s18 }
  0x10   : > { %980 = vmatpush3.bf16.msra.mxu0 %v1106_v10  ;;  %v1123_v27 = vld [vmem:[%s1348_s1 + $0xb0] sm:$0xff]   ;;  %s1292_s27 = scalar_lea.vmem %s1347_s0, %s1087_s16  ;;  %v1127_v31 = vld [vmem:[%s1348_s1 + $0xb8] sm:$0xff]  }
  0x11   : > { %1020 = vmatpush3.bf16.msra.mxu1 %v1107_v11  ;;  %981 = vmatprep.subr.bf16.mxu0 %v1108_v12  ;;  %v1128_v32 = vld [vmem:[%s1292_s27] ss:$20 sps:$4 sm:$0xff]   ;;  %v1130_v33 = vld [vmem:[%s1292_s27 + $0x4] ss:$20 sps:$4 sm:$0xff]   ;;  %v1131_v34 = vld [vmem:[%s1292_s27 + $0x8] ss:$20 sps:$4 sm:$0xff]  }
  0x12   : > { %1021 = vmatprep.subr.bf16.mxu1 %v1109_v13  ;;  %v1133_v35 = vld [vmem:[%s1292_s27 + $0xc] ss:$20 sps:$4 sm:$0xff]   ;;  %631 = vmatprep.mubr.bf16.mxu0 %v1130_v33  ;;  %v1137_v38 = vld [vmem:[%s1292_s27 + $0x34] ss:$20 sps:$4 sm:$0xff]   ;;  %v1140_v41 = vld [vmem:[%s1292_s27 + $0x30] ss:$20 sps:$4 sm:$0xff]  }
  0x13   : > { %695 = vmatprep.mubr.bf16.mxu1 %v1133_v35  ;;  %v1135_v37 = vld [vmem:[%s1292_s27 + $0x2c] ss:$20 sps:$4 sm:$0xff]   ;;  %v1139_v40 = vld [vmem:[%s1292_s27 + $0x28] ss:$20 sps:$4 sm:$0xff]   ;;  %v1148_v44 = vld [vmem:[%s1348_s1 + $0x110] sm:$0xff]  }
  0x14   : > { %982 = vmatpush3.bf16.msra.mxu0 %v1110_v14  ;;  %v1142_v42 = vld [vmem:[%s1292_s27 + $0x54] ss:$20 sps:$4 sm:$0xff]   ;;  %v1144_v43 = vld [vmem:[%s1292_s27 + $0x5c] ss:$20 sps:$4 sm:$0xff]   ;;  %v197_v47 = vld [vmem:[%s1292_s27 + $0x80] sm:$0xff] }
  0x15   : > { %1022 = vmatpush3.bf16.msra.mxu1 %v1111_v15  ;;  %983 = vmatprep.subr.bf16.mxu0 %v1112_v16  ;;  %v1153_v45 = vld [vmem:[%s1348_s1 + $0x118] sm:$0xff]   ;;  %v1146_v48 = vld [vmem:[%s1292_s27 + $0x50] ss:$20 sps:$4 sm:$0xff]   ;;  %v917_v51 = vcombine.high %v197_v47, %v197_v47  ;;  %v916_v53 = vcombine.low %v197_v47, %v197_v47  ;;  %v1155_v55 = vld [vmem:[%s1292_s27 + $0x60] ss:$20 sps:$4 sm:$0xff]  }
  0x16   : > { %1023 = vmatprep.subr.bf16.mxu1 %v1113_v17  ;;  %v196_v46 = vld [vmem:[%s1292_s27 + $0x78] sm:$0xff]  ;;  %v1154_v54 = vld [vmem:[%s1292_s27 + $0x10] ss:$20 sps:$4 sm:$0xff]   ;;  %v1157_v57 = vld [vmem:[%s1292_s27 + $0x88] ss:$0 sps:$4 sm:$0xff]  }
  0x17   : > { %v1147_v49 = vld [vmem:[%s1292_s27 + $0x58] ss:$20 sps:$4 sm:$0xff]   ;;  %v915_v50 = vcombine.high %v196_v46, %v196_v46  ;;  %v914_v52 = vcombine.low %v196_v46, %v196_v46 }
  0x18   : > { %984 = vmatpush3.bf16.msra.mxu0 %v1114_v18  ;;  %v1156_v56 = vld [vmem:[%s1292_s27 + $0x38] ss:$20 sps:$4 sm:$0xff]  }
  0x19   : > { %1024 = vmatpush3.bf16.msra.mxu1 %v1115_v19  ;;  %985 = vmatprep.subr.bf16.mxu0 %v1116_v20 }
  0x1a   : > { %1025 = vmatprep.subr.bf16.mxu1 %v1117_v21 }
  0x1c   : > { %986 = vmatpush3.bf16.msra.mxu0 %v1118_v22 }
  0x1d   : > { %1026 = vmatpush3.bf16.msra.mxu1 %v1119_v23  ;;  %987 = vmatprep.subr.bf16.mxu0 %v1120_v24 }
  0x1e   : > { %1027 = vmatprep.subr.bf16.mxu1 %v1121_v25 }
  0x20   : > { %988 = vmatpush3.bf16.msra.mxu0 %v1122_v26 }
  0x21   : > { %1028 = vmatpush3.bf16.msra.mxu1 %v1123_v27  ;;  %989 = vmatprep.subr.bf16.mxu0 %v1124_v28 }
  0x22   : > { %1029 = vmatprep.subr.bf16.mxu1 %v1125_v29 }
  0x24   : > { %990 = vmatpush3.bf16.msra.mxu0 %v1126_v30 }
  0x25   : > { %1030 = vmatpush3.bf16.msra.mxu1 %v1127_v31  ;;  %1063 = vmatprep.subr.bf16.mxu0 %v1134_v36 }
  0x26   : > { %1079 = vmatprep.subr.bf16.mxu1 %v1134_v36 }
  0x27   : > { %632 = vmatmul.mubr.bf16.vlgmr.msra.gmra.mrb[0].mxu0 %v1128_v32 }
  0x28   : > { %696 = vmatmul.mubr.bf16.vlgmr.msra.gmra.mrb[0].mxu1 %v1131_v34  ;;  %1064 = vmatpush3.bf16.msra.mxu0 %v1134_v36 }
  0x29   : > { %1083 = vmatpush3.bf16.msra.mxu1 %v1134_v36  ;;  %639 = vmatprep.mubr.bf16.mxu0 %v1135_v37 }
  0x2a   : > { %703 = vmatprep.mubr.bf16.mxu1 %v1137_v38  ;;  %1065 = vmatprep.subr.bf16.mxu0 %v1141_v39 }
  0x2b   : > { %1080 = vmatprep.subr.bf16.mxu1 %v1141_v39 }
  0x2c   : > { %1066 = vmatpush3.bf16.msra.mxu0 %v1141_v39 }
  0x2d   : > { %1084 = vmatpush3.bf16.msra.mxu1 %v1141_v39  ;;  %1067 = vmatprep.subr.bf16.mxu0 %v1148_v44 }
  0x2e   : > { %1081 = vmatprep.subr.bf16.mxu1 %v1148_v44 }
  0x2f   : > { %640 = vmatmul.mubr.bf16.gmra.mrb[4].mxu0 %v1139_v40 }
  0x30   : > { %704 = vmatmul.mubr.bf16.gmra.mrb[4].mxu1 %v1140_v41  ;;  %647 = vmatprep.mubr.bf16.mxu0 %v1142_v42 }
  0x31   : > { %711 = vmatprep.mubr.bf16.mxu1 %v1144_v43  ;;  %1068 = vmatpush3.bf16.msra.mxu0 %v1148_v44 }
  0x32   : > { %1085 = vmatpush3.bf16.msra.mxu1 %v1148_v44  ;;  %1069 = vmatprep.subr.bf16.mxu0 %v1153_v45 }
  0x33   : > { %1082 = vmatprep.subr.bf16.mxu1 %v1153_v45 }
  0x35   : > { %1070 = vmatpush3.bf16.msra.mxu0 %v1153_v45 }
  0x36   : > { %1086 = vmatpush3.bf16.msra.mxu1 %v1153_v45 }
  0x37   : > { %648 = vmatmul.mubr.bf16.gmra.mrb[8].mxu0 %v1146_v48 }
  0x38   : > { %712 = vmatmul.mubr.bf16.gmra.mrb[8].mxu1 %v1147_v49  ;;  %655 = vmatprep.mubr.bf16.mxu0 %v915_v50 }
  0x39   : > { %719 = vmatprep.mubr.bf16.mxu1 %v917_v51 }
  0x3f   : > { %656 = vmatmul.mubr.bf16.gmra.mrb[12].mxu0 %v914_v52 }
  0x40   : > { %720 = vmatmul.mubr.bf16.gmra.mrb[12].mxu1 %v916_v53  ;;  %1071 = vmatprep.mubr.msk.bf16.mxu0 %vm586_vm0, %v1154_v54 }
  0x41   : > { %1075 = vmatprep.mubr.msk.bf16.mxu1 %vm586_vm0, %v1155_v55 }
  0x47   : > { %1072 = vmatmul.mubr.msk.bf16.vlgmr.msra.gmra.mrb[16].mxu0 %vm586_vm0, %v1156_v56 }
  0x48   : > { %1076 = vmatmul.mubr.msk.bf16.vlgmr.msra.gmra.mrb[16].mxu1 %vm586_vm0, %v1157_v57 }
  0xfa   : > { %v991_v58 = vpop.f32.mrb[0].mxu0 }
  0xfb   : > { %v1031_v59 = vpop.f32.mrb[0].mxu1  ;;  %v992_v61 = vpop.f32.mrb[1].mxu0 }
  0xfc   : > { %v993_v62 = vadd.f32 %v992_v61, %v991_v58  ;;  %v1032_v63 = vpop.f32.mrb[1].mxu1  ;;  %v994_v0 = vpop.f32.mrb[2].mxu0 }
  0xfd   : > { %v1033_v1 = vadd.f32 %v1032_v63, %v1031_v59  ;;  %v1034_v2 = vpop.f32.mrb[2].mxu1  ;;  %v995_v3 = vpop.f32.mrb[3].mxu0 }
  0xfe   : > { %v634_v4 = vadd.f32 %v993_v62, %v898_v60  ;;  %v996_v5 = vadd.f32 %v995_v3, %v994_v0  ;;  %v1035_v6 = vpop.f32.mrb[3].mxu1 }
  0xff   : > { %v1036_v7 = vadd.f32 %v1035_v6, %v1034_v2 }
 0x100   : > { %v637_v8 = vadd.f32 %v996_v5, %v898_v60  ;;  %v698_v9 = vadd.f32 %v1033_v1, %v634_v4 }
 0x102   : > { %v997_v10 = vpop.f32.mrb[4].mxu0  ;;  %v701_v11 = vadd.f32 %v1036_v7, %v637_v8 }
 0x103   : > { %v1037_v12 = vpop.f32.mrb[4].mxu1  ;;  %v998_v13 = vpop.f32.mrb[5].mxu0 }
 0x104   : > { %v999_v14 = vadd.f32 %v998_v13, %v997_v10  ;;  %v1038_v15 = vpop.f32.mrb[5].mxu1  ;;  %v1000_v16 = vpop.f32.mrb[6].mxu0 }
 0x105   : > { %v1039_v17 = vadd.f32 %v1038_v15, %v1037_v12  ;;  %v1040_v18 = vpop.f32.mrb[6].mxu1  ;;  %v1001_v19 = vpop.f32.mrb[7].mxu0 }
 0x106   : > { %v642_v20 = vadd.f32 %v999_v14, %v898_v60  ;;  %v1002_v21 = vadd.f32 %v1001_v19, %v1000_v16  ;;  %v1041_v22 = vpop.f32.mrb[7].mxu1 }
 0x107   : > { %v1042_v23 = vadd.f32 %v1041_v22, %v1040_v18 }
 0x108   : > { %v645_v24 = vadd.f32 %v1002_v21, %v898_v60  ;;  %v706_v25 = vadd.f32 %v1039_v17, %v642_v20 }
 0x10a   : > { %v1003_v26 = vpop.f32.mrb[8].mxu0  ;;  %v709_v27 = vadd.f32 %v1042_v23, %v645_v24 }
 0x10b   : > { %v1043_v28 = vpop.f32.mrb[8].mxu1  ;;  %v1004_v29 = vpop.f32.mrb[9].mxu0 }
 0x10c   : > { %v1005_v30 = vadd.f32 %v1004_v29, %v1003_v26  ;;  %v1044_v31 = vpop.f32.mrb[9].mxu1  ;;  %v1006_v32 = vpop.f32.mrb[10].mxu0 }
 0x10d   : > { %v1045_v33 = vadd.f32 %v1044_v31, %v1043_v28  ;;  %v1046_v34 = vpop.f32.mrb[10].mxu1  ;;  %v1007_v35 = vpop.f32.mrb[11].mxu0 }
 0x10e   : > { %v650_v36 = vadd.f32 %v1005_v30, %v898_v60  ;;  %v1008_v37 = vadd.f32 %v1007_v35, %v1006_v32  ;;  %v1047_v38 = vpop.f32.mrb[11].mxu1 }
 0x10f   : > { %v1048_v39 = vadd.f32 %v1047_v38, %v1046_v34 }
 0x110   : > { %v653_v40 = vadd.f32 %v1008_v37, %v898_v60  ;;  %v714_v41 = vadd.f32 %v1045_v33, %v650_v36 }
 0x112   : > { %v1009_v42 = vpop.f32.mrb[12].mxu0  ;;  %v717_v43 = vadd.f32 %v1048_v39, %v653_v40 }
 0x113   : > { %v1049_v44 = vpop.f32.mrb[12].mxu1  ;;  %v1010_v45 = vpop.f32.mrb[13].mxu0 }
 0x114   : > { %v1011_v46 = vadd.f32 %v1010_v45, %v1009_v42  ;;  %v1050_v47 = vpop.f32.mrb[13].mxu1  ;;  %v1012_v48 = vpop.f32.mrb[14].mxu0 }
 0x115   : > { %v1051_v49 = vadd.f32 %v1050_v47, %v1049_v44  ;;  %v1052_v50 = vpop.f32.mrb[14].mxu1  ;;  %v1013_v51 = vpop.f32.mrb[15].mxu0 }
 0x116   : > { %v658_v52 = vadd.f32 %v1011_v46, %v898_v60  ;;  %v1053_v53 = vpop.f32.mrb[15].mxu1 }
 0x118   : > { %v722_v54 = vadd.f32 %v1051_v49, %v658_v52 }
 0x11a   : > { %v1073_v55 = vpop.f32.mrb[16].mxu0 }
 0x11b   : > { %v770_v56 = vadd.f32 %v1073_v55, %v706_v25  ;;  %v1077_v57 = vpop.f32.mrb[16].mxu1  ;;  %v761_v58 = vpop.f32.mrb[17].mxu0 }
 0x11c   : > { %v786_v59 = vadd.f32 %v1077_v57, %v722_v54  ;;  %v762_v61 = vadd.f32 %v761_v58, %v698_v9  ;;  %v777_v62 = vpop.f32.mrb[17].mxu1  ;;  %v1074_v63 = vpop.f32.mrb[18].mxu0 }
 0x11d   : > { %v793_v0 = vmax.f32 %v770_v56, 0.0  ;;  %v778_v1 = vadd.f32 %v777_v62, %v714_v41  ;;  %v773_v2 = vadd.f32 %v1074_v63, %v709_v27  ;;  %v1078_v3 = vpop.f32.mrb[18].mxu1  ;;  %v764_v4 = vpop.f32.mrb[19].mxu0 }
 0x11e   : > { %v797_v60 = vmax.f32 %v786_v59, 0.0  ;;  %v791_v5 = vmax.f32 %v762_v61, 0.0  ;;  %v765_v6 = vadd.f32 %v764_v4, %v701_v11  ;;  %v780_v7 = vpop.f32.mrb[19].mxu1 }
 0x11f   : > { %v970_v8 = vpack.c.bf16 %v793_v0, %v793_v0  ;;  %v795_v10 = vmax.f32 %v778_v1, 0.0  ;;  %v794_v12 = vmax.f32 %v773_v2, 0.0  ;;  %v781_v9 = vadd.f32 %v780_v7, %v717_v43 }
 0x120   : > { %v974_v13 = vpack.c.bf16 %v797_v60, %v797_v60  ;;  %v968_v14 = vpack.c.bf16 %v791_v5, %v791_v5  ;;  %v792_v15 = vmax.f32 %v765_v6, 0.0 }
 0x121   : > { %830 = vst.msk [vmem:[%s175_s21 + $0x8] sm:$0xf] %vm827_vm1, %v970_v8  ;;  %v972_v16 = vpack.c.bf16 %v795_v10, %v795_v10  ;;  %v971_v17 = vpack.c.bf16 %v794_v12, %v794_v12  ;;  %v796_v18 = vmax.f32 %v781_v9, 0.0 }
 0x122   : > { %834 = vst.msk [vmem:[%s175_s21 + $0x18] sm:$0xf] %vm827_vm1, %v974_v13  ;;  %828 = vst.msk [vmem:[%s175_s21] sm:$0xf] %vm827_vm1, %v968_v14  ;;  %v969_v19 = vpack.c.bf16 %v792_v15, %v792_v15 }
 0x123   : > { %832 = vst.msk [vmem:[%s175_s21 + $0x10] sm:$0xf] %vm827_vm1, %v972_v16  ;;  %831 = vst.msk [vmem:[%s175_s21 + $0xc] sm:$0xf] %vm827_vm1, %v971_v17  ;;  %v973_v11 = vpack.c.bf16 %v796_v18, %v796_v18 }
 0x124   : > { %829 = vst.msk [vmem:[%s175_s21 + $0x4] sm:$0xf] %vm827_vm1, %v969_v19 }
 0x125   : > { %833 = vst.msk [vmem:[%s175_s21 + $0x14] sm:$0xf] %vm827_vm1, %v973_v11 }
 0x126 PF: > { %s13_s12 = sadd.s32 1, %s1164_s12  }
 0x127   : > { %p10_p4 = scmp.ge.s32.totalorder %s13_s12, 9  }
 0x129   :  { %12 = sbr.rel (!%p10_p4) target bundleno = 1 (0x1), region = 62 }

// kernel: gpt_forward.10
= control target key start
LH: loop header
LB: loop body
LE: loop exit
PB: predicated region body
PF: predicated region fallthrough
CT: control target
= control target key end

     0   :  { %vm2951_vm0 = vmmov 0   ;;  %vm1690_vm1 = vcmask 523264   ;;  %vm2215_vm2 = vcmask 261120   ;;  %s3605_s1 = inlined_call_operand.vmem [shape: bf16[3136,32], index: 1, kind: input, shape index: {}]   ;;  %s3606_s0 = inlined_call_operand.vmem [shape: bf16[8,3136], index: 0, kind: input, shape index: {}]   ;;  %s3607_s2 = inlined_call_operand.vmem [shape: f32[1,32], index: 2, kind: input, shape index: {}]   ;;  %s3608_s3 = inlined_call_operand.vmem [shape: f32[8,32], index: 3, kind: output, shape index: {}]  }
   0x1   :  { %v2727_v0 = vld [vmem:[%s3605_s1 + $0x40] sm:$0xff]   ;;  %v2731_v4 = vld [vmem:[%s3605_s1 + $0x48] sm:$0xff]   ;;  %v2735_v8 = vld [vmem:[%s3605_s1 + $0x50] sm:$0xff]  }
   0x2   :  { %v2728_v1 = vld [vmem:[%s3605_s1] sm:$0xff]   ;;  %2444 = vmatprep.subr.bf16.mxu0 %v2727_v0  ;;  %v2732_v5 = vld [vmem:[%s3605_s1 + $0x8] sm:$0xff]   ;;  %v2736_v9 = vld [vmem:[%s3605_s1 + $0x10] sm:$0xff]  }
   0x3   :  { %v2729_v2 = vld [vmem:[%s3605_s1 + $0xc0] sm:$0xff]   ;;  %2445 = vmatpush3.bf16.msra.mxu0 %v2728_v1  ;;  %v2733_v6 = vld [vmem:[%s3605_s1 + $0xc8] sm:$0xff]   ;;  %v2737_v10 = vld [vmem:[%s3605_s1 + $0xd0] sm:$0xff]  }
   0x4   :  { %v2730_v3 = vld [vmem:[%s3605_s1 + $0x80] sm:$0xff]   ;;  %2466 = vmatprep.subr.bf16.mxu1 %v2729_v2  ;;  %2446 = vmatprep.subr.bf16.mxu0 %v2731_v4  ;;  %v2734_v7 = vld [vmem:[%s3605_s1 + $0x88] sm:$0xff]   ;;  %v2738_v11 = vld [vmem:[%s3605_s1 + $0x90] sm:$0xff]  }
   0x5   :  { %2467 = vmatpush3.bf16.msra.mxu1 %v2730_v3  ;;  %v2739_v12 = vld [vmem:[%s3605_s1 + $0x58] sm:$0xff]   ;;  %v2743_v16 = vld [vmem:[%s3605_s1 + $0x60] sm:$0xff]   ;;  %v2747_v20 = vld [vmem:[%s3605_s1 + $0x68] sm:$0xff]  }
   0x6   :  { %2468 = vmatprep.subr.bf16.mxu1 %v2733_v6  ;;  %v2740_v13 = vld [vmem:[%s3605_s1 + $0x18] sm:$0xff]   ;;  %v2744_v17 = vld [vmem:[%s3605_s1 + $0x20] sm:$0xff]   ;;  %v2748_v21 = vld [vmem:[%s3605_s1 + $0x28] sm:$0xff]  }
   0x7   :  { %2447 = vmatpush3.bf16.msra.mxu0 %v2732_v5  ;;  %v2741_v14 = vld [vmem:[%s3605_s1 + $0xd8] sm:$0xff]   ;;  %v2745_v18 = vld [vmem:[%s3605_s1 + $0xe0] sm:$0xff]   ;;  %v2749_v22 = vld [vmem:[%s3605_s1 + $0xe8] sm:$0xff]  }
   0x8   :  { %2448 = vmatprep.subr.bf16.mxu0 %v2735_v8  ;;  %v2742_v15 = vld [vmem:[%s3605_s1 + $0x98] sm:$0xff]   ;;  %v2746_v19 = vld [vmem:[%s3605_s1 + $0xa0] sm:$0xff]   ;;  %v2750_v23 = vld [vmem:[%s3605_s1 + $0xa8] sm:$0xff]  }
   0x9   :  { %2469 = vmatpush3.bf16.msra.mxu1 %v2734_v7  ;;  %v2751_v24 = vld [vmem:[%s3605_s1 + $0x70] sm:$0xff]   ;;  %v2755_v28 = vld [vmem:[%s3605_s1 + $0x78] sm:$0xff]   ;;  %v15_v31 = vld [vmem:[%s3606_s0] sm:$0xff] }
   0xa   :  { %2470 = vmatprep.subr.bf16.mxu1 %v2737_v10  ;;  %v2752_v25 = vld [vmem:[%s3605_s1 + $0x30] sm:$0xff]   ;;  %v2756_v29 = vld [vmem:[%s3605_s1 + $0x38] sm:$0xff]   ;;  %v2222_v32 = vcombine.low %v15_v31, %v15_v31  ;;  %v2223_v33 = vcombine.high %v15_v31, %v15_v31  ;;  %v2761_v35 = vld [vmem:[%s3605_s1 + $0x140] sm:$0xff]  }
   0xb   :  { %2449 = vmatpush3.bf16.msra.mxu0 %v2736_v9  ;;  %v2753_v26 = vld [vmem:[%s3605_s1 + $0xf0] sm:$0xff]   ;;  %v2757_v30 = vld [vmem:[%s3605_s1 + $0xf8] sm:$0xff]   ;;  %v16_v36 = vld [vmem:[%s3606_s0 + $0x8] sm:$0xff] }
   0xc   :  { %2450 = vmatprep.subr.bf16.mxu0 %v2739_v12  ;;  %v2754_v27 = vld [vmem:[%s3605_s1 + $0xb0] sm:$0xff]   ;;  %v2760_v34 = vld [vmem:[%s3605_s1 + $0xb8] sm:$0xff]   ;;  %1726 = vmatprep.mubr.bf16.mxu0 %v2223_v33  ;;  %v2224_v37 = vcombine.low %v16_v36, %v16_v36  ;;  %v2225_v38 = vcombine.high %v16_v36, %v16_v36  ;;  %v2764_v39 = vld [vmem:[%s3605_s1 + $0x100] sm:$0xff]  }
   0xd   :  { %2471 = vmatpush3.bf16.msra.mxu1 %v2738_v11  ;;  %v2765_v40 = vld [vmem:[%s3605_s1 + $0x1c0] sm:$0xff]   ;;  %v2767_v42 = vld [vmem:[%s3605_s1 + $0x148] sm:$0xff]   ;;  %v2771_v46 = vld [vmem:[%s3605_s1 + $0x150] sm:$0xff]  }
   0xe   :  { %2472 = vmatprep.subr.bf16.mxu1 %v2741_v14  ;;  %1766 = vmatprep.mubr.bf16.mxu1 %v2225_v38  ;;  %v2766_v41 = vld [vmem:[%s3605_s1 + $0x180] sm:$0xff]   ;;  %v2768_v43 = vld [vmem:[%s3605_s1 + $0x108] sm:$0xff]   ;;  %v2772_v47 = vld [vmem:[%s3605_s1 + $0x110] sm:$0xff]  }
   0xf   :  { %2451 = vmatpush3.bf16.msra.mxu0 %v2740_v13  ;;  %v2769_v44 = vld [vmem:[%s3605_s1 + $0x1c8] sm:$0xff]   ;;  %v2773_v48 = vld [vmem:[%s3605_s1 + $0x1d0] sm:$0xff]   ;;  %v2775_v50 = vld [vmem:[%s3605_s1 + $0x158] sm:$0xff]  }
  0x10   :  { %2452 = vmatprep.subr.bf16.mxu0 %v2743_v16  ;;  %v2770_v45 = vld [vmem:[%s3605_s1 + $0x188] sm:$0xff]   ;;  %v2774_v49 = vld [vmem:[%s3605_s1 + $0x190] sm:$0xff]   ;;  %v2776_v51 = vld [vmem:[%s3605_s1 + $0x118] sm:$0xff]  }
  0x11   :  { %2473 = vmatpush3.bf16.msra.mxu1 %v2742_v15  ;;  %v2777_v52 = vld [vmem:[%s3605_s1 + $0x1d8] sm:$0xff]   ;;  %v2779_v54 = vld [vmem:[%s3605_s1 + $0x160] sm:$0xff]   ;;  %v2783_v58 = vld [vmem:[%s3605_s1 + $0x168] sm:$0xff]  }
  0x12   :  { %2474 = vmatprep.subr.bf16.mxu1 %v2745_v18  ;;  %v2778_v53 = vld [vmem:[%s3605_s1 + $0x198] sm:$0xff]   ;;  %v2780_v55 = vld [vmem:[%s3605_s1 + $0x120] sm:$0xff]   ;;  %v2784_v59 = vld [vmem:[%s3605_s1 + $0x128] sm:$0xff]  }
  0x13   :  { %2453 = vmatpush3.bf16.msra.mxu0 %v2744_v17  ;;  %v2781_v56 = vld [vmem:[%s3605_s1 + $0x1e0] sm:$0xff]   ;;  %v2785_v60 = vld [vmem:[%s3605_s1 + $0x1e8] sm:$0xff]   ;;  %v2787_v62 = vld [vmem:[%s3605_s1 + $0x170] sm:$0xff]  }
  0x14   :  { %2454 = vmatprep.subr.bf16.mxu0 %v2747_v20  ;;  %v2782_v57 = vld [vmem:[%s3605_s1 + $0x1a0] sm:$0xff]   ;;  %v2786_v61 = vld [vmem:[%s3605_s1 + $0x1a8] sm:$0xff]   ;;  %v2788_v63 = vld [vmem:[%s3605_s1 + $0x130] sm:$0xff]  }
  0x15   :  { %2475 = vmatpush3.bf16.msra.mxu1 %v2746_v19  ;;  %v2789_v0 = vld [vmem:[%s3605_s1 + $0x1f0] sm:$0xff]   ;;  %v2791_v2 = vld [vmem:[%s3605_s1 + $0x178] sm:$0xff]   ;;  %v2797_v9 = vld [vmem:[%s3605_s1 + $0x240] sm:$0xff]  }
  0x16   :  { %2476 = vmatprep.subr.bf16.mxu1 %v2749_v22  ;;  %v2790_v1 = vld [vmem:[%s3605_s1 + $0x1b0] sm:$0xff]   ;;  %v2792_v3 = vld [vmem:[%s3605_s1 + $0x138] sm:$0xff]   ;;  %v2800_v13 = vld [vmem:[%s3605_s1 + $0x200] sm:$0xff]  }
  0x17   :  { %2455 = vmatpush3.bf16.msra.mxu0 %v2748_v21  ;;  %v2793_v4 = vld [vmem:[%s3605_s1 + $0x1f8] sm:$0xff]   ;;  %v17_v5 = vld [vmem:[%s3606_s0 + $0x10] sm:$0xff]  ;;  %v2801_v14 = vld [vmem:[%s3605_s1 + $0x2c0] sm:$0xff]  }
  0x18   :  { %2456 = vmatprep.subr.bf16.mxu0 %v2751_v24  ;;  %v2226_v6 = vcombine.low %v17_v5, %v17_v5  ;;  %v2227_v7 = vcombine.high %v17_v5, %v17_v5  ;;  %v2796_v8 = vld [vmem:[%s3605_s1 + $0x1b8] sm:$0xff]   ;;  %v2802_v15 = vld [vmem:[%s3605_s1 + $0x280] sm:$0xff]   ;;  %v2803_v16 = vld [vmem:[%s3605_s1 + $0x248] sm:$0xff]  }
  0x19   :  { %2477 = vmatpush3.bf16.msra.mxu1 %v2750_v23  ;;  %v18_v10 = vld [vmem:[%s3606_s0 + $0x18] sm:$0xff]  ;;  %v2804_v17 = vld [vmem:[%s3605_s1 + $0x208] sm:$0xff]   ;;  %v2807_v20 = vld [vmem:[%s3605_s1 + $0x250] sm:$0xff]  }
  0x1a   :  { %2478 = vmatprep.subr.bf16.mxu1 %v2753_v26  ;;  %v2228_v11 = vcombine.low %v18_v10, %v18_v10  ;;  %v2229_v12 = vcombine.high %v18_v10, %v18_v10  ;;  %v2805_v18 = vld [vmem:[%s3605_s1 + $0x2c8] sm:$0xff]   ;;  %v2808_v21 = vld [vmem:[%s3605_s1 + $0x210] sm:$0xff]   ;;  %v2811_v24 = vld [vmem:[%s3605_s1 + $0x258] sm:$0xff]  }
  0x1b   :  { %2457 = vmatpush3.bf16.msra.mxu0 %v2752_v25  ;;  %v2806_v19 = vld [vmem:[%s3605_s1 + $0x288] sm:$0xff]   ;;  %v2809_v22 = vld [vmem:[%s3605_s1 + $0x2d0] sm:$0xff]   ;;  %v2812_v25 = vld [vmem:[%s3605_s1 + $0x218] sm:$0xff]  }
  0x1c   :  { %2458 = vmatprep.subr.bf16.mxu0 %v2755_v28  ;;  %v2810_v23 = vld [vmem:[%s3605_s1 + $0x290] sm:$0xff]   ;;  %v2813_v26 = vld [vmem:[%s3605_s1 + $0x2d8] sm:$0xff]   ;;  %v2815_v28 = vld [vmem:[%s3605_s1 + $0x260] sm:$0xff]  }
  0x1d   :  { %2479 = vmatpush3.bf16.msra.mxu1 %v2754_v27  ;;  %v2814_v27 = vld [vmem:[%s3605_s1 + $0x298] sm:$0xff]   ;;  %v2818_v31 = vld [vmem:[%s3605_s1 + $0x2a0] sm:$0xff]   ;;  %v2820_v33 = vld [vmem:[%s3605_s1 + $0x228] sm:$0xff]  }
  0x1e   :  { %2480 = vmatprep.subr.bf16.mxu1 %v2757_v30  ;;  %v2817_v30 = vld [vmem:[%s3605_s1 + $0x2e0] sm:$0xff]   ;;  %v2823_v36 = vld [vmem:[%s3605_s1 + $0x270] sm:$0xff]  }
  0x1f   :  { %2459 = vmatpush3.bf16.msra.mxu0 %v2756_v29  ;;  %v2816_v29 = vld [vmem:[%s3605_s1 + $0x220] sm:$0xff]   ;;  %v2825_v38 = vld [vmem:[%s3605_s1 + $0x2f0] sm:$0xff]  }
  0x20   :  { %2488 = vmatprep.subr.bf16.mxu0 %v2761_v35  ;;  %v2822_v35 = vld [vmem:[%s3605_s1 + $0x2a8] sm:$0xff]   ;;  %v2854_v5 = vld [vmem:[%s3605_s1 + $0x3a0] sm:$0xff]   ;;  %v2859_v10 = vld [vmem:[%s3605_s1 + $0x370] sm:$0xff]  }
  0x21   :  { %2481 = vmatpush3.bf16.msra.mxu1 %v2760_v34  ;;  %v2821_v34 = vld [vmem:[%s3605_s1 + $0x2e8] sm:$0xff]  }
  0x22   :  { %1727 = vmatmul.mubr.bf16.vlgmr.msra.gmra.mrb[0].mxu0 %v2222_v32  ;;  %2510 = vmatprep.subr.bf16.mxu1 %v2765_v40  ;;  %v2819_v32 = vld [vmem:[%s3605_s1 + $0x268] sm:$0xff]   ;;  %v2827_v40 = vld [vmem:[%s3605_s1 + $0x278] sm:$0xff]  }
  0x23   :  { %2489 = vmatpush3.bf16.msra.mxu0 %v2764_v39  ;;  %1806 = vmatprep.mubr.bf16.mxu0 %v2227_v7  ;;  %v2826_v39 = vld [vmem:[%s3605_s1 + $0x2b0] sm:$0xff]   ;;  %v2856_v7 = vld [vmem:[%s3605_s1 + $0x328] sm:$0xff]  }
  0x24   :  { %1767 = vmatmul.mubr.bf16.vlgmr.msra.gmra.mrb[0].mxu1 %v2224_v37  ;;  %2490 = vmatprep.subr.bf16.mxu0 %v2767_v42  ;;  %v2824_v37 = vld [vmem:[%s3605_s1 + $0x230] sm:$0xff]   ;;  %v2829_v42 = vld [vmem:[%s3605_s1 + $0x2f8] sm:$0xff]  }
  0x25   :  { %2511 = vmatpush3.bf16.msra.mxu1 %v2766_v41  ;;  %1846 = vmatprep.mubr.bf16.mxu1 %v2229_v12  ;;  %v2828_v41 = vld [vmem:[%s3605_s1 + $0x238] sm:$0xff]   ;;  %v2861_v12 = vld [vmem:[%s3605_s1 + $0x3f0] sm:$0xff]  }
  0x26   :  { %2512 = vmatprep.subr.bf16.mxu1 %v2769_v44 }
  0x27   :  { %2491 = vmatpush3.bf16.msra.mxu0 %v2768_v43  ;;  %v19_v43 = vld [vmem:[%s3606_s0 + $0x20] sm:$0xff] }
  0x28   :  { %2492 = vmatprep.subr.bf16.mxu0 %v2771_v46  ;;  %v2230_v44 = vcombine.low %v19_v43, %v19_v43  ;;  %v2832_v46 = vld [vmem:[%s3605_s1 + $0x2b8] sm:$0xff]  }
  0x29   :  { %2513 = vmatpush3.bf16.msra.mxu1 %v2770_v45  ;;  %v2231_v45 = vcombine.high %v19_v43, %v19_v43  ;;  %v2890_v43 = vld [vmem:[%s3605_s1 + $0x4a0] sm:$0xff]  }
  0x2a   :  { %2514 = vmatprep.subr.bf16.mxu1 %v2773_v48  ;;  %v20_v48 = vld [vmem:[%s3606_s0 + $0x28] sm:$0xff] }
  0x2b   :  { %2493 = vmatpush3.bf16.msra.mxu0 %v2772_v47  ;;  %v2833_v47 = vld [vmem:[%s3605_s1 + $0x340] sm:$0xff]  }
  0x2c   :  { %2494 = vmatprep.subr.bf16.mxu0 %v2775_v50  ;;  %v2233_v50 = vcombine.high %v20_v48, %v20_v48 }
  0x2d   :  { %2515 = vmatpush3.bf16.msra.mxu1 %v2774_v49  ;;  %v2232_v49 = vcombine.low %v20_v48, %v20_v48  ;;  %v2895_v48 = vld [vmem:[%s3605_s1 + $0x470] sm:$0xff]  }
  0x2e   :  { %2516 = vmatprep.subr.bf16.mxu1 %v2777_v52  ;;  %v2837_v52 = vld [vmem:[%s3605_s1 + $0x3c0] sm:$0xff]  }
  0x2f   :  { %2495 = vmatpush3.bf16.msra.mxu0 %v2776_v51  ;;  %v2836_v51 = vld [vmem:[%s3605_s1 + $0x300] sm:$0xff]  }
  0x30   :  { %2496 = vmatprep.subr.bf16.mxu0 %v2779_v54  ;;  %v2839_v54 = vld [vmem:[%s3605_s1 + $0x348] sm:$0xff]  }
  0x31   :  { %2517 = vmatpush3.bf16.msra.mxu1 %v2778_v53  ;;  %v2838_v53 = vld [vmem:[%s3605_s1 + $0x380] sm:$0xff]  }
  0x32   :  { %2518 = vmatprep.subr.bf16.mxu1 %v2781_v56  ;;  %v2841_v56 = vld [vmem:[%s3605_s1 + $0x3c8] sm:$0xff]  }
  0x33   :  { %2497 = vmatpush3.bf16.msra.mxu0 %v2780_v55  ;;  %v2840_v55 = vld [vmem:[%s3605_s1 + $0x308] sm:$0xff]  }
  0x34   :  { %2498 = vmatprep.subr.bf16.mxu0 %v2783_v58  ;;  %v2843_v58 = vld [vmem:[%s3605_s1 + $0x350] sm:$0xff]  }
  0x35   :  { %2519 = vmatpush3.bf16.msra.mxu1 %v2782_v57  ;;  %v2842_v57 = vld [vmem:[%s3605_s1 + $0x388] sm:$0xff]  }
  0x36   :  { %2520 = vmatprep.subr.bf16.mxu1 %v2785_v60  ;;  %v2845_v60 = vld [vmem:[%s3605_s1 + $0x3d0] sm:$0xff]  }
  0x37   :  { %2499 = vmatpush3.bf16.msra.mxu0 %v2784_v59  ;;  %v2844_v59 = vld [vmem:[%s3605_s1 + $0x310] sm:$0xff]  }
  0x38   :  { %2500 = vmatprep.subr.bf16.mxu0 %v2787_v62  ;;  %v2847_v62 = vld [vmem:[%s3605_s1 + $0x358] sm:$0xff]  }
  0x39   :  { %2521 = vmatpush3.bf16.msra.mxu1 %v2786_v61  ;;  %v2846_v61 = vld [vmem:[%s3605_s1 + $0x390] sm:$0xff]  }
  0x3a   :  { %2522 = vmatprep.subr.bf16.mxu1 %v2789_v0  ;;  %v2849_v0 = vld [vmem:[%s3605_s1 + $0x3d8] sm:$0xff]  }
  0x3b   :  { %2501 = vmatpush3.bf16.msra.mxu0 %v2788_v63  ;;  %v2848_v63 = vld [vmem:[%s3605_s1 + $0x318] sm:$0xff]  }
  0x3c   :  { %2502 = vmatprep.subr.bf16.mxu0 %v2791_v2  ;;  %v2851_v2 = vld [vmem:[%s3605_s1 + $0x360] sm:$0xff]  }
  0x3d   :  { %2523 = vmatpush3.bf16.msra.mxu1 %v2790_v1  ;;  %v2850_v1 = vld [vmem:[%s3605_s1 + $0x398] sm:$0xff]  }
  0x3e   :  { %2524 = vmatprep.subr.bf16.mxu1 %v2793_v4  ;;  %v2853_v4 = vld [vmem:[%s3605_s1 + $0x3e0] sm:$0xff]  }
  0x3f   :  { %2503 = vmatpush3.bf16.msra.mxu0 %v2792_v3  ;;  %v2852_v3 = vld [vmem:[%s3605_s1 + $0x320] sm:$0xff]  }
  0x40   :  { %2532 = vmatprep.subr.bf16.mxu0 %v2797_v9  ;;  %v2858_v9 = vld [vmem:[%s3605_s1 + $0x3a8] sm:$0xff]  }
  0x41   :  { %2525 = vmatpush3.bf16.msra.mxu1 %v2796_v8  ;;  %v2857_v8 = vld [vmem:[%s3605_s1 + $0x3e8] sm:$0xff]  }
  0x42   :  { %1807 = vmatmul.mubr.bf16.vlgmr.msra.gmra.mrb[4].mxu0 %v2226_v6  ;;  %2554 = vmatprep.subr.bf16.mxu1 %v2801_v14  ;;  %v2855_v6 = vld [vmem:[%s3605_s1 + $0x368] sm:$0xff]   ;;  %v2863_v14 = vld [vmem:[%s3605_s1 + $0x378] sm:$0xff]  }
  0x43   :  { %2533 = vmatpush3.bf16.msra.mxu0 %v2800_v13  ;;  %1886 = vmatprep.mubr.bf16.mxu0 %v2231_v45  ;;  %v2862_v13 = vld [vmem:[%s3605_s1 + $0x3b0] sm:$0xff]   ;;  %v2892_v45 = vld [vmem:[%s3605_s1 + $0x428] sm:$0xff]  }
  0x44   :  { %1847 = vmatmul.mubr.bf16.vlgmr.msra.gmra.mrb[4].mxu1 %v2228_v11  ;;  %2534 = vmatprep.subr.bf16.mxu0 %v2803_v16  ;;  %v2860_v11 = vld [vmem:[%s3605_s1 + $0x330] sm:$0xff]   ;;  %v2865_v16 = vld [vmem:[%s3605_s1 + $0x3f8] sm:$0xff]  }
  0x45   :  { %2555 = vmatpush3.bf16.msra.mxu1 %v2802_v15  ;;  %1926 = vmatprep.mubr.bf16.mxu1 %v2233_v50  ;;  %v2864_v15 = vld [vmem:[%s3605_s1 + $0x338] sm:$0xff]   ;;  %v2897_v50 = vld [vmem:[%s3605_s1 + $0x4f0] sm:$0xff]  }
  0x46   :  { %2556 = vmatprep.subr.bf16.mxu1 %v2805_v18 }
  0x47   :  { %2535 = vmatpush3.bf16.msra.mxu0 %v2804_v17  ;;  %v21_v17 = vld [vmem:[%s3606_s0 + $0x30] sm:$0xff] }
  0x48   :  { %2536 = vmatprep.subr.bf16.mxu0 %v2807_v20  ;;  %v2234_v18 = vcombine.low %v21_v17, %v21_v17  ;;  %v2868_v20 = vld [vmem:[%s3605_s1 + $0x3b8] sm:$0xff]  }
  0x49   :  { %2557 = vmatpush3.bf16.msra.mxu1 %v2806_v19  ;;  %v2235_v19 = vcombine.high %v21_v17, %v21_v17  ;;  %v2926_v17 = vld [vmem:[%s3605_s1 + $0x5a0] sm:$0xff]  }
  0x4a   :  { %2558 = vmatprep.subr.bf16.mxu1 %v2809_v22  ;;  %v22_v22 = vld [vmem:[%s3606_s0 + $0x38] sm:$0xff] }
  0x4b   :  { %2537 = vmatpush3.bf16.msra.mxu0 %v2808_v21  ;;  %v2869_v21 = vld [vmem:[%s3605_s1 + $0x440] sm:$0xff]  }
  0x4c   :  { %2538 = vmatprep.subr.bf16.mxu0 %v2811_v24  ;;  %v2237_v24 = vcombine.high %v22_v22, %v22_v22 }
  0x4d   :  { %2559 = vmatpush3.bf16.msra.mxu1 %v2810_v23  ;;  %v2236_v23 = vcombine.low %v22_v22, %v22_v22  ;;  %v2931_v22 = vld [vmem:[%s3605_s1 + $0x570] sm:$0xff]  }
  0x4e   :  { %2560 = vmatprep.subr.bf16.mxu1 %v2813_v26  ;;  %v2873_v26 = vld [vmem:[%s3605_s1 + $0x4c0] sm:$0xff]  }
  0x4f   :  { %2539 = vmatpush3.bf16.msra.mxu0 %v2812_v25  ;;  %v2872_v25 = vld [vmem:[%s3605_s1 + $0x400] sm:$0xff]  }
  0x50   :  { %2540 = vmatprep.subr.bf16.mxu0 %v2815_v28  ;;  %v2875_v28 = vld [vmem:[%s3605_s1 + $0x448] sm:$0xff]  }
  0x51   :  { %2561 = vmatpush3.bf16.msra.mxu1 %v2814_v27  ;;  %v2874_v27 = vld [vmem:[%s3605_s1 + $0x480] sm:$0xff]  }
  0x52   :  { %2562 = vmatprep.subr.bf16.mxu1 %v2817_v30  ;;  %v2877_v30 = vld [vmem:[%s3605_s1 + $0x4c8] sm:$0xff]  }
  0x53   :  { %2541 = vmatpush3.bf16.msra.mxu0 %v2816_v29  ;;  %v2876_v29 = vld [vmem:[%s3605_s1 + $0x408] sm:$0xff]  }
  0x54   :  { %2542 = vmatprep.subr.bf16.mxu0 %v2819_v32  ;;  %v2879_v32 = vld [vmem:[%s3605_s1 + $0x450] sm:$0xff]  }
  0x55   :  { %2563 = vmatpush3.bf16.msra.mxu1 %v2818_v31  ;;  %v2878_v31 = vld [vmem:[%s3605_s1 + $0x488] sm:$0xff]  }
  0x56   :  { %2564 = vmatprep.subr.bf16.mxu1 %v2821_v34  ;;  %v2881_v34 = vld [vmem:[%s3605_s1 + $0x4d0] sm:$0xff]  }
  0x57   :  { %2543 = vmatpush3.bf16.msra.mxu0 %v2820_v33  ;;  %v2880_v33 = vld [vmem:[%s3605_s1 + $0x410] sm:$0xff]  }
  0x58   :  { %2544 = vmatprep.subr.bf16.mxu0 %v2823_v36  ;;  %v2883_v36 = vld [vmem:[%s3605_s1 + $0x458] sm:$0xff]  }
  0x59   :  { %2565 = vmatpush3.bf16.msra.mxu1 %v2822_v35  ;;  %v2882_v35 = vld [vmem:[%s3605_s1 + $0x490] sm:$0xff]  }
  0x5a   :  { %2566 = vmatprep.subr.bf16.mxu1 %v2825_v38  ;;  %v2885_v38 = vld [vmem:[%s3605_s1 + $0x4d8] sm:$0xff]  }
  0x5b   :  { %2545 = vmatpush3.bf16.msra.mxu0 %v2824_v37  ;;  %v2884_v37 = vld [vmem:[%s3605_s1 + $0x418] sm:$0xff]  }
  0x5c   :  { %2546 = vmatprep.subr.bf16.mxu0 %v2827_v40  ;;  %v2887_v40 = vld [vmem:[%s3605_s1 + $0x460] sm:$0xff]  }
  0x5d   :  { %2567 = vmatpush3.bf16.msra.mxu1 %v2826_v39  ;;  %v2886_v39 = vld [vmem:[%s3605_s1 + $0x498] sm:$0xff]  }
  0x5e   :  { %2568 = vmatprep.subr.bf16.mxu1 %v2829_v42  ;;  %v2889_v42 = vld [vmem:[%s3605_s1 + $0x4e0] sm:$0xff]  }
  0x5f   :  { %2547 = vmatpush3.bf16.msra.mxu0 %v2828_v41  ;;  %v2888_v41 = vld [vmem:[%s3605_s1 + $0x420] sm:$0xff]  }
  0x60   :  { %2576 = vmatprep.subr.bf16.mxu0 %v2833_v47  ;;  %v2894_v47 = vld [vmem:[%s3605_s1 + $0x4a8] sm:$0xff]  }
  0x61   :  { %2569 = vmatpush3.bf16.msra.mxu1 %v2832_v46  ;;  %v2893_v46 = vld [vmem:[%s3605_s1 + $0x4e8] sm:$0xff]  }
  0x62   :  { %1887 = vmatmul.mubr.bf16.vlgmr.msra.gmra.mrb[8].mxu0 %v2230_v44  ;;  %2598 = vmatprep.subr.bf16.mxu1 %v2837_v52  ;;  %v2891_v44 = vld [vmem:[%s3605_s1 + $0x468] sm:$0xff]   ;;  %v2899_v52 = vld [vmem:[%s3605_s1 + $0x478] sm:$0xff]  }
  0x63   :  { %2577 = vmatpush3.bf16.msra.mxu0 %v2836_v51  ;;  %1966 = vmatprep.mubr.bf16.mxu0 %v2235_v19  ;;  %v2898_v51 = vld [vmem:[%s3605_s1 + $0x4b0] sm:$0xff]   ;;  %v2928_v19 = vld [vmem:[%s3605_s1 + $0x528] sm:$0xff]  }
  0x64   :  { %1927 = vmatmul.mubr.bf16.vlgmr.msra.gmra.mrb[8].mxu1 %v2232_v49  ;;  %2578 = vmatprep.subr.bf16.mxu0 %v2839_v54  ;;  %v2896_v49 = vld [vmem:[%s3605_s1 + $0x430] sm:$0xff]   ;;  %v2901_v54 = vld [vmem:[%s3605_s1 + $0x4f8] sm:$0xff]  }
  0x65   :  { %2599 = vmatpush3.bf16.msra.mxu1 %v2838_v53  ;;  %2006 = vmatprep.mubr.bf16.mxu1 %v2237_v24  ;;  %v2900_v53 = vld [vmem:[%s3605_s1 + $0x438] sm:$0xff]   ;;  %v2933_v24 = vld [vmem:[%s3605_s1 + $0x5f0] sm:$0xff]  }
  0x66   :  { %2600 = vmatprep.subr.bf16.mxu1 %v2841_v56 }
  0x67   :  { %2579 = vmatpush3.bf16.msra.mxu0 %v2840_v55  ;;  %v23_v55 = vld [vmem:[%s3606_s0 + $0x40] sm:$0xff] }
  0x68   :  { %2580 = vmatprep.subr.bf16.mxu0 %v2843_v58  ;;  %v2238_v56 = vcombine.low %v23_v55, %v23_v55  ;;  %v2904_v58 = vld [vmem:[%s3605_s1 + $0x4b8] sm:$0xff]  }
  0x69   :  { %2601 = vmatpush3.bf16.msra.mxu1 %v2842_v57  ;;  %v2239_v57 = vcombine.high %v23_v55, %v23_v55 }
  0x6a   :  { %2602 = vmatprep.subr.bf16.mxu1 %v2845_v60  ;;  %v24_v60 = vld [vmem:[%s3606_s0 + $0x48] sm:$0xff] }
  0x6b   :  { %2581 = vmatpush3.bf16.msra.mxu0 %v2844_v59  ;;  %v2905_v59 = vld [vmem:[%s3605_s1 + $0x540] sm:$0xff]  }
  0x6c   :  { %2582 = vmatprep.subr.bf16.mxu0 %v2847_v62  ;;  %v2241_v62 = vcombine.high %v24_v60, %v24_v60 }
  0x6d   :  { %2603 = vmatpush3.bf16.msra.mxu1 %v2846_v61  ;;  %v2240_v61 = vcombine.low %v24_v60, %v24_v60 }
  0x6e   :  { %2604 = vmatprep.subr.bf16.mxu1 %v2849_v0  ;;  %v2909_v0 = vld [vmem:[%s3605_s1 + $0x5c0] sm:$0xff]  }
  0x6f   :  { %2583 = vmatpush3.bf16.msra.mxu0 %v2848_v63  ;;  %v2908_v63 = vld [vmem:[%s3605_s1 + $0x500] sm:$0xff]  }
  0x70   :  { %2584 = vmatprep.subr.bf16.mxu0 %v2851_v2  ;;  %v2911_v2 = vld [vmem:[%s3605_s1 + $0x548] sm:$0xff]  }
  0x71   :  { %2605 = vmatpush3.bf16.msra.mxu1 %v2850_v1  ;;  %v2910_v1 = vld [vmem:[%s3605_s1 + $0x580] sm:$0xff]  }
  0x72   :  { %2606 = vmatprep.subr.bf16.mxu1 %v2853_v4  ;;  %v2913_v4 = vld [vmem:[%s3605_s1 + $0x5c8] sm:$0xff]  }
  0x73   :  { %2585 = vmatpush3.bf16.msra.mxu0 %v2852_v3  ;;  %v2912_v3 = vld [vmem:[%s3605_s1 + $0x508] sm:$0xff]  }
  0x74   :  { %2586 = vmatprep.subr.bf16.mxu0 %v2855_v6  ;;  %v2915_v6 = vld [vmem:[%s3605_s1 + $0x550] sm:$0xff]  }
  0x75   :  { %2607 = vmatpush3.bf16.msra.mxu1 %v2854_v5  ;;  %v2914_v5 = vld [vmem:[%s3605_s1 + $0x588] sm:$0xff]  }
  0x76   :  { %2608 = vmatprep.subr.bf16.mxu1 %v2857_v8  ;;  %v2917_v8 = vld [vmem:[%s3605_s1 + $0x5d0] sm:$0xff]  }
  0x77   :  { %2587 = vmatpush3.bf16.msra.mxu0 %v2856_v7  ;;  %v2916_v7 = vld [vmem:[%s3605_s1 + $0x510] sm:$0xff]  }
  0x78   :  { %2588 = vmatprep.subr.bf16.mxu0 %v2859_v10  ;;  %v2919_v10 = vld [vmem:[%s3605_s1 + $0x558] sm:$0xff]  }
  0x79   :  { %2609 = vmatpush3.bf16.msra.mxu1 %v2858_v9  ;;  %v2918_v9 = vld [vmem:[%s3605_s1 + $0x590] sm:$0xff]  }
  0x7a   :  { %2610 = vmatprep.subr.bf16.mxu1 %v2861_v12  ;;  %v2921_v12 = vld [vmem:[%s3605_s1 + $0x5d8] sm:$0xff]  }
  0x7b   :  { %2589 = vmatpush3.bf16.msra.mxu0 %v2860_v11  ;;  %v2920_v11 = vld [vmem:[%s3605_s1 + $0x518] sm:$0xff]  }
  0x7c   :  { %2590 = vmatprep.subr.bf16.mxu0 %v2863_v14  ;;  %v2923_v14 = vld [vmem:[%s3605_s1 + $0x560] sm:$0xff]  }
  0x7d   :  { %2611 = vmatpush3.bf16.msra.mxu1 %v2862_v13  ;;  %v2922_v13 = vld [vmem:[%s3605_s1 + $0x598] sm:$0xff]  }
  0x7e   :  { %2612 = vmatprep.subr.bf16.mxu1 %v2865_v16  ;;  %v2925_v16 = vld [vmem:[%s3605_s1 + $0x5e0] sm:$0xff]  }
  0x7f   :  { %2591 = vmatpush3.bf16.msra.mxu0 %v2864_v15  ;;  %v2924_v15 = vld [vmem:[%s3605_s1 + $0x520] sm:$0xff]  }
  0x80   :  { %2620 = vmatprep.subr.bf16.mxu0 %v2869_v21  ;;  %v2930_v21 = vld [vmem:[%s3605_s1 + $0x5a8] sm:$0xff]  }
  0x81   :  { %2613 = vmatpush3.bf16.msra.mxu1 %v2868_v20  ;;  %v2929_v20 = vld [vmem:[%s3605_s1 + $0x5e8] sm:$0xff]  }
  0x82   :  { %1967 = vmatmul.mubr.bf16.vlgmr.msra.gmra.mrb[12].mxu0 %v2234_v18  ;;  %2642 = vmatprep.subr.bf16.mxu1 %v2873_v26  ;;  %v2927_v18 = vld [vmem:[%s3605_s1 + $0x568] sm:$0xff]   ;;  %v2935_v26 = vld [vmem:[%s3605_s1 + $0x578] sm:$0xff]  }
  0x83   :  { %2621 = vmatpush3.bf16.msra.mxu0 %v2872_v25  ;;  %2046 = vmatprep.mubr.bf16.mxu0 %v2239_v57  ;;  %v2934_v25 = vld [vmem:[%s3605_s1 + $0x5b0] sm:$0xff]  }
  0x84   :  { %2007 = vmatmul.mubr.bf16.vlgmr.msra.gmra.mrb[12].mxu1 %v2236_v23  ;;  %2622 = vmatprep.subr.bf16.mxu0 %v2875_v28  ;;  %v2932_v23 = vld [vmem:[%s3605_s1 + $0x530] sm:$0xff]   ;;  %v2937_v28 = vld [vmem:[%s3605_s1 + $0x5f8] sm:$0xff]  }
  0x85   :  { %2643 = vmatpush3.bf16.msra.mxu1 %v2874_v27  ;;  %2086 = vmatprep.mubr.bf16.mxu1 %v2241_v62  ;;  %v2936_v27 = vld [vmem:[%s3605_s1 + $0x538] sm:$0xff]  }
  0x86   :  { %2644 = vmatprep.subr.bf16.mxu1 %v2877_v30 }
  0x87   :  { %2623 = vmatpush3.bf16.msra.mxu0 %v2876_v29  ;;  %v25_v29 = vld [vmem:[%s3606_s0 + $0x50] sm:$0xff] }
  0x88   :  { %2624 = vmatprep.subr.bf16.mxu0 %v2879_v32  ;;  %v2242_v30 = vcombine.low %v25_v29, %v25_v29  ;;  %v2940_v32 = vld [vmem:[%s3605_s1 + $0x5b8] sm:$0xff]  }
  0x89   :  { %2645 = vmatpush3.bf16.msra.mxu1 %v2878_v31  ;;  %v2243_v31 = vcombine.high %v25_v29, %v25_v29 }
  0x8a   :  { %2646 = vmatprep.subr.bf16.mxu1 %v2881_v34  ;;  %v2950_v34 = vmov 0.0  }
  0x8b   :  { %2625 = vmatpush3.bf16.msra.mxu0 %v2880_v33  ;;  %v26_v33 = vld [vmem:[%s3606_s0 + $0x58] sm:$0xff] }
  0x8c   :  { %2626 = vmatprep.subr.bf16.mxu0 %v2883_v36  ;;  %v2245_v36 = vcombine.high %v26_v33, %v26_v33 }
  0x8d   :  { %2647 = vmatpush3.bf16.msra.mxu1 %v2882_v35  ;;  %v2244_v35 = vcombine.low %v26_v33, %v26_v33 }
  0x8e   :  { %2648 = vmatprep.subr.bf16.mxu1 %v2885_v38  ;;  %v2944_v38 = vld [vmem:[%s3605_s1 + $0x608] sm:$0xff]  }
  0x8f   :  { %2627 = vmatpush3.bf16.msra.mxu0 %v2884_v37  ;;  %v2943_v37 = vld [vmem:[%s3605_s1 + $0x600] sm:$0xff]  }
  0x90   :  { %2628 = vmatprep.subr.bf16.mxu0 %v2887_v40  ;;  %v2946_v40 = vld [vmem:[%s3605_s1 + $0x618] sm:$0xff]  }
  0x91   :  { %2649 = vmatpush3.bf16.msra.mxu1 %v2886_v39  ;;  %v2945_v39 = vld [vmem:[%s3605_s1 + $0x610] sm:$0xff]  }
  0x92   :  { %2650 = vmatprep.subr.bf16.mxu1 %v2889_v42 }
  0x93   :  { %2629 = vmatpush3.bf16.msra.mxu0 %v2888_v41  ;;  %v2947_v41 = vld [vmem:[%s3606_s0 + $0x60] ss:$0 sps:$4 sm:$0xff]  }
  0x94   :  { %2630 = vmatprep.subr.bf16.mxu0 %v2891_v44 }
  0x95   :  { %2651 = vmatpush3.bf16.msra.mxu1 %v2890_v43  ;;  %v2221_v43 = vld [vmem:[%s3607_s2] ss:$0 sm:$0xff] }
  0x96   :  { %2652 = vmatprep.subr.bf16.mxu1 %v2893_v46 }
  0x97   :  { %2631 = vmatpush3.bf16.msra.mxu0 %v2892_v45 }
  0x98   :  { %2632 = vmatprep.subr.bf16.mxu0 %v2895_v48 }
  0x99   :  { %2653 = vmatpush3.bf16.msra.mxu1 %v2894_v47 }
  0x9a   :  { %2654 = vmatprep.subr.bf16.mxu1 %v2897_v50 }
  0x9b   :  { %2633 = vmatpush3.bf16.msra.mxu0 %v2896_v49 }
  0x9c   :  { %2634 = vmatprep.subr.bf16.mxu0 %v2899_v52 }
  0x9d   :  { %2655 = vmatpush3.bf16.msra.mxu1 %v2898_v51 }
  0x9e   :  { %2656 = vmatprep.subr.bf16.mxu1 %v2901_v54 }
  0x9f   :  { %2635 = vmatpush3.bf16.msra.mxu0 %v2900_v53 }
  0xa0   :  { %2664 = vmatprep.subr.bf16.mxu0 %v2905_v59 }
  0xa1   :  { %2657 = vmatpush3.bf16.msra.mxu1 %v2904_v58 }
  0xa2   :  { %2047 = vmatmul.mubr.bf16.vlgmr.msra.gmra.mrb[16].mxu0 %v2238_v56  ;;  %2686 = vmatprep.subr.bf16.mxu1 %v2909_v0 }
  0xa3   :  { %2665 = vmatpush3.bf16.msra.mxu0 %v2908_v63  ;;  %2126 = vmatprep.mubr.bf16.mxu0 %v2243_v31 }
  0xa4   :  { %2087 = vmatmul.mubr.bf16.vlgmr.msra.gmra.mrb[16].mxu1 %v2240_v61  ;;  %2666 = vmatprep.subr.bf16.mxu0 %v2911_v2 }
  0xa5   :  { %2687 = vmatpush3.bf16.msra.mxu1 %v2910_v1  ;;  %2166 = vmatprep.mubr.bf16.mxu1 %v2245_v36 }
  0xa6   :  { %2688 = vmatprep.subr.bf16.mxu1 %v2913_v4 }
  0xa7   :  { %2667 = vmatpush3.bf16.msra.mxu0 %v2912_v3 }
  0xa8   :  { %2668 = vmatprep.subr.bf16.mxu0 %v2915_v6 }
  0xa9   :  { %2689 = vmatpush3.bf16.msra.mxu1 %v2914_v5 }
  0xaa   :  { %2690 = vmatprep.subr.bf16.mxu1 %v2917_v8 }
  0xab   :  { %2669 = vmatpush3.bf16.msra.mxu0 %v2916_v7 }
  0xac   :  { %2670 = vmatprep.subr.bf16.mxu0 %v2919_v10 }
  0xad   :  { %2691 = vmatpush3.bf16.msra.mxu1 %v2918_v9 }
  0xae   :  { %2692 = vmatprep.subr.bf16.mxu1 %v2921_v12 }
  0xaf   :  { %2671 = vmatpush3.bf16.msra.mxu0 %v2920_v11 }
  0xb0   :  { %2672 = vmatprep.subr.bf16.mxu0 %v2923_v14 }
  0xb1   :  { %2693 = vmatpush3.bf16.msra.mxu1 %v2922_v13 }
  0xb2   :  { %2694 = vmatprep.subr.bf16.mxu1 %v2925_v16 }
  0xb3   :  { %2673 = vmatpush3.bf16.msra.mxu0 %v2924_v15 }
  0xb4   :  { %2674 = vmatprep.subr.bf16.mxu0 %v2927_v18 }
  0xb5   :  { %2695 = vmatpush3.bf16.msra.mxu1 %v2926_v17 }
  0xb6   :  { %2696 = vmatprep.subr.bf16.mxu1 %v2929_v20 }
  0xb7   :  { %2675 = vmatpush3.bf16.msra.mxu0 %v2928_v19 }
  0xb8   :  { %2676 = vmatprep.subr.bf16.mxu0 %v2931_v22 }
  0xb9   :  { %2697 = vmatpush3.bf16.msra.mxu1 %v2930_v21 }
  0xba   :  { %2698 = vmatprep.subr.bf16.mxu1 %v2933_v24 }
  0xbb   :  { %2677 = vmatpush3.bf16.msra.mxu0 %v2932_v23 }
  0xbc   :  { %2678 = vmatprep.subr.bf16.mxu0 %v2935_v26 }
  0xbd   :  { %2699 = vmatpush3.bf16.msra.mxu1 %v2934_v25 }
  0xbe   :  { %2700 = vmatprep.subr.bf16.mxu1 %v2937_v28 }
  0xbf   :  { %2679 = vmatpush3.bf16.msra.mxu0 %v2936_v27 }
  0xc0   :  { %2713 = vmatprep.subr.bf16.mxu0 %v2950_v34 }
  0xc1   :  { %2701 = vmatpush3.bf16.msra.mxu1 %v2940_v32 }
  0xc2   :  { %2127 = vmatmul.mubr.bf16.vlgmr.msra.gmra.mrb[20].mxu0 %v2242_v30 }
  0xc3   :  { %2714 = vmatpush3.bf16.msra.mxu0 %v2943_v37  ;;  %2721 = vmatprep.mubr.msk.bf16.mxu0 %vm2951_vm0, %v2950_v34 }
  0xc4   :  { %2167 = vmatmul.mubr.bf16.vlgmr.msra.gmra.mrb[20].mxu1 %v2244_v35  ;;  %2715 = vmatprep.subr.bf16.mxu0 %v2950_v34 }
  0xc7   :  { %2716 = vmatpush3.bf16.msra.mxu0 %v2944_v38 }
  0xc8   :  { %2717 = vmatprep.subr.bf16.mxu0 %v2950_v34 }
  0xcb   :  { %2718 = vmatpush3.bf16.msra.mxu0 %v2945_v39 }
  0xcc   :  { %2719 = vmatprep.subr.bf16.mxu0 %v2950_v34 }
  0xcf   :  { %2720 = vmatpush3.bf16.msra.mxu0 %v2946_v40 }
  0xd2   :  { %2722 = vmatmul.mubr.msk.bf16.vlgmr.msra.gmra.mrb[24].mxu0 %vm1690_vm1, %v2947_v41 }
  0xf5   :  { %v2460_v42 = vpop.f32.mrb[0].mxu0 }
  0xf6   :  { %v2461_v44 = vpop.f32.mrb[1].mxu0 }
  0xf7   :  { %v2462_v45 = vadd.f32 %v2461_v44, %v2460_v42  ;;  %v2463_v46 = vpop.f32.mrb[2].mxu0  ;;  %v2482_v47 = vpop.f32.mrb[0].mxu1 }
  0xf8   :  { %v2464_v48 = vpop.f32.mrb[3].mxu0  ;;  %v2483_v49 = vpop.f32.mrb[1].mxu1 }
  0xf9   :  { %v1729_v50 = vadd.f32 %v2462_v45, %v2221_v43  ;;  %v2484_v51 = vadd.f32 %v2483_v49, %v2482_v47  ;;  %v2485_v52 = vpop.f32.mrb[2].mxu1 }
  0xfa   :  { %v2486_v53 = vpop.f32.mrb[3].mxu1 }
  0xfb   :  { %v1769_v54 = vadd.f32 %v2484_v51, %v1729_v50 }
 0x115   :  { %v2504_v55 = vpop.f32.mrb[4].mxu0 }
 0x116   :  { %v2505_v56 = vpop.f32.mrb[5].mxu0 }
 0x117   :  { %v2506_v57 = vadd.f32 %v2505_v56, %v2504_v55  ;;  %v2507_v58 = vpop.f32.mrb[6].mxu0  ;;  %v2526_v59 = vpop.f32.mrb[4].mxu1 }
 0x118   :  { %v2508_v60 = vpop.f32.mrb[7].mxu0  ;;  %v2527_v62 = vpop.f32.mrb[5].mxu1 }
 0x119   :  { %v1809_v61 = vadd.f32 %v2506_v57, %v1769_v54  ;;  %v2528_v63 = vadd.f32 %v2527_v62, %v2526_v59  ;;  %v2529_v0 = vpop.f32.mrb[6].mxu1 }
 0x11a   :  { %v2530_v1 = vpop.f32.mrb[7].mxu1 }
 0x11b   :  { %v1849_v2 = vadd.f32 %v2528_v63, %v1809_v61 }
 0x135   :  { %v2548_v3 = vpop.f32.mrb[8].mxu0 }
 0x136   :  { %v2549_v4 = vpop.f32.mrb[9].mxu0 }
 0x137   :  { %v2550_v5 = vadd.f32 %v2549_v4, %v2548_v3  ;;  %v2551_v6 = vpop.f32.mrb[10].mxu0  ;;  %v2570_v7 = vpop.f32.mrb[8].mxu1 }
 0x138   :  { %v2552_v8 = vpop.f32.mrb[11].mxu0  ;;  %v2571_v9 = vpop.f32.mrb[9].mxu1 }
 0x139   :  { %v1889_v10 = vadd.f32 %v2550_v5, %v1849_v2  ;;  %v2572_v11 = vadd.f32 %v2571_v9, %v2570_v7  ;;  %v2573_v12 = vpop.f32.mrb[10].mxu1 }
 0x13a   :  { %v2574_v13 = vpop.f32.mrb[11].mxu1 }
 0x13b   :  { %v1929_v14 = vadd.f32 %v2572_v11, %v1889_v10 }
 0x155   :  { %v2592_v15 = vpop.f32.mrb[12].mxu0 }
 0x156   :  { %v2593_v16 = vpop.f32.mrb[13].mxu0 }
 0x157   :  { %v2594_v17 = vadd.f32 %v2593_v16, %v2592_v15  ;;  %v2595_v18 = vpop.f32.mrb[14].mxu0  ;;  %v2614_v19 = vpop.f32.mrb[12].mxu1 }
 0x158   :  { %v2596_v20 = vpop.f32.mrb[15].mxu0  ;;  %v2615_v21 = vpop.f32.mrb[13].mxu1 }
 0x159   :  { %v1969_v22 = vadd.f32 %v2594_v17, %v1929_v14  ;;  %v2616_v23 = vadd.f32 %v2615_v21, %v2614_v19  ;;  %v2617_v24 = vpop.f32.mrb[14].mxu1 }
 0x15a   :  { %v2618_v25 = vpop.f32.mrb[15].mxu1 }
 0x15b   :  { %v2009_v26 = vadd.f32 %v2616_v23, %v1969_v22 }
 0x175   :  { %v2636_v27 = vpop.f32.mrb[16].mxu0 }
 0x176   :  { %v2637_v28 = vpop.f32.mrb[17].mxu0 }
 0x177   :  { %v2638_v29 = vadd.f32 %v2637_v28, %v2636_v27  ;;  %v2639_v30 = vpop.f32.mrb[18].mxu0  ;;  %v2658_v31 = vpop.f32.mrb[16].mxu1 }
 0x178   :  { %v2640_v32 = vpop.f32.mrb[19].mxu0  ;;  %v2659_v34 = vpop.f32.mrb[17].mxu1 }
 0x179   :  { %v2049_v33 = vadd.f32 %v2638_v29, %v2009_v26  ;;  %v2660_v35 = vadd.f32 %v2659_v34, %v2658_v31  ;;  %v2661_v36 = vpop.f32.mrb[18].mxu1 }
 0x17a   :  { %v2662_v37 = vpop.f32.mrb[19].mxu1 }
 0x17b   :  { %v2089_v38 = vadd.f32 %v2660_v35, %v2049_v33 }
 0x195   :  { %v2680_v39 = vpop.f32.mrb[20].mxu0 }
 0x196   :  { %v2681_v40 = vpop.f32.mrb[21].mxu0 }
 0x197   :  { %v2682_v41 = vadd.f32 %v2681_v40, %v2680_v39  ;;  %v2683_v42 = vpop.f32.mrb[22].mxu0  ;;  %v2702_v43 = vpop.f32.mrb[20].mxu1 }
 0x198   :  { %v2684_v44 = vpop.f32.mrb[23].mxu0  ;;  %v2703_v45 = vpop.f32.mrb[21].mxu1 }
 0x199   :  { %v2129_v46 = vadd.f32 %v2682_v41, %v2089_v38  ;;  %v2704_v47 = vadd.f32 %v2703_v45, %v2702_v43  ;;  %v2705_v48 = vpop.f32.mrb[22].mxu1 }
 0x19a   :  { %v2706_v49 = vpop.f32.mrb[23].mxu1 }
 0x19b   :  { %v2169_v50 = vadd.f32 %v2704_v47, %v2129_v46 }
 0x1a5   :  { %v2208_v51 = vpop.f32.mrb[24].mxu0 }
 0x1a6   :  { %v2209_v52 = vadd.f32 %v2208_v51, %v2169_v50  ;;  %v2723_v53 = vpop.f32.mrb[25].mxu0 }
 0x1a7   :  { %v2211_v54 = vpop.f32.mrb[26].mxu0 }
 0x1a8   :  { %2948 = vtanh.f32 %v2209_v52  ;;  %v2724_v55 = vpop.f32.mrb[27].mxu0 }
 0x1b2   :  { %v2949_v56 = vpop.eup %2948 }
 0x1b3   :  { %2216 = vst.msk [vmem:[%s3608_s3] sm:$0xff] %vm2215_vm2, %v2949_v56 }

// kernel: gpt_forward.11
= control target key start
LH: loop header
LB: loop body
LE: loop exit
PB: predicated region body
PF: predicated region fallthrough
CT: control target
= control target key end

     0   :  { %vm28_vm0 = vcmask 1040384   ;;  %v96_v0 = vmov 0.0   ;;  %v97_v2 = vmov 0   ;;  %vm98_vm1 = vmmov 0   ;;  %s131_s1 = inlined_call_operand.vmem [shape: bf16[1,32], index: 1, kind: input, shape index: {}]   ;;  %s132_s0 = inlined_call_operand.vmem [shape: bf16[8,1], index: 0, kind: input, shape index: {}]   ;;  %s133_s2 = inlined_call_operand.vmem [shape: f32[1,32], index: 2, kind: input, shape index: {}]   ;;  %s134_s3 = inlined_call_operand.vmem [shape: f32[8,32], index: 3, kind: output, shape index: {}]  }
   0x1   :  { %85 = vmatprep.subr.bf16.mxu0 %v96_v0  ;;  %v16_v1 = vld [vmem:[%s131_s1] sm:$0x1]  ;;  %v30_v3 = vsel %vm28_vm0, 65535, %v97_v2  ;;  %87 = vmatprep.mubr.msk.bf16.mxu0 %vm98_vm1, %v96_v0  ;;  %vm24_vm2 = vcmask 7168   ;;  %vm75_vm3 = vcmask 261120  }
   0x2   :  { %v32_v4 = vand.u32 %v30_v3, %v16_v1  ;;  %v15_v5 = vld [vmem:[%s132_s0] sm:$0xf] }
   0x3   :  { %v81_v6 = vld [vmem:[%s133_s2] ss:$0 sm:$0xff] }
   0x4   :  { %86 = vmatpush3.bf16.msra.mxu0 %v32_v4 }
   0x7   :  { %88 = vmatmul.mubr.msk.bf16.vlgmr.msra.gmra.mrb[0].mxu0 %vm24_vm2, %v15_v5 }
  0xda   :  { %v68_v7 = vpop.f32.mrb[0].mxu0 }
  0xdb   :  { %v69_v8 = vadd.f32 %v81_v6, %v68_v7  ;;  %v89_v9 = vpop.f32.mrb[1].mxu0 }
  0xdc   :  { %v71_v10 = vpop.f32.mrb[2].mxu0 }
  0xdd   :  { %94 = vtanh.f32 %v69_v8  ;;  %v90_v11 = vpop.f32.mrb[3].mxu0 }
  0xe7   :  { %v95_v12 = vpop.eup %94 }
  0xe8   :  { %76 = vst.msk [vmem:[%s134_s3] sm:$0xff] %vm75_vm3, %v95_v12 }

// kernel: gpt_forward.12
= control target key start
LH: loop header
LB: loop body
LE: loop exit
PB: predicated region body
PF: predicated region fallthrough
CT: control target
= control target key end

     0   :  { %s1901_s25 = smov 0   ;;  %s2150_s0 = inlined_call_operand.vmem [shape: f32[2,16,32], index: 0, kind: input, shape index: {}]   ;;  %s2151_s1 = inlined_call_operand.vmem [shape: f32[1,32], index: 1, kind: input, shape index: {}]   ;;  %s2152_s2 = inlined_call_operand.vmem [shape: f32[1,32], index: 2, kind: input, shape index: {}]   ;;  %s2153_s3 = inlined_call_operand.vmem [shape: bf16[32,96], index: 3, kind: input, shape index: {}]   ;;  %s2154_s4 = inlined_call_operand.vmem [shape: f32[1,96], index: 4, kind: input, shape index: {}]   ;;  %s2155_s5 = inlined_call_operand.vmem [shape: bf16[32,32], index: 5, kind: input, shape index: {}]   ;;  %s2156_s6 = inlined_call_operand.vmem [shape: f32[1,32], index: 6, kind: input, shape index: {}]   ;;  %s2157_s7 = inlined_call_operand.vmem [shape: f32[1,32], index: 7, kind: input, shape index: {}]   ;;  %s2158_s8 = inlined_call_operand.vmem [shape: f32[1,32], index: 8, kind: input, shape index: {}]   ;;  %s2159_s9 = inlined_call_operand.vmem [shape: bf16[32,128], index: 9, kind: input, shape index: {}]   ;;  %s2160_s10 = inlined_call_operand.vmem [shape: f32[1,128], index: 10, kind: input, shape index: {}]   ;;  %s2161_s11 = inlined_call_operand.vmem [shape: bf16[128,32], index: 11, kind: input, shape index: {}]   ;;  %s2162_s12 = inlined_call_operand.vmem [shape: f32[1,32], index: 12, kind: input, shape index: {}]   ;;  %s2163_s13 = inlined_call_operand.vmem [shape: f32[2,16,32], index: 13, kind: output, shape index: {}]  }
   0x1 LB: > { %s1527_s26 = sadd.s32 4294967295, %s1819_s25   ;;  %p1531_p0 = scmp.ge.s32.totalorder %s1819_s25, 1  ;;  %s1819_s25 = sphi %s1901_s25, %s23_s25  }
   0x2   : > { %p387_p1 = scmp.lt.s32.totalorder %s1819_s25, 3 }
   0x4   : > { %p388_p2 = pnand %p1531_p0, %p387_p1 }
   0x5   : > { %p431_p3 = scmp.lt.s32.totalorder (!%p388_p2), %s1527_s26, 1  ;;  %vm446_vm0 = vcmask (!%p388_p2), 261120   ;;  %v1751_v14 = vld [vmem:[%s2153_s3] sm:$0xff] (!%p388_p2)   ;;  %v1821_v15 = vmov (!%p388_p2), 0.0   ;;  %v1752_v16 = vld [vmem:[%s2153_s3 + $0x8] sm:$0xff] (!%p388_p2)   ;;  %vm1822_vm1 = vmmov (!%p388_p2), 0   ;;  %v582_v63 = vlaneseq (!%p388_p2) }
   0x6   : > { %391 = sbr.rel (%p388_p2) target bundleno = 2693 (0xa85), region = 72  ;;  %1611 = vmatprep.subr.bf16.mxu0 (!%p388_p2), %v1821_v15  ;;  %1631 = vmatprep.subr.bf16.mxu1 (!%p388_p2), %v1821_v15  ;;  %v1536_v25 = vld [vmem:[%s2151_s1] ss:$0 sm:$0xff] (!%p388_p2)  ;;  %s1823_s24 = smov (!%p388_p2), 112   ;;  %vm595_vm2 = vcmask (!%p388_p2), 64512   ;;  %vm805_vm7 = vcmask (!%p388_p2), 130048  }
   0x7   : > { %1612 = vmatpush3.bf16.msra.mxu0 (!%p388_p2), %v1751_v14  ;;  %1615 = vmatprep.mubr.msk.bf16.mxu0 (!%p388_p2), %vm1822_vm1, %v1821_v15  ;;  %v1537_v29 = vld [vmem:[%s2152_s2] ss:$0 sm:$0xff] (!%p388_p2)  ;;  %s1824_s28 = smov (!%p388_p2), 120   ;;  %s1825_s29 = smov (!%p388_p2), 104   ;;  %vm1114_vm9 = vcmask (!%p388_p2), 195584  }
   0x8   : > { %1613 = vmatprep.subr.bf16.mxu0 (!%p388_p2), %v1821_v15  ;;  %1633 = vmatprep.mubr.msk.bf16.mxu1 (!%p388_p2), %vm1822_vm1, %v1821_v15  ;;  %v1538_v34 = vld [vmem:[%s2154_s4] ss:$0 sm:$0xff] (!%p388_p2)  ;;  %s1827_s14 = smov (!%p388_p2), 64   ;;  %s1828_s19 = smov (!%p388_p2), 8  }
   0x9   : > { %s1829_s20 = smov (!%p388_p2), 16   ;;  %s1830_s21 = smov (!%p388_p2), 24  }
   0xb   : > { %1614 = vmatpush3.bf16.msra.mxu0 (!%p388_p2), %v1752_v16 }
   0xc   : > { %1619 = vmatprep.subr.bf16.mxu0 (!%p388_p2), %v1821_v15 }
   0xd   : > { %s2169_s26 = smov (!%p431_p3, %s1527_s26), 1 }
   0xe   : > { %s1575_s27 = sshll.u32 %s2169_s26, 4 }
   0xf   : > { %s435_s30 = scalar_lea.vmem %s2150_s0, %s1575_s27 }
  0x10   : > { %v1917_v0 = vld [vmem:[%s435_s30] sm:$0xff]  ;;  %v1919_v1 = vld [vmem:[%s435_s30 + $0x8] sm:$0xff]  ;;  %s1826_s30 = smov 96  }
  0x11   : > { %v447_v2 = vsel %vm446_vm0, %v1917_v0, 0.0  ;;  %v450_v3 = vsel %vm446_vm0, %v1919_v1, 0.0 }
  0x12   : > { %448 = vadd.xlane.f32.xlu0 %v447_v2  ;;  %v583_v2 = vshrl.u32 %v582_v63, 7 }
  0x16   : > { %451 = vadd.xlane.f32.xlu0 %v450_v3  ;;  %v586_v3 = vand.u32 127, %v582_v63 }
  0x18   : > { %vm587_vm3 = vcmp.le.s32.totalorder %v586_v3, %v583_v2  ;;  %vm589_vm4 = vcmp.lt.s32.totalorder %v586_v3, 11 }
  0x19   : > { %vm1991_vm6 = vmand %vm587_vm3, %vm589_vm4 }
  0x9f   : > { %v449_v4 = vpop.xlane.xlu0 %448 }
  0xa0   : > { %v454_v5 = vmul.f32 0.03125, %v449_v4  ;;  %v584_v4 = vadd.s32 8, %v583_v2 }
  0xa2   : > { %v456_v6 = vsub.f32 %v1917_v0, %v454_v5  ;;  %vm588_vm5 = vcmp.le.s32.totalorder %v586_v3, %v584_v4 }
  0xa3   : > { %v452_v7 = vpop.xlane.xlu0 %451  ;;  %vm1995_vm8 = vmand %vm588_vm5, %vm589_vm4 }
  0xa4   : > { %v455_v8 = vmul.f32 0.03125, %v452_v7  ;;  %v458_v9 = vmul.f32 %v456_v6, %v456_v6 }
  0xa6   : > { %v457_v10 = vsub.f32 %v1919_v1, %v455_v8  ;;  %v460_v11 = vsel %vm446_vm0, %v458_v9, 0.0 }
  0xa7   : > { %461 = vadd.xlane.f32.xlu1 %v460_v11 }
  0xa8   : > { %v459_v12 = vmul.f32 %v457_v10, %v457_v10 }
  0xaa   : > { %v463_v13 = vsel %vm446_vm0, %v459_v12, 0.0 }
  0xab   : > { %464 = vadd.xlane.f32.xlu1 %v463_v13 }
 0x134   : > { %v462_v17 = vpop.xlane.xlu1 %461 }
 0x135   : > { %v466_v18 = vmul.f32 0.03125, %v462_v17 }
 0x137   : > { %v468_v19 = vadd.f32 1e-05, %v466_v18 }
 0x138   : > { %v465_v20 = vpop.xlane.xlu1 %464 }
 0x139   : > { %1765 = vrsqrt.f32 %v468_v19  ;;  %v467_v21 = vmul.f32 0.03125, %v465_v20 }
 0x13b   : > { %v469_v22 = vadd.f32 1e-05, %v467_v21 }
 0x13d   : > { %1767 = vrsqrt.f32 %v469_v22 }
 0x143   : > { %v1766_v23 = vpop.eup %1765 }
 0x144   : > { %v472_v24 = vmul.f32 %v1766_v23, %v456_v6 }
 0x146   : > { %v480_v28 = vmul.f32 %v1536_v25, %v472_v24 }
 0x147   : > { %v1768_v26 = vpop.eup %1767 }
 0x148   : > { %v473_v27 = vmul.f32 %v1768_v26, %v457_v10  ;;  %v488_v31 = vadd.f32 %v1537_v29, %v480_v28 }
 0x14a   : > { %v481_v30 = vmul.f32 %v1536_v25, %v473_v27 }
 0x14c   : > { %v489_v32 = vadd.f32 %v1537_v29, %v481_v30 }
 0x14e   : > { %v490_v33 = vpack.c.bf16 %v489_v32, %v488_v31 }
 0x150   : > { %1616 = vmatmul.mubr.msk.bf16.vlgmr.msra.gmra.mrb[0].mxu0 %vm446_vm0, %v490_v33 }
 0x151   : > { %1621 = vmatprep.mubr.msk.bf16.mxu0 %vm1822_vm1, %v1821_v15 }
 0x223   : > { %v551_v35 = vpop.f32.mrb[0].mxu0 }
 0x224   : > { %v1617_v36 = vpop.f32.mrb[1].mxu0  ;;  %v552_v38 = vadd.f32 %v1538_v34, %v551_v35 }
 0x225   : > { %v554_v37 = vpop.f32.mrb[2].mxu0 }
 0x226   : > { %v555_v39 = vadd.f32 %v1538_v34, %v554_v37  ;;  %v1618_v40 = vpop.f32.mrb[3].mxu0 }
 0x228   : > { %v1726_v41 = vpack.i.bf16 %v555_v39, %v552_v38  ;;  %v1955_v42 = vpack.c.bf16 %v555_v39, %v552_v38 }
 0x22a   : > { %1727 = vrot.lane.b32.xlu1 %v1726_v41, %s1823_s24  ;;  %1722 = vrot.lane.b32.xlu0 %v1726_v41, %s1824_s28 }
 0x22e   : > { %1732 = vrot.lane.b32.xlu1 %v1726_v41, %s1825_s29  ;;  %s440_s29 = scalar_lea.vmem %s2163_s13, %s1575_s27 }
 0x232   : > { %593 = vrot.lane.b32.xlu1 %v1955_v42, %s1826_s30 }
 0x29c   : > { %v1728_v43 = vpop.permute.xlu1 %1727  ;;  %v1723_v44 = vpop.permute.xlu0 %1722 }
 0x29d   : > { %v1730_v45 = vunpack.i.h.bf16 %v1728_v43  ;;  %v1729_v46 = vunpack.i.l.bf16 %v1728_v43  ;;  %v1725_v47 = vunpack.i.h.bf16 %v1723_v44  ;;  %v1724_v48 = vunpack.i.l.bf16 %v1723_v44 }
 0x29f   : > { %v1958_v49 = vpack.c.bf16 %v1730_v45, %v1729_v46  ;;  %v1960_v50 = vpack.c.bf16 %v1725_v47, %v1724_v48 }
 0x2a0   : > { %v1733_v51 = vpop.permute.xlu1 %1732 }
 0x2a1   : > { %v1735_v52 = vunpack.i.h.bf16 %v1733_v51  ;;  %v1734_v53 = vunpack.i.l.bf16 %v1733_v51  ;;  %644 = vrot.lane.b32.xlu0 %v1960_v50, %s1826_s30  ;;  %694 = vrot.lane.b32.xlu1 %v1958_v49, %s1826_s30 }
 0x2a3   : > { %v1964_v54 = vpack.c.bf16 %v1735_v52, %v1734_v53 }
 0x2a4   : > { %v594_v55 = vpop.permute.xlu1 %593 }
 0x2a5   : > { %v600_v56 = vsel %vm595_vm2, %v594_v55, 0  ;;  %744 = vrot.lane.b32.xlu0 %v1964_v54, %s1826_s30 }
 0x2a6   : > { %1620 = vmatpush3.bf16.xpose.msra.mxu0 %v600_v56 }
 0x2a7   : > { %1625 = vmatprep.subr.bf16.mxu0 %v1821_v15 }
 0x2ad   : > { %1622 = vmatmul.mubr.msk.bf16.vlgmr.msra.gmra.mrb[4].mxu0 %vm595_vm2, %v1955_v42 }
 0x2ae   : > { %1627 = vmatprep.mubr.msk.bf16.mxu0 %vm1822_vm1, %v1821_v15 }
 0x313   : > { %v645_v57 = vpop.permute.xlu0 %644  ;;  %v695_v58 = vpop.permute.xlu1 %694 }
 0x314   : > { %v650_v59 = vsel %vm595_vm2, %v645_v57, 0  ;;  %v700_v60 = vsel %vm595_vm2, %v695_v58, 0 }
 0x315   : > { %1626 = vmatpush3.bf16.xpose.msra.mxu0 %v650_v59  ;;  %1632 = vmatpush3.bf16.xpose.msra.mxu1 %v700_v60 }
 0x316   : > { %1637 = vmatprep.subr.bf16.mxu0 %v1821_v15  ;;  %1643 = vmatprep.subr.bf16.mxu1 %v1821_v15 }
 0x317   : > { %v745_v61 = vpop.permute.xlu0 %744 }
 0x318   : > { %v750_v62 = vsel %vm595_vm2, %v745_v61, 0 }
 0x31c   : > { %1628 = vmatmul.mubr.msk.bf16.vlgmr.msra.gmra.mrb[8].mxu0 %vm595_vm2, %v1960_v50  ;;  %1634 = vmatmul.mubr.msk.bf16.vlgmr.msra.gmra.mrb[0].mxu1 %vm595_vm2, %v1958_v49 }
 0x31d   : > { %1638 = vmatpush3.bf16.xpose.msra.mxu0 %v750_v62  ;;  %1639 = vmatprep.mubr.msk.bf16.mxu0 %vm1822_vm1, %v1821_v15 }
 0x31e   : > { %1645 = vmatprep.mubr.msk.bf16.mxu1 %vm1822_vm1, %v1821_v15  ;;  %1649 = vmatprep.subr.bf16.mxu0 %v1821_v15 }
 0x324   : > { %1640 = vmatmul.mubr.msk.bf16.vlgmr.msra.gmra.mrb[12].mxu0 %vm595_vm2, %v1964_v54 }
 0x325   : > { %1651 = vmatprep.mubr.msk.bf16.mxu0 %vm1822_vm1, %v1821_v15 }
 0x380   : > { %v636_v6 = vpop.f32.mrb[4].mxu0 }
 0x381   : > { %v797_v8 = vsel %vm1991_vm6, %v636_v6, -1e+30  ;;  %v1623_v9 = vpop.f32.mrb[5].mxu0 }
 0x382   : > { %v639_v10 = vpop.f32.mrb[6].mxu0  ;;  %v806_v11 = vsel %vm805_vm7, %v797_v8, -inf }
 0x383   : > { %v798_v12 = vsel %vm1995_vm8, %v639_v10, -1e+30  ;;  %807 = vmax.xlane.f32.xlu1 %v806_v11  ;;  %v1624_v13 = vpop.f32.mrb[7].mxu0 }
 0x384   : > { %v809_v14 = vsel %vm805_vm7, %v798_v12, -inf }
 0x385   : > { %810 = vmax.xlane.f32.xlu0 %v809_v14 }
 0x3ef   : > { %v686_v16 = vpop.f32.mrb[8].mxu0  ;;  %v736_v17 = vpop.f32.mrb[0].mxu1 }
 0x3f0   : > { %v799_v18 = vsel %vm1991_vm6, %v686_v16, -1e+30  ;;  %v801_v19 = vsel %vm1991_vm6, %v736_v17, -1e+30  ;;  %v1629_v20 = vpop.f32.mrb[9].mxu0  ;;  %v1635_v21 = vpop.f32.mrb[1].mxu1 }
 0x3f1   : > { %v689_v22 = vpop.f32.mrb[10].mxu0  ;;  %v739_v23 = vpop.f32.mrb[2].mxu1  ;;  %v818_v24 = vsel %vm805_vm7, %v801_v19, -inf  ;;  %v812_v25 = vsel %vm805_vm7, %v799_v18, -inf }
 0x3f2   : > { %v800_v26 = vsel %vm1995_vm8, %v689_v22, -1e+30  ;;  %v1636_v27 = vpop.f32.mrb[3].mxu1  ;;  %819 = vmax.xlane.f32.xlu1 %v818_v24  ;;  %813 = vmax.xlane.f32.xlu0 %v812_v25  ;;  %v1630_v28 = vpop.f32.mrb[11].mxu0  ;;  %v802_v30 = vsel %vm1995_vm8, %v739_v23, -1e+30 }
 0x3f3   : > { %v815_v29 = vsel %vm805_vm7, %v800_v26, -inf  ;;  %v821_v35 = vsel %vm805_vm7, %v802_v30, -inf }
 0x3f6   : > { %816 = vmax.xlane.f32.xlu0 %v815_v29 }
 0x3f7   : > { %v786_v31 = vpop.f32.mrb[12].mxu0 }
 0x3f8   : > { %v803_v32 = vsel %vm1991_vm6, %v786_v31, -1e+30  ;;  %v1641_v33 = vpop.f32.mrb[13].mxu0 }
 0x3f9   : > { %v789_v34 = vpop.f32.mrb[14].mxu0  ;;  %v824_v36 = vsel %vm805_vm7, %v803_v32, -inf }
 0x3fa   : > { %v804_v37 = vsel %vm1995_vm8, %v789_v34, -1e+30  ;;  %822 = vmax.xlane.f32.xlu0 %v821_v35  ;;  %825 = vmax.xlane.f32.xlu1 %v824_v36  ;;  %v1642_v38 = vpop.f32.mrb[15].mxu0 }
 0x3fb   : > { %v827_v39 = vsel %vm805_vm7, %v804_v37, -inf }
 0x3fe   : > { %828 = vmax.xlane.f32.xlu0 %v827_v39 }
 0x40b   : > { %898 = vrot.lane.b32.xlu1 %v1955_v42, %s1827_s14 }
 0x410   : > { %v808_v44 = vpop.xlane.xlu1 %807 }
 0x411   : > { %v830_v45 = vsub.f32 %v797_v8, %v808_v44 }
 0x412   : > { %v811_v40 = vpop.xlane.xlu0 %810 }
 0x413   : > { %v831_v41 = vsub.f32 %v798_v12, %v811_v40  ;;  %v838_v46 = vmul.f32 1.442695, %v830_v45 }
 0x415   : > { %v840_v43 = vmul.f32 1.442695, %v831_v41 }
 0x417   : > { %1769 = vpow2.f32 %v840_v43 }
 0x418   : > { %1771 = vpow2.f32 %v838_v46 }
 0x421   : > { %v1770_v47 = vpop.eup %1769 }
 0x422   : > { %v857_v48 = vsel %vm805_vm7, %v1770_v47, 0.0  ;;  %v1772_v51 = vpop.eup %1771 }
 0x423   : > { %858 = vadd.xlane.f32.xlu0 %v857_v48  ;;  %v854_v52 = vsel %vm805_vm7, %v1772_v51, 0.0 }
 0x42f   : > { %855 = vadd.xlane.f32.xlu1 %v854_v52 }
 0x47f   : > { %v820_v53 = vpop.xlane.xlu1 %819  ;;  %v814_v55 = vpop.xlane.xlu0 %813 }
 0x480   : > { %v834_v56 = vsub.f32 %v801_v19, %v820_v53  ;;  %v832_v42 = vsub.f32 %v799_v18, %v814_v55 }
 0x482   : > { %v842_v57 = vmul.f32 1.442695, %v832_v42  ;;  %v846_v58 = vmul.f32 1.442695, %v834_v56 }
 0x483   : > { %v817_v59 = vpop.xlane.xlu0 %816 }
 0x484   : > { %v833_v60 = vsub.f32 %v800_v26, %v817_v59  ;;  %1773 = vpow2.f32 %v842_v57 }
 0x485   : > { %1775 = vpow2.f32 %v846_v58  ;;  %v1753_v58 = vld [vmem:[%s2155_s5] sm:$0xff]  }
 0x486   : > { %v844_v61 = vmul.f32 1.442695, %v833_v60 }
 0x487   : > { %v823_v62 = vpop.xlane.xlu0 %822  ;;  %v826_v63 = vpop.xlane.xlu1 %825 }
 0x488   : > { %1777 = vpow2.f32 %v844_v61  ;;  %v835_v2 = vsub.f32 %v802_v30, %v823_v62  ;;  %v836_v3 = vsub.f32 %v803_v32, %v826_v63  ;;  %v1754_v61 = vld [vmem:[%s2155_s5 + $0x8] sm:$0xff]  }
 0x48a   : > { %v848_v4 = vmul.f32 1.442695, %v835_v2  ;;  %v850_v5 = vmul.f32 1.442695, %v836_v3 }
 0x48b   : > { %v899_v6 = vpop.permute.xlu1 %898  ;;  %v829_v7 = vpop.xlane.xlu0 %828 }
 0x48c   : > { %1779 = vpow2.f32 %v848_v4  ;;  %v837_v8 = vsub.f32 %v804_v37, %v829_v7  ;;  %1644 = vmatpush3.bf16.msra.mxu1 %v899_v6 }
 0x48d   : > { %1781 = vpow2.f32 %v850_v5  ;;  %1655 = vmatprep.subr.bf16.mxu1 %v1821_v15 }
 0x48e   : > { %v852_v9 = vmul.f32 1.442695, %v837_v8  ;;  %v1774_v10 = vpop.eup %1773 }
 0x48f   : > { %v860_v11 = vsel %vm805_vm7, %v1774_v10, 0.0  ;;  %v1776_v12 = vpop.eup %1775 }
 0x490   : > { %1783 = vpow2.f32 %v852_v9  ;;  %861 = vadd.xlane.f32.xlu1 %v860_v11  ;;  %v866_v16 = vsel %vm805_vm7, %v1776_v12, 0.0 }
 0x492   : > { %v1778_v13 = vpop.eup %1777 }
 0x493   : > { %v863_v14 = vsel %vm805_vm7, %v1778_v13, 0.0 }
 0x494   : > { %864 = vadd.xlane.f32.xlu0 %v863_v14  ;;  %867 = vadd.xlane.f32.xlu1 %v866_v16 }
 0x496   : > { %v1780_v17 = vpop.eup %1779 }
 0x497   : > { %v1782_v18 = vpop.eup %1781  ;;  %v869_v19 = vsel %vm805_vm7, %v1780_v17, 0.0 }
 0x498   : > { %v872_v20 = vsel %vm805_vm7, %v1782_v18, 0.0  ;;  %870 = vadd.xlane.f32.xlu0 %v869_v19 }
 0x499   : > { %873 = vadd.xlane.f32.xlu1 %v872_v20 }
 0x49a   : > { %v1784_v21 = vpop.eup %1783 }
 0x49b   : > { %v875_v22 = vsel %vm805_vm7, %v1784_v21, 0.0 }
 0x49c   : > { %876 = vadd.xlane.f32.xlu0 %v875_v22 }
 0x4aa   : > { %992 = vrot.lane.b32.xlu1 %v1958_v49, %s1827_s14 }
 0x4ae   : > { %1039 = vrot.lane.b32.xlu1 %v1964_v54, %s1827_s14 }
 0x4b0   : > { %v859_v23 = vpop.xlane.xlu0 %858 }
 0x4b1   : > { %1785 = vrcp.f32 %v859_v23 }
 0x4b2   : > { %945 = vrot.lane.b32.xlu0 %v1960_v50, %s1827_s14 }
 0x4bb   : > { %v1786_v25 = vpop.eup %1785 }
 0x4bc   : > { %v856_v24 = vpop.xlane.xlu1 %855  ;;  %v887_v27 = vmul.f32 %v1786_v25, %v1770_v47 }
 0x4bd   : > { %1787 = vrcp.f32 %v856_v24 }
 0x4c7   : > { %v1788_v26 = vpop.eup %1787 }
 0x4c8   : > { %v886_v28 = vmul.f32 %v1788_v26, %v1772_v51 }
 0x4ca   : > { %v894_v29 = vpack.c.bf16 %v887_v27, %v886_v28 }
 0x4cc   : > { %1646 = vmatmul.mubr.msk.bf16.vlgmr.msra.gmra.mrb[4].mxu1 %vm805_vm7, %v894_v29 }
 0x4cd   : > { %1657 = vmatprep.mubr.msk.bf16.mxu1 %vm1822_vm1, %v1821_v15 }
 0x51d   : > { %v862_v49 = vpop.xlane.xlu1 %861 }
 0x51e   : > { %1789 = vrcp.f32 %v862_v49 }
 0x521   : > { %v865_v54 = vpop.xlane.xlu0 %864  ;;  %v868_v30 = vpop.xlane.xlu1 %867 }
 0x522   : > { %1791 = vrcp.f32 %v865_v54  ;;  %v1553_v54 = vld [vmem:[%s2156_s6] ss:$0 sm:$0xff] }
 0x523   : > { %1793 = vrcp.f32 %v868_v30 }
 0x525   : > { %v871_v50 = vpop.xlane.xlu0 %870 }
 0x526   : > { %v874_v31 = vpop.xlane.xlu1 %873  ;;  %1795 = vrcp.f32 %v871_v50 }
 0x527   : > { %1797 = vrcp.f32 %v874_v31 }
 0x528   : > { %v1790_v33 = vpop.eup %1789 }
 0x529   : > { %v877_v32 = vpop.xlane.xlu0 %876  ;;  %v888_v36 = vmul.f32 %v1790_v33, %v1774_v10 }
 0x52a   : > { %v993_v34 = vpop.permute.xlu1 %992  ;;  %1799 = vrcp.f32 %v877_v32 }
 0x52b   : > { %1656 = vmatpush3.bf16.msra.mxu1 %v993_v34 }
 0x52c   : > { %v1792_v35 = vpop.eup %1791  ;;  %1667 = vmatprep.subr.bf16.mxu1 %v1821_v15 }
 0x52d   : > { %v889_v37 = vmul.f32 %v1792_v35, %v1778_v13  ;;  %v946_v38 = vpop.permute.xlu0 %945  ;;  %v1794_v39 = vpop.eup %1793 }
 0x52e   : > { %1650 = vmatpush3.bf16.msra.mxu0 %v946_v38  ;;  %v890_v43 = vmul.f32 %v1794_v39, %v1776_v12  ;;  %v1040_v45 = vpop.permute.xlu1 %1039 }
 0x52f   : > { %v895_v40 = vpack.c.bf16 %v889_v37, %v888_v36  ;;  %1661 = vmatprep.subr.bf16.mxu0 %v1821_v15 }
 0x530   : > { %v1796_v41 = vpop.eup %1795 }
 0x531   : > { %v891_v44 = vmul.f32 %v1796_v41, %v1780_v17  ;;  %1652 = vmatmul.mubr.msk.bf16.vlgmr.msra.gmra.mrb[16].mxu0 %vm805_vm7, %v895_v40  ;;  %v1798_v46 = vpop.eup %1797 }
 0x532   : > { %1662 = vmatpush3.bf16.msra.mxu0 %v1040_v45  ;;  %1663 = vmatprep.mubr.msk.bf16.mxu0 %vm1822_vm1, %v1821_v15  ;;  %v892_v51 = vmul.f32 %v1798_v46, %v1782_v18 }
 0x533   : > { %v896_v47 = vpack.c.bf16 %v891_v44, %v890_v43  ;;  %1675 = vmatprep.subr.bf16.mxu0 %v1821_v15 }
 0x534   : > { %v1800_v48 = vpop.eup %1799 }
 0x535   : > { %v893_v52 = vmul.f32 %v1800_v48, %v1784_v21  ;;  %1658 = vmatmul.mubr.msk.bf16.vlgmr.msra.gmra.mrb[8].mxu1 %vm805_vm7, %v896_v47  ;;  %v1755_v47 = vld [vmem:[%s2159_s9] sm:$0xff]   ;;  %v1756_v48 = vld [vmem:[%s2159_s9 + $0x8] sm:$0xff]  }
 0x536   : > { %1671 = vmatprep.mubr.msk.bf16.mxu1 %vm1822_vm1, %v1821_v15  ;;  %1668 = vmatpush3.bf16.msra.mxu1 %v1753_v58 }
 0x537   : > { %v897_v53 = vpack.c.bf16 %v893_v52, %v892_v51  ;;  %1669 = vmatprep.subr.bf16.mxu1 %v1821_v15 }
 0x539   : > { %1664 = vmatmul.mubr.msk.bf16.vlgmr.msra.gmra.mrb[20].mxu0 %vm805_vm7, %v897_v53 }
 0x53a   : > { %1679 = vmatprep.mubr.msk.bf16.mxu0 %vm1822_vm1, %v1821_v15  ;;  %1670 = vmatpush3.bf16.msra.mxu1 %v1754_v61 }
 0x53b   : > { %1683 = vmatprep.subr.bf16.mxu1 %v1821_v15  ;;  %1676 = vmatpush3.bf16.msra.mxu0 %v1755_v47 }
 0x53c   : > { %1677 = vmatprep.subr.bf16.mxu0 %v1821_v15 }
 0x53f   : > { %1678 = vmatpush3.bf16.msra.mxu0 %v1756_v48 }
 0x59f   : > { %v938_v55 = vpop.f32.mrb[4].mxu1 }
 0x5a0   : > { %v1647_v56 = vpop.f32.mrb[5].mxu1 }
 0x5a1   : > { %v941_v42 = vpop.f32.mrb[6].mxu1 }
 0x5a2   : > { %v1648_v57 = vpop.f32.mrb[7].mxu1 }
 0x604   : > { %v985_v59 = vpop.f32.mrb[16].mxu0 }
 0x605   : > { %v1653_v60 = vpop.f32.mrb[17].mxu0 }
 0x606   : > { %v988_v62 = vpop.f32.mrb[18].mxu0 }
 0x607   : > { %v1736_v63 = vpack.i.bf16 %v988_v62, %v985_v59  ;;  %v1654_v2 = vpop.f32.mrb[19].mxu0  ;;  %v1554_v59 = vld [vmem:[%s2157_s7] ss:$0 sm:$0xff] }
 0x608   : > { %v1032_v3 = vpop.f32.mrb[8].mxu1 }
 0x609   : > { %v1659_v4 = vpop.f32.mrb[9].mxu1  ;;  %1737 = vrot.lane.b32.xlu1 %v1736_v63, %s1828_s19  ;;  %v1555_v63 = vld [vmem:[%s2158_s8] ss:$0 sm:$0xff] }
 0x60a   : > { %v1035_v5 = vpop.f32.mrb[10].mxu1 }
 0x60b   : > { %v1741_v6 = vpack.i.bf16 %v1035_v5, %v1032_v3  ;;  %v1660_v7 = vpop.f32.mrb[11].mxu1 }
 0x60c   : > { %v1079_v8 = vpop.f32.mrb[20].mxu0  ;;  %v1758_v7 = vld [vmem:[%s2161_s11 + $0x8] sm:$0xff]  }
 0x60d   : > { %1742 = vrot.lane.b32.xlu0 %v1741_v6, %s1829_s20  ;;  %v1665_v9 = vpop.f32.mrb[21].mxu0  ;;  %v1757_v6 = vld [vmem:[%s2161_s11] sm:$0xff]  }
 0x60e   : > { %v1082_v10 = vpop.f32.mrb[22].mxu0  ;;  %v1760_v9 = vld [vmem:[%s2161_s11 + $0x18] sm:$0xff]  }
 0x60f   : > { %v1746_v11 = vpack.i.bf16 %v1082_v10, %v1079_v8  ;;  %v1666_v12 = vpop.f32.mrb[23].mxu0  ;;  %v1759_v8 = vld [vmem:[%s2161_s11 + $0x10] sm:$0xff]   ;;  %v1761_v10 = vld [vmem:[%s2161_s11 + $0x20] sm:$0xff]  }
 0x610   : > { %v1763_v12 = vld [vmem:[%s2161_s11 + $0x30] sm:$0xff]  }
 0x611   : > { %1747 = vrot.lane.b32.xlu1 %v1746_v11, %s1830_s21  ;;  %v1762_v11 = vld [vmem:[%s2161_s11 + $0x28] sm:$0xff]  }
 0x67b   : > { %v1738_v13 = vpop.permute.xlu1 %1737 }
 0x67c   : > { %v1740_v16 = vunpack.i.h.bf16 %v1738_v13  ;;  %v1739_v17 = vunpack.i.l.bf16 %v1738_v13  ;;  %v1764_v13 = vld [vmem:[%s2161_s11 + $0x38] sm:$0xff]  }
 0x67e   : > { %v1111_v21 = vsel %vm595_vm2, %v941_v42, %v1740_v16  ;;  %v1110_v22 = vsel %vm595_vm2, %v938_v55, %v1739_v17 }
 0x67f   : > { %v1743_v14 = vpop.permute.xlu0 %1742 }
 0x680   : > { %v1745_v18 = vunpack.i.h.bf16 %v1743_v14  ;;  %v1744_v19 = vunpack.i.l.bf16 %v1743_v14  ;;  %v1556_v14 = vld [vmem:[%s2160_s10] ss:$0 sm:$0xff] }
 0x682   : > { %v1112_v25 = vsel %vm805_vm7, %v1110_v22, %v1744_v19  ;;  %v1113_v26 = vsel %vm805_vm7, %v1111_v21, %v1745_v18 }
 0x683   : > { %v1748_v20 = vpop.permute.xlu1 %1747 }
 0x684   : > { %v1750_v23 = vunpack.i.h.bf16 %v1748_v20  ;;  %v1749_v24 = vunpack.i.l.bf16 %v1748_v20 }
 0x686   : > { %v1116_v27 = vsel %vm1114_vm9, %v1113_v26, %v1750_v23  ;;  %v1115_v28 = vsel %vm1114_vm9, %v1112_v25, %v1749_v24 }
 0x687   : > { %v1117_v29 = vpack.c.bf16 %v1116_v27, %v1115_v28 }
 0x689   : > { %1672 = vmatmul.mubr.msk.bf16.vlgmr.msra.gmra.mrb[12].mxu1 %vm446_vm0, %v1117_v29 }
 0x68a   : > { %1699 = vmatprep.mubr.msk.bf16.mxu1 %vm1822_vm1, %v1821_v15  ;;  %1684 = vmatpush3.bf16.msra.mxu1 %v1757_v6 }
 0x68b   : > { %1685 = vmatprep.subr.bf16.mxu1 %v1821_v15 }
 0x68e   : > { %1686 = vmatpush3.bf16.msra.mxu1 %v1758_v7 }
 0x68f   : > { %1687 = vmatprep.subr.bf16.mxu1 %v1821_v15 }
 0x692   : > { %1688 = vmatpush3.bf16.msra.mxu1 %v1759_v8 }
 0x693   : > { %1689 = vmatprep.subr.bf16.mxu1 %v1821_v15 }
 0x696   : > { %1690 = vmatpush3.bf16.msra.mxu1 %v1760_v9 }
 0x697   : > { %1691 = vmatprep.subr.bf16.mxu1 %v1821_v15 }
 0x69a   : > { %1692 = vmatpush3.bf16.msra.mxu1 %v1761_v10 }
 0x69b   : > { %1693 = vmatprep.subr.bf16.mxu1 %v1821_v15 }
 0x69e   : > { %1694 = vmatpush3.bf16.msra.mxu1 %v1762_v11  ;;  %v1572_v11 = vld [vmem:[%s2162_s12] ss:$0 sm:$0xff] }
 0x69f   : > { %1695 = vmatprep.subr.bf16.mxu1 %v1821_v15 }
 0x6a2   : > { %1696 = vmatpush3.bf16.msra.mxu1 %v1763_v12 }
 0x6a3   : > { %1697 = vmatprep.subr.bf16.mxu1 %v1821_v15 }
 0x6a6   : > { %1698 = vmatpush3.bf16.msra.mxu1 %v1764_v13 }
 0x75c   : > { %v1171_v49 = vpop.f32.mrb[12].mxu1 }
 0x75d   : > { %v1178_v30 = vadd.f32 %v1171_v49, %v1917_v0  ;;  %v1673_v50 = vpop.f32.mrb[13].mxu1 }
 0x75e   : > { %v1174_v31 = vpop.f32.mrb[14].mxu1 }
 0x75f   : > { %v2074_v32 = vadd.f32 %v1553_v54, %v1178_v30  ;;  %v1179_v33 = vadd.f32 %v1174_v31, %v1919_v1  ;;  %v1674_v34 = vpop.f32.mrb[15].mxu1 }
 0x761   : > { %v2077_v35 = vadd.f32 %v1553_v54, %v1179_v33  ;;  %v1191_v36 = vsel %vm446_vm0, %v2074_v32, 0.0 }
 0x762   : > { %1192 = vadd.xlane.f32.xlu0 %v1191_v36 }
 0x763   : > { %v1194_v37 = vsel %vm446_vm0, %v2077_v35, 0.0 }
 0x764   : > { %1195 = vadd.xlane.f32.xlu1 %v1194_v37 }
 0x7ef   : > { %v1193_v38 = vpop.xlane.xlu0 %1192 }
 0x7f0   : > { %v1197_v39 = vmul.f32 0.03125, %v1193_v38 }
 0x7f1   : > { %v1196_v0 = vpop.xlane.xlu1 %1195 }
 0x7f2   : > { %v1199_v40 = vsub.f32 %v2074_v32, %v1197_v39  ;;  %v1198_v41 = vmul.f32 0.03125, %v1196_v0 }
 0x7f4   : > { %v1200_v43 = vsub.f32 %v2077_v35, %v1198_v41  ;;  %v1201_v1 = vmul.f32 %v1199_v40, %v1199_v40 }
 0x7f6   : > { %v1203_v44 = vsel %vm446_vm0, %v1201_v1, 0.0  ;;  %v1202_v45 = vmul.f32 %v1200_v43, %v1200_v43 }
 0x7f7   : > { %1204 = vadd.xlane.f32.xlu0 %v1203_v44 }
 0x7f8   : > { %v1206_v46 = vsel %vm446_vm0, %v1202_v45, 0.0 }
 0x7fb   : > { %1207 = vadd.xlane.f32.xlu0 %v1206_v46 }
 0x884   : > { %v1205_v51 = vpop.xlane.xlu0 %1204 }
 0x885   : > { %v1209_v52 = vmul.f32 0.03125, %v1205_v51 }
 0x887   : > { %v1211_v53 = vadd.f32 1e-05, %v1209_v52 }
 0x888   : > { %v1208_v55 = vpop.xlane.xlu0 %1207 }
 0x889   : > { %1801 = vrsqrt.f32 %v1211_v53  ;;  %v1210_v56 = vmul.f32 0.03125, %v1208_v55 }
 0x88b   : > { %v1212_v42 = vadd.f32 1e-05, %v1210_v56 }
 0x88d   : > { %1803 = vrsqrt.f32 %v1212_v42 }
 0x893   : > { %v1802_v57 = vpop.eup %1801 }
 0x894   : > { %v1215_v58 = vmul.f32 %v1802_v57, %v1199_v40 }
 0x896   : > { %v1223_v61 = vmul.f32 %v1554_v59, %v1215_v58 }
 0x897   : > { %v1804_v60 = vpop.eup %1803 }
 0x898   : > { %v1216_v62 = vmul.f32 %v1804_v60, %v1200_v43  ;;  %v1231_v3 = vadd.f32 %v1555_v63, %v1223_v61 }
 0x89a   : > { %v1224_v2 = vmul.f32 %v1554_v59, %v1216_v62 }
 0x89c   : > { %v1232_v4 = vadd.f32 %v1555_v63, %v1224_v2 }
 0x89e   : > { %v1233_v5 = vpack.c.bf16 %v1232_v4, %v1231_v3 }
 0x8a0   : > { %1680 = vmatmul.mubr.msk.bf16.vlgmr.msra.gmra.mrb[24].mxu0 %vm446_vm0, %v1233_v5 }
 0x973   : > { %v1294_v16 = vpop.f32.mrb[24].mxu0 }
 0x974   : > { %v1295_v17 = vadd.f32 %v1556_v14, %v1294_v16  ;;  %v1681_v18 = vpop.f32.mrb[25].mxu0 }
 0x975   : > { %v1297_v19 = vpop.f32.mrb[26].mxu0 }
 0x976   : > { %v1303_v20 = vmul.f32 0.70710677, %v1295_v17  ;;  %v1298_v21 = vadd.f32 %v1556_v14, %v1297_v19  ;;  %v1682_v22 = vpop.f32.mrb[27].mxu0  ;;  %v1301_v4 = vmul.f32 0.5, %v1295_v17 }
 0x978   : > { %v1305_v23 = vand.u32 2147483647, %v1303_v20  ;;  %v1304_v24 = vmul.f32 0.70710677, %v1298_v21  ;;  %vm1343_vm10 = vcmp.ge.f32.partialorder %v1303_v20, 0.0  ;;  %v1302_v5 = vmul.f32 0.5, %v1298_v21 }
 0x97a   : > { %v1307_v25 = vmul.f32 0.3275911, %v1305_v23  ;;  %v1306_v15 = vand.u32 2147483647, %v1304_v24  ;;  %v1331_v29 = vsub.f32 0.0, %v1305_v23  ;;  %vm1344_vm11 = vcmp.ge.f32.partialorder %v1304_v24, 0.0 }
 0x97c   : > { %v1309_v26 = vadd.f32 1.0, %v1307_v25  ;;  %v1308_v27 = vmul.f32 0.3275911, %v1306_v15  ;;  %v1332_v49 = vsub.f32 0.0, %v1306_v15  ;;  %v1333_v30 = vmul.f32 %v1331_v29, %v1305_v23 }
 0x97e   : > { %1805 = vrcp.f32 %v1309_v26  ;;  %v1310_v28 = vadd.f32 1.0, %v1308_v27  ;;  %v1334_v34 = vmul.f32 %v1332_v49, %v1306_v15  ;;  %v1335_v36 = vmul.f32 1.442695, %v1333_v30 }
 0x980   : > { %1807 = vrcp.f32 %v1310_v28  ;;  %v1337_v40 = vmul.f32 1.442695, %v1334_v34 }
 0x981   : > { %1809 = vpow2.f32 %v1335_v36 }
 0x982   : > { %1811 = vpow2.f32 %v1337_v40 }
 0x988   : > { %v1806_v54 = vpop.eup %1805 }
 0x989   : > { %v1313_v50 = vmul.f32 1.0614054, %v1806_v54 }
 0x98a   : > { %v1808_v31 = vpop.eup %1807 }
 0x98b   : > { %v1560_v33 = vadd.f32 -1.4531521, %v1313_v50  ;;  %v1314_v37 = vmul.f32 1.0614054, %v1808_v31  ;;  %v1810_v53 = vpop.eup %1809 }
 0x98c   : > { %v1812_v57 = vpop.eup %1811 }
 0x98d   : > { %v1317_v38 = vmul.f32 %v1806_v54, %v1560_v33  ;;  %v1561_v39 = vadd.f32 -1.4531521, %v1314_v37 }
 0x98f   : > { %v1319_v0 = vadd.f32 1.4214138, %v1317_v38  ;;  %v1318_v41 = vmul.f32 %v1808_v31, %v1561_v39 }
 0x991   : > { %v1321_v43 = vmul.f32 %v1806_v54, %v1319_v0  ;;  %v1320_v1 = vadd.f32 1.4214138, %v1318_v41 }
 0x993   : > { %v1562_v44 = vadd.f32 -0.28449672, %v1321_v43  ;;  %v1322_v45 = vmul.f32 %v1808_v31, %v1320_v1 }
 0x995   : > { %v1325_v46 = vmul.f32 %v1806_v54, %v1562_v44  ;;  %v1563_v47 = vadd.f32 -0.28449672, %v1322_v45 }
 0x997   : > { %v1327_v48 = vadd.f32 0.2548296, %v1325_v46  ;;  %v1326_v51 = vmul.f32 %v1808_v31, %v1563_v47 }
 0x999   : > { %v1329_v52 = vmul.f32 %v1806_v54, %v1327_v48  ;;  %v1328_v55 = vadd.f32 0.2548296, %v1326_v51 }
 0x99b   : > { %v1339_v56 = vmul.f32 %v1810_v53, %v1329_v52  ;;  %v1330_v42 = vmul.f32 %v1808_v31, %v1328_v55 }
 0x99d   : > { %v1341_v58 = vsub.f32 1.0, %v1339_v56  ;;  %v1340_v59 = vmul.f32 %v1812_v57, %v1330_v42 }
 0x99f   : > { %v1345_v60 = vsub.f32 0.0, %v1341_v58  ;;  %v1342_v61 = vsub.f32 1.0, %v1340_v59 }
 0x9a1   : > { %v1347_v62 = vsel %vm1343_vm10, %v1341_v58, %v1345_v60  ;;  %v1346_v63 = vsub.f32 0.0, %v1342_v61 }
 0x9a2   : > { %v1349_v2 = vadd.f32 1.0, %v1347_v62 }
 0x9a3   : > { %v1348_v3 = vsel %vm1344_vm11, %v1342_v61, %v1346_v63 }
 0x9a4   : > { %v1350_v6 = vadd.f32 1.0, %v1348_v3  ;;  %v1351_v7 = vmul.f32 %v1349_v2, %v1301_v4 }
 0x9a6   : > { %v1352_v8 = vmul.f32 %v1350_v6, %v1302_v5 }
 0x9a8   : > { %v1353_v9 = vpack.c.bf16 %v1352_v8, %v1351_v7 }
 0x9aa   : > { %1700 = vmatmul.mubr.bf16.vlgmr.msra.gmra.mrb[16].mxu1 %v1353_v9 }
 0xa7d   : > { %v1452_v10 = vpop.f32.mrb[16].mxu1 }
 0xa7e   : > { %v1459_v12 = vadd.f32 %v1452_v10, %v2074_v32  ;;  %v1701_v13 = vpop.f32.mrb[17].mxu1 }
 0xa7f   : > { %v1455_v14 = vpop.f32.mrb[18].mxu1 }
 0xa80   : > { %v1468_v16 = vadd.f32 %v1572_v11, %v1459_v12  ;;  %v1460_v17 = vadd.f32 %v1455_v14, %v2077_v35  ;;  %v1702_v18 = vpop.f32.mrb[19].mxu1 }
 0xa82   : > { %1470 = vst.msk [vmem:[%s440_s29] sm:$0xff] %vm446_vm0, %v1468_v16  ;;  %v1469_v19 = vadd.f32 %v1572_v11, %v1460_v17 }
 0xa84   : > { %1471 = vst.msk [vmem:[%s440_s29 + $0x8] sm:$0xff] %vm446_vm0, %v1469_v19 }
 0xa85 PF: > { %s23_s25 = sadd.s32 1, %s1819_s25  }
 0xa86   : > { %p20_p4 = scmp.ge.s32.totalorder %s23_s25, 4  }
 0xa88   :  { %22 = sbr.rel (!%p20_p4) target bundleno = 1 (0x1), region = 102 }

// kernel: gpt_forward.13
= control target key start
LH: loop header
LB: loop body
LE: loop exit
PB: predicated region body
PF: predicated region fallthrough
CT: control target
= control target key end

     0   :  { %s2213_s24 = smov 0   ;;  %s2505_s0 = inlined_call_operand.vmem [shape: f32[2,16,32], index: 0, kind: input, shape index: {}]   ;;  %s2506_s1 = inlined_call_operand.vmem [shape: f32[1,32], index: 1, kind: input, shape index: {}]   ;;  %s2507_s2 = inlined_call_operand.vmem [shape: f32[1,32], index: 2, kind: input, shape index: {}]   ;;  %s2508_s3 = inlined_call_operand.vmem [shape: bf16[32,96], index: 3, kind: input, shape index: {}]   ;;  %s2509_s4 = inlined_call_operand.vmem [shape: f32[1,96], index: 4, kind: input, shape index: {}]   ;;  %s2510_s5 = inlined_call_operand.vmem [shape: bf16[32,32], index: 5, kind: input, shape index: {}]   ;;  %s2511_s6 = inlined_call_operand.vmem [shape: f32[1,32], index: 6, kind: input, shape index: {}]   ;;  %s2512_s7 = inlined_call_operand.vmem [shape: f32[1,32], index: 7, kind: input, shape index: {}]   ;;  %s2513_s8 = inlined_call_operand.vmem [shape: f32[1,32], index: 8, kind: input, shape index: {}]   ;;  %s2514_s9 = inlined_call_operand.vmem [shape: bf16[32,128], index: 9, kind: input, shape index: {}]   ;;  %s2515_s10 = inlined_call_operand.vmem [shape: f32[1,128], index: 10, kind: input, shape index: {}]   ;;  %s2516_s11 = inlined_call_operand.vmem [shape: bf16[128,32], index: 11, kind: input, shape index: {}]   ;;  %s2517_s12 = inlined_call_operand.vmem [shape: f32[1,32], index: 12, kind: input, shape index: {}]   ;;  %s2518_s13 = inlined_call_operand.vmem [shape: f32[1,32], index: 13, kind: input, shape index: {}]   ;;  %s2519_s14 = inlined_call_operand.vmem [shape: f32[1,32], index: 14, kind: input, shape index: {}]   ;;  %s2520_s15 = inlined_call_operand.vmem [shape: bf16[32,16], index: 15, kind: input, shape index: {}]   ;;  %s2521_s16 = inlined_call_operand.vmem [shape: f32[2,16,16], index: 16, kind: output, shape index: {0}]   ;;  %s2522_s17 = inlined_call_operand.vmem [shape: f32[2,4,16,16], index: 17, kind: output, shape index: {1}]  }
   0x1   :  { %2523 = sst [smem:[#allocation2_spill]] %s2505_s0 }
   0x2   :  { %2524 = sst [smem:[#allocation3_spill]] %s2506_s1 }
   0x3 LB: > { %s1794_s25 = sadd.s32 4294967295, %s2111_s24   ;;  %p1798_p0 = scmp.ge.s32.totalorder %s2111_s24, 1  ;;  %s2111_s24 = sphi %s2213_s24, %s28_s24  }
   0x4   : > { %p490_p1 = scmp.lt.s32.totalorder %s2111_s24, 3 }
   0x6   : > { %p491_p2 = pnand %p1798_p0, %p490_p1 }
   0x7   : > { %p547_p3 = scmp.lt.s32.totalorder (!%p491_p2), %s1794_s25, 1  ;;  %vm567_vm0 = vcmask (!%p491_p2), 261120   ;;  %s2525_s29 = sld [smem:[#allocation2_spill]] (!%p491_p2)  ;;  %v2037_v14 = vld [vmem:[%s2508_s3] sm:$0xff] (!%p491_p2)   ;;  %v2113_v15 = vmov (!%p491_p2), 0.0   ;;  %v2038_v16 = vld [vmem:[%s2508_s3 + $0x8] sm:$0xff] (!%p491_p2)   ;;  %v703_v63 = vlaneseq (!%p491_p2) }
   0x8   : > { %494 = sbr.rel (%p491_p2) target bundleno = 3224 (0xc98), region = 84  ;;  %1889 = vmatprep.subr.bf16.mxu0 (!%p491_p2), %v2113_v15  ;;  %1909 = vmatprep.subr.bf16.mxu1 (!%p491_p2), %v2113_v15  ;;  %vm2114_vm1 = vmmov (!%p491_p2), 0   ;;  %s2526_s22 = sld [smem:[#allocation3_spill]] (!%p491_p2)  ;;  %v1806_v29 = vld [vmem:[%s2507_s2] ss:$0 sm:$0xff] (!%p491_p2)  ;;  %vm716_vm2 = vcmask (!%p491_p2), 64512  }
   0x9   : > { %1890 = vmatpush3.bf16.msra.mxu0 (!%p491_p2), %v2037_v14  ;;  %1893 = vmatprep.mubr.msk.bf16.mxu0 (!%p491_p2), %vm2114_vm1, %v2113_v15  ;;  %v1807_v34 = vld [vmem:[%s2509_s4] ss:$0 sm:$0xff] (!%p491_p2)  ;;  %s2116_s30 = smov (!%p491_p2), 120   ;;  %s2117_s18 = smov (!%p491_p2), 104   ;;  %vm926_vm7 = vcmask (!%p491_p2), 130048   ;;  %vm1243_vm9 = vcmask (!%p491_p2), 195584  }
   0xa   : > { %1891 = vmatprep.subr.bf16.mxu0 (!%p491_p2), %v2113_v15  ;;  %1911 = vmatprep.mubr.msk.bf16.mxu1 (!%p491_p2), %vm2114_vm1, %v2113_v15  ;;  %s2118_s19 = smov (!%p491_p2), 96   ;;  %s2119_s1 = smov (!%p491_p2), 64  }
   0xd   : > { %1892 = vmatpush3.bf16.msra.mxu0 (!%p491_p2), %v2038_v16 }
   0xe   : > { %1897 = vmatprep.subr.bf16.mxu0 (!%p491_p2), %v2113_v15  ;;  %v1805_v25 = vld [vmem:[%s2526_s22] ss:$0 sm:$0xff] (!%p491_p2) }
   0xf   : > { %s2532_s25 = smov (!%p547_p3, %s1794_s25), 1 }
  0x10   : > { %s1849_s26 = sshll.u32 %s2532_s25, 4  ;;  %s1851_s20 = sshll.u32 %s2532_s25, 6 }
  0x11   : > { %s551_s0 = scalar_lea.vmem %s2525_s29, %s1849_s26  ;;  %s2356_s23 = scalar_lea.vmem %s2522_s17, %s1851_s20 }
  0x12   : > { %v2229_v0 = vld [vmem:[%s551_s0] sm:$0xff]  ;;  %v2231_v1 = vld [vmem:[%s551_s0 + $0x8] sm:$0xff]  ;;  %s2115_s0 = smov 112  }
  0x13   : > { %v568_v2 = vsel %vm567_vm0, %v2229_v0, 0.0  ;;  %v571_v3 = vsel %vm567_vm0, %v2231_v1, 0.0 }
  0x14   : > { %569 = vadd.xlane.f32.xlu0 %v568_v2  ;;  %v704_v2 = vshrl.u32 %v703_v63, 7 }
  0x18   : > { %572 = vadd.xlane.f32.xlu0 %v571_v3  ;;  %v707_v3 = vand.u32 127, %v703_v63 }
  0x1a   : > { %vm708_vm3 = vcmp.le.s32.totalorder %v707_v3, %v704_v2  ;;  %vm710_vm4 = vcmp.lt.s32.totalorder %v707_v3, 11 }
  0x1b   : > { %vm2303_vm6 = vmand %vm708_vm3, %vm710_vm4 }
  0xa1   : > { %v570_v4 = vpop.xlane.xlu0 %569 }
  0xa2   : > { %v575_v5 = vmul.f32 0.03125, %v570_v4  ;;  %v705_v4 = vadd.s32 8, %v704_v2 }
  0xa4   : > { %v577_v6 = vsub.f32 %v2229_v0, %v575_v5  ;;  %vm709_vm5 = vcmp.le.s32.totalorder %v707_v3, %v705_v4 }
  0xa5   : > { %v573_v7 = vpop.xlane.xlu0 %572  ;;  %vm2307_vm8 = vmand %vm709_vm5, %vm710_vm4 }
  0xa6   : > { %v576_v8 = vmul.f32 0.03125, %v573_v7  ;;  %v579_v9 = vmul.f32 %v577_v6, %v577_v6 }
  0xa8   : > { %v578_v10 = vsub.f32 %v2231_v1, %v576_v8  ;;  %v581_v11 = vsel %vm567_vm0, %v579_v9, 0.0 }
  0xa9   : > { %582 = vadd.xlane.f32.xlu1 %v581_v11 }
  0xaa   : > { %v580_v12 = vmul.f32 %v578_v10, %v578_v10 }
  0xac   : > { %v584_v13 = vsel %vm567_vm0, %v580_v12, 0.0 }
  0xad   : > { %585 = vadd.xlane.f32.xlu1 %v584_v13 }
 0x136   : > { %v583_v17 = vpop.xlane.xlu1 %582 }
 0x137   : > { %v587_v18 = vmul.f32 0.03125, %v583_v17 }
 0x139   : > { %v589_v19 = vadd.f32 1e-05, %v587_v18 }
 0x13a   : > { %v586_v20 = vpop.xlane.xlu1 %585 }
 0x13b   : > { %2053 = vrsqrt.f32 %v589_v19  ;;  %v588_v21 = vmul.f32 0.03125, %v586_v20 }
 0x13d   : > { %v590_v22 = vadd.f32 1e-05, %v588_v21 }
 0x13f   : > { %2055 = vrsqrt.f32 %v590_v22 }
 0x145   : > { %v2054_v23 = vpop.eup %2053 }
 0x146   : > { %v593_v24 = vmul.f32 %v2054_v23, %v577_v6 }
 0x148   : > { %v601_v28 = vmul.f32 %v1805_v25, %v593_v24 }
 0x149   : > { %v2056_v26 = vpop.eup %2055 }
 0x14a   : > { %v594_v27 = vmul.f32 %v2056_v26, %v578_v10  ;;  %v609_v31 = vadd.f32 %v1806_v29, %v601_v28 }
 0x14c   : > { %v602_v30 = vmul.f32 %v1805_v25, %v594_v27 }
 0x14e   : > { %v610_v32 = vadd.f32 %v1806_v29, %v602_v30 }
 0x150   : > { %v611_v33 = vpack.c.bf16 %v610_v32, %v609_v31 }
 0x152   : > { %1894 = vmatmul.mubr.msk.bf16.vlgmr.msra.gmra.mrb[0].mxu0 %vm567_vm0, %v611_v33 }
 0x153   : > { %1899 = vmatprep.mubr.msk.bf16.mxu0 %vm2114_vm1, %v2113_v15 }
 0x225   : > { %v672_v35 = vpop.f32.mrb[0].mxu0 }
 0x226   : > { %v1895_v36 = vpop.f32.mrb[1].mxu0  ;;  %v673_v38 = vadd.f32 %v1807_v34, %v672_v35 }
 0x227   : > { %v675_v37 = vpop.f32.mrb[2].mxu0 }
 0x228   : > { %v676_v39 = vadd.f32 %v1807_v34, %v675_v37  ;;  %v1896_v40 = vpop.f32.mrb[3].mxu0 }
 0x22a   : > { %v2012_v41 = vpack.i.bf16 %v676_v39, %v673_v38  ;;  %v2267_v42 = vpack.c.bf16 %v676_v39, %v673_v38 }
 0x22c   : > { %2013 = vrot.lane.b32.xlu1 %v2012_v41, %s2115_s0  ;;  %2008 = vrot.lane.b32.xlu0 %v2012_v41, %s2116_s30  ;;  %s2120_s30 = smov 8  }
 0x230   : > { %2018 = vrot.lane.b32.xlu1 %v2012_v41, %s2117_s18  ;;  %s2121_s18 = smov 16  }
 0x234   : > { %714 = vrot.lane.b32.xlu1 %v2267_v42, %s2118_s19 }
 0x29e   : > { %v2014_v43 = vpop.permute.xlu1 %2013  ;;  %v2009_v44 = vpop.permute.xlu0 %2008 }
 0x29f   : > { %v2016_v45 = vunpack.i.h.bf16 %v2014_v43  ;;  %v2015_v46 = vunpack.i.l.bf16 %v2014_v43  ;;  %v2011_v47 = vunpack.i.h.bf16 %v2009_v44  ;;  %v2010_v48 = vunpack.i.l.bf16 %v2009_v44 }
 0x2a1   : > { %v2270_v49 = vpack.c.bf16 %v2016_v45, %v2015_v46  ;;  %v2272_v50 = vpack.c.bf16 %v2011_v47, %v2010_v48 }
 0x2a2   : > { %v2019_v51 = vpop.permute.xlu1 %2018 }
 0x2a3   : > { %v2021_v52 = vunpack.i.h.bf16 %v2019_v51  ;;  %v2020_v53 = vunpack.i.l.bf16 %v2019_v51  ;;  %765 = vrot.lane.b32.xlu0 %v2272_v50, %s2118_s19  ;;  %815 = vrot.lane.b32.xlu1 %v2270_v49, %s2118_s19 }
 0x2a5   : > { %v2276_v54 = vpack.c.bf16 %v2021_v52, %v2020_v53 }
 0x2a6   : > { %v715_v55 = vpop.permute.xlu1 %714 }
 0x2a7   : > { %v721_v56 = vsel %vm716_vm2, %v715_v55, 0  ;;  %865 = vrot.lane.b32.xlu0 %v2276_v54, %s2118_s19  ;;  %s2122_s19 = smov 24  }
 0x2a8   : > { %1898 = vmatpush3.bf16.xpose.msra.mxu0 %v721_v56 }
 0x2a9   : > { %1903 = vmatprep.subr.bf16.mxu0 %v2113_v15 }
 0x2af   : > { %1900 = vmatmul.mubr.msk.bf16.vlgmr.msra.gmra.mrb[4].mxu0 %vm716_vm2, %v2267_v42 }
 0x2b0   : > { %1905 = vmatprep.mubr.msk.bf16.mxu0 %vm2114_vm1, %v2113_v15 }
 0x315   : > { %v766_v57 = vpop.permute.xlu0 %765  ;;  %v816_v58 = vpop.permute.xlu1 %815 }
 0x316   : > { %v771_v59 = vsel %vm716_vm2, %v766_v57, 0  ;;  %v821_v60 = vsel %vm716_vm2, %v816_v58, 0 }
 0x317   : > { %1904 = vmatpush3.bf16.xpose.msra.mxu0 %v771_v59  ;;  %1910 = vmatpush3.bf16.xpose.msra.mxu1 %v821_v60 }
 0x318   : > { %1915 = vmatprep.subr.bf16.mxu0 %v2113_v15  ;;  %1921 = vmatprep.subr.bf16.mxu1 %v2113_v15 }
 0x319   : > { %v866_v61 = vpop.permute.xlu0 %865 }
 0x31a   : > { %v871_v62 = vsel %vm716_vm2, %v866_v61, 0 }
 0x31e   : > { %1906 = vmatmul.mubr.msk.bf16.vlgmr.msra.gmra.mrb[8].mxu0 %vm716_vm2, %v2272_v50  ;;  %1912 = vmatmul.mubr.msk.bf16.vlgmr.msra.gmra.mrb[0].mxu1 %vm716_vm2, %v2270_v49 }
 0x31f   : > { %1916 = vmatpush3.bf16.xpose.msra.mxu0 %v871_v62  ;;  %1917 = vmatprep.mubr.msk.bf16.mxu0 %vm2114_vm1, %v2113_v15 }
 0x320   : > { %1923 = vmatprep.mubr.msk.bf16.mxu1 %vm2114_vm1, %v2113_v15  ;;  %1927 = vmatprep.subr.bf16.mxu0 %v2113_v15 }
 0x326   : > { %1918 = vmatmul.mubr.msk.bf16.vlgmr.msra.gmra.mrb[12].mxu0 %vm716_vm2, %v2276_v54 }
 0x327   : > { %1929 = vmatprep.mubr.msk.bf16.mxu0 %vm2114_vm1, %v2113_v15 }
 0x382   : > { %v757_v6 = vpop.f32.mrb[4].mxu0 }
 0x383   : > { %v918_v8 = vsel %vm2303_vm6, %v757_v6, -1e+30  ;;  %v1901_v9 = vpop.f32.mrb[5].mxu0 }
 0x384   : > { %v760_v10 = vpop.f32.mrb[6].mxu0  ;;  %v927_v11 = vsel %vm926_vm7, %v918_v8, -inf }
 0x385   : > { %v919_v12 = vsel %vm2307_vm8, %v760_v10, -1e+30  ;;  %928 = vmax.xlane.f32.xlu1 %v927_v11  ;;  %v1902_v13 = vpop.f32.mrb[7].mxu0 }
 0x386   : > { %v930_v14 = vsel %vm926_vm7, %v919_v12, -inf }
 0x387   : > { %931 = vmax.xlane.f32.xlu0 %v930_v14 }
 0x3f1   : > { %v807_v16 = vpop.f32.mrb[8].mxu0  ;;  %v857_v17 = vpop.f32.mrb[0].mxu1 }
 0x3f2   : > { %v920_v18 = vsel %vm2303_vm6, %v807_v16, -1e+30  ;;  %v922_v19 = vsel %vm2303_vm6, %v857_v17, -1e+30  ;;  %v1907_v20 = vpop.f32.mrb[9].mxu0  ;;  %v1913_v21 = vpop.f32.mrb[1].mxu1 }
 0x3f3   : > { %v810_v22 = vpop.f32.mrb[10].mxu0  ;;  %v860_v23 = vpop.f32.mrb[2].mxu1  ;;  %v939_v24 = vsel %vm926_vm7, %v922_v19, -inf  ;;  %v933_v25 = vsel %vm926_vm7, %v920_v18, -inf }
 0x3f4   : > { %v921_v26 = vsel %vm2307_vm8, %v810_v22, -1e+30  ;;  %v1914_v27 = vpop.f32.mrb[3].mxu1  ;;  %940 = vmax.xlane.f32.xlu1 %v939_v24  ;;  %934 = vmax.xlane.f32.xlu0 %v933_v25  ;;  %v1908_v28 = vpop.f32.mrb[11].mxu0  ;;  %v923_v30 = vsel %vm2307_vm8, %v860_v23, -1e+30 }
 0x3f5   : > { %v936_v29 = vsel %vm926_vm7, %v921_v26, -inf  ;;  %v942_v35 = vsel %vm926_vm7, %v923_v30, -inf }
 0x3f8   : > { %937 = vmax.xlane.f32.xlu0 %v936_v29 }
 0x3f9   : > { %v907_v31 = vpop.f32.mrb[12].mxu0 }
 0x3fa   : > { %v924_v32 = vsel %vm2303_vm6, %v907_v31, -1e+30  ;;  %v1919_v33 = vpop.f32.mrb[13].mxu0 }
 0x3fb   : > { %v910_v34 = vpop.f32.mrb[14].mxu0  ;;  %v945_v36 = vsel %vm926_vm7, %v924_v32, -inf }
 0x3fc   : > { %v925_v37 = vsel %vm2307_vm8, %v910_v34, -1e+30  ;;  %943 = vmax.xlane.f32.xlu0 %v942_v35  ;;  %946 = vmax.xlane.f32.xlu1 %v945_v36  ;;  %v1920_v38 = vpop.f32.mrb[15].mxu0 }
 0x3fd   : > { %v948_v39 = vsel %vm926_vm7, %v925_v37, -inf }
 0x400   : > { %949 = vmax.xlane.f32.xlu0 %v948_v39 }
 0x40d   : > { %1027 = vrot.lane.b32.xlu1 %v2267_v42, %s2119_s1 }
 0x412   : > { %v929_v44 = vpop.xlane.xlu1 %928 }
 0x413   : > { %v951_v45 = vsub.f32 %v918_v8, %v929_v44 }
 0x414   : > { %v932_v40 = vpop.xlane.xlu0 %931 }
 0x415   : > { %v952_v41 = vsub.f32 %v919_v12, %v932_v40  ;;  %v959_v46 = vmul.f32 1.442695, %v951_v45 }
 0x417   : > { %v961_v43 = vmul.f32 1.442695, %v952_v41 }
 0x419   : > { %2057 = vpow2.f32 %v961_v43 }
 0x41a   : > { %2059 = vpow2.f32 %v959_v46 }
 0x423   : > { %v2058_v47 = vpop.eup %2057 }
 0x424   : > { %v978_v48 = vsel %vm926_vm7, %v2058_v47, 0.0  ;;  %v2060_v51 = vpop.eup %2059 }
 0x425   : > { %979 = vadd.xlane.f32.xlu0 %v978_v48  ;;  %v975_v52 = vsel %vm926_vm7, %v2060_v51, 0.0 }
 0x431   : > { %976 = vadd.xlane.f32.xlu1 %v975_v52 }
 0x481   : > { %v941_v53 = vpop.xlane.xlu1 %940  ;;  %v935_v55 = vpop.xlane.xlu0 %934 }
 0x482   : > { %v955_v56 = vsub.f32 %v922_v19, %v941_v53  ;;  %v953_v42 = vsub.f32 %v920_v18, %v935_v55 }
 0x484   : > { %v963_v57 = vmul.f32 1.442695, %v953_v42  ;;  %v967_v58 = vmul.f32 1.442695, %v955_v56 }
 0x485   : > { %v938_v59 = vpop.xlane.xlu0 %937 }
 0x486   : > { %v954_v60 = vsub.f32 %v921_v26, %v938_v59  ;;  %2061 = vpow2.f32 %v963_v57 }
 0x487   : > { %2063 = vpow2.f32 %v967_v58  ;;  %v2039_v58 = vld [vmem:[%s2510_s5] sm:$0xff]  }
 0x488   : > { %v965_v61 = vmul.f32 1.442695, %v954_v60 }
 0x489   : > { %v944_v62 = vpop.xlane.xlu0 %943  ;;  %v947_v63 = vpop.xlane.xlu1 %946 }
 0x48a   : > { %2065 = vpow2.f32 %v965_v61  ;;  %v956_v2 = vsub.f32 %v923_v30, %v944_v62  ;;  %v957_v3 = vsub.f32 %v924_v32, %v947_v63  ;;  %v2040_v61 = vld [vmem:[%s2510_s5 + $0x8] sm:$0xff]  }
 0x48c   : > { %v969_v4 = vmul.f32 1.442695, %v956_v2  ;;  %v971_v5 = vmul.f32 1.442695, %v957_v3 }
 0x48d   : > { %v1028_v6 = vpop.permute.xlu1 %1027  ;;  %v950_v7 = vpop.xlane.xlu0 %949 }
 0x48e   : > { %2067 = vpow2.f32 %v969_v4  ;;  %v958_v8 = vsub.f32 %v925_v37, %v950_v7  ;;  %1922 = vmatpush3.bf16.msra.mxu1 %v1028_v6 }
 0x48f   : > { %2069 = vpow2.f32 %v971_v5  ;;  %1933 = vmatprep.subr.bf16.mxu1 %v2113_v15 }
 0x490   : > { %v973_v9 = vmul.f32 1.442695, %v958_v8  ;;  %v2062_v10 = vpop.eup %2061 }
 0x491   : > { %v981_v11 = vsel %vm926_vm7, %v2062_v10, 0.0  ;;  %v2064_v12 = vpop.eup %2063 }
 0x492   : > { %2071 = vpow2.f32 %v973_v9  ;;  %982 = vadd.xlane.f32.xlu1 %v981_v11  ;;  %v987_v16 = vsel %vm926_vm7, %v2064_v12, 0.0 }
 0x494   : > { %v2066_v13 = vpop.eup %2065 }
 0x495   : > { %v984_v14 = vsel %vm926_vm7, %v2066_v13, 0.0 }
 0x496   : > { %985 = vadd.xlane.f32.xlu0 %v984_v14  ;;  %988 = vadd.xlane.f32.xlu1 %v987_v16 }
 0x498   : > { %v2068_v17 = vpop.eup %2067 }
 0x499   : > { %v2070_v18 = vpop.eup %2069  ;;  %v990_v19 = vsel %vm926_vm7, %v2068_v17, 0.0 }
 0x49a   : > { %v993_v20 = vsel %vm926_vm7, %v2070_v18, 0.0  ;;  %991 = vadd.xlane.f32.xlu0 %v990_v19 }
 0x49b   : > { %994 = vadd.xlane.f32.xlu1 %v993_v20 }
 0x49c   : > { %v2072_v21 = vpop.eup %2071 }
 0x49d   : > { %v996_v22 = vsel %vm926_vm7, %v2072_v21, 0.0 }
 0x49e   : > { %997 = vadd.xlane.f32.xlu0 %v996_v22 }
 0x4ac   : > { %1121 = vrot.lane.b32.xlu1 %v2270_v49, %s2119_s1 }
 0x4b0   : > { %1168 = vrot.lane.b32.xlu1 %v2276_v54, %s2119_s1 }
 0x4b2   : > { %v980_v23 = vpop.xlane.xlu0 %979 }
 0x4b3   : > { %2073 = vrcp.f32 %v980_v23 }
 0x4b4   : > { %1074 = vrot.lane.b32.xlu0 %v2272_v50, %s2119_s1 }
 0x4bd   : > { %v2074_v24 = vpop.eup %2073 }
 0x4be   : > { %v1008_v25 = vmul.f32 %v2074_v24, %v2058_v47  ;;  %v977_v26 = vpop.xlane.xlu1 %976 }
 0x4bf   : > { %2075 = vrcp.f32 %v977_v26 }
 0x4c0   : > { %1016 = vst.msk [vmem:[%s2356_s23 + $0x8] sm:$0xff] %vm926_vm7, %v1008_v25 }
 0x4c9   : > { %v2076_v49 = vpop.eup %2075 }
 0x4ca   : > { %v1007_v54 = vmul.f32 %v2076_v49, %v2060_v51 }
 0x4cc   : > { %1015 = vst.msk [vmem:[%s2356_s23] sm:$0xff] %vm926_vm7, %v1007_v54  ;;  %v1023_v27 = vpack.c.bf16 %v1008_v25, %v1007_v54 }
 0x4ce   : > { %1924 = vmatmul.mubr.msk.bf16.vlgmr.msra.gmra.mrb[4].mxu1 %vm926_vm7, %v1023_v27 }
 0x4cf   : > { %1935 = vmatprep.mubr.msk.bf16.mxu1 %vm2114_vm1, %v2113_v15 }
 0x51f   : > { %v983_v50 = vpop.xlane.xlu1 %982 }
 0x520   : > { %2077 = vrcp.f32 %v983_v50 }
 0x523   : > { %v986_v28 = vpop.xlane.xlu0 %985  ;;  %v989_v29 = vpop.xlane.xlu1 %988 }
 0x524   : > { %2079 = vrcp.f32 %v986_v28  ;;  %v1822_v28 = vld [vmem:[%s2511_s6] ss:$0 sm:$0xff] }
 0x525   : > { %2081 = vrcp.f32 %v989_v29 }
 0x527   : > { %v992_v30 = vpop.xlane.xlu0 %991 }
 0x528   : > { %v995_v31 = vpop.xlane.xlu1 %994  ;;  %2083 = vrcp.f32 %v992_v30 }
 0x529   : > { %2085 = vrcp.f32 %v995_v31 }
 0x52a   : > { %v2078_v32 = vpop.eup %2077 }
 0x52b   : > { %v998_v33 = vpop.xlane.xlu0 %997  ;;  %v1009_v34 = vmul.f32 %v2078_v32, %v2062_v10 }
 0x52c   : > { %v1122_v35 = vpop.permute.xlu1 %1121  ;;  %2087 = vrcp.f32 %v998_v33 }
 0x52d   : > { %1934 = vmatpush3.bf16.msra.mxu1 %v1122_v35  ;;  %1017 = vst.msk [vmem:[%s2356_s23 + $0x10] sm:$0xff] %vm926_vm7, %v1009_v34 }
 0x52e   : > { %v2080_v36 = vpop.eup %2079  ;;  %1945 = vmatprep.subr.bf16.mxu1 %v2113_v15 }
 0x52f   : > { %v2082_v37 = vpop.eup %2081  ;;  %v1010_v38 = vmul.f32 %v2080_v36, %v2066_v13  ;;  %v1075_v39 = vpop.permute.xlu0 %1074 }
 0x530   : > { %v1011_v40 = vmul.f32 %v2082_v37, %v2064_v12  ;;  %1928 = vmatpush3.bf16.msra.mxu0 %v1075_v39  ;;  %v1169_v46 = vpop.permute.xlu1 %1168 }
 0x531   : > { %1018 = vst.msk [vmem:[%s2356_s23 + $0x18] sm:$0xff] %vm926_vm7, %v1010_v38  ;;  %v1024_v41 = vpack.c.bf16 %v1010_v38, %v1009_v34  ;;  %1939 = vmatprep.subr.bf16.mxu0 %v2113_v15 }
 0x532   : > { %v2084_v43 = vpop.eup %2083  ;;  %1019 = vst.msk [vmem:[%s2356_s23 + $0x20] sm:$0xff] %vm926_vm7, %v1011_v40 }
 0x533   : > { %v2086_v44 = vpop.eup %2085  ;;  %v1012_v45 = vmul.f32 %v2084_v43, %v2068_v17  ;;  %1930 = vmatmul.mubr.msk.bf16.vlgmr.msra.gmra.mrb[16].mxu0 %vm926_vm7, %v1024_v41 }
 0x534   : > { %v1013_v47 = vmul.f32 %v2086_v44, %v2070_v18  ;;  %1940 = vmatpush3.bf16.msra.mxu0 %v1169_v46  ;;  %1941 = vmatprep.mubr.msk.bf16.mxu0 %vm2114_vm1, %v2113_v15 }
 0x535   : > { %1020 = vst.msk [vmem:[%s2356_s23 + $0x28] sm:$0xff] %vm926_vm7, %v1012_v45  ;;  %v1025_v48 = vpack.c.bf16 %v1012_v45, %v1011_v40  ;;  %1953 = vmatprep.subr.bf16.mxu0 %v2113_v15 }
 0x536   : > { %v2088_v51 = vpop.eup %2087  ;;  %1021 = vst.msk [vmem:[%s2356_s23 + $0x30] sm:$0xff] %vm926_vm7, %v1013_v47 }
 0x537   : > { %v1014_v52 = vmul.f32 %v2088_v51, %v2072_v21  ;;  %1936 = vmatmul.mubr.msk.bf16.vlgmr.msra.gmra.mrb[8].mxu1 %vm926_vm7, %v1025_v48  ;;  %v2042_v48 = vld [vmem:[%s2514_s9 + $0x8] sm:$0xff]  }
 0x538   : > { %1949 = vmatprep.mubr.msk.bf16.mxu1 %vm2114_vm1, %v2113_v15  ;;  %1946 = vmatpush3.bf16.msra.mxu1 %v2039_v58 }
 0x539   : > { %1022 = vst.msk [vmem:[%s2356_s23 + $0x38] sm:$0xff] %vm926_vm7, %v1014_v52  ;;  %v1026_v53 = vpack.c.bf16 %v1014_v52, %v1013_v47  ;;  %1947 = vmatprep.subr.bf16.mxu1 %v2113_v15  ;;  %v2041_v47 = vld [vmem:[%s2514_s9] sm:$0xff]   ;;  %s556_s23 = scalar_lea.vmem %s2521_s16, %s1849_s26 }
 0x53b   : > { %1942 = vmatmul.mubr.msk.bf16.vlgmr.msra.gmra.mrb[20].mxu0 %vm926_vm7, %v1026_v53 }
 0x53c   : > { %1957 = vmatprep.mubr.msk.bf16.mxu0 %vm2114_vm1, %v2113_v15  ;;  %1948 = vmatpush3.bf16.msra.mxu1 %v2040_v61 }
 0x53d   : > { %1961 = vmatprep.subr.bf16.mxu1 %v2113_v15  ;;  %1954 = vmatpush3.bf16.msra.mxu0 %v2041_v47 }
 0x53e   : > { %1955 = vmatprep.subr.bf16.mxu0 %v2113_v15 }
 0x541   : > { %1956 = vmatpush3.bf16.msra.mxu0 %v2042_v48 }
 0x542   : > { %1981 = vmatprep.subr.bf16.mxu0 %v2113_v15 }
 0x5a1   : > { %v1067_v55 = vpop.f32.mrb[4].mxu1 }
 0x5a2   : > { %v1925_v56 = vpop.f32.mrb[5].mxu1 }
 0x5a3   : > { %v1070_v42 = vpop.f32.mrb[6].mxu1 }
 0x5a4   : > { %v1926_v57 = vpop.f32.mrb[7].mxu1 }
 0x606   : > { %v1114_v59 = vpop.f32.mrb[16].mxu0 }
 0x607   : > { %v1931_v60 = vpop.f32.mrb[17].mxu0 }
 0x608   : > { %v1117_v62 = vpop.f32.mrb[18].mxu0 }
 0x609   : > { %v2022_v63 = vpack.i.bf16 %v1117_v62, %v1114_v59  ;;  %v1932_v2 = vpop.f32.mrb[19].mxu0  ;;  %v1823_v59 = vld [vmem:[%s2512_s7] ss:$0 sm:$0xff] }
 0x60a   : > { %v1161_v3 = vpop.f32.mrb[8].mxu1 }
 0x60b   : > { %v1937_v4 = vpop.f32.mrb[9].mxu1  ;;  %2023 = vrot.lane.b32.xlu1 %v2022_v63, %s2120_s30  ;;  %v1824_v63 = vld [vmem:[%s2513_s8] ss:$0 sm:$0xff] }
 0x60c   : > { %v1164_v5 = vpop.f32.mrb[10].mxu1 }
 0x60d   : > { %v2027_v6 = vpack.i.bf16 %v1164_v5, %v1161_v3  ;;  %v1938_v7 = vpop.f32.mrb[11].mxu1 }
 0x60e   : > { %v1208_v8 = vpop.f32.mrb[20].mxu0  ;;  %v2044_v7 = vld [vmem:[%s2516_s11 + $0x8] sm:$0xff]  }
 0x60f   : > { %2028 = vrot.lane.b32.xlu0 %v2027_v6, %s2121_s18  ;;  %v1943_v9 = vpop.f32.mrb[21].mxu0  ;;  %v2043_v6 = vld [vmem:[%s2516_s11] sm:$0xff]  }
 0x610   : > { %v1211_v10 = vpop.f32.mrb[22].mxu0  ;;  %v2046_v9 = vld [vmem:[%s2516_s11 + $0x18] sm:$0xff]  }
 0x611   : > { %v2032_v11 = vpack.i.bf16 %v1211_v10, %v1208_v8  ;;  %v1944_v12 = vpop.f32.mrb[23].mxu0  ;;  %v2045_v8 = vld [vmem:[%s2516_s11 + $0x10] sm:$0xff]   ;;  %v2047_v10 = vld [vmem:[%s2516_s11 + $0x20] sm:$0xff]  }
 0x612   : > { %v2049_v12 = vld [vmem:[%s2516_s11 + $0x30] sm:$0xff]  }
 0x613   : > { %2033 = vrot.lane.b32.xlu1 %v2032_v11, %s2122_s19  ;;  %v2048_v11 = vld [vmem:[%s2516_s11 + $0x28] sm:$0xff]  }
 0x67d   : > { %v2024_v13 = vpop.permute.xlu1 %2023 }
 0x67e   : > { %v2026_v16 = vunpack.i.h.bf16 %v2024_v13  ;;  %v2025_v17 = vunpack.i.l.bf16 %v2024_v13  ;;  %v2050_v13 = vld [vmem:[%s2516_s11 + $0x38] sm:$0xff]  }
 0x680   : > { %v1240_v21 = vsel %vm716_vm2, %v1070_v42, %v2026_v16  ;;  %v1239_v22 = vsel %vm716_vm2, %v1067_v55, %v2025_v17 }
 0x681   : > { %v2029_v14 = vpop.permute.xlu0 %2028 }
 0x682   : > { %v2031_v18 = vunpack.i.h.bf16 %v2029_v14  ;;  %v2030_v19 = vunpack.i.l.bf16 %v2029_v14  ;;  %v1825_v14 = vld [vmem:[%s2515_s10] ss:$0 sm:$0xff] }
 0x684   : > { %v1241_v25 = vsel %vm926_vm7, %v1239_v22, %v2030_v19  ;;  %v1242_v26 = vsel %vm926_vm7, %v1240_v21, %v2031_v18 }
 0x685   : > { %v2034_v20 = vpop.permute.xlu1 %2033 }
 0x686   : > { %v2036_v23 = vunpack.i.h.bf16 %v2034_v20  ;;  %v2035_v24 = vunpack.i.l.bf16 %v2034_v20 }
 0x688   : > { %v1245_v49 = vsel %vm1243_vm9, %v1242_v26, %v2036_v23  ;;  %v1244_v54 = vsel %vm1243_vm9, %v1241_v25, %v2035_v24 }
 0x689   : > { %v1246_v27 = vpack.c.bf16 %v1245_v49, %v1244_v54 }
 0x68b   : > { %1950 = vmatmul.mubr.msk.bf16.vlgmr.msra.gmra.mrb[12].mxu1 %vm567_vm0, %v1246_v27 }
 0x68c   : > { %1977 = vmatprep.mubr.msk.bf16.mxu1 %vm2114_vm1, %v2113_v15  ;;  %1962 = vmatpush3.bf16.msra.mxu1 %v2043_v6 }
 0x68d   : > { %1963 = vmatprep.subr.bf16.mxu1 %v2113_v15 }
 0x690   : > { %1964 = vmatpush3.bf16.msra.mxu1 %v2044_v7 }
 0x691   : > { %1965 = vmatprep.subr.bf16.mxu1 %v2113_v15 }
 0x694   : > { %1966 = vmatpush3.bf16.msra.mxu1 %v2045_v8 }
 0x695   : > { %1967 = vmatprep.subr.bf16.mxu1 %v2113_v15 }
 0x698   : > { %1968 = vmatpush3.bf16.msra.mxu1 %v2046_v9 }
 0x699   : > { %1969 = vmatprep.subr.bf16.mxu1 %v2113_v15 }
 0x69c   : > { %1970 = vmatpush3.bf16.msra.mxu1 %v2047_v10 }
 0x69d   : > { %1971 = vmatprep.subr.bf16.mxu1 %v2113_v15 }
 0x6a0   : > { %1972 = vmatpush3.bf16.msra.mxu1 %v2048_v11 }
 0x6a1   : > { %1973 = vmatprep.subr.bf16.mxu1 %v2113_v15 }
 0x6a4   : > { %1974 = vmatpush3.bf16.msra.mxu1 %v2049_v12  ;;  %v1841_v12 = vld [vmem:[%s2517_s12] ss:$0 sm:$0xff] }
 0x6a5   : > { %1975 = vmatprep.subr.bf16.mxu1 %v2113_v15 }
 0x6a8   : > { %1976 = vmatpush3.bf16.msra.mxu1 %v2050_v13 }
 0x75e   : > { %v1300_v50 = vpop.f32.mrb[12].mxu1 }
 0x75f   : > { %v1307_v29 = vadd.f32 %v1300_v50, %v2229_v0  ;;  %v1951_v30 = vpop.f32.mrb[13].mxu1 }
 0x760   : > { %v1303_v31 = vpop.f32.mrb[14].mxu1 }
 0x761   : > { %v2408_v32 = vadd.f32 %v1822_v28, %v1307_v29  ;;  %v1308_v33 = vadd.f32 %v1303_v31, %v2231_v1  ;;  %v1952_v34 = vpop.f32.mrb[15].mxu1 }
 0x763   : > { %v2411_v35 = vadd.f32 %v1822_v28, %v1308_v33  ;;  %v1320_v36 = vsel %vm567_vm0, %v2408_v32, 0.0 }
 0x764   : > { %1321 = vadd.xlane.f32.xlu0 %v1320_v36 }
 0x765   : > { %v1323_v37 = vsel %vm567_vm0, %v2411_v35, 0.0 }
 0x766   : > { %1324 = vadd.xlane.f32.xlu1 %v1323_v37 }
 0x7f1   : > { %v1322_v38 = vpop.xlane.xlu0 %1321 }
 0x7f2   : > { %v1326_v39 = vmul.f32 0.03125, %v1322_v38 }
 0x7f3   : > { %v1325_v0 = vpop.xlane.xlu1 %1324 }
 0x7f4   : > { %v1328_v40 = vsub.f32 %v2408_v32, %v1326_v39  ;;  %v1327_v41 = vmul.f32 0.03125, %v1325_v0 }
 0x7f6   : > { %v1329_v43 = vsub.f32 %v2411_v35, %v1327_v41  ;;  %v1330_v1 = vmul.f32 %v1328_v40, %v1328_v40 }
 0x7f8   : > { %v1332_v44 = vsel %vm567_vm0, %v1330_v1, 0.0  ;;  %v1331_v45 = vmul.f32 %v1329_v43, %v1329_v43 }
 0x7f9   : > { %1333 = vadd.xlane.f32.xlu0 %v1332_v44 }
 0x7fa   : > { %v1335_v46 = vsel %vm567_vm0, %v1331_v45, 0.0 }
 0x7fd   : > { %1336 = vadd.xlane.f32.xlu0 %v1335_v46 }
 0x886   : > { %v1334_v51 = vpop.xlane.xlu0 %1333 }
 0x887   : > { %v1338_v52 = vmul.f32 0.03125, %v1334_v51 }
 0x889   : > { %v1340_v53 = vadd.f32 1e-05, %v1338_v52 }
 0x88a   : > { %v1337_v55 = vpop.xlane.xlu0 %1336 }
 0x88b   : > { %2089 = vrsqrt.f32 %v1340_v53  ;;  %v1339_v56 = vmul.f32 0.03125, %v1337_v55 }
 0x88d   : > { %v1341_v42 = vadd.f32 1e-05, %v1339_v56 }
 0x88f   : > { %2091 = vrsqrt.f32 %v1341_v42 }
 0x895   : > { %v2090_v57 = vpop.eup %2089 }
 0x896   : > { %v1344_v58 = vmul.f32 %v2090_v57, %v1328_v40 }
 0x898   : > { %v1352_v61 = vmul.f32 %v1823_v59, %v1344_v58 }
 0x899   : > { %v2092_v60 = vpop.eup %2091 }
 0x89a   : > { %v1345_v62 = vmul.f32 %v2092_v60, %v1329_v43  ;;  %v1360_v3 = vadd.f32 %v1824_v63, %v1352_v61 }
 0x89c   : > { %v1353_v2 = vmul.f32 %v1823_v59, %v1345_v62 }
 0x89e   : > { %v1361_v4 = vadd.f32 %v1824_v63, %v1353_v2 }
 0x8a0   : > { %v1362_v5 = vpack.c.bf16 %v1361_v4, %v1360_v3 }
 0x8a2   : > { %1958 = vmatmul.mubr.msk.bf16.vlgmr.msra.gmra.mrb[24].mxu0 %vm567_vm0, %v1362_v5 }
 0x8a3   : > { %1985 = vmatprep.mubr.msk.bf16.mxu0 %vm2114_vm1, %v2113_v15 }
 0x975   : > { %v1423_v16 = vpop.f32.mrb[24].mxu0 }
 0x976   : > { %v1424_v17 = vadd.f32 %v1825_v14, %v1423_v16  ;;  %v1959_v18 = vpop.f32.mrb[25].mxu0 }
 0x977   : > { %v1426_v19 = vpop.f32.mrb[26].mxu0 }
 0x978   : > { %v1432_v20 = vmul.f32 0.70710677, %v1424_v17  ;;  %v1427_v21 = vadd.f32 %v1825_v14, %v1426_v19  ;;  %v1960_v22 = vpop.f32.mrb[27].mxu0  ;;  %v1430_v5 = vmul.f32 0.5, %v1424_v17 }
 0x97a   : > { %v1434_v23 = vand.u32 2147483647, %v1432_v20  ;;  %v1433_v24 = vmul.f32 0.70710677, %v1427_v21  ;;  %vm1472_vm10 = vcmp.ge.f32.partialorder %v1432_v20, 0.0  ;;  %v1431_v6 = vmul.f32 0.5, %v1427_v21 }
 0x97c   : > { %v1436_v25 = vmul.f32 0.3275911, %v1434_v23  ;;  %v1435_v26 = vand.u32 2147483647, %v1433_v24  ;;  %v1460_v50 = vsub.f32 0.0, %v1434_v23  ;;  %vm1473_vm11 = vcmp.ge.f32.partialorder %v1433_v24, 0.0 }
 0x97e   : > { %v1438_v49 = vadd.f32 1.0, %v1436_v25  ;;  %v1437_v54 = vmul.f32 0.3275911, %v1435_v26  ;;  %v1461_v28 = vsub.f32 0.0, %v1435_v26  ;;  %v1462_v30 = vmul.f32 %v1460_v50, %v1434_v23 }
 0x980   : > { %2093 = vrcp.f32 %v1438_v49  ;;  %v1439_v27 = vadd.f32 1.0, %v1437_v54  ;;  %v1463_v36 = vmul.f32 %v1461_v28, %v1435_v26  ;;  %v1464_v37 = vmul.f32 1.442695, %v1462_v30  ;;  %v2051_v28 = vld [vmem:[%s2520_s15] sm:$0xff]  }
 0x981   : > { %1982 = vmatpush3.bf16.msra.mxu0 %v2051_v28 }
 0x982   : > { %2095 = vrcp.f32 %v1439_v27  ;;  %v1466_v41 = vmul.f32 1.442695, %v1463_v36  ;;  %1983 = vmatprep.subr.bf16.mxu0 %v2113_v15 }
 0x983   : > { %2097 = vpow2.f32 %v1464_v37 }
 0x984   : > { %2099 = vpow2.f32 %v1466_v41 }
 0x98a   : > { %v2094_v29 = vpop.eup %2093 }
 0x98b   : > { %v1442_v31 = vmul.f32 1.0614054, %v2094_v29 }
 0x98c   : > { %v2096_v33 = vpop.eup %2095 }
 0x98d   : > { %v1829_v34 = vadd.f32 -1.4531521, %v1442_v31  ;;  %v1443_v38 = vmul.f32 1.0614054, %v2096_v33  ;;  %v2098_v55 = vpop.eup %2097 }
 0x98e   : > { %v2100_v58 = vpop.eup %2099 }
 0x98f   : > { %v1446_v39 = vmul.f32 %v2094_v29, %v1829_v34  ;;  %v1830_v0 = vadd.f32 -1.4531521, %v1443_v38 }
 0x991   : > { %v1448_v40 = vadd.f32 1.4214138, %v1446_v39  ;;  %v1447_v43 = vmul.f32 %v2096_v33, %v1830_v0  ;;  %v1842_v39 = vld [vmem:[%s2518_s13] ss:$0 sm:$0xff] }
 0x993   : > { %v1450_v1 = vmul.f32 %v2094_v29, %v1448_v40  ;;  %v1449_v44 = vadd.f32 1.4214138, %v1447_v43  ;;  %v1843_v43 = vld [vmem:[%s2519_s14] ss:$0 sm:$0xff] }
 0x995   : > { %v1831_v45 = vadd.f32 -0.28449672, %v1450_v1  ;;  %v1451_v46 = vmul.f32 %v2096_v33, %v1449_v44 }
 0x997   : > { %v1454_v47 = vmul.f32 %v2094_v29, %v1831_v45  ;;  %v1832_v48 = vadd.f32 -0.28449672, %v1451_v46 }
 0x999   : > { %v1456_v51 = vadd.f32 0.2548296, %v1454_v47  ;;  %v1455_v52 = vmul.f32 %v2096_v33, %v1832_v48 }
 0x99b   : > { %v1458_v53 = vmul.f32 %v2094_v29, %v1456_v51  ;;  %v1457_v56 = vadd.f32 0.2548296, %v1455_v52  ;;  %v2052_v29 = vld [vmem:[%s2520_s15 + $0x8] sm:$0xff]  }
 0x99c   : > { %1984 = vmatpush3.bf16.msra.mxu0 %v2052_v29 }
 0x99d   : > { %v1468_v42 = vmul.f32 %v2098_v55, %v1458_v53  ;;  %v1459_v57 = vmul.f32 %v2096_v33, %v1457_v56 }
 0x99f   : > { %v1470_v59 = vsub.f32 1.0, %v1468_v42  ;;  %v1469_v60 = vmul.f32 %v2100_v58, %v1459_v57 }
 0x9a1   : > { %v1474_v61 = vsub.f32 0.0, %v1470_v59  ;;  %v1471_v62 = vsub.f32 1.0, %v1469_v60 }
 0x9a3   : > { %v1476_v63 = vsel %vm1472_vm10, %v1470_v59, %v1474_v61  ;;  %v1475_v2 = vsub.f32 0.0, %v1471_v62 }
 0x9a4   : > { %v1478_v3 = vadd.f32 1.0, %v1476_v63 }
 0x9a5   : > { %v1477_v4 = vsel %vm1473_vm11, %v1471_v62, %v1475_v2 }
 0x9a6   : > { %v1479_v7 = vadd.f32 1.0, %v1477_v4  ;;  %v1480_v8 = vmul.f32 %v1478_v3, %v1430_v5 }
 0x9a8   : > { %v1481_v9 = vmul.f32 %v1479_v7, %v1431_v6 }
 0x9aa   : > { %v1482_v10 = vpack.c.bf16 %v1481_v9, %v1480_v8 }
 0x9ac   : > { %1978 = vmatmul.mubr.bf16.vlgmr.msra.gmra.mrb[16].mxu1 %v1482_v10 }
 0xa7f   : > { %v1581_v11 = vpop.f32.mrb[16].mxu1 }
 0xa80   : > { %v1588_v13 = vadd.f32 %v1581_v11, %v2408_v32  ;;  %v1979_v14 = vpop.f32.mrb[17].mxu1 }
 0xa81   : > { %v1584_v16 = vpop.f32.mrb[18].mxu1 }
 0xa82   : > { %v1589_v18 = vadd.f32 %v1584_v16, %v2411_v35  ;;  %v1980_v19 = vpop.f32.mrb[19].mxu1  ;;  %v1597_v20 = vadd.f32 %v1841_v12, %v1588_v13 }
 0xa84   : > { %v1601_v17 = vsel %vm567_vm0, %v1597_v20, 0.0  ;;  %v1598_v21 = vadd.f32 %v1841_v12, %v1589_v18 }
 0xa85   : > { %1602 = vadd.xlane.f32.xlu0 %v1601_v17 }
 0xa86   : > { %v1604_v22 = vsel %vm567_vm0, %v1598_v21, 0.0 }
 0xa87   : > { %1605 = vadd.xlane.f32.xlu1 %v1604_v22 }
 0xb12   : > { %v1603_v23 = vpop.xlane.xlu0 %1602 }
 0xb13   : > { %v1607_v24 = vmul.f32 0.03125, %v1603_v23 }
 0xb14   : > { %v1606_v25 = vpop.xlane.xlu1 %1605 }
 0xb15   : > { %v1609_v26 = vsub.f32 %v1597_v20, %v1607_v24  ;;  %v1608_v49 = vmul.f32 0.03125, %v1606_v25 }
 0xb17   : > { %v1610_v54 = vsub.f32 %v1598_v21, %v1608_v49  ;;  %v1611_v32 = vmul.f32 %v1609_v26, %v1609_v26 }
 0xb19   : > { %v1613_v27 = vsel %vm567_vm0, %v1611_v32, 0.0  ;;  %v1612_v50 = vmul.f32 %v1610_v54, %v1610_v54 }
 0xb1a   : > { %1614 = vadd.xlane.f32.xlu0 %v1613_v27 }
 0xb1b   : > { %v1616_v35 = vsel %vm567_vm0, %v1612_v50, 0.0 }
 0xb1c   : > { %1617 = vadd.xlane.f32.xlu1 %v1616_v35 }
 0xba7   : > { %v1615_v30 = vpop.xlane.xlu0 %1614 }
 0xba8   : > { %v1619_v31 = vmul.f32 0.03125, %v1615_v30 }
 0xba9   : > { %v1618_v33 = vpop.xlane.xlu1 %1617 }
 0xbaa   : > { %v1621_v34 = vadd.f32 1e-05, %v1619_v31  ;;  %v1620_v36 = vmul.f32 0.03125, %v1618_v33 }
 0xbac   : > { %2101 = vrsqrt.f32 %v1621_v34  ;;  %v1622_v37 = vadd.f32 1e-05, %v1620_v36 }
 0xbae   : > { %2103 = vrsqrt.f32 %v1622_v37 }
 0xbb6   : > { %v2102_v38 = vpop.eup %2101 }
 0xbb7   : > { %v1625_v15 = vmul.f32 %v2102_v38, %v1609_v26 }
 0xbb8   : > { %v2104_v0 = vpop.eup %2103 }
 0xbb9   : > { %v1633_v40 = vmul.f32 %v1842_v39, %v1625_v15  ;;  %v1626_v41 = vmul.f32 %v2104_v0, %v1610_v54 }
 0xbbb   : > { %v1634_v1 = vmul.f32 %v1842_v39, %v1626_v41  ;;  %v1641_v44 = vadd.f32 %v1843_v43, %v1633_v40 }
 0xbbd   : > { %v1642_v45 = vadd.f32 %v1843_v43, %v1634_v1 }
 0xbbf   : > { %v1643_v46 = vpack.c.bf16 %v1642_v45, %v1641_v44 }
 0xbc1   : > { %1986 = vmatmul.mubr.msk.bf16.vlgmr.msra.gmra.mrb[28].mxu0 %vm567_vm0, %v1643_v46 }
 0xc94   : > { %v1697_v47 = vpop.f32.mrb[28].mxu0 }
 0xc95   : > { %1704 = vst.msk [vmem:[%s556_s23] sm:$0xff] %vm926_vm7, %v1697_v47  ;;  %v1987_v48 = vpop.f32.mrb[29].mxu0 }
 0xc96   : > { %v1700_v51 = vpop.f32.mrb[30].mxu0 }
 0xc97   : > { %1705 = vst.msk [vmem:[%s556_s23 + $0x8] sm:$0xff] %vm926_vm7, %v1700_v51  ;;  %v1988_v52 = vpop.f32.mrb[31].mxu0 }
 0xc98 PF: > { %s28_s24 = sadd.s32 1, %s2111_s24  }
 0xc99   : > { %p25_p4 = scmp.ge.s32.totalorder %s28_s24, 4  }
 0xc9b   :  { %27 = sbr.rel (!%p25_p4) target bundleno = 3 (0x3), region = 126 }

</bundles_post_ra>
